<compile_context>
chip_gen: v5e
topology: v5e:2x2
jax: 0.10.0
libtpu: 0.0.40
codegen_flags: <defaults>
</compile_context>

<pallas_src>
import jax
import jax.numpy as jnp
from jax.experimental import pallas as pl
from jax.experimental.pallas import tpu as pltpu

_KMAX = 5       # largest conv width (3, 4, 5)
_LANES = 128    # fused channel block: 16 + 32 + 64 = 112, padded to 128 lanes
_V_LANES = 128  # one-hot vocab block (requires vocab_size <= 128)
_TB = 256       # batch tile: M = TB*S rows per matmul (multiple of 256)
_USE_CORE_PARALLEL = False  # set True on v7x (2 TensorCores per chip)


def _cnn_kernel(ids_ref, proj_ref, bias_ref, mask_ref, feat_ref,
                fcw_ref, fcb_ref, o_ref):
    """One batch tile: one-hot gather == conv, ReLU, masked max-pool, fused FC."""
    TB, S = ids_ref.shape
    KMAX, V_LANES, LANES = proj_ref.shape

    # Per-position one-hot blocks (position-major rows): oh[s][b, v] = (tok[b,s]==v).
    ids = ids_ref[...]                                            # (TB, S) int32
    vocab = jax.lax.broadcasted_iota(jnp.int32, (TB, V_LANES), 1)
    oh = [(ids[:, s:s + 1] == vocab).astype(jnp.bfloat16) for s in range(S)]

    # Fused embedding-gather + conv:
    #   acc[p*TB + b, c] = sum_j proj[tok[b, p+j], j, c]  (proj = emb @ W_j).
    # The "+j" shift is a rotation of the per-position block order (sublane-
    # aligned concat); wrapped / out-of-window rows are masked away below.
    def rotated(j):
        return jnp.concatenate(oh[j:] + oh[:j], axis=0)           # (S*TB, V_LANES)

    acc = jnp.dot(rotated(0), proj_ref[0], preferred_element_type=jnp.float32)
    for j in range(1, KMAX):
        acc = acc + jnp.dot(rotated(j), proj_ref[j],
                            preferred_element_type=jnp.float32)

    # Bias + ReLU, mask invalid window positions (precomputed mask; ReLU >= 0 so
    # masking to 0 preserves each branch's valid-window max), max-pool over pos.
    acc = jnp.maximum(acc + bias_ref[...], 0.0)                   # (S*TB, LANES)
    scores = acc.reshape(S, TB, LANES)
    pooled = jnp.max(scores * mask_ref[...], axis=0)              # (TB, LANES)

    # Extra features ride in the padding lanes [ctot, ctot+F) (zeroed by mask).
    pooled = pooled + feat_ref[...]

    # Final Linear as (1, LANES) x (TB, LANES)^T -> lane-dense (1, TB) row:
    # the MXU gives the transposed (unmasked-vst) output layout for free.
    # TODO(synk): nn.Dropout is inference-mode identity (no RNG mask applied).
    y = jnp.einsum("oc,bc->ob", fcw_ref[...], pooled.astype(jnp.bfloat16),
                   preferred_element_type=jnp.float32)            # (1, TB)
    o_ref[...] = (y + fcb_ref[...]).reshape(o_ref.shape)


def _pack_params(params, S):
    """Pre-project embeddings through the fused conv weights; pack bias/FC/mask."""
    emb = params["embedding"].astype(jnp.float32)
    V, E = emb.shape
    c3 = params["b3"].shape[1]
    c4 = params["b4"].shape[1]
    c5 = params["b5"].shape[1]
    ctot = c3 + c4 + c5
    F = params["fc_w"].shape[0] - ctot
    assert V <= _V_LANES, "one-hot gather needs vocab_size <= 128"
    # TODO(synk): for larger vocabularies, split the one-hot over several 128-lane
    # blocks (or fall back to a DMA gather); V=50 fits a single block here.
    assert ctot <= _LANES and ctot + F <= _LANES, "channels + features must fit 128 lanes"

    # Per-offset fused conv weights W_j: (KMAX, E, LANES); a branch of width k
    # only populates offsets j < k, so wider offsets contribute zero to it.
    w_all = jnp.zeros((_KMAX, E, _LANES), jnp.float32)
    for w, k, off, C in ((params["w3"], 3, 0, c3),
                         (params["w4"], 4, c3, c4),
                         (params["w5"], 5, c3 + c4, c5)):
        wk = w.reshape(C, k, E)                      # torch Conv2d (C,1,k,E) flattened
        for j in range(k):
            w_all = w_all.at[j, :, off:off + C].set(wk[:, j, :].T)

    # proj[j, v, :] = emb[v] @ W_j  (computed in f32, stored bf16 for the MXU).
    proj = jnp.einsum("ve,jec->jvc", emb, w_all)                  # (KMAX, V, LANES)
    proj = jnp.pad(proj, ((0, 0), (0, _V_LANES - V), (0, 0)))     # OOB ids -> zero rows
    proj = proj.astype(jnp.bfloat16)

    bias = jnp.zeros((1, _LANES), jnp.float32)
    bias = bias.at[0, :c3].set(params["b3"][0])
    bias = bias.at[0, c3:c3 + c4].set(params["b4"][0])
    bias = bias.at[0, c3 + c4:ctot].set(params["b5"][0])

    # Fused FC weight row: conv lanes [0, ctot), extra-feature lanes [ctot, ctot+F).
    fc_w = params["fc_w"][:, 0]
    fcw = jnp.zeros((1, _LANES), jnp.float32)
    fcw = fcw.at[0, :ctot].set(fc_w[:ctot])
    fcw = fcw.at[0, ctot:ctot + F].set(fc_w[ctot:])
    fcw = fcw.astype(jnp.bfloat16)

    # Valid-window mask, hoisted out of the kernel: (S, 1, LANES), 1.0 where
    # start position p is valid for the branch owning lane c, else 0.0.
    lane = jnp.arange(_LANES)
    k_of_lane = jnp.where(lane < c3, 3,
                jnp.where(lane < c3 + c4, 4,
                jnp.where(lane < ctot, 5, S + 1)))                # pad lanes: never valid
    pos = jnp.arange(S)
    mask = ((pos[:, None] + k_of_lane[None, :]) <= S).astype(jnp.float32)
    mask = mask[:, None, :]                                       # (S, 1, LANES)

    return proj, bias, mask, fcw, ctot, F


@jax.jit
def conv_nn_forward(token_ids, lengths, feat, params):
    # `lengths` mirrors the torch signature but the reference forward never uses it.
    del lengths
    B, S = token_ids.shape
    assert S >= 5, "conv widths up to 5 require sequence length S >= 5"

    proj, bias, mask, fcw, ctot, F = _pack_params(params, S)
    fcb = params["fc_b"].astype(jnp.float32).reshape(1, 1)

    TB = _TB
    B_pad = ((B + TB - 1) // TB) * TB
    ids = jnp.zeros((B_pad, S), jnp.int32).at[:B].set(token_ids.astype(jnp.int32))
    # Extra features pre-placed in the FC padding lanes; padded batch rows are 0.
    feat_p = jnp.zeros((B_pad, _LANES), jnp.float32).at[:B, ctot:ctot + F].set(
        feat.astype(jnp.float32))

    sem = pltpu.CORE_PARALLEL if _USE_CORE_PARALLEL else pltpu.PARALLEL
    out = pl.pallas_call(
        _cnn_kernel,
        out_shape=jax.ShapeDtypeStruct((B_pad // TB, 1, TB), jnp.float32),
        grid=(B_pad // TB,),
        in_specs=[
            pl.BlockSpec((TB, S), lambda i: (i, 0)),                       # token ids (per tile)
            pl.BlockSpec((_KMAX, _V_LANES, _LANES), lambda i: (0, 0, 0)),  # proj (VMEM-resident)
            pl.BlockSpec((1, _LANES), lambda i: (0, 0)),                   # fused conv bias
            pl.BlockSpec((S, 1, _LANES), lambda i: (0, 0, 0)),             # valid-window mask
            pl.BlockSpec((TB, _LANES), lambda i: (i, 0)),                  # feat (in pad lanes)
            pl.BlockSpec((1, _LANES), lambda i: (0, 0)),                   # fused FC weight row
            pl.BlockSpec((1, 1), lambda i: (0, 0)),                        # FC bias
        ],
        out_specs=pl.BlockSpec((1, 1, TB), lambda i: (i, 0, 0)),
        compiler_params=pltpu.CompilerParams(
            dimension_semantics=(sem,),
            vmem_limit_bytes=32 * 1024 * 1024),
    )(ids, proj, bias, mask, feat_p, fcw, fcb)
    # Lane-dense (grid, 1, TB) rows -> flat (B,)  (== torch .squeeze() for B > 1;
    # for B == 1 torch returns a 0-d scalar, we return shape (1,)).
    return out.reshape(-1)[:B]


def _reference_forward(token_ids, feat, params):
    """Plain-JAX f32 reference of the torch forward."""
    E = params["embedding"].shape[1]
    S = token_ids.shape[1]
    x = params["embedding"][token_ids].astype(jnp.float32)        # (B, S, E)

    def branch(w, b, k):
        C = w.shape[0]
        wk = w.reshape(C, k, E)
        outs = [jnp.einsum("bke,cke->bc", x[:, p:p + k, :], wk)
                for p in range(S - k + 1)]
        z = jnp.stack(outs, axis=1) + b[:, None, :]
        return jnp.max(jnp.maximum(z, 0.0), axis=1)

    x3 = branch(params["w3"], params["b3"], 3)
    x4 = branch(params["w4"], params["b4"], 4)
    x5 = branch(params["w5"], params["b5"], 5)
    h = jnp.concatenate([x3, x4, x5, feat], axis=1)
    return h @ params["fc_w"][:, 0] + params["fc_b"][0, 0]


def init_params(vocab_size=50, embedding_dim=32, channel_sizes=(16, 32, 64),
                extra_dim=4, seed=0):
    keys = jax.random.split(jax.random.PRNGKey(seed), 9)
    E = embedding_dim
    c3, c4, c5 = channel_sizes
    total = sum(channel_sizes) + extra_dim
    return {
        "embedding": 0.1 * jax.random.normal(keys[0], (vocab_size, E), jnp.float32),
        # Conv2d(1, C, (k, E)) weight (C, 1, k, E) stored flattened as (C, k*E).
        "w3": 0.1 * jax.random.normal(keys[1], (c3, 3 * E), jnp.float32),
        "b3": 0.1 * jax.random.normal(keys[2], (1, c3), jnp.float32),
        "w4": 0.1 * jax.random.normal(keys[3], (c4, 4 * E), jnp.float32),
        "b4": 0.1 * jax.random.normal(keys[4], (1, c4), jnp.float32),
        "w5": 0.1 * jax.random.normal(keys[5], (c5, 5 * E), jnp.float32),
        "b5": 0.1 * jax.random.normal(keys[6], (1, c5), jnp.float32),
        # Linear(sum(channels) + extra_dim, 1)
        "fc_w": 0.1 * jax.random.normal(keys[7], (total, 1), jnp.float32),
        "fc_b": 0.1 * jax.random.normal(keys[8], (1, 1), jnp.float32),
    }


if __name__ == "__main__":
    B, S, E = 2, 8, 32
    vocab = 50
    extra_dim = 4

    params = init_params(vocab_size=vocab, embedding_dim=E, extra_dim=extra_dim)

    key = jax.random.PRNGKey(0)
    k_tok, k_feat = jax.random.split(key)
    token_ids = jax.random.randint(k_tok, (B, S), 0, vocab, dtype=jnp.int32)
    lengths = jnp.full((B,), S, dtype=jnp.int32)
    feat = jax.random.normal(k_feat, (B, extra_dim), jnp.float32)

    out = conv_nn_forward(token_ids, lengths, feat, params)
    jax.block_until_ready(out)
    assert out.shape == (B,), out.shape

    ref = _reference_forward(token_ids, feat, params)
    assert jnp.allclose(out, ref, atol=2e-3, rtol=2e-3), (out, ref)
    print("KERNEL_OK")
</pallas_src>

<mosaic_0001>
module attributes {stable_mosaic.version = 11 : i64} {
  func.func @_cnn_kernel(%arg0: i32, %arg1: memref<256x8xi32, #tpu.memory_space<vmem>>, %arg2: memref<5x128x128xbf16, #tpu.memory_space<vmem>>, %arg3: memref<1x128xf32, #tpu.memory_space<vmem>>, %arg4: memref<8x1x128xf32, #tpu.memory_space<vmem>>, %arg5: memref<256x128xf32, #tpu.memory_space<vmem>>, %arg6: memref<1x128xbf16, #tpu.memory_space<vmem>>, %arg7: memref<1x1xf32, #tpu.memory_space<vmem>>, %arg8: memref<1x1x256xf32, #tpu.memory_space<vmem>>) attributes {dimension_semantics = [#tpu.dimension_semantics<parallel>], iteration_bounds = array<i64: 1>, scalar_prefetch = 0 : i64, scratch_operands = 0 : i64, tpu.core_type = #tpu.core_type<tc>, window_params = [{transform_indices = @transform_0, window_bounds = array<i64: 256, 8>}, {pipeline_mode = #tpu.pipeline_mode<synchronous>, transform_indices = @transform_1, window_bounds = array<i64: 5, 128, 128>}, {pipeline_mode = #tpu.pipeline_mode<synchronous>, transform_indices = @transform_2, window_bounds = array<i64: 1, 128>}, {pipeline_mode = #tpu.pipeline_mode<synchronous>, transform_indices = @transform_3, window_bounds = array<i64: 8, 1, 128>}, {transform_indices = @transform_4, window_bounds = array<i64: 256, 128>}, {pipeline_mode = #tpu.pipeline_mode<synchronous>, transform_indices = @transform_5, window_bounds = array<i64: 1, 128>}, {pipeline_mode = #tpu.pipeline_mode<synchronous>, transform_indices = @transform_6, window_bounds = array<i64: 1, 1>}, {transform_indices = @transform_7, window_bounds = array<i64: 1, 1, 256>}]} {
    %c0 = arith.constant 0 : index
    %c0_0 = arith.constant 0 : index
    %0 = vector.load %arg1[%c0, %c0_0] : memref<256x8xi32, #tpu.memory_space<vmem>>, vector<256x8xi32>
    %1 = tpu.iota {dimensions = array<i32: 1>} : vector<256x128xi32>
    %2 = vector.extract_strided_slice %0 {offsets = [0, 0], sizes = [256, 1], strides = [1, 1]} : vector<256x8xi32> to vector<256x1xi32>
    %3 = vector.broadcast %2 : vector<256x1xi32> to vector<256x128xi32>
    %4 = arith.cmpi eq, %3, %1 : vector<256x128xi32>
    %5 = arith.extui %4 : vector<256x128xi1> to vector<256x128xi32>
    %6 = arith.sitofp %5 : vector<256x128xi32> to vector<256x128xf32>
    %7 = arith.truncf %6 : vector<256x128xf32> to vector<256x128xbf16>
    %8 = vector.extract_strided_slice %0 {offsets = [0, 1], sizes = [256, 1], strides = [1, 1]} : vector<256x8xi32> to vector<256x1xi32>
    %9 = vector.broadcast %8 : vector<256x1xi32> to vector<256x128xi32>
    %10 = arith.cmpi eq, %9, %1 : vector<256x128xi32>
    %11 = arith.extui %10 : vector<256x128xi1> to vector<256x128xi32>
    %12 = arith.sitofp %11 : vector<256x128xi32> to vector<256x128xf32>
    %13 = arith.truncf %12 : vector<256x128xf32> to vector<256x128xbf16>
    %14 = vector.extract_strided_slice %0 {offsets = [0, 2], sizes = [256, 1], strides = [1, 1]} : vector<256x8xi32> to vector<256x1xi32>
    %15 = vector.broadcast %14 : vector<256x1xi32> to vector<256x128xi32>
    %16 = arith.cmpi eq, %15, %1 : vector<256x128xi32>
    %17 = arith.extui %16 : vector<256x128xi1> to vector<256x128xi32>
    %18 = arith.sitofp %17 : vector<256x128xi32> to vector<256x128xf32>
    %19 = arith.truncf %18 : vector<256x128xf32> to vector<256x128xbf16>
    %20 = vector.extract_strided_slice %0 {offsets = [0, 3], sizes = [256, 1], strides = [1, 1]} : vector<256x8xi32> to vector<256x1xi32>
    %21 = vector.broadcast %20 : vector<256x1xi32> to vector<256x128xi32>
    %22 = arith.cmpi eq, %21, %1 : vector<256x128xi32>
    %23 = arith.extui %22 : vector<256x128xi1> to vector<256x128xi32>
    %24 = arith.sitofp %23 : vector<256x128xi32> to vector<256x128xf32>
    %25 = arith.truncf %24 : vector<256x128xf32> to vector<256x128xbf16>
    %26 = vector.extract_strided_slice %0 {offsets = [0, 4], sizes = [256, 1], strides = [1, 1]} : vector<256x8xi32> to vector<256x1xi32>
    %27 = vector.broadcast %26 : vector<256x1xi32> to vector<256x128xi32>
    %28 = arith.cmpi eq, %27, %1 : vector<256x128xi32>
    %29 = arith.extui %28 : vector<256x128xi1> to vector<256x128xi32>
    %30 = arith.sitofp %29 : vector<256x128xi32> to vector<256x128xf32>
    %31 = arith.truncf %30 : vector<256x128xf32> to vector<256x128xbf16>
    %32 = vector.extract_strided_slice %0 {offsets = [0, 5], sizes = [256, 1], strides = [1, 1]} : vector<256x8xi32> to vector<256x1xi32>
    %33 = vector.broadcast %32 : vector<256x1xi32> to vector<256x128xi32>
    %34 = arith.cmpi eq, %33, %1 : vector<256x128xi32>
    %35 = arith.extui %34 : vector<256x128xi1> to vector<256x128xi32>
    %36 = arith.sitofp %35 : vector<256x128xi32> to vector<256x128xf32>
    %37 = arith.truncf %36 : vector<256x128xf32> to vector<256x128xbf16>
    %38 = vector.extract_strided_slice %0 {offsets = [0, 6], sizes = [256, 1], strides = [1, 1]} : vector<256x8xi32> to vector<256x1xi32>
    %39 = vector.broadcast %38 : vector<256x1xi32> to vector<256x128xi32>
    %40 = arith.cmpi eq, %39, %1 : vector<256x128xi32>
    %41 = arith.extui %40 : vector<256x128xi1> to vector<256x128xi32>
    %42 = arith.sitofp %41 : vector<256x128xi32> to vector<256x128xf32>
    %43 = arith.truncf %42 : vector<256x128xf32> to vector<256x128xbf16>
    %44 = vector.extract_strided_slice %0 {offsets = [0, 7], sizes = [256, 1], strides = [1, 1]} : vector<256x8xi32> to vector<256x1xi32>
    %45 = vector.broadcast %44 : vector<256x1xi32> to vector<256x128xi32>
    %46 = arith.cmpi eq, %45, %1 : vector<256x128xi32>
    %47 = arith.extui %46 : vector<256x128xi1> to vector<256x128xi32>
    %48 = arith.sitofp %47 : vector<256x128xi32> to vector<256x128xf32>
    %49 = arith.truncf %48 : vector<256x128xf32> to vector<256x128xbf16>
    %50 = tpu.concatenate %7, %13, %19, %25, %31, %37, %43, %49 in 0 : vector<256x128xbf16>, vector<256x128xbf16>, vector<256x128xbf16>, vector<256x128xbf16>, vector<256x128xbf16>, vector<256x128xbf16>, vector<256x128xbf16>, vector<256x128xbf16> -> vector<2048x128xbf16>
    %c0_1 = arith.constant 0 : index
    %c0_2 = arith.constant 0 : index
    %c0_3 = arith.constant 0 : index
    %51 = vector.load %arg2[%c0_1, %c0_2, %c0_3] : memref<5x128x128xbf16, #tpu.memory_space<vmem>>, vector<1x128x128xbf16>
    %52 = vector.shape_cast %51 : vector<1x128x128xbf16> to vector<128x128xbf16>
    %cst = arith.constant dense<0.000000e+00> : vector<2048x128xf32>
    %53 = tpu.matmul %50, %52, %cst {dimension_numbers = #tpu.dot_dimension_numbers<[1], [0], [0], [1], [0, 0, 1, 1], [], []>} : vector<2048x128xbf16>, vector<128x128xbf16>, vector<2048x128xf32> -> vector<2048x128xf32>
    %54 = tpu.concatenate %13, %19, %25, %31, %37, %43, %49, %7 in 0 : vector<256x128xbf16>, vector<256x128xbf16>, vector<256x128xbf16>, vector<256x128xbf16>, vector<256x128xbf16>, vector<256x128xbf16>, vector<256x128xbf16>, vector<256x128xbf16> -> vector<2048x128xbf16>
    %c1 = arith.constant 1 : index
    %c0_4 = arith.constant 0 : index
    %c0_5 = arith.constant 0 : index
    %55 = vector.load %arg2[%c1, %c0_4, %c0_5] : memref<5x128x128xbf16, #tpu.memory_space<vmem>>, vector<1x128x128xbf16>
    %56 = vector.shape_cast %55 : vector<1x128x128xbf16> to vector<128x128xbf16>
    %cst_6 = arith.constant dense<0.000000e+00> : vector<2048x128xf32>
    %57 = tpu.matmul %54, %56, %cst_6 {dimension_numbers = #tpu.dot_dimension_numbers<[1], [0], [0], [1], [0, 0, 1, 1], [], []>} : vector<2048x128xbf16>, vector<128x128xbf16>, vector<2048x128xf32> -> vector<2048x128xf32>
    %58 = arith.addf %53, %57 : vector<2048x128xf32>
    %59 = tpu.concatenate %19, %25, %31, %37, %43, %49, %7, %13 in 0 : vector<256x128xbf16>, vector<256x128xbf16>, vector<256x128xbf16>, vector<256x128xbf16>, vector<256x128xbf16>, vector<256x128xbf16>, vector<256x128xbf16>, vector<256x128xbf16> -> vector<2048x128xbf16>
    %c2 = arith.constant 2 : index
    %c0_7 = arith.constant 0 : index
    %c0_8 = arith.constant 0 : index
    %60 = vector.load %arg2[%c2, %c0_7, %c0_8] : memref<5x128x128xbf16, #tpu.memory_space<vmem>>, vector<1x128x128xbf16>
    %61 = vector.shape_cast %60 : vector<1x128x128xbf16> to vector<128x128xbf16>
    %cst_9 = arith.constant dense<0.000000e+00> : vector<2048x128xf32>
    %62 = tpu.matmul %59, %61, %cst_9 {dimension_numbers = #tpu.dot_dimension_numbers<[1], [0], [0], [1], [0, 0, 1, 1], [], []>} : vector<2048x128xbf16>, vector<128x128xbf16>, vector<2048x128xf32> -> vector<2048x128xf32>
    %63 = arith.addf %58, %62 : vector<2048x128xf32>
    %64 = tpu.concatenate %25, %31, %37, %43, %49, %7, %13, %19 in 0 : vector<256x128xbf16>, vector<256x128xbf16>, vector<256x128xbf16>, vector<256x128xbf16>, vector<256x128xbf16>, vector<256x128xbf16>, vector<256x128xbf16>, vector<256x128xbf16> -> vector<2048x128xbf16>
    %c3 = arith.constant 3 : index
    %c0_10 = arith.constant 0 : index
    %c0_11 = arith.constant 0 : index
    %65 = vector.load %arg2[%c3, %c0_10, %c0_11] : memref<5x128x128xbf16, #tpu.memory_space<vmem>>, vector<1x128x128xbf16>
    %66 = vector.shape_cast %65 : vector<1x128x128xbf16> to vector<128x128xbf16>
    %cst_12 = arith.constant dense<0.000000e+00> : vector<2048x128xf32>
    %67 = tpu.matmul %64, %66, %cst_12 {dimension_numbers = #tpu.dot_dimension_numbers<[1], [0], [0], [1], [0, 0, 1, 1], [], []>} : vector<2048x128xbf16>, vector<128x128xbf16>, vector<2048x128xf32> -> vector<2048x128xf32>
    %68 = arith.addf %63, %67 : vector<2048x128xf32>
    %69 = tpu.concatenate %31, %37, %43, %49, %7, %13, %19, %25 in 0 : vector<256x128xbf16>, vector<256x128xbf16>, vector<256x128xbf16>, vector<256x128xbf16>, vector<256x128xbf16>, vector<256x128xbf16>, vector<256x128xbf16>, vector<256x128xbf16> -> vector<2048x128xbf16>
    %c4 = arith.constant 4 : index
    %c0_13 = arith.constant 0 : index
    %c0_14 = arith.constant 0 : index
    %70 = vector.load %arg2[%c4, %c0_13, %c0_14] : memref<5x128x128xbf16, #tpu.memory_space<vmem>>, vector<1x128x128xbf16>
    %71 = vector.shape_cast %70 : vector<1x128x128xbf16> to vector<128x128xbf16>
    %cst_15 = arith.constant dense<0.000000e+00> : vector<2048x128xf32>
    %72 = tpu.matmul %69, %71, %cst_15 {dimension_numbers = #tpu.dot_dimension_numbers<[1], [0], [0], [1], [0, 0, 1, 1], [], []>} : vector<2048x128xbf16>, vector<128x128xbf16>, vector<2048x128xf32> -> vector<2048x128xf32>
    %73 = arith.addf %68, %72 : vector<2048x128xf32>
    %c0_16 = arith.constant 0 : index
    %c0_17 = arith.constant 0 : index
    %74 = vector.load %arg3[%c0_16, %c0_17] : memref<1x128xf32, #tpu.memory_space<vmem>>, vector<1x128xf32>
    %75 = vector.broadcast %74 : vector<1x128xf32> to vector<2048x128xf32>
    %76 = arith.addf %73, %75 : vector<2048x128xf32>
    %cst_18 = arith.constant 0.000000e+00 : f32
    %77 = vector.broadcast %cst_18 : f32 to vector<2048x128xf32>
    %78 = arith.maximumf %76, %77 : vector<2048x128xf32>
    %79 = vector.shape_cast %78 : vector<2048x128xf32> to vector<8x256x128xf32>
    %c0_19 = arith.constant 0 : index
    %c0_20 = arith.constant 0 : index
    %c0_21 = arith.constant 0 : index
    %80 = vector.load %arg4[%c0_19, %c0_20, %c0_21] : memref<8x1x128xf32, #tpu.memory_space<vmem>>, vector<8x1x128xf32>
    %81 = vector.broadcast %80 : vector<8x1x128xf32> to vector<8x256x128xf32>
    %82 = arith.mulf %79, %81 : vector<8x256x128xf32>
    %cst_22 = arith.constant dense<0xFF800000> : vector<256x128xf32>
    %83 = vector.multi_reduction <maximumf>, %82, %cst_22 [0] : vector<8x256x128xf32> to vector<256x128xf32>
    %c0_23 = arith.constant 0 : index
    %c0_24 = arith.constant 0 : index
    %84 = vector.load %arg5[%c0_23, %c0_24] : memref<256x128xf32, #tpu.memory_space<vmem>>, vector<256x128xf32>
    %85 = arith.addf %83, %84 : vector<256x128xf32>
    %c0_25 = arith.constant 0 : index
    %c0_26 = arith.constant 0 : index
    %86 = vector.load %arg6[%c0_25, %c0_26] : memref<1x128xbf16, #tpu.memory_space<vmem>>, vector<1x128xbf16>
    %87 = arith.truncf %85 : vector<256x128xf32> to vector<256x128xbf16>
    "tpu.trace_start"() <{level = 10 : i32, message = "oc,bc->ob"}> : () -> ()
    %cst_27 = arith.constant dense<0.000000e+00> : vector<1x256xf32>
    %88 = tpu.matmul %86, %87, %cst_27 {dimension_numbers = #tpu.dot_dimension_numbers<[1], [1], [0], [0], [0, 0, 1, 0], [], []>} : vector<1x128xbf16>, vector<256x128xbf16>, vector<1x256xf32> -> vector<1x256xf32>
    "tpu.trace_stop"() : () -> ()
    %c0_28 = arith.constant 0 : index
    %c0_29 = arith.constant 0 : index
    %89 = vector.load %arg7[%c0_28, %c0_29] : memref<1x1xf32, #tpu.memory_space<vmem>>, vector<1x1xf32>
    %90 = vector.broadcast %89 : vector<1x1xf32> to vector<1x256xf32>
    %91 = arith.addf %88, %90 : vector<1x256xf32>
    %92 = vector.shape_cast %91 : vector<1x256xf32> to vector<1x1x256xf32>
    %c0_30 = arith.constant 0 : index
    %c0_31 = arith.constant 0 : index
    %c0_32 = arith.constant 0 : index
    %93 = vector.load %arg8[%c0_30, %c0_31, %c0_32] : memref<1x1x256xf32, #tpu.memory_space<vmem>>, vector<1x1x256xf32>
    tpu.vector_store %arg8[%c0_30, %c0_31, %c0_32], %92 {strides = array<i32>} : memref<1x1x256xf32, #tpu.memory_space<vmem>>, vector<1x1x256xf32>,
    return
  }
  func.func @transform_0(%arg0: i32) -> (i32, i32) {
    %c0_i32 = arith.constant 0 : i32
    %c0_i32_0 = arith.constant 0 : i32
    return %arg0, %c0_i32 : i32, i32
  }
  func.func @transform_1(%arg0: i32) -> (i32, i32, i32) {
    %c0_i32 = arith.constant 0 : i32
    %c0_i32_0 = arith.constant 0 : i32
    %c0_i32_1 = arith.constant 0 : i32
    %c0_i32_2 = arith.constant 0 : i32
    return %c0_i32, %c0_i32_0, %c0_i32_1 : i32, i32, i32
  }
  func.func @transform_2(%arg0: i32) -> (i32, i32) {
    %c0_i32 = arith.constant 0 : i32
    %c0_i32_0 = arith.constant 0 : i32
    %c0_i32_1 = arith.constant 0 : i32
    return %c0_i32, %c0_i32_0 : i32, i32
  }
  func.func @transform_3(%arg0: i32) -> (i32, i32, i32) {
    %c0_i32 = arith.constant 0 : i32
    %c0_i32_0 = arith.constant 0 : i32
    %c0_i32_1 = arith.constant 0 : i32
    %c0_i32_2 = arith.constant 0 : i32
    return %c0_i32, %c0_i32_0, %c0_i32_1 : i32, i32, i32
  }
  func.func @transform_4(%arg0: i32) -> (i32, i32) {
    %c0_i32 = arith.constant 0 : i32
    %c0_i32_0 = arith.constant 0 : i32
    return %arg0, %c0_i32 : i32, i32
  }
  func.func @transform_5(%arg0: i32) -> (i32, i32) {
    %c0_i32 = arith.constant 0 : i32
    %c0_i32_0 = arith.constant 0 : i32
    %c0_i32_1 = arith.constant 0 : i32
    return %c0_i32, %c0_i32_0 : i32, i32
  }
  func.func @transform_6(%arg0: i32) -> (i32, i32) {
    %c0_i32 = arith.constant 0 : i32
    %c0_i32_0 = arith.constant 0 : i32
    %c0_i32_1 = arith.constant 0 : i32
    return %c0_i32, %c0_i32_0 : i32, i32
  }
  func.func @transform_7(%arg0: i32) -> (i32, i32, i32) {
    %c0_i32 = arith.constant 0 : i32
    %c0_i32_0 = arith.constant 0 : i32
    %c0_i32_1 = arith.constant 0 : i32
    return %arg0, %c0_i32, %c0_i32_0 : i32, i32, i32
  }
}

</mosaic_0001>

<bundles_post_ra>
// kernel: conv_nn_forward.1
= control target key start
LH: loop header
LB: loop body
LE: loop exit
PB: predicated region body
PF: predicated region fallthrough
CT: control target
= control target key end

     0   :  { %v14098_v0 = vmov 6   ;;  %v14104_v1 = vmov 1   ;;  %v14100_v4 = vmov 7   ;;  %v14110_v8 = vmov 3   ;;  %s14089_s0 = inlined_call_operand.vmem [shape: s32[256,8], index: 0, kind: input, shape index: {}]   ;;  %s14090_s1 = inlined_call_operand.vmem [shape: bf16[5,128,128], index: 1, kind: input, shape index: {}]   ;;  %s14091_s6 = inlined_call_operand.<no memory space> [shape: f32[1,1], index: 6, kind: input, shape index: {}]   ;;  %s14092_s2 = inlined_call_operand.vmem [shape: f32[1,128], index: 2, kind: input, shape index: {}]   ;;  %s14093_s3 = inlined_call_operand.vmem [shape: f32[8,1,128], index: 3, kind: input, shape index: {}]   ;;  %s14094_s4 = inlined_call_operand.vmem [shape: f32[256,128], index: 4, kind: input, shape index: {}]   ;;  %s14095_s5 = inlined_call_operand.vmem [shape: bf16[1,128], index: 5, kind: input, shape index: {}]   ;;  %s14096_s7 = inlined_call_operand.vmem [shape: f32[1,1,256], index: 7, kind: output, shape index: {}]  }
   0x1   :  { %8669 = vset.pattern.permute.xlu0 %v14098_v0  ;;  %8670 = vset.pattern.permute.xlu1 %v14104_v1  ;;  %v58_v2 = vld [vmem:[%s14089_s0 + $0xf0] sm:$0xff]  ;;  %v28_v3 = vld [vmem:[%s14089_s0] sm:$0xff]  ;;  %v59_v5 = vld [vmem:[%s14089_s0 + $0xf8] sm:$0xff]  ;;  %v14102_v15 = vmov 5   ;;  %v14097_v30 = vlaneseq  ;;  %v14152_v35 = vmov 0.0  }
   0x2   :  { %1497 = vperm.xlu0 %8669, %v58_v2   ;;  %287 = vperm.xlu1 %8670, %v28_v3   ;;  %v29_v6 = vld [vmem:[%s14089_s0 + $0x8] sm:$0xff]  ;;  %v31_v7 = vld [vmem:[%s14089_s0 + $0x18] sm:$0xff]  ;;  %v9026_v9 = vld [vmem:[%s14089_s0 + $0x10] sm:$0xff] }
   0x3   :  { %8671 = vset.pattern.permute.xlu2 %v14100_v4  ;;  %v9033_v10 = vld [vmem:[%s14089_s0 + $0x30] sm:$0xff]  ;;  %v9042_v11 = vld [vmem:[%s14089_s0 + $0x48] sm:$0xff]  ;;  %v32_v12 = vld [vmem:[%s14089_s0 + $0x20] sm:$0xff]  ;;  %v9141_v32 = vand.u32 127, %v14097_v30 }
   0x4   :  { %1631 = vperm.xlu2 %8671, %v28_v3   ;;  %v33_v13 = vld [vmem:[%s14089_s0 + $0x28] sm:$0xff]  ;;  %v9057_v14 = vld [vmem:[%s14089_s0 + $0x60] sm:$0xff]  ;;  %v9069_v16 = vld [vmem:[%s14089_s0 + $0x38] sm:$0xff] }
   0x5   :  { %v9077_v17 = vld [vmem:[%s14089_s0 + $0x50] sm:$0xff]  ;;  %v8611_v18 = vld [vmem:[%s14090_s1 + $0x78] sm:$0xff]  ;;  %v9092_v20 = vld [vmem:[%s14089_s0 + $0x88] sm:$0xff] }
   0x6   :  { %2703 = vmatpush.bf16.msra.mxu0 %v8611_v18  ;;  %8638 = vmatpush.bf16.msra.mxu3 %v8611_v18  ;;  %v8610_v19 = vld [vmem:[%s14090_s1 + $0x70] sm:$0xff]  ;;  %v8609_v21 = vld [vmem:[%s14090_s1 + $0x68] sm:$0xff]  ;;  %v8608_v22 = vld [vmem:[%s14090_s1 + $0x60] sm:$0xff] }
   0x7   :  { %8636 = vmatpush.bf16.msra.mxu1 %v8611_v18  ;;  %8637 = vmatpush.bf16.msra.mxu2 %v8611_v18  ;;  %v8607_v23 = vld [vmem:[%s14090_s1 + $0x58] sm:$0xff]  ;;  %v8606_v24 = vld [vmem:[%s14090_s1 + $0x50] sm:$0xff]  ;;  %v9117_v25 = vld [vmem:[%s14089_s0 + $0x40] sm:$0xff] }
   0x8   :  { %v8605_v26 = vld [vmem:[%s14090_s1 + $0x48] sm:$0xff]  ;;  %v8604_v28 = vld [vmem:[%s14090_s1 + $0x40] sm:$0xff]  ;;  %v9156_v39 = vld [vmem:[%s14089_s0 + $0x98] sm:$0xff] }
   0x9   :  { %v9162_v43 = vld [vmem:[%s14089_s0 + $0x58] sm:$0xff]  ;;  %v9177_v54 = vld [vmem:[%s14089_s0 + $0x68] sm:$0xff] }
   0xa   :  { %1500 = vperm.xlu0 %8669, %v59_v5   ;;  %290 = vperm.xlu1 %8670, %v29_v6  }
   0xb   :  { %2704 = vmatpush.bf16.msra.mxu0 %v8610_v19  ;;  %8641 = vmatpush.bf16.msra.mxu3 %v8610_v19 }
   0xc   :  { %1634 = vperm.xlu2 %8671, %v29_v6   ;;  %8639 = vmatpush.bf16.msra.mxu1 %v8610_v19 }
   0xd   :  { %8640 = vmatpush.bf16.msra.mxu2 %v8610_v19 }
   0xf   :  { %2705 = vmatpush.bf16.msra.mxu0 %v8609_v21  ;;  %8644 = vmatpush.bf16.msra.mxu3 %v8609_v21 }
  0x10   :  { %8642 = vmatpush.bf16.msra.mxu1 %v8609_v21 }
  0x11   :  { %8643 = vmatpush.bf16.msra.mxu2 %v8609_v21 }
  0x12   :  { %8676 = vset.pattern.permute.xlu0 %v14100_v4  ;;  %8672 = vset.pattern.permute.xlu1 %v14110_v8 }
  0x13   :  { %1640 = vperm.xlu0 %8676, %v31_v7   ;;  %744 = vperm.xlu1 %8672, %v31_v7  }
  0x14   :  { %8673 = vset.pattern.permute.xlu2 %v14104_v1  ;;  %2706 = vmatpush.bf16.msra.mxu0 %v8608_v22 }
  0x15   :  { %293 = vperm.xlu2 %8673, %v9026_v9   ;;  %8647 = vmatpush.bf16.msra.mxu3 %v8608_v22 }
  0x16   :  { %8645 = vmatpush.bf16.msra.mxu1 %v8608_v22  ;;  %8646 = vmatpush.bf16.msra.mxu2 %v8608_v22 }
  0x18   :  { %2707 = vmatpush.bf16.msra.mxu0 %v8607_v23 }
  0x19   :  { %8650 = vmatpush.bf16.msra.mxu3 %v8607_v23 }
  0x1a   :  { %8648 = vmatpush.bf16.msra.mxu1 %v8607_v23  ;;  %8649 = vmatpush.bf16.msra.mxu2 %v8607_v23 }
  0x1b   :  { %1649 = vperm.xlu0 %8676, %v9033_v10   ;;  %8674 = vset.pattern.permute.xlu1 %v14104_v1 }
  0x1c   :  { %296 = vperm.xlu1 %8674, %v31_v7   ;;  %2708 = vmatpush.bf16.msra.mxu0 %v8606_v24 }
  0x1d   :  { %8675 = vset.pattern.permute.xlu2 %v14100_v4  ;;  %8653 = vmatpush.bf16.msra.mxu3 %v8606_v24 }
  0x1e   :  { %1637 = vperm.xlu2 %8675, %v9026_v9   ;;  %8651 = vmatpush.bf16.msra.mxu1 %v8606_v24 }
  0x1f   :  { %8652 = vmatpush.bf16.msra.mxu2 %v8606_v24 }
  0x20   :  { %2709 = vmatpush.bf16.msra.mxu0 %v8605_v26 }
  0x21   :  { %8656 = vmatpush.bf16.msra.mxu3 %v8605_v26 }
  0x22   :  { %8654 = vmatpush.bf16.msra.mxu1 %v8605_v26 }
  0x23   :  { %8693 = vset.pattern.permute.xlu0 %v14104_v1  ;;  %8655 = vmatpush.bf16.msra.mxu2 %v8605_v26 }
  0x24   :  { %314 = vperm.xlu0 %8693, %v9042_v11   ;;  %8677 = vset.pattern.permute.xlu1 %v14110_v8 }
  0x25   :  { %747 = vperm.xlu1 %8677, %v32_v12   ;;  %2710 = vmatpush.bf16.msra.mxu0 %v8604_v28 }
  0x26   :  { %8678 = vset.pattern.permute.xlu2 %v14110_v8  ;;  %8659 = vmatpush.bf16.msra.mxu3 %v8604_v28 }
  0x27   :  { %750 = vperm.xlu2 %8678, %v33_v13   ;;  %8657 = vmatpush.bf16.msra.mxu1 %v8604_v28 }
  0x28   :  { %8658 = vmatpush.bf16.msra.mxu2 %v8604_v28 }
  0x2c   :  { %323 = vperm.xlu0 %8693, %v9057_v14  }
  0x2d   :  { %8679 = vset.pattern.permute.xlu1 %v14104_v1 }
  0x2e   :  { %299 = vperm.xlu1 %8679, %v32_v12  }
  0x2f   :  { %8680 = vset.pattern.permute.xlu2 %v14104_v1 }
  0x30   :  { %302 = vperm.xlu2 %8680, %v33_v13  }
  0x34   :  { %8706 = vset.pattern.permute.xlu0 %v14110_v8 }
  0x35   :  { %741 = vperm.xlu0 %8706, %v9026_v9  }
  0x36   :  { %8681 = vset.pattern.permute.xlu1 %v14102_v15 }
  0x37   :  { %1192 = vperm.xlu1 %8681, %v31_v7  }
  0x38   :  { %8682 = vset.pattern.permute.xlu2 %v14100_v4 }
  0x39   :  { %1643 = vperm.xlu2 %8682, %v32_v12  }
  0x3d   :  { %756 = vperm.xlu0 %8706, %v9069_v16  }
  0x3f   :  { %8683 = vset.pattern.permute.xlu1 %v14100_v4 }
  0x40   :  { %1646 = vperm.xlu1 %8683, %v33_v13  }
  0x41   :  { %8684 = vset.pattern.permute.xlu2 %v14110_v8 }
  0x42   :  { %753 = vperm.xlu2 %8684, %v9033_v10  }
  0x45   :  { %765 = vperm.xlu0 %8706, %v9077_v17  }
  0x48   :  { %8685 = vset.pattern.permute.xlu1 %v14104_v1 }
  0x49   :  { %305 = vperm.xlu1 %8685, %v9033_v10  }
  0x4a   :  { %8686 = vset.pattern.permute.xlu2 %v14104_v1 }
  0x4b   :  { %308 = vperm.xlu2 %8686, %v9069_v16  }
  0x4d   :  { %786 = vperm.xlu0 %8706, %v9092_v20  }
  0x51   :  { %8687 = vset.pattern.permute.xlu1 %v14102_v15 }
  0x52   :  { %1195 = vperm.xlu1 %8687, %v32_v12  }
  0x53   :  { %8688 = vset.pattern.permute.xlu2 %v14102_v15 }
  0x54   :  { %1198 = vperm.xlu2 %8688, %v33_v13  }
  0x55   :  { %8719 = vset.pattern.permute.xlu0 %v14102_v15 }
  0x56   :  { %1189 = vperm.xlu0 %8719, %v9026_v9  }
  0x5a   :  { %8689 = vset.pattern.permute.xlu1 %v14100_v4 }
  0x5b   :  { %1652 = vperm.xlu1 %8689, %v9069_v16  }
  0x5c   :  { %8690 = vset.pattern.permute.xlu2 %v14110_v8 }
  0x5d   :  { %759 = vperm.xlu2 %8690, %v9117_v25  }
  0x5e   :  { %v9125_v27 = vpop.permute.xlu2 %1631  ;;  %1210 = vperm.xlu0 %8719, %v9042_v11  }
  0x5f   :  { %vm1726_vm4 = vcmp.eq.s32.totalorder %v9125_v27, %v9141_v32 }
  0x60   :  { %v8340_v59 = vsel %vm1726_vm4, 1.0, %v14152_v35 }
  0x61   :  { %v1822_v62 = vpack.c.bf16 %v8340_v59, %v8340_v59 }
  0x63   :  { %8691 = vset.pattern.permute.xlu1 %v14110_v8  ;;  %v2558_v6 = vunpack.c.l.b16 %v1822_v62 }
  0x64   :  { %762 = vperm.xlu1 %8691, %v9042_v11  }
  0x65   :  { %8692 = vset.pattern.permute.xlu2 %v14104_v1 }
  0x66   :  { %311 = vperm.xlu2 %8692, %v9117_v25   ;;  %1219 = vperm.xlu0 %8719, %v9057_v14   ;;  %v1635_v29 = vpop.permute.xlu2 %1634 }
  0x67   :  { %vm1727_vm5 = vcmp.eq.s32.totalorder %v1635_v29, %v9141_v32 }
  0x68   :  { %v8341_v60 = vsel %vm1727_vm5, 1.0, %v14152_v35 }
  0x69   :  { %v1823_v63 = vpack.c.bf16 %v8341_v60, %v8341_v60 }
  0x6b   :  { %v2559_v7 = vunpack.c.l.b16 %v1823_v63 }
  0x6c   :  { %8694 = vset.pattern.permute.xlu1 %v14102_v15 }
  0x6d   :  { %1201 = vperm.xlu1 %8694, %v9033_v10   ;;  %v9205_v12 = vpack.c.b16 %v2559_v7, %v2558_v6 }
  0x6e   :  { %8695 = vset.pattern.permute.xlu2 %v14102_v15  ;;  %1240 = vperm.xlu0 %8719, %v9156_v39  }
  0x6f   :  { %1204 = vperm.xlu2 %8695, %v9069_v16   ;;  %v294_v31 = vpop.permute.xlu2 %293  ;;  %14561 = vst [vmem:[#allocation5_spill] sm:$0xff] %v9205_v12 }
  0x70   :  { %vm384_vm6 = vcmp.eq.s32.totalorder %v294_v31, %v9141_v32 }
  0x71   :  { %v8150_v2 = vsel %vm384_vm6, 1.0, %v14152_v35 }
  0x72   :  { %v480_v9 = vpack.c.bf16 %v8150_v2, %v8150_v2 }
  0x74   :  { %v1498_v33 = vpop.permute.xlu0 %1497  ;;  %v288_v34 = vpop.permute.xlu1 %287  ;;  %v1984_v13 = vunpack.c.l.b16 %v480_v9 }
  0x75   :  { %vm1532_vm0 = vcmp.eq.s32.totalorder %v1498_v33, %v9141_v32  ;;  %8696 = vset.pattern.permute.xlu1 %v14100_v4  ;;  %vm382_vm1 = vcmp.eq.s32.totalorder %v288_v34, %v9141_v32 }
  0x76   :  { %1655 = vperm.xlu1 %8696, %v9117_v25   ;;  %v8338_v36 = vsel %vm1532_vm0, 1.0, %v14152_v35  ;;  %v8148_v38 = vsel %vm382_vm1, 1.0, %v14152_v35  ;;  %8736 = vset.pattern.permute.xlu0 %v14100_v4 }
  0x77   :  { %8697 = vset.pattern.permute.xlu2 %v14100_v4  ;;  %v1628_v40 = vpack.c.bf16 %v8338_v36, %v8338_v36  ;;  %v478_v44 = vpack.c.bf16 %v8148_v38, %v8148_v38  ;;  %1670 = vperm.xlu0 %8736, %v9177_v54  }
  0x78   :  { %1658 = vperm.xlu2 %8697, %v9042_v11   ;;  %v9150_v37 = vpop.permute.xlu2 %1637 }
  0x79   :  { %v2492_v47 = vunpack.c.l.b16 %v1628_v40  ;;  %v1982_v50 = vunpack.c.l.b16 %v478_v44  ;;  %vm1728_vm9 = vcmp.eq.s32.totalorder %v9150_v37, %v9141_v32 }
  0x7a   :  { %v8342_v24 = vsel %vm1728_vm9, 1.0, %v14152_v35 }
  0x7b   :  { %v1824_v26 = vpack.c.bf16 %v8342_v24, %v8342_v24 }
  0x7c   :  { %v1501_v41 = vpop.permute.xlu0 %1500  ;;  %v291_v42 = vpop.permute.xlu1 %290 }
  0x7d   :  { %vm1533_vm2 = vcmp.eq.s32.totalorder %v1501_v41, %v9141_v32  ;;  %vm383_vm3 = vcmp.eq.s32.totalorder %v291_v42, %v9141_v32  ;;  %v2560_v33 = vunpack.c.l.b16 %v1824_v26  ;;  %v9296_v26 = vld [vmem:[%s14089_s0 + $0xb8] sm:$0xff] }
  0x7e   :  { %v8339_v45 = vsel %vm1533_vm2, 1.0, %v14152_v35  ;;  %v8149_v46 = vsel %vm383_vm3, 1.0, %v14152_v35  ;;  %8698 = vset.pattern.permute.xlu1 %v14110_v8 }
  0x7f   :  { %v1629_v48 = vpack.c.bf16 %v8339_v45, %v8339_v45  ;;  %v479_v49 = vpack.c.bf16 %v8149_v46, %v8149_v46  ;;  %768 = vperm.xlu1 %8698, %v9162_v43  }
  0x80   :  { %8699 = vset.pattern.permute.xlu2 %v14104_v1 }
  0x81   :  { %v2493_v51 = vunpack.c.l.b16 %v1629_v48  ;;  %v1983_v52 = vunpack.c.l.b16 %v479_v49  ;;  %317 = vperm.xlu2 %8699, %v9077_v17   ;;  %v9172_v53 = vpop.permute.xlu2 %750 }
  0x82   :  { %vm835_vm15 = vcmp.eq.s32.totalorder %v9172_v53, %v9141_v32 }
  0x83   :  { %v9179_v55 = vpack.c.b16 %v2493_v51, %v2492_v47  ;;  %v9181_v56 = vpack.c.b16 %v1983_v52, %v1982_v50  ;;  %v8217_v62 = vsel %vm835_vm15, 1.0, %v14152_v35 }
  0x84   :  { %v931_v7 = vpack.c.bf16 %v8217_v62, %v8217_v62 }
  0x85   :  { %14559 = vst [vmem:[#allocation3_spill] sm:$0xff] %v9179_v55  ;;  %3186 = vmatmul.bf16.vlgmr.msra.gmra.mxu3 %v9179_v55  ;;  %2711 = vmatmul.bf16.vlgmr.msra.gmra.mxu0 %v9181_v56  ;;  %v745_v57 = vpop.permute.xlu1 %744  ;;  %v1641_v58 = vpop.permute.xlu0 %1640 }
  0x86   :  { %14560 = vst [vmem:[#allocation4_spill] sm:$0xff] %v9181_v56  ;;  %vm1729_vm8 = vcmp.eq.s32.totalorder %v1641_v58, %v9141_v32  ;;  %vm833_vm12 = vcmp.eq.s32.totalorder %v745_v57, %v9141_v32 }
  0x87   :  { %8700 = vset.pattern.permute.xlu1 %v14104_v1  ;;  %v8343_v23 = vsel %vm1729_vm8, 1.0, %v14152_v35  ;;  %v8215_v42 = vsel %vm833_vm12, 1.0, %v14152_v35 }
  0x88   :  { %320 = vperm.xlu1 %8700, %v9162_v43   ;;  %v929_v48 = vpack.c.bf16 %v8215_v42, %v8215_v42 }
  0x89   :  { %8701 = vset.pattern.permute.xlu2 %v14102_v15 }
  0x8a   :  { %1207 = vperm.xlu2 %8701, %v9117_v25   ;;  %v303_v61 = vpop.permute.xlu2 %302  ;;  %v1825_v25 = vpack.c.bf16 %v8343_v23, %v8343_v23  ;;  %v2177_v52 = vunpack.c.l.b16 %v929_v48  ;;  %v2179_v23 = vunpack.c.l.b16 %v931_v7 }
  0x8b   :  { %vm387_vm10 = vcmp.eq.s32.totalorder %v303_v61, %v9141_v32  ;;  %v9264_v61 = vld [vmem:[%s14089_s0 + $0x70] sm:$0xff] }
  0x8c   :  { %v8153_v27 = vsel %vm387_vm10, 1.0, %v14152_v35  ;;  %v2561_v31 = vunpack.c.l.b16 %v1825_v25 }
  0x8d   :  { %v9198_v3 = vpop.permute.xlu0 %1649  ;;  %v483_v34 = vpack.c.bf16 %v8153_v27, %v8153_v27 }
  0x8e   :  { %v297_v5 = vpop.permute.xlu1 %296  ;;  %v9233_v38 = vpack.c.b16 %v2561_v31, %v2560_v33  ;;  %vm1732_vm9 = vcmp.eq.s32.totalorder %v9198_v3, %v9141_v32 }
  0x8f   :  { %vm385_vm7 = vcmp.eq.s32.totalorder %v297_v5, %v9141_v32  ;;  %v1987_v40 = vunpack.c.l.b16 %v483_v34  ;;  %v9281_v5 = vld [vmem:[%s14089_s0 + $0x78] sm:$0xff] }
  0x90   :  { %v8151_v10 = vsel %vm385_vm7, 1.0, %v14152_v35  ;;  %8702 = vset.pattern.permute.xlu1 %v14100_v4  ;;  %14563 = vst [vmem:[#allocation7_spill] sm:$0xff] %v9233_v38 }
  0x91   :  { %v481_v11 = vpack.c.bf16 %v8151_v10, %v8151_v10  ;;  %1661 = vperm.xlu1 %8702, %v9077_v17  }
  0x92   :  { %8703 = vset.pattern.permute.xlu2 %v14100_v4 }
  0x93   :  { %v1985_v16 = vunpack.c.l.b16 %v481_v11  ;;  %1664 = vperm.xlu2 %8703, %v9162_v43   ;;  %v1644_v18 = vpop.permute.xlu2 %1643 }
  0x94   :  { %vm1730_vm14 = vcmp.eq.s32.totalorder %v1644_v18, %v9141_v32 }
  0x95   :  { %v9211_v19 = vpack.c.b16 %v1985_v16, %v1984_v13  ;;  %3191 = vmatmul.bf16.gmra.mxu3 %v9205_v12  ;;  %v8344_v60 = vsel %vm1730_vm14, 1.0, %v14152_v35 }
  0x96   :  { %v9214_v21 = vpop.permute.xlu0 %314  ;;  %v1826_v63 = vpack.c.bf16 %v8344_v60, %v8344_v60  ;;  %v8346_v60 = vsel %vm1732_vm9, 1.0, %v14152_v35 }
  0x97   :  { %14562 = vst [vmem:[#allocation6_spill] sm:$0xff] %v9211_v19  ;;  %2716 = vmatmul.bf16.gmra.mxu0 %v9211_v19  ;;  %v748_v22 = vpop.permute.xlu1 %747  ;;  %vm391_vm6 = vcmp.eq.s32.totalorder %v9214_v21, %v9141_v32 }
  0x98   :  { %vm834_vm0 = vcmp.eq.s32.totalorder %v748_v22, %v9141_v32  ;;  %v2562_v10 = vunpack.c.l.b16 %v1826_v63 }
  0x99   :  { %8704 = vset.pattern.permute.xlu1 %v14110_v8  ;;  %v8216_v53 = vsel %vm834_vm0, 1.0, %v14152_v35 }
  0x9a   :  { %771 = vperm.xlu1 %8704, %v9057_v14   ;;  %v930_v9 = vpack.c.bf16 %v8216_v53, %v8216_v53 }
  0x9b   :  { %8705 = vset.pattern.permute.xlu2 %v14110_v8 }
  0x9c   :  { %774 = vperm.xlu2 %8705, %v9177_v54   ;;  %v9225_v28 = vpop.permute.xlu2 %753  ;;  %v2178_v24 = vunpack.c.l.b16 %v930_v9 }
  0x9d   :  { %vm836_vm4 = vcmp.eq.s32.totalorder %v9225_v28, %v9141_v32 }
  0x9e   :  { %v9227_v29 = vpop.permute.xlu0 %323  ;;  %v9303_v33 = vpack.c.b16 %v2179_v23, %v2178_v24  ;;  %v8218_v28 = vsel %vm836_vm4, 1.0, %v14152_v35 }
  0xa0   :  { %v300_v36 = vpop.permute.xlu1 %299  ;;  %14567 = vst [vmem:[#allocation11_spill] sm:$0xff] %v9303_v33 }
  0xa1   :  { %vm386_vm11 = vcmp.eq.s32.totalorder %v300_v36, %v9141_v32 }
  0xa2   :  { %v8152_v37 = vsel %vm386_vm11, 1.0, %v14152_v35  ;;  %8707 = vset.pattern.permute.xlu1 %v14104_v1 }
  0xa3   :  { %v482_v41 = vpack.c.bf16 %v8152_v37, %v8152_v37  ;;  %326 = vperm.xlu1 %8707, %v9177_v54  }
  0xa4   :  { %8708 = vset.pattern.permute.xlu2 %v14102_v15 }
  0xa5   :  { %v1986_v44 = vunpack.c.l.b16 %v482_v41  ;;  %3196 = vmatmul.bf16.gmra.mxu3 %v9233_v38  ;;  %1213 = vperm.xlu2 %8708, %v9077_v17   ;;  %v309_v45 = vpop.permute.xlu2 %308 }
  0xa6   :  { %vm389_vm2 = vcmp.eq.s32.totalorder %v309_v45, %v9141_v32 }
  0xa7   :  { %v9240_v46 = vpack.c.b16 %v1987_v40, %v1986_v44  ;;  %v742_v47 = vpop.permute.xlu0 %741  ;;  %v8155_v13 = vsel %vm389_vm2, 1.0, %v14152_v35  ;;  %v9322_v44 = vld [vmem:[%s14089_s0 + $0xd0] sm:$0xff] }
  0xa8   :  { %vm832_vm13 = vcmp.eq.s32.totalorder %v742_v47, %v9141_v32  ;;  %v485_v25 = vpack.c.bf16 %v8155_v13, %v8155_v13  ;;  %v8157_v47 = vsel %vm391_vm6, 1.0, %v14152_v35 }
  0xa9   :  { %14564 = vst [vmem:[#allocation8_spill] sm:$0xff] %v9240_v46  ;;  %v8214_v49 = vsel %vm832_vm13, 1.0, %v14152_v35  ;;  %2721 = vmatmul.bf16.gmra.mxu0 %v9240_v46  ;;  %v9245_v50 = vpop.permute.xlu1 %1192 }
  0xaa   :  { %v928_v51 = vpack.c.bf16 %v8214_v49, %v8214_v49  ;;  %v1989_v34 = vunpack.c.l.b16 %v485_v25  ;;  %vm1281_vm8 = vcmp.eq.s32.totalorder %v9245_v50, %v9141_v32 }
  0xab   :  { %8709 = vset.pattern.permute.xlu1 %v14102_v15  ;;  %v8279_v49 = vsel %vm1281_vm8, 1.0, %v14152_v35 }
  0xac   :  { %v2176_v57 = vunpack.c.l.b16 %v928_v51  ;;  %1216 = vperm.xlu1 %8709, %v9162_v43   ;;  %v932_v51 = vpack.c.bf16 %v8218_v28, %v8218_v28 }
  0xad   :  { %8710 = vset.pattern.permute.xlu2 %v14100_v4 }
  0xae   :  { %v9251_v17 = vpack.c.b16 %v2177_v52, %v2176_v57  ;;  %1667 = vperm.xlu2 %8710, %v9057_v14   ;;  %v9254_v58 = vpop.permute.xlu2 %1198  ;;  %v9269_v14 = vld [vmem:[%s14089_s0 + $0x80] sm:$0xff]  ;;  %v487_v52 = vpack.c.bf16 %v8157_v47, %v8157_v47  ;;  %v2180_v62 = vunpack.c.l.b16 %v932_v51 }
  0xaf   :  { %v757_v59 = vpop.permute.xlu0 %756  ;;  %1679 = vperm.xlu0 %8736, %v9269_v14   ;;  %vm1283_vm12 = vcmp.eq.s32.totalorder %v9254_v58, %v9141_v32 }
  0xb0   :  { %14565 = vst [vmem:[#allocation9_spill] sm:$0xff] %v9251_v17  ;;  %2876 = vmatmul.bf16.vlgmr.msra.gmra.mxu1 %v9251_v17  ;;  %vm837_vm5 = vcmp.eq.s32.totalorder %v757_v59, %v9141_v32 }
  0xb1   :  { %v8219_v45 = vsel %vm837_vm5, 1.0, %v14152_v35 }
  0xb2   :  { %v1647_v43 = vpop.permute.xlu1 %1646  ;;  %v933_v50 = vpack.c.bf16 %v8219_v45, %v8219_v45 }
  0xb3   :  { %vm1731_vm1 = vcmp.eq.s32.totalorder %v1647_v43, %v9141_v32  ;;  %v1377_v43 = vpack.c.bf16 %v8279_v49, %v8279_v49 }
  0xb4   :  { %v8345_v2 = vsel %vm1731_vm1, 1.0, %v14152_v35  ;;  %8711 = vset.pattern.permute.xlu1 %v14110_v8  ;;  %v2181_v53 = vunpack.c.l.b16 %v933_v50 }
  0xb5   :  { %v1827_v6 = vpack.c.bf16 %v8345_v2, %v8345_v2  ;;  %777 = vperm.xlu1 %8711, %v9264_v61   ;;  %v2369_v9 = vunpack.c.l.b16 %v1377_v43  ;;  %v9385_v43 = vld [vmem:[%s14089_s0 + $0xb0] sm:$0xff] }
  0xb6   :  { %8712 = vset.pattern.permute.xlu2 %v14110_v8  ;;  %v9346_v13 = vpack.c.b16 %v2181_v53, %v2180_v62 }
  0xb7   :  { %v2563_v11 = vunpack.c.l.b16 %v1827_v6  ;;  %v9286_v16 = vpop.permute.xlu0 %765  ;;  %780 = vperm.xlu2 %8712, %v9281_v5   ;;  %v9289_v18 = vpop.permute.xlu2 %759  ;;  %1700 = vperm.xlu0 %8736, %v9296_v26   ;;  %v1991_v6 = vunpack.c.l.b16 %v487_v52 }
  0xb8   :  { %14569 = vst [vmem:[#allocation13_spill] sm:$0xff] %v9346_v13  ;;  %vm838_vm14 = vcmp.eq.s32.totalorder %v9289_v18, %v9141_v32  ;;  %vm840_vm4 = vcmp.eq.s32.totalorder %v9286_v16, %v9141_v32 }
  0xb9   :  { %v9291_v22 = vpack.c.b16 %v2563_v11, %v2562_v10  ;;  %v8220_v28 = vsel %vm838_vm14, 1.0, %v14152_v35  ;;  %v8222_v16 = vsel %vm840_vm4, 1.0, %v14152_v35 }
  0xba   :  { %v934_v47 = vpack.c.bf16 %v8220_v28, %v8220_v28  ;;  %v9427_v28 = vld [vmem:[%s14089_s0 + $0xa0] sm:$0xff] }
  0xbb   :  { %14566 = vst [vmem:[#allocation10_spill] sm:$0xff] %v9291_v22  ;;  %3201 = vmatmul.bf16.gmra.mxu3 %v9291_v22  ;;  %v306_v27 = vpop.permute.xlu1 %305 }
  0xbc   :  { %vm388_vm3 = vcmp.eq.s32.totalorder %v306_v27, %v9141_v32  ;;  %v2182_v52 = vunpack.c.l.b16 %v934_v47 }
  0xbd   :  { %v8154_v31 = vsel %vm388_vm3, 1.0, %v14152_v35  ;;  %8713 = vset.pattern.permute.xlu1 %v14104_v1 }
  0xbe   :  { %v484_v36 = vpack.c.bf16 %v8154_v31, %v8154_v31  ;;  %329 = vperm.xlu1 %8713, %v9264_v61  }
  0xbf   :  { %v9306_v37 = vpop.permute.xlu0 %786  ;;  %8714 = vset.pattern.permute.xlu2 %v14104_v1  ;;  %1709 = vperm.xlu0 %8736, %v9322_v44  }
  0xc0   :  { %v1988_v40 = vunpack.c.l.b16 %v484_v36  ;;  %2881 = vmatmul.bf16.gmra.mxu1 %v9303_v33  ;;  %332 = vperm.xlu2 %8714, %v9281_v5   ;;  %v312_v41 = vpop.permute.xlu2 %311 }
  0xc1   :  { %vm390_vm7 = vcmp.eq.s32.totalorder %v312_v41, %v9141_v32 }
  0xc2   :  { %v9316_v42 = vpack.c.b16 %v1989_v34, %v1988_v40  ;;  %v8156_v48 = vsel %vm390_vm7, 1.0, %v14152_v35  ;;  %v8281_v40 = vsel %vm1283_vm12, 1.0, %v14152_v35 }
  0xc3   :  { %v486_v59 = vpack.c.bf16 %v8156_v48, %v8156_v48  ;;  %v1379_v45 = vpack.c.bf16 %v8281_v40, %v8281_v40 }
  0xc4   :  { %14568 = vst [vmem:[#allocation12_spill] sm:$0xff] %v9316_v42  ;;  %2726 = vmatmul.bf16.gmra.mxu0 %v9316_v42  ;;  %v1196_v21 = vpop.permute.xlu1 %1195 }
  0xc5   :  { %v1990_v7 = vunpack.c.l.b16 %v486_v59  ;;  %vm1282_vm13 = vcmp.eq.s32.totalorder %v1196_v21, %v9141_v32  ;;  %v2371_v51 = vunpack.c.l.b16 %v1379_v45 }
  0xc6   :  { %8715 = vset.pattern.permute.xlu1 %v14102_v15  ;;  %v8280_v41 = vsel %vm1282_vm13, 1.0, %v14152_v35 }
  0xc7   :  { %1222 = vperm.xlu1 %8715, %v9177_v54   ;;  %8757 = vset.pattern.permute.xlu0 %v14104_v1  ;;  %v1828_v54 = vpack.c.bf16 %v8346_v60, %v8346_v60  ;;  %v9353_v31 = vpack.c.b16 %v1991_v6, %v1990_v7  ;;  %v1378_v21 = vpack.c.bf16 %v8280_v41, %v8280_v41  ;;  %v9406_v6 = vld [vmem:[%s14089_s0 + $0xe8] sm:$0xff] }
  0xc8   :  { %v1190_v57 = vpop.permute.xlu0 %1189  ;;  %8716 = vset.pattern.permute.xlu2 %v14100_v4  ;;  %344 = vperm.xlu0 %8757, %v9156_v39  }
  0xc9   :  { %vm1280_vm10 = vcmp.eq.s32.totalorder %v1190_v57, %v9141_v32  ;;  %1673 = vperm.xlu2 %8716, %v9264_v61   ;;  %v9341_v3 = vpop.permute.xlu2 %1204  ;;  %v2564_v25 = vunpack.c.l.b16 %v1828_v54  ;;  %14571 = vst [vmem:[#allocation15_spill] sm:$0xff] %v9353_v31  ;;  %v2370_v50 = vunpack.c.l.b16 %v1378_v21  ;;  %v936_v21 = vpack.c.bf16 %v8222_v16, %v8222_v16 }
  0xca   :  { %v8278_v63 = vsel %vm1280_vm10, 1.0, %v14152_v35  ;;  %vm1285_vm0 = vcmp.eq.s32.totalorder %v9341_v3, %v9141_v32 }
  0xcb   :  { %v1376_v2 = vpack.c.bf16 %v8278_v63, %v8278_v63  ;;  %v9388_v62 = vpack.c.b16 %v2371_v51, %v2370_v50  ;;  %v8283_v63 = vsel %vm1285_vm0, 1.0, %v14152_v35  ;;  %vm394_vm0 = vcmp.eq.s32.totalorder %v9227_v29, %v9141_v32 }
  0xcc   :  { %v1381_v7 = vpack.c.bf16 %v8283_v63, %v8283_v63 }
  0xcd   :  { %v2368_v10 = vunpack.c.l.b16 %v1376_v2  ;;  %v1653_v11 = vpop.permute.xlu1 %1652  ;;  %14574 = vst [vmem:[#allocation18_spill] sm:$0xff] %v9388_v62 }
  0xce   :  { %vm1733_vm11 = vcmp.eq.s32.totalorder %v1653_v11, %v9141_v32 }
  0xcf   :  { %v9349_v23 = vpack.c.b16 %v2369_v9, %v2368_v10  ;;  %v8347_v24 = vsel %vm1733_vm11, 1.0, %v14152_v35  ;;  %8717 = vset.pattern.permute.xlu1 %v14100_v4 }
  0xd0   :  { %v1829_v27 = vpack.c.bf16 %v8347_v24, %v8347_v24  ;;  %1676 = vperm.xlu1 %8717, %v9281_v5   ;;  %2886 = vmatmul.bf16.gmra.mxu1 %v9346_v13  ;;  %v2373_v24 = vunpack.c.l.b16 %v1381_v7 }
  0xd1   :  { %14570 = vst [vmem:[#allocation14_spill] sm:$0xff] %v9349_v23  ;;  %3036 = vmatmul.bf16.vlgmr.msra.gmra.mxu2 %v9349_v23  ;;  %8718 = vset.pattern.permute.xlu2 %v14110_v8 }
  0xd2   :  { %v2565_v34 = vunpack.c.l.b16 %v1829_v27  ;;  %783 = vperm.xlu2 %8718, %v9269_v14   ;;  %v1659_v36 = vpop.permute.xlu2 %1658  ;;  %353 = vperm.xlu0 %8757, %v9385_v43  }
  0xd3   :  { %vm1735_vm2 = vcmp.eq.s32.totalorder %v1659_v36, %v9141_v32  ;;  %v1211_v36 = vpop.permute.xlu0 %1210 }
  0xd4   :  { %v9368_v58 = vpack.c.b16 %v2565_v34, %v2564_v25  ;;  %2731 = vmatmul.bf16.gmra.mxu0 %v9353_v31  ;;  %v8349_v54 = vsel %vm1735_vm2, 1.0, %v14152_v35  ;;  %vm1287_vm6 = vcmp.eq.s32.totalorder %v1211_v36, %v9141_v32 }
  0xd5   :  { %v1831_v9 = vpack.c.bf16 %v8349_v54, %v8349_v54 }
  0xd6   :  { %14572 = vst [vmem:[#allocation16_spill] sm:$0xff] %v9368_v58  ;;  %3206 = vmatmul.bf16.gmra.mxu3 %v9368_v58  ;;  %v763_v18 = vpop.permute.xlu1 %762 }
  0xd7   :  { %vm839_vm15 = vcmp.eq.s32.totalorder %v763_v18, %v9141_v32  ;;  %v2567_v27 = vunpack.c.l.b16 %v1831_v9 }
  0xd8   :  { %v8221_v48 = vsel %vm839_vm15, 1.0, %v14152_v35  ;;  %8720 = vset.pattern.permute.xlu1 %v14104_v1 }
  0xd9   :  { %v935_v49 = vpack.c.bf16 %v8221_v48, %v8221_v48  ;;  %335 = vperm.xlu1 %8720, %v9269_v14  }
  0xda   :  { %8721 = vset.pattern.permute.xlu2 %v14104_v1  ;;  %374 = vperm.xlu0 %8757, %v9406_v6  }
  0xdb   :  { %v2183_v57 = vunpack.c.l.b16 %v935_v49  ;;  %338 = vperm.xlu2 %8721, %v9092_v20   ;;  %v9378_v59 = vpop.permute.xlu2 %317  ;;  %v8285_v49 = vsel %vm1287_vm6, 1.0, %v14152_v35  ;;  %v9443_v50 = vpop.permute.xlu0 %1219 }
  0xdc   :  { %vm392_vm8 = vcmp.eq.s32.totalorder %v9378_v59, %v9141_v32  ;;  %v1383_v63 = vpack.c.bf16 %v8285_v49, %v8285_v49 }
  0xdd   :  { %v9380_v60 = vpack.c.b16 %v2183_v57, %v2182_v52  ;;  %v2184_v52 = vunpack.c.l.b16 %v936_v21 }
  0xde   :  { %v2375_v9 = vunpack.c.l.b16 %v1383_v63 }
  0xdf   :  { %14573 = vst [vmem:[#allocation17_spill] sm:$0xff] %v9380_v60  ;;  %v1202_v53 = vpop.permute.xlu1 %1201 }
  0xe0   :  { %2891 = vmatmul.bf16.gmra.mxu1 %v9380_v60  ;;  %vm1284_vm1 = vcmp.eq.s32.totalorder %v1202_v53, %v9141_v32 }
  0xe1   :  { %8722 = vset.pattern.permute.xlu1 %v14102_v15  ;;  %3041 = vmatmul.bf16.gmra.mxu2 %v9388_v62  ;;  %v8282_v2 = vsel %vm1284_vm1, 1.0, %v14152_v35 }
  0xe2   :  { %1225 = vperm.xlu1 %8722, %v9264_v61   ;;  %v1380_v61 = vpack.c.bf16 %v8282_v2, %v8282_v2  ;;  %8762 = vset.pattern.permute.xlu0 %v14110_v8 }
  0xe3   :  { %8723 = vset.pattern.permute.xlu2 %v14102_v15  ;;  %795 = vperm.xlu0 %8762, %v9427_v28  }
  0xe4   :  { %1228 = vperm.xlu2 %8723, %v9281_v5   ;;  %v1208_v3 = vpop.permute.xlu2 %1207  ;;  %v9417_v5 = vld [vmem:[%s14089_s0 + $0x90] sm:$0xff]  ;;  %v2372_v25 = vunpack.c.l.b16 %v1380_v61 }
  0xe5   :  { %vm1286_vm5 = vcmp.eq.s32.totalorder %v1208_v3, %v9141_v32  ;;  %v8158_v3 = vsel %vm392_vm8, 1.0, %v14152_v35 }
  0xe6   :  { %v9429_v18 = vpack.c.b16 %v2373_v24, %v2372_v25  ;;  %v8284_v48 = vsel %vm1286_vm5, 1.0, %v14152_v35 }
  0xe7   :  { %v1382_v53 = vpack.c.bf16 %v8284_v48, %v8284_v48 }
  0xe8   :  { %v1656_v10 = vpop.permute.xlu1 %1655  ;;  %14575 = vst [vmem:[#allocation19_spill] sm:$0xff] %v9429_v18 }
  0xe9   :  { %vm1734_vm3 = vcmp.eq.s32.totalorder %v1656_v10, %v9141_v32  ;;  %v2374_v61 = vunpack.c.l.b16 %v1382_v53 }
  0xea   :  { %v8348_v11 = vsel %vm1734_vm3, 1.0, %v14152_v35  ;;  %8724 = vset.pattern.permute.xlu1 %v14100_v4 }
  0xeb   :  { %v1830_v34 = vpack.c.bf16 %v8348_v11, %v8348_v11  ;;  %1682 = vperm.xlu1 %8724, %v9092_v20   ;;  %v488_v11 = vpack.c.bf16 %v8158_v3, %v8158_v3  ;;  %v9458_v24 = vpack.c.b16 %v2375_v9, %v2374_v61 }
  0xec   :  { %8725 = vset.pattern.permute.xlu2 %v14110_v8 }
  0xed   :  { %v2566_v40 = vunpack.c.l.b16 %v1830_v34  ;;  %789 = vperm.xlu2 %8725, %v9417_v5   ;;  %v1665_v41 = vpop.permute.xlu2 %1664  ;;  %14578 = vst [vmem:[#allocation22_spill] sm:$0xff] %v9458_v24  ;;  %v1992_v34 = vunpack.c.l.b16 %v488_v11 }
  0xee   :  { %vm1737_vm10 = vcmp.eq.s32.totalorder %v1665_v41, %v9141_v32 }
  0xef   :  { %v9431_v45 = vpack.c.b16 %v2567_v27, %v2566_v40  ;;  %v9461_v27 = vpop.permute.xlu0 %1240  ;;  %v8351_v16 = vsel %vm1737_vm10, 1.0, %v14152_v35  ;;  %vm1290_vm10 = vcmp.eq.s32.totalorder %v9443_v50, %v9141_v32 }
  0xf0   :  { %v1833_v41 = vpack.c.bf16 %v8351_v16, %v8351_v16 }
  0xf1   :  { %14576 = vst [vmem:[#allocation20_spill] sm:$0xff] %v9431_v45  ;;  %3046 = vmatmul.bf16.gmra.mxu2 %v9429_v18  ;;  %3211 = vmatmul.bf16.gmra.mxu3 %v9431_v45  ;;  %v769_v47 = vpop.permute.xlu1 %768 }
  0xf2   :  { %vm841_vm7 = vcmp.eq.s32.totalorder %v769_v47, %v9141_v32  ;;  %v2569_v48 = vunpack.c.l.b16 %v1833_v41 }
  0xf3   :  { %v8223_v51 = vsel %vm841_vm7, 1.0, %v14152_v35  ;;  %8726 = vset.pattern.permute.xlu1 %v14110_v8  ;;  %vm847_vm7 = vcmp.eq.s32.totalorder %v9306_v37, %v9141_v32 }
  0xf4   :  { %v937_v57 = vpack.c.bf16 %v8223_v51, %v8223_v51  ;;  %792 = vperm.xlu1 %8726, %v9156_v39  }
  0xf5   :  { %8727 = vset.pattern.permute.xlu2 %v14104_v1 }
  0xf6   :  { %v2185_v2 = vunpack.c.l.b16 %v937_v57  ;;  %341 = vperm.xlu2 %8727, %v9417_v5   ;;  %v775_v54 = vpop.permute.xlu2 %774 }
  0xf7   :  { %vm843_vm12 = vcmp.eq.s32.totalorder %v775_v54, %v9141_v32  ;;  %v9486_v54 = vld [vmem:[%s14089_s0 + $0xa8] sm:$0xff] }
  0xf8   :  { %v9451_v7 = vpack.c.b16 %v2185_v2, %v2184_v52  ;;  %v8225_v52 = vsel %vm843_vm12, 1.0, %v14152_v35 }
  0xf9   :  { %v939_v63 = vpack.c.bf16 %v8225_v52, %v8225_v52 }
  0xfa   :  { %14577 = vst [vmem:[#allocation21_spill] sm:$0xff] %v9451_v7  ;;  %2896 = vmatmul.bf16.gmra.mxu1 %v9451_v7  ;;  %v321_v10 = vpop.permute.xlu1 %320 }
  0xfb   :  { %vm393_vm9 = vcmp.eq.s32.totalorder %v321_v10, %v9141_v32  ;;  %v2187_v9 = vunpack.c.l.b16 %v939_v63 }
  0xfc   :  { %v8159_v59 = vsel %vm393_vm9, 1.0, %v14152_v35  ;;  %8728 = vset.pattern.permute.xlu1 %v14102_v15 }
  0xfd   :  { %v489_v25 = vpack.c.bf16 %v8159_v59, %v8159_v59  ;;  %1231 = vperm.xlu1 %8728, %v9269_v14  }
  0xfe   :  { %8729 = vset.pattern.permute.xlu2 %v14102_v15 }
  0xff   :  { %v1993_v36 = vunpack.c.l.b16 %v489_v25  ;;  %1234 = vperm.xlu2 %8729, %v9092_v20   ;;  %v1214_v40 = vpop.permute.xlu2 %1213  ;;  %v1671_v20 = vpop.permute.xlu0 %1670  ;;  %v8160_v25 = vsel %vm394_vm0, 1.0, %v14152_v35 }
 0x100   :  { %vm1739_vm13 = vcmp.eq.s32.totalorder %v1671_v20, %v9141_v32  ;;  %v490_v29 = vpack.c.bf16 %v8160_v25, %v8160_v25  ;;  %vm1288_vm2 = vcmp.eq.s32.totalorder %v1214_v40, %v9141_v32  ;;  %v9531_v25 = vld [vmem:[%s14089_s0 + $0xd8] sm:$0xff] }
 0x101   :  { %v9466_v21 = vpack.c.b16 %v1993_v36, %v1992_v34  ;;  %3051 = vmatmul.bf16.gmra.mxu2 %v9458_v24  ;;  %v8286_v63 = vsel %vm1288_vm2, 1.0, %v14152_v35  ;;  %816 = vperm.xlu0 %8762, %v9531_v25  }
 0x102   :  { %v9837_v22 = vpop.f32.mrf.mxu0 }
 0x103   :  { %14579 = vst [vmem:[#allocation23_spill] sm:$0xff] %v9466_v21  ;;  %2736 = vmatmul.bf16.gmra.mxu0 %v9466_v21  ;;  %v1662_v47 = vpop.permute.xlu1 %1661 }
 0x104   :  { %vm1736_vm11 = vcmp.eq.s32.totalorder %v1662_v47, %v9141_v32 }
 0x105   :  { %v8350_v14 = vsel %vm1736_vm11, 1.0, %v14152_v35  ;;  %8730 = vset.pattern.permute.xlu1 %v14100_v4 }
 0x106   :  { %v1832_v49 = vpack.c.bf16 %v8350_v14, %v8350_v14  ;;  %1685 = vperm.xlu1 %8730, %v9417_v5  }
 0x107   :  { %8731 = vset.pattern.permute.xlu2 %v14100_v4 }
 0x108   :  { %v2568_v51 = vunpack.c.l.b16 %v1832_v49  ;;  %1688 = vperm.xlu2 %8731, %v9156_v39   ;;  %v1668_v57 = vpop.permute.xlu2 %1667  ;;  %v8353_v39 = vsel %vm1739_vm13, 1.0, %v14152_v35  ;;  %v1994_v49 = vunpack.c.l.b16 %v490_v29 }
 0x109   :  { %vm1738_vm14 = vcmp.eq.s32.totalorder %v1668_v57, %v9141_v32  ;;  %v1835_v11 = vpack.c.bf16 %v8353_v39, %v8353_v39 }
 0x10a   :  { %v9478_v53 = vpack.c.b16 %v2569_v48, %v2568_v51  ;;  %v8352_v3 = vsel %vm1738_vm14, 1.0, %v14152_v35 }
 0x10b   :  { %v1834_v59 = vpack.c.bf16 %v8352_v3, %v8352_v3  ;;  %v2571_v41 = vunpack.c.l.b16 %v1835_v11  ;;  %v1384_v3 = vpack.c.bf16 %v8286_v63, %v8286_v63 }
 0x10c   :  { %14580 = vst [vmem:[#allocation24_spill] sm:$0xff] %v9478_v53  ;;  %3216 = vmatmul.bf16.gmra.mxu3 %v9478_v53  ;;  %v772_v2 = vpop.permute.xlu1 %771 }
 0x10d   :  { %vm842_vm15 = vcmp.eq.s32.totalorder %v772_v2, %v9141_v32  ;;  %v2570_v47 = vunpack.c.l.b16 %v1834_v59 }
 0x10e   :  { %v8224_v61 = vsel %vm842_vm15, 1.0, %v14152_v35  ;;  %8732 = vset.pattern.permute.xlu1 %v14110_v8 }
 0x10f   :  { %v938_v10 = vpack.c.bf16 %v8224_v61, %v8224_v61  ;;  %798 = vperm.xlu1 %8732, %v9486_v54   ;;  %v9505_v51 = vpack.c.b16 %v2571_v41, %v2570_v47  ;;  %v2376_v61 = vunpack.c.l.b16 %v1384_v3 }
 0x110   :  { %8733 = vset.pattern.permute.xlu2 %v14104_v1 }
 0x111   :  { %v2186_v34 = vunpack.c.l.b16 %v938_v10  ;;  %347 = vperm.xlu2 %8733, %v9427_v28   ;;  %v781_v36 = vpop.permute.xlu2 %780  ;;  %14582 = vst [vmem:[#allocation26_spill] sm:$0xff] %v9505_v51 }
 0x112   :  { %vm845_vm4 = vcmp.eq.s32.totalorder %v781_v36, %v9141_v32 }
 0x113   :  { %v9499_v16 = vpack.c.b16 %v2187_v9, %v2186_v34  ;;  %v8227_v10 = vsel %vm845_vm4, 1.0, %v14152_v35 }
 0x114   :  { %v941_v34 = vpack.c.bf16 %v8227_v10, %v8227_v10 }
 0x115   :  { %14581 = vst [vmem:[#allocation25_spill] sm:$0xff] %v9499_v16  ;;  %2901 = vmatmul.bf16.gmra.mxu1 %v9499_v16  ;;  %v327_v14 = vpop.permute.xlu1 %326 }
 0x116   :  { %vm395_vm1 = vcmp.eq.s32.totalorder %v327_v14, %v9141_v32  ;;  %v2189_v41 = vunpack.c.l.b16 %v941_v34  ;;  %v8288_v34 = vsel %vm1290_vm10, 1.0, %v14152_v35 }
 0x117   :  { %v8161_v48 = vsel %vm395_vm1, 1.0, %v14152_v35  ;;  %8734 = vset.pattern.permute.xlu1 %v14104_v1 }
 0x118   :  { %v491_v20 = vpack.c.bf16 %v8161_v48, %v8161_v48  ;;  %350 = vperm.xlu1 %8734, %v9486_v54  }
 0x119   :  { %8735 = vset.pattern.permute.xlu2 %v14102_v15 }
 0x11a   :  { %v1995_v52 = vunpack.c.l.b16 %v491_v20  ;;  %1237 = vperm.xlu2 %8735, %v9417_v5   ;;  %v333_v57 = vpop.permute.xlu2 %332 }
 0x11b   :  { %vm397_vm6 = vcmp.eq.s32.totalorder %v333_v57, %v9141_v32 }
 0x11c   :  { %v9512_v2 = vpack.c.b16 %v1995_v52, %v1994_v49  ;;  %3221 = vmatmul.bf16.gmra.mxu3 %v9505_v51  ;;  %v8163_v48 = vsel %vm397_vm6, 1.0, %v14152_v35  ;;  %v9551_v52 = vld [vmem:[%s14089_s0 + $0xf0] sm:$0xff]  ;;  %v9779_v51 = vpop.f32.mrf.mxu3 }
 0x11d   :  { %825 = vperm.xlu0 %8762, %v9551_v52   ;;  %v493_v57 = vpack.c.bf16 %v8163_v48, %v8163_v48  ;;  %14605 = vst [vmem:[#allocation45_spill] sm:$0xff] %v9779_v51 }
 0x11e   :  { %14583 = vst [vmem:[#allocation27_spill] sm:$0xff] %v9512_v2  ;;  %2741 = vmatmul.bf16.gmra.mxu0 %v9512_v2  ;;  %v1217_v39 = vpop.permute.xlu1 %1216 }
 0x11f   :  { %vm1289_vm3 = vcmp.eq.s32.totalorder %v1217_v39, %v9141_v32  ;;  %v8229_v39 = vsel %vm847_vm7, 1.0, %v14152_v35 }
 0x120   :  { %v8287_v40 = vsel %vm1289_vm3, 1.0, %v14152_v35  ;;  %8737 = vset.pattern.permute.xlu1 %v14100_v4 }
 0x121   :  { %v1385_v5 = vpack.c.bf16 %v8287_v40, %v8287_v40  ;;  %1691 = vperm.xlu1 %8737, %v9427_v28   ;;  %v9558_v3 = vpop.permute.xlu0 %1679 }
 0x122   :  { %8738 = vset.pattern.permute.xlu2 %v14100_v4  ;;  %vm1742_vm4 = vcmp.eq.s32.totalorder %v9558_v3, %v9141_v32 }
 0x123   :  { %v2377_v9 = vunpack.c.l.b16 %v1385_v5  ;;  %1694 = vperm.xlu2 %8738, %v9486_v54   ;;  %v9524_v11 = vpop.permute.xlu2 %1673  ;;  %v1997_v5 = vunpack.c.l.b16 %v493_v57 }
 0x124   :  { %vm1740_vm12 = vcmp.eq.s32.totalorder %v9524_v11, %v9141_v32  ;;  %v9594_v11 = vld [vmem:[%s14089_s0 + $0xc0] sm:$0xff] }
 0x125   :  { %v9526_v59 = vpack.c.b16 %v2377_v9, %v2376_v61  ;;  %v943_v9 = vpack.c.bf16 %v8229_v39, %v8229_v39  ;;  %8767 = vset.pattern.permute.xlu0 %v14102_v15 }
 0x126   :  { %1249 = vperm.xlu0 %8767, %v9385_v43  }
 0x127   :  { %14584 = vst [vmem:[#allocation28_spill] sm:$0xff] %v9526_v59  ;;  %3056 = vmatmul.bf16.gmra.mxu2 %v9526_v59  ;;  %v778_v36 = vpop.permute.xlu1 %777 }
 0x128   :  { %vm844_vm5 = vcmp.eq.s32.totalorder %v778_v36, %v9141_v32 }
 0x129   :  { %v8226_v29 = vsel %vm844_vm5, 1.0, %v14152_v35  ;;  %8739 = vset.pattern.permute.xlu1 %v14110_v8 }
 0x12a   :  { %v940_v47 = vpack.c.bf16 %v8226_v29, %v8226_v29  ;;  %801 = vperm.xlu1 %8739, %v9385_v43  }
 0x12b   :  { %8740 = vset.pattern.permute.xlu2 %v14110_v8 }
 0x12c   :  { %v2188_v14 = vunpack.c.l.b16 %v940_v47  ;;  %804 = vperm.xlu2 %8740, %v9296_v26   ;;  %v784_v49 = vpop.permute.xlu2 %783  ;;  %v1386_v47 = vpack.c.bf16 %v8288_v34, %v8288_v34 }
 0x12d   :  { %vm846_vm8 = vcmp.eq.s32.totalorder %v784_v49, %v9141_v32 }
 0x12e   :  { %v9545_v20 = vpack.c.b16 %v2189_v41, %v2188_v14  ;;  %v8228_v37 = vsel %vm846_vm8, 1.0, %v14152_v35  ;;  %v2191_v41 = vunpack.c.l.b16 %v943_v9  ;;  %v2378_v57 = vunpack.c.l.b16 %v1386_v47  ;;  %1270 = vperm.xlu0 %8767, %v9406_v6  }
 0x12f   :  { %v942_v10 = vpack.c.bf16 %v8228_v37, %v8228_v37 }
 0x130   :  { %14585 = vst [vmem:[#allocation29_spill] sm:$0xff] %v9545_v20  ;;  %2906 = vmatmul.bf16.gmra.mxu1 %v9545_v20  ;;  %v330_v63 = vpop.permute.xlu1 %329 }
 0x131   :  { %vm396_vm9 = vcmp.eq.s32.totalorder %v330_v63, %v9141_v32  ;;  %v2190_v14 = vunpack.c.l.b16 %v942_v10  ;;  %v9603_v10 = vld [vmem:[%s14089_s0 + $0xc8] sm:$0xff] }
 0x132   :  { %v8162_v40 = vsel %vm396_vm9, 1.0, %v14152_v35  ;;  %8741 = vset.pattern.permute.xlu1 %v14104_v1 }
 0x133   :  { %v492_v61 = vpack.c.bf16 %v8162_v40, %v8162_v40  ;;  %356 = vperm.xlu1 %8741, %v9296_v26   ;;  %v9578_v39 = vpack.c.b16 %v2191_v41, %v2190_v14 }
 0x134   :  { %8742 = vset.pattern.permute.xlu2 %v14102_v15 }
 0x135   :  { %v1996_v36 = vunpack.c.l.b16 %v492_v61  ;;  %1243 = vperm.xlu2 %8742, %v9427_v28   ;;  %v339_v29 = vpop.permute.xlu2 %338  ;;  %v9576_v28 = vpop.permute.xlu0 %1700  ;;  %14587 = vst [vmem:[#allocation31_spill] sm:$0xff] %v9578_v39 }
 0x136   :  { %vm399_vm14 = vcmp.eq.s32.totalorder %v339_v29, %v9141_v32 }
 0x137   :  { %v9569_v50 = vpack.c.b16 %v1997_v5, %v1996_v36  ;;  %v8354_v5 = vsel %vm1740_vm12, 1.0, %v14152_v35  ;;  %v8165_v14 = vsel %vm399_vm14, 1.0, %v14152_v35 }
 0x138   :  { %v1836_v9 = vpack.c.bf16 %v8354_v5, %v8354_v5 }
 0x139   :  { %14586 = vst [vmem:[#allocation30_spill] sm:$0xff] %v9569_v50  ;;  %2746 = vmatmul.bf16.gmra.mxu0 %v9569_v50  ;;  %v1223_v48 = vpop.permute.xlu1 %1222 }
 0x13a   :  { %vm1291_vm11 = vcmp.eq.s32.totalorder %v1223_v48, %v9141_v32  ;;  %v2572_v41 = vunpack.c.l.b16 %v1836_v9 }
 0x13b   :  { %v8289_v49 = vsel %vm1291_vm11, 1.0, %v14152_v35  ;;  %8743 = vset.pattern.permute.xlu1 %v14102_v15  ;;  %vm1297_vm11 = vcmp.eq.s32.totalorder %v9461_v27, %v9141_v32  ;;  %v9693_v27 = vld [vmem:[%s14089_s0 + $0xe0] sm:$0xff] }
 0x13c   :  { %v1387_v63 = vpack.c.bf16 %v8289_v49, %v8289_v49  ;;  %1246 = vperm.xlu1 %8743, %v9486_v54   ;;  %v495_v49 = vpack.c.bf16 %v8165_v14, %v8165_v14 }
 0x13d   :  { %8744 = vset.pattern.permute.xlu2 %v14100_v4  ;;  %v9606_v36 = vpop.permute.xlu0 %1709 }
 0x13e   :  { %v2379_v37 = vunpack.c.l.b16 %v1387_v63  ;;  %1697 = vperm.xlu2 %8744, %v9385_v43   ;;  %v1229_v40 = vpop.permute.xlu2 %1228 }
 0x13f   :  { %vm1293_vm0 = vcmp.eq.s32.totalorder %v1229_v40, %v9141_v32 }
 0x140   :  { %v9587_v61 = vpack.c.b16 %v2379_v37, %v2378_v57  ;;  %2911 = vmatmul.bf16.gmra.mxu1 %v9578_v39  ;;  %v1999_v37 = vunpack.c.l.b16 %v495_v49 }
 0x142   :  { %14588 = vst [vmem:[#allocation32_spill] sm:$0xff] %v9587_v61  ;;  %3061 = vmatmul.bf16.gmra.mxu2 %v9587_v61  ;;  %v1677_v54 = vpop.permute.xlu1 %1676 }
 0x143   :  { %vm1741_vm13 = vcmp.eq.s32.totalorder %v1677_v54, %v9141_v32 }
 0x144   :  { %v8355_v43 = vsel %vm1741_vm13, 1.0, %v14152_v35  ;;  %8745 = vset.pattern.permute.xlu1 %v14110_v8 }
 0x145   :  { %v1837_v34 = vpack.c.bf16 %v8355_v43, %v8355_v43  ;;  %807 = vperm.xlu1 %8745, %v9594_v11   ;;  %v345_v54 = vpop.permute.xlu0 %344  ;;  %v8291_v43 = vsel %vm1293_vm0, 1.0, %v14152_v35 }
 0x146   :  { %8746 = vset.pattern.permute.xlu2 %v14110_v8  ;;  %vm401_vm1 = vcmp.eq.s32.totalorder %v345_v54, %v9141_v32  ;;  %v1389_v40 = vpack.c.bf16 %v8291_v43, %v8291_v43 }
 0x147   :  { %v2573_v47 = vunpack.c.l.b16 %v1837_v34  ;;  %810 = vperm.xlu2 %8746, %v9603_v10   ;;  %v790_v48 = vpop.permute.xlu2 %789  ;;  %v8167_v14 = vsel %vm401_vm1, 1.0, %v14152_v35 }
 0x148   :  { %vm848_vm6 = vcmp.eq.s32.totalorder %v790_v48, %v9141_v32 }
 0x149   :  { %v9611_v29 = vpack.c.b16 %v2573_v47, %v2572_v41 }
 0x14b   :  { %14589 = vst [vmem:[#allocation33_spill] sm:$0xff] %v9611_v29  ;;  %3226 = vmatmul.bf16.gmra.mxu3 %v9611_v29  ;;  %v336_v57 = vpop.permute.xlu1 %335 }
 0x14c   :  { %vm398_vm15 = vcmp.eq.s32.totalorder %v336_v57, %v9141_v32 }
 0x14d   :  { %v8164_v63 = vsel %vm398_vm15, 1.0, %v14152_v35  ;;  %8747 = vset.pattern.permute.xlu1 %v14104_v1 }
 0x14e   :  { %v494_v5 = vpack.c.bf16 %v8164_v63, %v8164_v63  ;;  %359 = vperm.xlu1 %8747, %v9594_v11   ;;  %v2381_v63 = vunpack.c.l.b16 %v1389_v40 }
 0x14f   :  { %8748 = vset.pattern.permute.xlu2 %v14104_v1 }
 0x150   :  { %v1998_v9 = vunpack.c.l.b16 %v494_v5  ;;  %362 = vperm.xlu2 %8748, %v9603_v10   ;;  %v342_v34 = vpop.permute.xlu2 %341  ;;  %v497_v5 = vpack.c.bf16 %v8167_v14, %v8167_v14 }
 0x151   :  { %vm400_vm2 = vcmp.eq.s32.totalorder %v342_v34, %v9141_v32 }
 0x152   :  { %v9622_v41 = vpack.c.b16 %v1999_v37, %v1998_v9  ;;  %v8166_v49 = vsel %vm400_vm2, 1.0, %v14152_v35  ;;  %v8356_v9 = vsel %vm1742_vm4, 1.0, %v14152_v35  ;;  %v2001_v30 = vunpack.c.l.b16 %v497_v5  ;;  %v9650_v5 = vpop.permute.xlu0 %353 }
 0x153   :  { %v496_v54 = vpack.c.bf16 %v8166_v49, %v8166_v49  ;;  %v1838_v3 = vpack.c.bf16 %v8356_v9, %v8356_v9 }
 0x154   :  { %14590 = vst [vmem:[#allocation34_spill] sm:$0xff] %v9622_v41  ;;  %2751 = vmatmul.bf16.gmra.mxu0 %v9622_v41  ;;  %v1226_v47 = vpop.permute.xlu1 %1225 }
 0x155   :  { %vm1292_vm3 = vcmp.eq.s32.totalorder %v1226_v47, %v9141_v32  ;;  %v2000_v0 = vunpack.c.l.b16 %v496_v54  ;;  %v2574_v14 = vunpack.c.l.b16 %v1838_v3  ;;  %v8230_v54 = vsel %vm848_vm6, 1.0, %v14152_v35 }
 0x156   :  { %v8290_v57 = vsel %vm1292_vm3, 1.0, %v14152_v35  ;;  %8749 = vset.pattern.permute.xlu1 %v14102_v15 }
 0x157   :  { %v1388_v37 = vpack.c.bf16 %v8290_v57, %v8290_v57  ;;  %1252 = vperm.xlu1 %8749, %v9296_v26   ;;  %v9644_v57 = vpack.c.b16 %v2001_v30, %v2000_v0  ;;  %v944_v30 = vpack.c.bf16 %v8230_v54, %v8230_v54 }
 0x158   :  { %8750 = vset.pattern.permute.xlu2 %v14100_v4 }
 0x159   :  { %v2380_v43 = vunpack.c.l.b16 %v1388_v37  ;;  %1703 = vperm.xlu2 %8750, %v9594_v11   ;;  %v1235_v34 = vpop.permute.xlu2 %1234  ;;  %14592 = vst [vmem:[#allocation36_spill] sm:$0xff] %v9644_v57  ;;  %v2192_v3 = vunpack.c.l.b16 %v944_v30 }
 0x15a   :  { %vm1295_vm8 = vcmp.eq.s32.totalorder %v1235_v34, %v9141_v32 }
 0x15b   :  { %v9638_v47 = vpack.c.b16 %v2381_v63, %v2380_v43 }
 0x15d   :  { %14591 = vst [vmem:[#allocation35_spill] sm:$0xff] %v9638_v47  ;;  %3066 = vmatmul.bf16.gmra.mxu2 %v9638_v47  ;;  %v1683_v40 = vpop.permute.xlu1 %1682 }
 0x15e   :  { %vm1743_vm5 = vcmp.eq.s32.totalorder %v1683_v40, %v9141_v32 }
 0x15f   :  { %v8357_v26 = vsel %vm1743_vm5, 1.0, %v14152_v35  ;;  %8751 = vset.pattern.permute.xlu1 %v14100_v4  ;;  %vm1749_vm5 = vcmp.eq.s32.totalorder %v9576_v28, %v9141_v32  ;;  %v14604_v28 = vmov 3  }
 0x160   :  { %v1839_v49 = vpack.c.bf16 %v8357_v26, %v8357_v26  ;;  %1706 = vperm.xlu1 %8751, %v9603_v10   ;;  %v8293_v26 = vsel %vm1295_vm8, 1.0, %v14152_v35  ;;  %vm404_vm8 = vcmp.eq.s32.totalorder %v9650_v5, %v9141_v32 }
 0x161   :  { %8752 = vset.pattern.permute.xlu2 %v14110_v8  ;;  %v1391_v54 = vpack.c.bf16 %v8293_v26, %v8293_v26 }
 0x162   :  { %v2575_v63 = vunpack.c.l.b16 %v1839_v49  ;;  %813 = vperm.xlu2 %8752, %v9322_v44   ;;  %v1689_v37 = vpop.permute.xlu2 %1688 }
 0x163   :  { %vm1745_vm10 = vcmp.eq.s32.totalorder %v1689_v37, %v9141_v32  ;;  %v2383_v30 = vunpack.c.l.b16 %v1391_v54 }
 0x164   :  { %v9653_v9 = vpack.c.b16 %v2575_v63, %v2574_v14  ;;  %2756 = vmatmul.bf16.gmra.mxu0 %v9644_v57  ;;  %v9667_v63 = vpop.permute.xlu0 %374 }
 0x166   :  { %14593 = vst [vmem:[#allocation37_spill] sm:$0xff] %v9653_v9  ;;  %3231 = vmatmul.bf16.gmra.mxu3 %v9653_v9  ;;  %v793_v0 = vpop.permute.xlu1 %792 }
 0x167   :  { %vm849_vm7 = vcmp.eq.s32.totalorder %v793_v0, %v9141_v32 }
 0x168   :  { %v8231_v48 = vsel %vm849_vm7, 1.0, %v14152_v35  ;;  %8753 = vset.pattern.permute.xlu1 %v14104_v1 }
 0x169   :  { %v945_v43 = vpack.c.bf16 %v8231_v48, %v8231_v48  ;;  %365 = vperm.xlu1 %8753, %v9322_v44  }
 0x16a   :  { %8754 = vset.pattern.permute.xlu2 %v14104_v1 }
 0x16b   :  { %v2193_v40 = vunpack.c.l.b16 %v945_v43  ;;  %368 = vperm.xlu2 %8754, %v9531_v25   ;;  %v348_v14 = vpop.permute.xlu2 %347 }
 0x16c   :  { %v796_v54 = vpop.permute.xlu0 %795  ;;  %vm402_vm0 = vcmp.eq.s32.totalorder %v348_v14, %v9141_v32  ;;  %v14600_v14 = vmov 5  }
 0x16d   :  { %v9665_v49 = vpack.c.b16 %v2193_v40, %v2192_v3  ;;  %v8359_v3 = vsel %vm1745_vm10, 1.0, %v14152_v35  ;;  %vm850_vm14 = vcmp.eq.s32.totalorder %v796_v54, %v9141_v32 }
 0x16e   :  { %v1841_v37 = vpack.c.bf16 %v8359_v3, %v8359_v3 }
 0x16f   :  { %14594 = vst [vmem:[#allocation38_spill] sm:$0xff] %v9665_v49  ;;  %2916 = vmatmul.bf16.gmra.mxu1 %v9665_v49  ;;  %v1232_v34 = vpop.permute.xlu1 %1231 }
 0x170   :  { %vm1294_vm9 = vcmp.eq.s32.totalorder %v1232_v34, %v9141_v32  ;;  %v8295_v34 = vsel %vm1297_vm11, 1.0, %v14152_v35 }
 0x171   :  { %v8292_v0 = vsel %vm1294_vm9, 1.0, %v14152_v35  ;;  %8755 = vset.pattern.permute.xlu1 %v14102_v15 }
 0x172   :  { %v1390_v48 = vpack.c.bf16 %v8292_v0, %v8292_v0  ;;  %1255 = vperm.xlu1 %8755, %v9594_v11  }
 0x173   :  { %8756 = vset.pattern.permute.xlu2 %v14102_v15 }
 0x174   :  { %v2382_v43 = vunpack.c.l.b16 %v1390_v48  ;;  %1258 = vperm.xlu2 %8756, %v9603_v10   ;;  %v1238_v40 = vpop.permute.xlu2 %1237 }
 0x175   :  { %vm1296_vm12 = vcmp.eq.s32.totalorder %v1238_v40, %v9141_v32 }
 0x176   :  { %v9680_v26 = vpack.c.b16 %v2383_v30, %v2382_v43  ;;  %v8294_v0 = vsel %vm1296_vm12, 1.0, %v14152_v35  ;;  %v2577_v30 = vunpack.c.l.b16 %v1841_v37  ;;  %v1393_v43 = vpack.c.bf16 %v8295_v34, %v8295_v34 }
 0x177   :  { %v1392_v3 = vpack.c.bf16 %v8294_v0, %v8294_v0 }
 0x178   :  { %14595 = vst [vmem:[#allocation39_spill] sm:$0xff] %v9680_v26  ;;  %3071 = vmatmul.bf16.gmra.mxu2 %v9680_v26  ;;  %v1686_v11 = vpop.permute.xlu1 %1685  ;;  %v2385_v15 = vunpack.c.l.b16 %v1393_v43 }
 0x179   :  { %vm1744_vm13 = vcmp.eq.s32.totalorder %v1686_v11, %v9141_v32  ;;  %v8232_v11 = vsel %vm850_vm14, 1.0, %v14152_v35  ;;  %v2384_v9 = vunpack.c.l.b16 %v1392_v3 }
 0x17a   :  { %v8358_v10 = vsel %vm1744_vm13, 1.0, %v14152_v35  ;;  %8758 = vset.pattern.permute.xlu1 %v14100_v4  ;;  %v946_v1 = vpack.c.bf16 %v8232_v11, %v8232_v11 }
 0x17b   :  { %v1840_v48 = vpack.c.bf16 %v8358_v10, %v8358_v10  ;;  %1712 = vperm.xlu1 %8758, %v9531_v25  }
 0x17c   :  { %8759 = vset.pattern.permute.xlu2 %v14110_v8  ;;  %v2194_v0 = vunpack.c.l.b16 %v946_v1 }
 0x17d   :  { %v2576_v40 = vunpack.c.l.b16 %v1840_v48  ;;  %819 = vperm.xlu2 %8759, %v9693_v27   ;;  %v1695_v4 = vpop.permute.xlu2 %1694  ;;  %v9705_v48 = vpack.c.b16 %v2385_v15, %v2384_v9 }
 0x17e   :  { %vm1747_vm2 = vcmp.eq.s32.totalorder %v1695_v4, %v9141_v32 }
 0x17f   :  { %v9699_v54 = vpack.c.b16 %v2577_v30, %v2576_v40  ;;  %14597 = vst [vmem:[#allocation41_spill] sm:$0xff] %v9705_v48  ;;  %v14598_v30 = vmov 1   ;;  %v8168_v40 = vsel %vm402_vm0, 1.0, %v14152_v35 }
 0x180   :  { %v498_v15 = vpack.c.bf16 %v8168_v40, %v8168_v40  ;;  %v8361_v40 = vsel %vm1747_vm2, 1.0, %v14152_v35 }
 0x181   :  { %14596 = vst [vmem:[#allocation40_spill] sm:$0xff] %v9699_v54  ;;  %3236 = vmatmul.bf16.gmra.mxu3 %v9699_v54  ;;  %v799_v37 = vpop.permute.xlu1 %798  ;;  %v14114_v54 = vmov 2  }
 0x182   :  { %vm851_vm15 = vcmp.eq.s32.totalorder %v799_v37, %v9141_v32  ;;  %v14108_v37 = vmov 0  }
 0x183   :  { %v8233_v34 = vsel %vm851_vm15, 1.0, %v14152_v35  ;;  %8760 = vset.pattern.permute.xlu1 %v14110_v8  ;;  %8780 = vset.pattern.permute.xlu0 %v14108_v37  ;;  %v14602_v8 = vmov 7  }
 0x184   :  { %v947_v10 = vpack.c.bf16 %v8233_v34, %v8233_v34  ;;  %822 = vperm.xlu1 %8760, %v9406_v6  }
 0x185   :  { %8761 = vset.pattern.permute.xlu2 %v14598_v30 }
 0x186   :  { %v2195_v43 = vunpack.c.l.b16 %v947_v10  ;;  %371 = vperm.xlu2 %8761, %v9693_v27   ;;  %v805_v3 = vpop.permute.xlu2 %804  ;;  %v2002_v10 = vunpack.c.l.b16 %v498_v15 }
 0x187   :  { %vm853_vm4 = vcmp.eq.s32.totalorder %v805_v3, %v9141_v32 }
 0x188   :  { %v9712_v11 = vpack.c.b16 %v2195_v43, %v2194_v0  ;;  %3076 = vmatmul.bf16.gmra.mxu2 %v9705_v48  ;;  %v9725_v0 = vld [vmem:[%s14089_s0 + $0x8] sm:$0xff]  ;;  %v14616_v48 = vmov 4  }
 0x189   :  { %66 = vperm.xlu0 %8780, %v9725_v0  }
 0x18a   :  { %14599 = vst [vmem:[#allocation42_spill] sm:$0xff] %v9712_v11  ;;  %2921 = vmatmul.bf16.gmra.mxu1 %v9712_v11  ;;  %v351_v1 = vpop.permute.xlu1 %350 }
 0x18b   :  { %vm403_vm1 = vcmp.eq.s32.totalorder %v351_v1, %v9141_v32 }
 0x18c   :  { %v8169_v9 = vsel %vm403_vm1, 1.0, %v14152_v35  ;;  %8763 = vset.pattern.permute.xlu1 %v14600_v14 }
 0x18d   :  { %v499_v34 = vpack.c.bf16 %v8169_v9, %v8169_v9  ;;  %1261 = vperm.xlu1 %8763, %v9322_v44   ;;  %v1843_v44 = vpack.c.bf16 %v8361_v40, %v8361_v40 }
 0x18e   :  { %8764 = vset.pattern.permute.xlu2 %v14600_v14 }
 0x18f   :  { %v2003_v43 = vunpack.c.l.b16 %v499_v34  ;;  %1264 = vperm.xlu2 %8764, %v9531_v25   ;;  %v9731_v4 = vpop.permute.xlu2 %1243  ;;  %v9743_v25 = vld [vmem:[%s14089_s0 + $0x20] sm:$0xff]  ;;  %v2579_v15 = vunpack.c.l.b16 %v1843_v44  ;;  %v8363_v44 = vsel %vm1749_vm5, 1.0, %v14152_v35 }
 0x190   :  { %v1845_v5 = vpack.c.bf16 %v8363_v44, %v8363_v44  ;;  %v9788_v44 = vld [vmem:[%s14089_s0 + $0x38] sm:$0xff]  ;;  %vm1298_vm10 = vcmp.eq.s32.totalorder %v9731_v4, %v9141_v32 }
 0x191   :  { %v9733_v1 = vpack.c.b16 %v2003_v43, %v2002_v10  ;;  %75 = vperm.xlu0 %8780, %v9743_v25   ;;  %v8235_v43 = vsel %vm853_vm4, 1.0, %v14152_v35 }
 0x193   :  { %14601 = vst [vmem:[#allocation43_spill] sm:$0xff] %v9733_v1  ;;  %2761 = vmatmul.bf16.gmra.mxu0 %v9733_v1  ;;  %v1692_v9 = vpop.permute.xlu1 %1691 }
 0x194   :  { %vm1746_vm3 = vcmp.eq.s32.totalorder %v1692_v9, %v9141_v32  ;;  %v949_v9 = vpack.c.bf16 %v8235_v43, %v8235_v43 }
 0x195   :  { %v8360_v37 = vsel %vm1746_vm3, 1.0, %v14152_v35  ;;  %8765 = vset.pattern.permute.xlu1 %v14602_v8 }
 0x196   :  { %v1842_v34 = vpack.c.bf16 %v8360_v37, %v8360_v37  ;;  %1715 = vperm.xlu1 %8765, %v9693_v27  }
 0x197   :  { %8766 = vset.pattern.permute.xlu2 %v14602_v8 }
 0x198   :  { %v2578_v10 = vunpack.c.l.b16 %v1842_v34  ;;  %1718 = vperm.xlu2 %8766, %v9406_v6   ;;  %v1698_v40 = vpop.permute.xlu2 %1697 }
 0x199   :  { %vm1748_vm6 = vcmp.eq.s32.totalorder %v1698_v40, %v9141_v32  ;;  %8793 = vset.pattern.permute.xlu0 %v14114_v54  ;;  %v9773_v40 = vld [vmem:[%s14089_s0 + $0xf8] sm:$0xff]  ;;  %v8170_v54 = vsel %vm404_vm8, 1.0, %v14152_v35 }
 0x19a   :  { %v9752_v3 = vpack.c.b16 %v2579_v15, %v2578_v10  ;;  %v8362_v34 = vsel %vm1748_vm6, 1.0, %v14152_v35  ;;  %v9767_v15 = vld [vmem:[%s14089_s0] sm:$0xff]  ;;  %v2197_v10 = vunpack.c.l.b16 %v949_v9  ;;  %v500_v53 = vpack.c.bf16 %v8170_v54, %v8170_v54 }
 0x19b   :  { %511 = vperm.xlu0 %8793, %v9767_v15  }
 0x19c   :  { %14603 = vst [vmem:[#allocation44_spill] sm:$0xff] %v9752_v3  ;;  %3241 = vmatmul.bf16.gmra.mxu3 %v9752_v3  ;;  %v802_v37 = vpop.permute.xlu1 %801 }
 0x19d   :  { %vm852_vm7 = vcmp.eq.s32.totalorder %v802_v37, %v9141_v32  ;;  %v1844_v37 = vpack.c.bf16 %v8362_v34, %v8362_v34 }
 0x19e   :  { %v8234_v6 = vsel %vm852_vm7, 1.0, %v14152_v35  ;;  %8768 = vset.pattern.permute.xlu1 %v14604_v28 }
 0x19f   :  { %v948_v43 = vpack.c.bf16 %v8234_v6, %v8234_v6  ;;  %828 = vperm.xlu1 %8768, %v9773_v40   ;;  %v2581_v6 = vunpack.c.l.b16 %v1845_v5  ;;  %v2580_v45 = vunpack.c.l.b16 %v1844_v37  ;;  %v817_v5 = vpop.permute.xlu0 %816  ;;  %v9800_v37 = vpop.f32.mrf.mxu3 }
 0x1a0   :  { %8769 = vset.pattern.permute.xlu2 %v14598_v30  ;;  %14608 = vst [vmem:[#allocation48_spill] sm:$0xff] %v9800_v37  ;;  %vm857_vm15 = vcmp.eq.s32.totalorder %v817_v5, %v9141_v32 }
 0x1a1   :  { %v2196_v3 = vunpack.c.l.b16 %v948_v43  ;;  %377 = vperm.xlu2 %8769, %v9551_v52   ;;  %v811_v29 = vpop.permute.xlu2 %810  ;;  %v9793_v54 = vpack.c.b16 %v2581_v6, %v2580_v45  ;;  %v14610_v6 = vmov 6  }
 0x1a2   :  { %vm855_vm12 = vcmp.eq.s32.totalorder %v811_v29, %v9141_v32 }
 0x1a3   :  { %v9781_v9 = vpack.c.b16 %v2197_v10, %v2196_v3  ;;  %532 = vperm.xlu0 %8793, %v9788_v44   ;;  %v2004_v3 = vunpack.c.l.b16 %v500_v53  ;;  %14607 = vst [vmem:[#allocation47_spill] sm:$0xff] %v9793_v54  ;;  %v8237_v37 = vsel %vm855_vm12, 1.0, %v14152_v35  ;;  %vm1752_vm12 = vcmp.eq.s32.totalorder %v9606_v36, %v9141_v32  ;;  %v9965_v36 = vld [vmem:[%s14089_s0 + $0x70] sm:$0xff] }
 0x1a5   :  { %14606 = vst [vmem:[#allocation46_spill] sm:$0xff] %v9781_v9  ;;  %2926 = vmatmul.bf16.gmra.mxu1 %v9781_v9  ;;  %v357_v58 = vpop.permute.xlu1 %356 }
 0x1a6   :  { %vm405_vm9 = vcmp.eq.s32.totalorder %v357_v58, %v9141_v32 }
 0x1a7   :  { %v8171_v34 = vsel %vm405_vm9, 1.0, %v14152_v35  ;;  %8770 = vset.pattern.permute.xlu1 %v14598_v30  ;;  %v8296_v30 = vsel %vm1298_vm10, 1.0, %v14152_v35  ;;  %v9821_v51 = vpop.permute.xlu0 %825  ;;  %vm411_vm9 = vcmp.eq.s32.totalorder %v9667_v63, %v9141_v32 }
 0x1a8   :  { %v501_v10 = vpack.c.bf16 %v8171_v34, %v8171_v34  ;;  %380 = vperm.xlu1 %8770, %v9773_v40   ;;  %v1394_v4 = vpack.c.bf16 %v8296_v30, %v8296_v30 }
 0x1a9   :  { %8771 = vset.pattern.permute.xlu2 %v14600_v14 }
 0x1aa   :  { %v2005_v58 = vunpack.c.l.b16 %v501_v10  ;;  %1267 = vperm.xlu2 %8771, %v9693_v27   ;;  %v363_v43 = vpop.permute.xlu2 %362  ;;  %v2386_v10 = vunpack.c.l.b16 %v1394_v4  ;;  %v14132_v4 = vmov 4  }
 0x1ab   :  { %8798 = vset.pattern.permute.xlu0 %v14610_v6  ;;  %vm407_vm14 = vcmp.eq.s32.totalorder %v363_v43, %v9141_v32 }
 0x1ac   :  { %v9803_v53 = vpack.c.b16 %v2005_v58, %v2004_v3  ;;  %3246 = vmatmul.bf16.gmra.mxu3 %v9793_v54  ;;  %1407 = vperm.xlu0 %8798, %v9767_v15   ;;  %v951_v54 = vpack.c.bf16 %v8237_v37, %v8237_v37 }
 0x1ae   :  { %14609 = vst [vmem:[#allocation49_spill] sm:$0xff] %v9803_v53  ;;  %2766 = vmatmul.bf16.gmra.mxu0 %v9803_v53  ;;  %v1247_v45 = vpop.permute.xlu1 %1246 }
 0x1af   :  { %vm1299_vm11 = vcmp.eq.s32.totalorder %v1247_v45, %v9141_v32  ;;  %v1250_v43 = vpop.permute.xlu0 %1249 }
 0x1b0   :  { %v8297_v34 = vsel %vm1299_vm11, 1.0, %v14152_v35  ;;  %8772 = vset.pattern.permute.xlu1 %v14602_v8  ;;  %vm1300_vm2 = vcmp.eq.s32.totalorder %v1250_v43, %v9141_v32 }
 0x1b1   :  { %v1395_v3 = vpack.c.bf16 %v8297_v34, %v8297_v34  ;;  %1721 = vperm.xlu1 %8772, %v9551_v52   ;;  %v2199_v34 = vunpack.c.l.b16 %v951_v54  ;;  %v8298_v53 = vsel %vm1300_vm2, 1.0, %v14152_v35 }
 0x1b2   :  { %8773 = vset.pattern.permute.xlu2 %v14602_v8  ;;  %v1396_v43 = vpack.c.bf16 %v8298_v53, %v8298_v53 }
 0x1b3   :  { %v2387_v58 = vunpack.c.l.b16 %v1395_v3  ;;  %1724 = vperm.xlu2 %8773, %v9773_v40   ;;  %v9817_v30 = vpop.permute.xlu2 %1703 }
 0x1b4   :  { %1428 = vperm.xlu0 %8798, %v9788_v44   ;;  %vm1750_vm4 = vcmp.eq.s32.totalorder %v9817_v30, %v9141_v32  ;;  %v9892_v30 = vpop.f32.mrf.mxu3 }
 0x1b5   :  { %v9819_v45 = vpack.c.b16 %v2387_v58, %v2386_v10  ;;  %v8173_v10 = vsel %vm407_vm14, 1.0, %v14152_v35  ;;  %14622 = vst [vmem:[#allocation58_spill] sm:$0xff] %v9892_v30  ;;  %v9920_v30 = vld [vmem:[%s14089_s0 + $0x78] sm:$0xff] }
 0x1b6   :  { %v503_v54 = vpack.c.bf16 %v8173_v10, %v8173_v10  ;;  %v14613_v10 = vmov 2  }
 0x1b7   :  { %14611 = vst [vmem:[#allocation50_spill] sm:$0xff] %v9819_v45  ;;  %3081 = vmatmul.bf16.gmra.mxu2 %v9819_v45  ;;  %v808_v29 = vpop.permute.xlu1 %807 }
 0x1b8   :  { %vm854_vm13 = vcmp.eq.s32.totalorder %v808_v29, %v9141_v32 }
 0x1b9   :  { %v8236_v8 = vsel %vm854_vm13, 1.0, %v14152_v35  ;;  %8774 = vset.pattern.permute.xlu1 %v14132_v4 }
 0x1ba   :  { %v950_v3 = vpack.c.bf16 %v8236_v8, %v8236_v8  ;;  %959 = vperm.xlu1 %8774, %v9767_v15   ;;  %v9842_v8 = vld [vmem:[%s14089_s0 + $0x50] sm:$0xff] }
 0x1bb   :  { %8775 = vset.pattern.permute.xlu2 %v14132_v4 }
 0x1bc   :  { %v2198_v37 = vunpack.c.l.b16 %v950_v3  ;;  %962 = vperm.xlu2 %8775, %v9725_v0   ;;  %v814_v58 = vpop.permute.xlu2 %813  ;;  %1437 = vperm.xlu0 %8798, %v9842_v8  }
 0x1bd   :  { %vm856_vm0 = vcmp.eq.s32.totalorder %v814_v58, %v9141_v32  ;;  %v2007_v58 = vunpack.c.l.b16 %v503_v54 }
 0x1be   :  { %v9833_v29 = vpack.c.b16 %v2199_v34, %v2198_v37  ;;  %v8239_v34 = vsel %vm857_vm15, 1.0, %v14152_v35  ;;  %v8238_v5 = vsel %vm856_vm0, 1.0, %v14152_v35 }
 0x1bf   :  { %v953_v38 = vpack.c.bf16 %v8239_v34, %v8239_v34  ;;  %v952_v12 = vpack.c.bf16 %v8238_v5, %v8238_v5  ;;  %v9864_v34 = vld [vmem:[%s14089_s0 + $0x28] sm:$0xff]  ;;  %v14619_v5 = vmov 0  }
 0x1c0   :  { %14612 = vst [vmem:[#allocation51_spill] sm:$0xff] %v9833_v29  ;;  %2931 = vmatmul.bf16.gmra.mxu1 %v9833_v29  ;;  %v360_v3 = vpop.permute.xlu1 %359 }
 0x1c1   :  { %vm406_vm1 = vcmp.eq.s32.totalorder %v360_v3, %v9141_v32  ;;  %v9856_v3 = vpop.f32.mrf.mxu1  ;;  %v2201_v54 = vunpack.c.l.b16 %v953_v38  ;;  %v2388_v38 = vunpack.c.l.b16 %v1396_v43 }
 0x1c2   :  { %v8172_v37 = vsel %vm406_vm1, 1.0, %v14152_v35  ;;  %8776 = vset.pattern.permute.xlu1 %v14613_v10  ;;  %14614 = vst [vmem:[#allocation52_spill] sm:$0xff] %v9856_v3 }
 0x1c3   :  { %v502_v4 = vpack.c.bf16 %v8172_v37, %v8172_v37  ;;  %514 = vperm.xlu1 %8776, %v9725_v0   ;;  %v2200_v37 = vunpack.c.l.b16 %v952_v12 }
 0x1c4   :  { %8777 = vset.pattern.permute.xlu2 %v14600_v14  ;;  %8819 = vset.pattern.permute.xlu0 %v14616_v48 }
 0x1c5   :  { %v2006_v55 = vunpack.c.l.b16 %v502_v4  ;;  %1273 = vperm.xlu2 %8777, %v9551_v52   ;;  %v369_v45 = vpop.permute.xlu2 %368  ;;  %974 = vperm.xlu0 %8819, %v9864_v34   ;;  %v9867_v4 = vpop.f32.mrf.mxu0  ;;  %v9873_v53 = vpack.c.b16 %v2201_v54, %v2200_v37  ;;  %v9889_v54 = vld [vmem:[%s14089_s0 + $0x40] sm:$0xff] }
 0x1c6   :  { %14617 = vst [vmem:[#allocation54_spill] sm:$0xff] %v9867_v4  ;;  %vm409_vm6 = vcmp.eq.s32.totalorder %v369_v45, %v9141_v32 }
 0x1c7   :  { %v9858_v1 = vpack.c.b16 %v2007_v58, %v2006_v55  ;;  %14618 = vst [vmem:[#allocation55_spill] sm:$0xff] %v9873_v53 }
 0x1c9   :  { %14615 = vst [vmem:[#allocation53_spill] sm:$0xff] %v9858_v1  ;;  %2771 = vmatmul.bf16.gmra.mxu0 %v9858_v1  ;;  %v1253_v52 = vpop.permute.xlu1 %1252  ;;  %v8364_v1 = vsel %vm1750_vm4, 1.0, %v14152_v35 }
 0x1ca   :  { %vm1301_vm3 = vcmp.eq.s32.totalorder %v1253_v52, %v9141_v32  ;;  %v9880_v52 = vpop.f32.mrf.mxu1  ;;  %v1846_v43 = vpack.c.bf16 %v8364_v1, %v8364_v1 }
 0x1cb   :  { %v8299_v55 = vsel %vm1301_vm3, 1.0, %v14152_v35  ;;  %8778 = vset.pattern.permute.xlu1 %v14600_v14  ;;  %14620 = vst [vmem:[#allocation56_spill] sm:$0xff] %v9880_v52 }
 0x1cc   :  { %v1397_v12 = vpack.c.bf16 %v8299_v55, %v8299_v55  ;;  %1276 = vperm.xlu1 %8778, %v9773_v40  }
 0x1cd   :  { %8779 = vset.pattern.permute.xlu2 %v14619_v5  ;;  %983 = vperm.xlu0 %8819, %v9889_v54  }
 0x1ce   :  { %v2389_v58 = vunpack.c.l.b16 %v1397_v12  ;;  %63 = vperm.xlu2 %8779, %v9767_v15   ;;  %v1259_v3 = vpop.permute.xlu2 %1258  ;;  %v2582_v12 = vunpack.c.l.b16 %v1846_v43 }
 0x1cf   :  { %vm1303_vm8 = vcmp.eq.s32.totalorder %v1259_v3, %v9141_v32 }
 0x1d0   :  { %v9883_v57 = vpack.c.b16 %v2389_v58, %v2388_v38  ;;  %2936 = vmatmul.bf16.gmra.mxu1 %v9873_v53  ;;  %v9902_v38 = vld [vmem:[%s14089_s0 + $0x10] sm:$0xff]  ;;  %v8175_v58 = vsel %vm409_vm6, 1.0, %v14152_v35  ;;  %vm860_vm6 = vcmp.eq.s32.totalorder %v9821_v51, %v9141_v32 }
 0x1d1   :  { %v10058_v51 = vld [vmem:[%s14089_s0 + $0x30] sm:$0xff] }
 0x1d2   :  { %14621 = vst [vmem:[#allocation57_spill] sm:$0xff] %v9883_v57  ;;  %3086 = vmatmul.bf16.gmra.mxu2 %v9883_v57  ;;  %v1707_v15 = vpop.permute.xlu1 %1706  ;;  %v14626_v57 = vmov 0.0  }
 0x1d3   :  { %vm1751_vm5 = vcmp.eq.s32.totalorder %v1707_v15, %v9141_v32  ;;  %v9910_v15 = vld [vmem:[%s14089_s0 + $0x18] sm:$0xff] }
 0x1d4   :  { %v8365_v37 = vsel %vm1751_vm5, 1.0, %v14152_v35  ;;  %8781 = vset.pattern.permute.xlu1 %v14616_v48  ;;  %v9925_v35 = vpop.f32.mrf.mxu3 }
 0x1d5   :  { %v1847_v55 = vpack.c.bf16 %v8365_v37, %v8365_v37  ;;  %965 = vperm.xlu1 %8781, %v9902_v38   ;;  %v9915_v37 = vpop.f32.mrf.mxu0  ;;  %1004 = vperm.xlu0 %8819, %v9920_v30   ;;  %14625 = vst [vmem:[#allocation61_spill] sm:$0xff] %v9925_v35  ;;  %v8177_v35 = vsel %vm411_vm9, 1.0, %v14626_v57 }
 0x1d6   :  { %8782 = vset.pattern.permute.xlu2 %v14616_v48  ;;  %14623 = vst [vmem:[#allocation59_spill] sm:$0xff] %v9915_v37 }
 0x1d7   :  { %v2583_v1 = vunpack.c.l.b16 %v1847_v55  ;;  %968 = vperm.xlu2 %8782, %v9910_v15   ;;  %v9913_v45 = vpop.permute.xlu2 %819  ;;  %v505_v55 = vpack.c.bf16 %v8175_v58, %v8175_v58 }
 0x1d8   :  { %vm858_vm14 = vcmp.eq.s32.totalorder %v9913_v45, %v9141_v32 }
 0x1d9   :  { %v9923_v43 = vpack.c.b16 %v2583_v1, %v2582_v12  ;;  %v2009_v41 = vunpack.c.l.b16 %v505_v55  ;;  %v8301_v1 = vsel %vm1303_vm8, 1.0, %v14626_v57 }
 0x1da   :  { %v1399_v3 = vpack.c.bf16 %v8301_v1, %v8301_v1 }
 0x1db   :  { %14624 = vst [vmem:[#allocation60_spill] sm:$0xff] %v9923_v43  ;;  %3251 = vmatmul.bf16.gmra.mxu3 %v9923_v43  ;;  %v366_v52 = vpop.permute.xlu1 %365 }
 0x1dc   :  { %vm408_vm7 = vcmp.eq.s32.totalorder %v366_v52, %v9141_v32  ;;  %v9940_v52 = vld [vmem:[%s14089_s0 + $0x58] sm:$0xff] }
 0x1dd   :  { %v8174_v26 = vsel %vm408_vm7, 1.0, %v14626_v57  ;;  %8783 = vset.pattern.permute.xlu1 %v14613_v10  ;;  %8824 = vset.pattern.permute.xlu0 %v14619_v5 }
 0x1de   :  { %v504_v47 = vpack.c.bf16 %v8174_v26, %v8174_v26  ;;  %517 = vperm.xlu1 %8783, %v9902_v38   ;;  %96 = vperm.xlu0 %8824, %v9940_v52   ;;  %v9943_v26 = vpop.f32.mrf.mxu0 }
 0x1df   :  { %8784 = vset.pattern.permute.xlu2 %v14613_v10  ;;  %14627 = vst [vmem:[#allocation62_spill] sm:$0xff] %v9943_v26 }
 0x1e0   :  { %v2008_v12 = vunpack.c.l.b16 %v504_v47  ;;  %520 = vperm.xlu2 %8784, %v9910_v15   ;;  %v372_v58 = vpop.permute.xlu2 %371 }
 0x1e1   :  { %vm410_vm10 = vcmp.eq.s32.totalorder %v372_v58, %v9141_v32  ;;  %v8366_v58 = vsel %vm1752_vm12, 1.0, %v14626_v57 }
 0x1e2   :  { %v9947_v47 = vpack.c.b16 %v2009_v41, %v2008_v12  ;;  %v8176_v43 = vsel %vm410_vm10, 1.0, %v14626_v57  ;;  %v2391_v41 = vunpack.c.l.b16 %v1399_v3  ;;  %v507_v12 = vpack.c.bf16 %v8177_v35, %v8177_v35  ;;  %v9972_v35 = vpop.f32.mrf.mxu3 }
 0x1e3   :  { %v506_v1 = vpack.c.bf16 %v8176_v43, %v8176_v43  ;;  %14631 = vst [vmem:[#allocation66_spill] sm:$0xff] %v9972_v35  ;;  %v1848_v43 = vpack.c.bf16 %v8366_v58, %v8366_v58 }
 0x1e4   :  { %14628 = vst [vmem:[#allocation63_spill] sm:$0xff] %v9947_v47  ;;  %2776 = vmatmul.bf16.gmra.mxu0 %v9947_v47  ;;  %v1256_v55 = vpop.permute.xlu1 %1255  ;;  %v2011_v47 = vunpack.c.l.b16 %v507_v12 }
 0x1e5   :  { %vm1302_vm11 = vcmp.eq.s32.totalorder %v1256_v55, %v9141_v32  ;;  %v2010_v61 = vunpack.c.l.b16 %v506_v1  ;;  %v2584_v59 = vunpack.c.l.b16 %v1848_v43  ;;  %v10003_v43 = vpop.f32.mrf.mxu2 }
 0x1e6   :  { %v8300_v50 = vsel %vm1302_vm11, 1.0, %v14626_v57  ;;  %8785 = vset.pattern.permute.xlu1 %v14610_v6  ;;  %105 = vperm.xlu0 %8824, %v9965_v36   ;;  %v9968_v3 = vpop.f32.mrf.mxu0  ;;  %14637 = vst [vmem:[#allocation72_spill] sm:$0xff] %v10003_v43 }
 0x1e7   :  { %v1398_v63 = vpack.c.bf16 %v8300_v50, %v8300_v50  ;;  %1410 = vperm.xlu1 %8785, %v9725_v0   ;;  %14629 = vst [vmem:[#allocation64_spill] sm:$0xff] %v9968_v3  ;;  %v9978_v24 = vpack.c.b16 %v2011_v47, %v2010_v61  ;;  %v9993_v47 = vpop.f32.mrf.mxu1 }
 0x1e8   :  { %8786 = vset.pattern.permute.xlu2 %v14619_v5  ;;  %14635 = vst [vmem:[#allocation70_spill] sm:$0xff] %v9993_v47 }
 0x1e9   :  { %v2390_v55 = vunpack.c.l.b16 %v1398_v63  ;;  %69 = vperm.xlu2 %8786, %v9902_v38   ;;  %v1265_v50 = vpop.permute.xlu2 %1264  ;;  %14632 = vst [vmem:[#allocation67_spill] sm:$0xff] %v9978_v24 }
 0x1ea   :  { %v9995_v45 = vpop.f32.mrf.mxu3  ;;  %vm1305_vm0 = vcmp.eq.s32.totalorder %v1265_v50, %v9141_v32 }
 0x1eb   :  { %v9970_v0 = vpack.c.b16 %v2391_v41, %v2390_v55  ;;  %14636 = vst [vmem:[#allocation71_spill] sm:$0xff] %v9995_v45  ;;  %v1271_v45 = vpop.permute.xlu0 %1270 }
 0x1ec   :  { %vm1307_vm3 = vcmp.eq.s32.totalorder %v1271_v45, %v9141_v32 }
 0x1ed   :  { %14630 = vst [vmem:[#allocation65_spill] sm:$0xff] %v9970_v0  ;;  %3091 = vmatmul.bf16.gmra.mxu2 %v9970_v0  ;;  %v1713_v63 = vpop.permute.xlu1 %1712 }
 0x1ee   :  { %vm1753_vm13 = vcmp.eq.s32.totalorder %v1713_v63, %v9141_v32  ;;  %8829 = vset.pattern.permute.xlu0 %v14613_v10  ;;  %v9987_v1 = vpop.f32.mrf.mxu0  ;;  %v10009_v63 = vld [vmem:[%s14089_s0 + $0x88] sm:$0xff] }
 0x1ef   :  { %v8367_v2 = vsel %vm1753_vm13, 1.0, %v14626_v57  ;;  %8787 = vset.pattern.permute.xlu1 %v14619_v5  ;;  %541 = vperm.xlu0 %8829, %v9842_v8   ;;  %14633 = vst [vmem:[#allocation68_spill] sm:$0xff] %v9987_v1  ;;  %v10018_v43 = vpop.f32.mrf.mxu1 }
 0x1f0   :  { %v1849_v21 = vpack.c.bf16 %v8367_v2, %v8367_v2  ;;  %72 = vperm.xlu1 %8787, %v9910_v15   ;;  %v8240_v2 = vsel %vm858_vm14, 1.0, %v14626_v57  ;;  %14639 = vst [vmem:[#allocation74_spill] sm:$0xff] %v10018_v43 }
 0x1f1   :  { %8788 = vset.pattern.permute.xlu2 %v14616_v48  ;;  %v954_v58 = vpack.c.bf16 %v8240_v2, %v8240_v2 }
 0x1f2   :  { %v2585_v41 = vunpack.c.l.b16 %v1849_v21  ;;  %971 = vperm.xlu2 %8788, %v9743_v25   ;;  %v1719_v12 = vpop.permute.xlu2 %1718 }
 0x1f3   :  { %vm1755_vm2 = vcmp.eq.s32.totalorder %v1719_v12, %v9141_v32 }
 0x1f4   :  { %v9990_v61 = vpack.c.b16 %v2585_v41, %v2584_v59  ;;  %2781 = vmatmul.bf16.gmra.mxu0 %v9978_v24  ;;  %v2202_v41 = vunpack.c.l.b16 %v954_v58 }
 0x1f6   :  { %14634 = vst [vmem:[#allocation69_spill] sm:$0xff] %v9990_v61  ;;  %3256 = vmatmul.bf16.gmra.mxu3 %v9990_v61  ;;  %v823_v21 = vpop.permute.xlu1 %822 }
 0x1f7   :  { %vm859_vm15 = vcmp.eq.s32.totalorder %v823_v21, %v9141_v32  ;;  %562 = vperm.xlu0 %8829, %v10009_v63   ;;  %v8303_v21 = vsel %vm1305_vm0, 1.0, %v14626_v57 }
 0x1f8   :  { %v8241_v55 = vsel %vm859_vm15, 1.0, %v14626_v57  ;;  %8789 = vset.pattern.permute.xlu1 %v14613_v10  ;;  %v1401_v35 = vpack.c.bf16 %v8303_v21, %v8303_v21  ;;  %v8369_v21 = vsel %vm1755_vm2, 1.0, %v14626_v57 }
 0x1f9   :  { %v955_v59 = vpack.c.bf16 %v8241_v55, %v8241_v55  ;;  %523 = vperm.xlu1 %8789, %v9743_v25  }
 0x1fa   :  { %8790 = vset.pattern.permute.xlu2 %v14613_v10 }
 0x1fb   :  { %v2203_v2 = vunpack.c.l.b16 %v955_v59  ;;  %526 = vperm.xlu2 %8790, %v9864_v34   ;;  %v10014_v50 = vpop.permute.xlu2 %377  ;;  %v2393_v59 = vunpack.c.l.b16 %v1401_v35  ;;  %v10034_v12 = vpop.permute.xlu0 %66 }
 0x1fc   :  { %vm412_vm8 = vcmp.eq.s32.totalorder %v10014_v50, %v9141_v32  ;;  %vm159_vm13 = vcmp.eq.s32.totalorder %v10034_v12, %v9141_v32  ;;  %v10151_v12 = vld [vmem:[%s14089_s0 + $0xa8] sm:$0xff] }
 0x1fd   :  { %v10016_v55 = vpack.c.b16 %v2203_v2, %v2202_v41  ;;  %v8918_v41 = vld [vmem:[%s14089_s0 + $0xa0] sm:$0xff]  ;;  %v10030_v2 = vpop.f32.mrf.mxu2 }
 0x1fe   :  { %14640 = vst [vmem:[#allocation75_spill] sm:$0xff] %v10030_v2 }
 0x1ff   :  { %14638 = vst [vmem:[#allocation73_spill] sm:$0xff] %v10016_v55  ;;  %2941 = vmatmul.bf16.gmra.mxu1 %v10016_v55  ;;  %v1262_v61 = vpop.permute.xlu1 %1261  ;;  %571 = vperm.xlu0 %8829, %v8918_v41  }
 0x200   :  { %vm1304_vm1 = vcmp.eq.s32.totalorder %v1262_v61, %v9141_v32 }
 0x201   :  { %v8302_v58 = vsel %vm1304_vm1, 1.0, %v14626_v57  ;;  %8791 = vset.pattern.permute.xlu1 %v14610_v6 }
 0x202   :  { %v1400_v47 = vpack.c.bf16 %v8302_v58, %v8302_v58  ;;  %1413 = vperm.xlu1 %8791, %v9902_v38   ;;  %v10040_v38 = vpop.f32.mrf.mxu3  ;;  %v1851_v58 = vpack.c.bf16 %v8369_v21, %v8369_v21  ;;  %v8242_v21 = vsel %vm860_vm6, 1.0, %v14626_v57 }
 0x203   :  { %8792 = vset.pattern.permute.xlu2 %v14610_v6  ;;  %14642 = vst [vmem:[#allocation77_spill] sm:$0xff] %v10040_v38 }
 0x204   :  { %v2392_v61 = vunpack.c.l.b16 %v1400_v47  ;;  %1416 = vperm.xlu2 %8792, %v9910_v15   ;;  %v1268_v43 = vpop.permute.xlu2 %1267  ;;  %v8305_v47 = vsel %vm1307_vm3, 1.0, %v14626_v57  ;;  %v2587_v45 = vunpack.c.l.b16 %v1851_v58 }
 0x205   :  { %vm1306_vm4 = vcmp.eq.s32.totalorder %v1268_v43, %v9141_v32 }
 0x206   :  { %v10036_v35 = vpack.c.b16 %v2393_v59, %v2392_v61  ;;  %v8304_v15 = vsel %vm1306_vm4, 1.0, %v14626_v57 }
 0x207   :  { %8846 = vset.pattern.permute.xlu0 %v14610_v6  ;;  %v1402_v61 = vpack.c.bf16 %v8304_v15, %v8304_v15  ;;  %v956_v15 = vpack.c.bf16 %v8242_v21, %v8242_v21 }
 0x208   :  { %14641 = vst [vmem:[#allocation76_spill] sm:$0xff] %v10036_v35  ;;  %3096 = vmatmul.bf16.gmra.mxu2 %v10036_v35  ;;  %v1716_v2 = vpop.permute.xlu1 %1715  ;;  %1458 = vperm.xlu0 %8846, %v10009_v63   ;;  %v10065_v35 = vpop.permute.xlu0 %75 }
 0x209   :  { %vm1754_vm5 = vcmp.eq.s32.totalorder %v1716_v2, %v9141_v32  ;;  %v1403_v2 = vpack.c.bf16 %v8305_v47, %v8305_v47  ;;  %v10067_v47 = vpop.f32.mrf.mxu1  ;;  %v2394_v31 = vunpack.c.l.b16 %v1402_v61  ;;  %v10082_v61 = vpop.f32.mrf.mxu0 }
 0x20a   :  { %v8368_v59 = vsel %vm1754_vm5, 1.0, %v14626_v57  ;;  %8794 = vset.pattern.permute.xlu1 %v14619_v5  ;;  %14645 = vst [vmem:[#allocation80_spill] sm:$0xff] %v10067_v47 }
 0x20b   :  { %v1850_v43 = vpack.c.bf16 %v8368_v59, %v8368_v59  ;;  %78 = vperm.xlu1 %8794, %v9864_v34   ;;  %v10061_v59 = vpop.f32.mrf.mxu2  ;;  %v2395_v0 = vunpack.c.l.b16 %v1403_v2  ;;  %14648 = vst [vmem:[#allocation83_spill] sm:$0xff] %v10082_v61 }
 0x20c   :  { %8795 = vset.pattern.permute.xlu2 %v14616_v48  ;;  %14643 = vst [vmem:[#allocation78_spill] sm:$0xff] %v10061_v59 }
 0x20d   :  { %v2586_v38 = vunpack.c.l.b16 %v1850_v43  ;;  %977 = vperm.xlu2 %8795, %v10058_v51   ;;  %v1725_v58 = vpop.permute.xlu2 %1724  ;;  %v10069_v43 = vpop.f32.mrf.mxu3  ;;  %v10075_v59 = vpack.c.b16 %v2395_v0, %v2394_v31 }
 0x20e   :  { %14646 = vst [vmem:[#allocation81_spill] sm:$0xff] %v10069_v43  ;;  %vm1757_vm10 = vcmp.eq.s32.totalorder %v1725_v58, %v9141_v32 }
 0x20f   :  { %v10063_v24 = vpack.c.b16 %v2587_v45, %v2586_v38  ;;  %v2204_v38 = vunpack.c.l.b16 %v956_v15  ;;  %14647 = vst [vmem:[#allocation82_spill] sm:$0xff] %v10075_v59  ;;  %v8371_v43 = vsel %vm1757_vm10, 1.0, %v14626_v57 }
 0x210   :  { %1467 = vperm.xlu0 %8846, %v8918_v41   ;;  %v8178_v41 = vsel %vm412_vm8, 1.0, %v14626_v57  ;;  %v10090_v31 = vpop.permute.xlu0 %511  ;;  %v1853_v47 = vpack.c.bf16 %v8371_v43, %v8371_v43 }
 0x211   :  { %14644 = vst [vmem:[#allocation79_spill] sm:$0xff] %v10063_v24  ;;  %3261 = vmatmul.bf16.gmra.mxu3 %v10063_v24  ;;  %v829_v18 = vpop.permute.xlu1 %828  ;;  %v10092_v0 = vpop.f32.mrf.mxu1  ;;  %v508_v15 = vpack.c.bf16 %v8178_v41, %v8178_v41  ;;  %vm606_vm0 = vcmp.eq.s32.totalorder %v10090_v31, %v9141_v32 }
 0x212   :  { %vm861_vm7 = vcmp.eq.s32.totalorder %v829_v18, %v9141_v32  ;;  %14651 = vst [vmem:[#allocation86_spill] sm:$0xff] %v10092_v0  ;;  %v10116_v0 = vpop.f32.mrf.mxu0 }
 0x213   :  { %v8243_v42 = vsel %vm861_vm7, 1.0, %v14626_v57  ;;  %8796 = vset.pattern.permute.xlu1 %v14616_v48  ;;  %v10084_v21 = vpop.f32.mrf.mxu2  ;;  %v2012_v41 = vunpack.c.l.b16 %v508_v15  ;;  %14654 = vst [vmem:[#allocation89_spill] sm:$0xff] %v10116_v0 }
 0x214   :  { %v957_v45 = vpack.c.bf16 %v8243_v42, %v8243_v42  ;;  %980 = vperm.xlu1 %8796, %v9788_v44   ;;  %14649 = vst [vmem:[#allocation84_spill] sm:$0xff] %v10084_v21 }
 0x215   :  { %8797 = vset.pattern.permute.xlu2 %v14613_v10  ;;  %v10112_v58 = vpop.f32.mrf.mxu3 }
 0x216   :  { %v2205_v2 = vunpack.c.l.b16 %v957_v45  ;;  %529 = vperm.xlu2 %8797, %v10058_v51   ;;  %v963_v18 = vpop.permute.xlu2 %962  ;;  %14652 = vst [vmem:[#allocation87_spill] sm:$0xff] %v10112_v58 }
 0x217   :  { %vm1055_vm12 = vcmp.eq.s32.totalorder %v963_v18, %v9141_v32 }
 0x218   :  { %v10087_v42 = vpack.c.b16 %v2205_v2, %v2204_v38  ;;  %3101 = vmatmul.bf16.gmra.mxu2 %v10075_v59  ;;  %8855 = vset.pattern.permute.xlu0 %v14616_v48  ;;  %v10103_v38 = vld [vmem:[%s14089_s0 + $0x90] sm:$0xff] }
 0x219   :  { %1013 = vperm.xlu0 %8855, %v10103_v38  }
 0x21a   :  { %14650 = vst [vmem:[#allocation85_spill] sm:$0xff] %v10087_v42  ;;  %2946 = vmatmul.bf16.gmra.mxu1 %v10087_v42  ;;  %v381_v50 = vpop.permute.xlu1 %380 }
 0x21b   :  { %vm413_vm9 = vcmp.eq.s32.totalorder %v381_v50, %v9141_v32 }
 0x21c   :  { %v8179_v45 = vsel %vm413_vm9, 1.0, %v14626_v57  ;;  %8799 = vset.pattern.permute.xlu1 %v14610_v6 }
 0x21d   :  { %v509_v2 = vpack.c.bf16 %v8179_v45, %v8179_v45  ;;  %1419 = vperm.xlu1 %8799, %v9743_v25   ;;  %v10119_v45 = vpop.permute.xlu0 %532  ;;  %v10132_v58 = vpop.f32.mrf.mxu3 }
 0x21e   :  { %8800 = vset.pattern.permute.xlu2 %v14610_v6  ;;  %14655 = vst [vmem:[#allocation90_spill] sm:$0xff] %v10132_v58 }
 0x21f   :  { %v2013_v50 = vunpack.c.l.b16 %v509_v2  ;;  %1422 = vperm.xlu2 %8800, %v9864_v34   ;;  %v10110_v21 = vpop.permute.xlu2 %1273  ;;  %v8921_v34 = vld [vmem:[%s14089_s0 + $0xc8] sm:$0xff]  ;;  %v2589_v2 = vunpack.c.l.b16 %v1853_v47  ;;  %v10139_v47 = vpop.f32.mrf.mxu1 }
 0x220   :  { %14657 = vst [vmem:[#allocation92_spill] sm:$0xff] %v10139_v47  ;;  %vm1308_vm2 = vcmp.eq.s32.totalorder %v10110_v21, %v9141_v32 }
 0x221   :  { %v10114_v24 = vpack.c.b16 %v2013_v50, %v2012_v41  ;;  %1034 = vperm.xlu0 %8855, %v8921_v34   ;;  %v8245_v50 = vsel %vm1055_vm12, 1.0, %v14626_v57 }
 0x222   :  { %v1151_v18 = vpack.c.bf16 %v8245_v50, %v8245_v50 }
 0x223   :  { %14653 = vst [vmem:[#allocation88_spill] sm:$0xff] %v10114_v24  ;;  %2786 = vmatmul.bf16.gmra.mxu0 %v10114_v24  ;;  %v1722_v25 = vpop.permute.xlu1 %1721  ;;  %v8180_v24 = vsel %vm606_vm0, 1.0, %v14626_v57 }
 0x224   :  { %vm1756_vm11 = vcmp.eq.s32.totalorder %v1722_v25, %v9141_v32  ;;  %v702_v46 = vpack.c.bf16 %v8180_v24, %v8180_v24 }
 0x225   :  { %v8370_v15 = vsel %vm1756_vm11, 1.0, %v14626_v57  ;;  %8801 = vset.pattern.permute.xlu1 %v14619_v5  ;;  %v10146_v58 = vpop.permute.xlu0 %1407  ;;  %v10167_v31 = vpop.f32.mrf.mxu3 }
 0x226   :  { %v1852_v43 = vpack.c.bf16 %v8370_v15, %v8370_v15  ;;  %81 = vperm.xlu1 %8801, %v10058_v51   ;;  %14658 = vst [vmem:[#allocation93_spill] sm:$0xff] %v10167_v31  ;;  %v2078_v24 = vunpack.c.l.b16 %v702_v46  ;;  %v8306_v31 = vsel %vm1308_vm2, 1.0, %v14626_v57  ;;  %v10197_v46 = vpop.f32.mrf.mxu2  ;;  %vm1502_vm10 = vcmp.eq.s32.totalorder %v10146_v58, %v9141_v32 }
 0x227   :  { %8802 = vset.pattern.permute.xlu2 %v14619_v5  ;;  %v10173_v19 = vpop.f32.mrf.mxu1  ;;  %14665 = vst [vmem:[#allocation100_spill] sm:$0xff] %v10197_v46  ;;  %v1404_v21 = vpack.c.bf16 %v8306_v31, %v8306_v31 }
 0x228   :  { %v2588_v41 = vunpack.c.l.b16 %v1852_v43  ;;  %84 = vperm.xlu2 %8802, %v9788_v44   ;;  %v64_v25 = vpop.permute.xlu2 %63  ;;  %v8117_v44 = vsel %vm159_vm13, 1.0, %v14626_v57  ;;  %14661 = vst [vmem:[#allocation96_spill] sm:$0xff] %v10173_v19 }
 0x229   :  { %vm158_vm14 = vcmp.eq.s32.totalorder %v64_v25, %v9141_v32  ;;  %8860 = vset.pattern.permute.xlu0 %v14619_v5  ;;  %v10161_v25 = vld [vmem:[%s14089_s0 + $0x48] sm:$0xff] }
 0x22a   :  { %v10136_v34 = vpack.c.b16 %v2589_v2, %v2588_v41  ;;  %v8116_v43 = vsel %vm158_vm14, 1.0, %v14626_v57  ;;  %126 = vperm.xlu0 %8860, %v10151_v12   ;;  %v2271_v41 = vunpack.c.l.b16 %v1151_v18 }
 0x22c   :  { %14656 = vst [vmem:[#allocation91_spill] sm:$0xff] %v10136_v34  ;;  %3266 = vmatmul.bf16.gmra.mxu3 %v10136_v34  ;;  %v960_v15 = vpop.permute.xlu1 %959  ;;  %v254_v34 = vpack.c.bf16 %v8116_v43, %v8116_v43  ;;  %v8924_v43 = vld [vmem:[%s14089_s0 + $0xc0] sm:$0xff] }
 0x22d   :  { %vm1054_vm15 = vcmp.eq.s32.totalorder %v960_v15, %v9141_v32  ;;  %v255_v15 = vpack.c.bf16 %v8117_v44, %v8117_v44 }
 0x22e   :  { %v8244_v2 = vsel %vm1054_vm15, 1.0, %v14626_v57  ;;  %8803 = vset.pattern.permute.xlu1 %v14616_v48  ;;  %v1886_v23 = vunpack.c.l.b16 %v254_v34 }
 0x22f   :  { %v1150_v50 = vpack.c.bf16 %v8244_v2, %v8244_v2  ;;  %986 = vperm.xlu1 %8803, %v10161_v25   ;;  %v10171_v2 = vpop.f32.mrf.mxu0  ;;  %v1887_v62 = vunpack.c.l.b16 %v255_v15 }
 0x230   :  { %8804 = vset.pattern.permute.xlu2 %v14613_v10  ;;  %14660 = vst [vmem:[#allocation95_spill] sm:$0xff] %v10171_v2 }
 0x231   :  { %v2270_v47 = vunpack.c.l.b16 %v1150_v50  ;;  %535 = vperm.xlu2 %8804, %v9889_v54   ;;  %v969_v59 = vpop.permute.xlu2 %968  ;;  %v10184_v50 = vpack.c.b16 %v1887_v62, %v1886_v23 }
 0x232   :  { %135 = vperm.xlu0 %8860, %v8924_v43   ;;  %v10191_v43 = vpop.f32.mrf.mxu3  ;;  %vm1057_vm4 = vcmp.eq.s32.totalorder %v969_v59, %v9141_v32 }
 0x233   :  { %v10169_v18 = vpack.c.b16 %v2271_v41, %v2270_v47  ;;  %v10182_v41 = vpop.permute.xlu0 %1428  ;;  %14662 = vst [vmem:[#allocation97_spill] sm:$0xff] %v10184_v50  ;;  %v8247_v46 = vsel %vm1057_vm4, 1.0, %v14626_v57  ;;  %vm162_vm4 = vcmp.eq.s32.totalorder %v10065_v35, %v9141_v32 }
 0x234   :  { %14663 = vst [vmem:[#allocation98_spill] sm:$0xff] %v10191_v43  ;;  %v1153_v59 = vpack.c.bf16 %v8247_v46, %v8247_v46 }
 0x235   :  { %14659 = vst [vmem:[#allocation94_spill] sm:$0xff] %v10169_v18  ;;  %2951 = vmatmul.bf16.gmra.mxu1 %v10169_v18  ;;  %v515_v44 = vpop.permute.xlu1 %514 }
 0x236   :  { %vm607_vm1 = vcmp.eq.s32.totalorder %v515_v44, %v9141_v32 }
 0x237   :  { %v8181_v47 = vsel %vm607_vm1, 1.0, %v14626_v57  ;;  %8805 = vset.pattern.permute.xlu1 %v14613_v10  ;;  %v10200_v23 = vpop.f32.mrf.mxu0  ;;  %vm613_vm1 = vcmp.eq.s32.totalorder %v10119_v45, %v9141_v32 }
 0x238   :  { %v703_v34 = vpack.c.bf16 %v8181_v47, %v8181_v47  ;;  %538 = vperm.xlu1 %8805, %v10161_v25   ;;  %14666 = vst [vmem:[#allocation101_spill] sm:$0xff] %v10200_v23 }
 0x239   :  { %8806 = vset.pattern.permute.xlu2 %v14610_v6 }
 0x23a   :  { %v2079_v15 = vunpack.c.l.b16 %v703_v34  ;;  %1425 = vperm.xlu2 %8806, %v10058_v51   ;;  %v521_v44 = vpop.permute.xlu2 %520  ;;  %8869 = vset.pattern.permute.xlu0 %v14613_v10  ;;  %v8925_v51 = vld [vmem:[%s14089_s0 + $0xd8] sm:$0xff] }
 0x23b   :  { %592 = vperm.xlu0 %8869, %v8925_v51   ;;  %v10211_v34 = vpop.permute.xlu0 %1437  ;;  %vm609_vm6 = vcmp.eq.s32.totalorder %v521_v44, %v9141_v32 }
 0x23c   :  { %v10194_v19 = vpack.c.b16 %v2079_v15, %v2078_v24  ;;  %3271 = vmatmul.bf16.gmra.mxu3 %v10184_v50  ;;  %v2396_v15 = vunpack.c.l.b16 %v1404_v21 }
 0x23e   :  { %14664 = vst [vmem:[#allocation99_spill] sm:$0xff] %v10194_v19  ;;  %2791 = vmatmul.bf16.gmra.mxu0 %v10194_v19  ;;  %v1277_v62 = vpop.permute.xlu1 %1276 }
 0x23f   :  { %vm1309_vm3 = vcmp.eq.s32.totalorder %v1277_v62, %v9141_v32  ;;  %v10218_v62 = vpop.f32.mrf.mxu1  ;;  %v10241_v44 = vpop.f32.mrf.mxu0 }
 0x240   :  { %v8307_v47 = vsel %vm1309_vm3, 1.0, %v14626_v57  ;;  %8807 = vset.pattern.permute.xlu1 %v14619_v5  ;;  %14667 = vst [vmem:[#allocation102_spill] sm:$0xff] %v10218_v62 }
 0x241   :  { %v1405_v24 = vpack.c.bf16 %v8307_v47, %v8307_v47  ;;  %87 = vperm.xlu1 %8807, %v9889_v54   ;;  %v10223_v47 = vpop.f32.mrf.mxu2  ;;  %14672 = vst [vmem:[#allocation107_spill] sm:$0xff] %v10241_v44 }
 0x242   :  { %8808 = vset.pattern.permute.xlu2 %v14619_v5  ;;  %14669 = vst [vmem:[#allocation104_spill] sm:$0xff] %v10223_v47  ;;  %v8183_v47 = vsel %vm609_vm6, 1.0, %v14626_v57 }
 0x243   :  { %v2397_v43 = vunpack.c.l.b16 %v1405_v24  ;;  %90 = vperm.xlu2 %8808, %v10161_v25   ;;  %v10216_v31 = vpop.permute.xlu2 %69  ;;  %8874 = vset.pattern.permute.xlu0 %v14616_v48  ;;  %v975_v46 = vpop.permute.xlu0 %974 }
 0x244   :  { %1043 = vperm.xlu0 %8874, %v9693_v27   ;;  %vm1059_vm7 = vcmp.eq.s32.totalorder %v975_v46, %v9141_v32  ;;  %vm160_vm12 = vcmp.eq.s32.totalorder %v10216_v31, %v9141_v32 }
 0x245   :  { %v10220_v56 = vpack.c.b16 %v2397_v43, %v2396_v15  ;;  %v2273_v43 = vunpack.c.l.b16 %v1153_v59  ;;  %v705_v59 = vpack.c.bf16 %v8183_v47, %v8183_v47 }
 0x247   :  { %14668 = vst [vmem:[#allocation103_spill] sm:$0xff] %v10220_v56  ;;  %3106 = vmatmul.bf16.gmra.mxu2 %v10220_v56  ;;  %v966_v42 = vpop.permute.xlu1 %965  ;;  %v2081_v47 = vunpack.c.l.b16 %v705_v59 }
 0x248   :  { %vm1056_vm5 = vcmp.eq.s32.totalorder %v966_v42, %v9141_v32  ;;  %v10235_v42 = vpop.f32.mrf.mxu1 }
 0x249   :  { %v8246_v21 = vsel %vm1056_vm5, 1.0, %v14626_v57  ;;  %8809 = vset.pattern.permute.xlu1 %v14616_v48  ;;  %14670 = vst [vmem:[#allocation105_spill] sm:$0xff] %v10235_v42  ;;  %v10260_v44 = vpop.f32.mrf.mxu2 }
 0x24a   :  { %v1152_v24 = vpack.c.bf16 %v8246_v21, %v8246_v21  ;;  %989 = vperm.xlu1 %8809, %v9842_v8   ;;  %14675 = vst [vmem:[#allocation110_spill] sm:$0xff] %v10260_v44 }
 0x24b   :  { %8810 = vset.pattern.permute.xlu2 %v14616_v48 }
 0x24c   :  { %v2272_v15 = vunpack.c.l.b16 %v1152_v24  ;;  %992 = vperm.xlu2 %8810, %v9940_v52   ;;  %v972_v27 = vpop.permute.xlu2 %971  ;;  %8879 = vset.pattern.permute.xlu0 %v14610_v6  ;;  %v8249_v24 = vsel %vm1059_vm7, 1.0, %v14626_v57 }
 0x24d   :  { %vm1058_vm8 = vcmp.eq.s32.totalorder %v972_v27, %v9141_v32  ;;  %1488 = vperm.xlu0 %8879, %v8925_v51   ;;  %v1155_v27 = vpack.c.bf16 %v8249_v24, %v8249_v24  ;;  %v8308_v51 = vsel %vm1502_vm10, 1.0, %v14626_v57  ;;  %v10263_v24 = vpop.f32.mrf.mxu0 }
 0x24e   :  { %v10237_v62 = vpack.c.b16 %v2273_v43, %v2272_v15  ;;  %v8248_v43 = vsel %vm1058_vm8, 1.0, %v14626_v57  ;;  %v1598_v59 = vpack.c.bf16 %v8308_v51, %v8308_v51  ;;  %14676 = vst [vmem:[#allocation111_spill] sm:$0xff] %v10263_v24 }
 0x24f   :  { %v1154_v42 = vpack.c.bf16 %v8248_v43, %v8248_v43 }
 0x250   :  { %14671 = vst [vmem:[#allocation106_spill] sm:$0xff] %v10237_v62  ;;  %2956 = vmatmul.bf16.gmra.mxu1 %v10237_v62  ;;  %v518_v21 = vpop.permute.xlu1 %517  ;;  %v10256_v56 = vpop.f32.mrf.mxu1 }
 0x251   :  { %vm608_vm9 = vcmp.eq.s32.totalorder %v518_v21, %v9141_v32  ;;  %14673 = vst [vmem:[#allocation108_spill] sm:$0xff] %v10256_v56  ;;  %v2274_v53 = vunpack.c.l.b16 %v1154_v42 }
 0x252   :  { %v8182_v46 = vsel %vm608_vm9, 1.0, %v14626_v57  ;;  %8811 = vset.pattern.permute.xlu1 %v14613_v10 }
 0x253   :  { %v704_v15 = vpack.c.bf16 %v8182_v46, %v8182_v46  ;;  %544 = vperm.xlu1 %8811, %v9940_v52   ;;  %v2275_v46 = vunpack.c.l.b16 %v1155_v27 }
 0x254   :  { %8812 = vset.pattern.permute.xlu2 %v14610_v6 }
 0x255   :  { %v2080_v21 = vunpack.c.l.b16 %v704_v15  ;;  %1431 = vperm.xlu2 %8812, %v9889_v54   ;;  %v527_v58 = vpop.permute.xlu2 %526  ;;  %8884 = vset.pattern.permute.xlu0 %v14613_v10  ;;  %v8926_v54 = vld [vmem:[%s14089_s0 + $0xf0] sm:$0xff]  ;;  %v2462_v15 = vunpack.c.l.b16 %v1598_v59  ;;  %v10272_v27 = vpack.c.b16 %v2275_v46, %v2274_v53  ;;  %v10285_v53 = vpop.f32.mrf.mxu3 }
 0x256   :  { %601 = vperm.xlu0 %8884, %v8926_v54   ;;  %v8118_v54 = vsel %vm160_vm12, 1.0, %v14626_v57  ;;  %14680 = vst [vmem:[#allocation115_spill] sm:$0xff] %v10285_v53  ;;  %vm611_vm14 = vcmp.eq.s32.totalorder %v527_v58, %v9141_v32 }
 0x257   :  { %v10258_v55 = vpack.c.b16 %v2081_v47, %v2080_v21  ;;  %14677 = vst [vmem:[#allocation112_spill] sm:$0xff] %v10272_v27 }
 0x259   :  { %14674 = vst [vmem:[#allocation109_spill] sm:$0xff] %v10258_v55  ;;  %2796 = vmatmul.bf16.gmra.mxu0 %v10258_v55  ;;  %v1411_v43 = vpop.permute.xlu1 %1410 }
 0x25a   :  { %vm1503_vm11 = vcmp.eq.s32.totalorder %v1411_v43, %v9141_v32  ;;  %v10279_v43 = vpop.f32.mrf.mxu1 }
 0x25b   :  { %v8309_v47 = vsel %vm1503_vm11, 1.0, %v14626_v57  ;;  %8813 = vset.pattern.permute.xlu1 %v14610_v6  ;;  %14678 = vst [vmem:[#allocation113_spill] sm:$0xff] %v10279_v43  ;;  %vm1509_vm11 = vcmp.eq.s32.totalorder %v10182_v41, %v9141_v32 }
 0x25c   :  { %v1599_v42 = vpack.c.bf16 %v8309_v47, %v8309_v47  ;;  %1434 = vperm.xlu1 %8813, %v10161_v25   ;;  %v10288_v25 = vpop.f32.mrf.mxu2  ;;  %v10299_v47 = vld [vmem:[%s14089_s0 + $0x60] sm:$0xff] }
 0x25d   :  { %8814 = vset.pattern.permute.xlu2 %v14619_v5  ;;  %14681 = vst [vmem:[#allocation116_spill] sm:$0xff] %v10288_v25  ;;  %v10316_v53 = vpop.f32.mrf.mxu3 }
 0x25e   :  { %v2463_v51 = vunpack.c.l.b16 %v1599_v42  ;;  %93 = vperm.xlu2 %8814, %v9842_v8   ;;  %v1417_v21 = vpop.permute.xlu2 %1416  ;;  %8889 = vset.pattern.permute.xlu0 %v14619_v5  ;;  %v256_v8 = vpack.c.bf16 %v8118_v54, %v8118_v54  ;;  %v8185_v42 = vsel %vm611_vm14, 1.0, %v14626_v57  ;;  %v10312_v54 = vpop.f32.mrf.mxu0  ;;  %14684 = vst [vmem:[#allocation119_spill] sm:$0xff] %v10316_v53 }
 0x25f   :  { %156 = vperm.xlu0 %8889, %v9773_v40   ;;  %14682 = vst [vmem:[#allocation117_spill] sm:$0xff] %v10312_v54  ;;  %vm1505_vm0 = vcmp.eq.s32.totalorder %v1417_v21, %v9141_v32 }
 0x260   :  { %v10282_v44 = vpack.c.b16 %v2463_v51, %v2462_v15  ;;  %2961 = vmatmul.bf16.gmra.mxu1 %v10272_v27  ;;  %v1888_v40 = vunpack.c.l.b16 %v256_v8  ;;  %v10307_v51 = vld [vmem:[%s14089_s0 + $0x68] sm:$0xff] }
 0x262   :  { %14679 = vst [vmem:[#allocation114_spill] sm:$0xff] %v10282_v44  ;;  %3111 = vmatmul.bf16.gmra.mxu2 %v10282_v44  ;;  %v73_v31 = vpop.permute.xlu1 %72 }
 0x263   :  { %vm161_vm13 = vcmp.eq.s32.totalorder %v73_v31, %v9141_v32 }
 0x264   :  { %v8119_v59 = vsel %vm161_vm13, 1.0, %v14626_v57  ;;  %8815 = vset.pattern.permute.xlu1 %v14616_v48  ;;  %v10334_v21 = vpop.f32.mrf.mxu2 }
 0x265   :  { %v257_v46 = vpack.c.bf16 %v8119_v59, %v8119_v59  ;;  %995 = vperm.xlu1 %8815, %v10299_v47   ;;  %v707_v59 = vpack.c.bf16 %v8185_v42, %v8185_v42  ;;  %14687 = vst [vmem:[#allocation122_spill] sm:$0xff] %v10334_v21  ;;  %v8120_v21 = vsel %vm162_vm4, 1.0, %v14626_v57  ;;  %v10352_v54 = vpop.f32.mrf.mxu3 }
 0x266   :  { %8816 = vset.pattern.permute.xlu2 %v14616_v48  ;;  %v10327_v53 = vpop.f32.mrf.mxu0  ;;  %14690 = vst [vmem:[#allocation125_spill] sm:$0xff] %v10352_v54 }
 0x267   :  { %v1889_v15 = vunpack.c.l.b16 %v257_v46  ;;  %998 = vperm.xlu2 %8816, %v10307_v51   ;;  %v10310_v58 = vpop.permute.xlu2 %977  ;;  %v2083_v25 = vunpack.c.l.b16 %v707_v59  ;;  %14685 = vst [vmem:[#allocation120_spill] sm:$0xff] %v10327_v53 }
 0x268   :  { %vm1060_vm6 = vcmp.eq.s32.totalorder %v10310_v58, %v9141_v32 }
 0x269   :  { %v10314_v31 = vpack.c.b16 %v1889_v15, %v1888_v40  ;;  %v8311_v15 = vsel %vm1505_vm0, 1.0, %v14626_v57 }
 0x26a   :  { %v1601_v59 = vpack.c.bf16 %v8311_v15, %v8311_v15 }
 0x26b   :  { %14683 = vst [vmem:[#allocation118_spill] sm:$0xff] %v10314_v31  ;;  %3276 = vmatmul.bf16.gmra.mxu3 %v10314_v31  ;;  %v524_v8 = vpop.permute.xlu1 %523 }
 0x26c   :  { %vm610_vm15 = vcmp.eq.s32.totalorder %v524_v8, %v9141_v32 }
 0x26d   :  { %v8184_v46 = vsel %vm610_vm15, 1.0, %v14626_v57  ;;  %8817 = vset.pattern.permute.xlu1 %v14613_v10 }
 0x26e   :  { %v706_v43 = vpack.c.bf16 %v8184_v46, %v8184_v46  ;;  %547 = vperm.xlu1 %8817, %v10299_v47   ;;  %v8187_v46 = vsel %vm613_vm1, 1.0, %v14626_v57  ;;  %v10348_v44 = vpop.f32.mrf.mxu0 }
 0x26f   :  { %8818 = vset.pattern.permute.xlu2 %v14613_v10  ;;  %v709_v15 = vpack.c.bf16 %v8187_v46, %v8187_v46  ;;  %14688 = vst [vmem:[#allocation123_spill] sm:$0xff] %v10348_v44 }
 0x270   :  { %v2082_v40 = vunpack.c.l.b16 %v706_v43  ;;  %550 = vperm.xlu2 %8818, %v10307_v51   ;;  %v530_v42 = vpop.permute.xlu2 %529 }
 0x271   :  { %vm612_vm2 = vcmp.eq.s32.totalorder %v530_v42, %v9141_v32 }
 0x272   :  { %v10331_v8 = vpack.c.b16 %v2083_v25, %v2082_v40  ;;  %v8186_v56 = vsel %vm612_vm2, 1.0, %v14626_v57  ;;  %v2465_v25 = vunpack.c.l.b16 %v1601_v59  ;;  %v258_v59 = vpack.c.bf16 %v8120_v21, %v8120_v21 }
 0x273   :  { %v708_v42 = vpack.c.bf16 %v8186_v56, %v8186_v56 }
 0x274   :  { %14686 = vst [vmem:[#allocation121_spill] sm:$0xff] %v10331_v8  ;;  %2801 = vmatmul.bf16.gmra.mxu0 %v10331_v8  ;;  %v1414_v43 = vpop.permute.xlu1 %1413 }
 0x275   :  { %vm1504_vm3 = vcmp.eq.s32.totalorder %v1414_v43, %v9141_v32  ;;  %v2084_v24 = vunpack.c.l.b16 %v708_v42 }
 0x276   :  { %v8310_v45 = vsel %vm1504_vm3, 1.0, %v14626_v57  ;;  %8820 = vset.pattern.permute.xlu1 %v14610_v6  ;;  %v10367_v42 = vpop.f32.mrf.mxu0 }
 0x277   :  { %v1600_v40 = vpack.c.bf16 %v8310_v45, %v8310_v45  ;;  %1440 = vperm.xlu1 %8820, %v9940_v52   ;;  %v2085_v45 = vunpack.c.l.b16 %v709_v15  ;;  %v10354_v52 = vpop.f32.mrf.mxu2  ;;  %14693 = vst [vmem:[#allocation128_spill] sm:$0xff] %v10367_v42 }
 0x278   :  { %8821 = vset.pattern.permute.xlu2 %v14619_v5  ;;  %14691 = vst [vmem:[#allocation126_spill] sm:$0xff] %v10354_v52 }
 0x279   :  { %v2464_v43 = vunpack.c.l.b16 %v1600_v40  ;;  %99 = vperm.xlu2 %8821, %v10299_v47   ;;  %v1423_v35 = vpop.permute.xlu2 %1422  ;;  %v1890_v40 = vunpack.c.l.b16 %v258_v59  ;;  %v10375_v59 = vpop.f32.mrf.mxu3 }
 0x27a   :  { %14696 = vst [vmem:[#allocation131_spill] sm:$0xff] %v10375_v59  ;;  %vm1507_vm8 = vcmp.eq.s32.totalorder %v1423_v35, %v9141_v32 }
 0x27b   :  { %v10350_v53 = vpack.c.b16 %v2465_v25, %v2464_v43  ;;  %v10360_v25 = vpack.c.b16 %v2085_v45, %v2084_v24  ;;  %v8250_v43 = vsel %vm1060_vm6, 1.0, %v14626_v57  ;;  %v10373_v24 = vpop.f32.mrf.mxu1  ;;  %v8313_v59 = vsel %vm1507_vm8, 1.0, %v14626_v57 }
 0x27c   :  { %14695 = vst [vmem:[#allocation130_spill] sm:$0xff] %v10373_v24  ;;  %v1156_v45 = vpack.c.bf16 %v8250_v43, %v8250_v43  ;;  %v1603_v52 = vpack.c.bf16 %v8313_v59, %v8313_v59 }
 0x27d   :  { %14689 = vst [vmem:[#allocation124_spill] sm:$0xff] %v10350_v53  ;;  %3116 = vmatmul.bf16.gmra.mxu2 %v10350_v53  ;;  %v79_v56 = vpop.permute.xlu1 %78 }
 0x27e   :  { %vm163_vm5 = vcmp.eq.s32.totalorder %v79_v56, %v9141_v32  ;;  %14692 = vst [vmem:[#allocation127_spill] sm:$0xff] %v10360_v25 }
 0x27f   :  { %v8121_v46 = vsel %vm163_vm5, 1.0, %v14626_v57  ;;  %8822 = vset.pattern.permute.xlu1 %v14619_v5 }
 0x280   :  { %v259_v44 = vpack.c.bf16 %v8121_v46, %v8121_v46  ;;  %102 = vperm.xlu1 %8822, %v10307_v51  }
 0x281   :  { %8823 = vset.pattern.permute.xlu2 %v14616_v48 }
 0x282   :  { %v1891_v21 = vunpack.c.l.b16 %v259_v44  ;;  %1001 = vperm.xlu2 %8823, %v9965_v36   ;;  %v85_v15 = vpop.permute.xlu2 %84 }
 0x283   :  { %v10392_v24 = vpop.f32.mrf.mxu1  ;;  %vm165_vm10 = vcmp.eq.s32.totalorder %v85_v15, %v9141_v32 }
 0x284   :  { %v10370_v56 = vpack.c.b16 %v1891_v21, %v1890_v40  ;;  %2806 = vmatmul.bf16.gmra.mxu0 %v10360_v25  ;;  %v2276_v40 = vunpack.c.l.b16 %v1156_v45  ;;  %14699 = vst [vmem:[#allocation134_spill] sm:$0xff] %v10392_v24 }
 0x286   :  { %14694 = vst [vmem:[#allocation129_spill] sm:$0xff] %v10370_v56  ;;  %3281 = vmatmul.bf16.gmra.mxu3 %v10370_v56  ;;  %v981_v58 = vpop.permute.xlu1 %980 }
 0x287   :  { %vm1061_vm7 = vcmp.eq.s32.totalorder %v981_v58, %v9141_v32  ;;  %v10388_v58 = vpop.f32.mrf.mxu2 }
 0x288   :  { %v8251_v44 = vsel %vm1061_vm7, 1.0, %v14626_v57  ;;  %8825 = vset.pattern.permute.xlu1 %v14613_v10  ;;  %14697 = vst [vmem:[#allocation132_spill] sm:$0xff] %v10388_v58  ;;  %v984_v58 = vpop.permute.xlu0 %983 }
 0x289   :  { %v1157_v46 = vpack.c.bf16 %v8251_v44, %v8251_v44  ;;  %553 = vperm.xlu1 %8825, %v9965_v36   ;;  %v2467_v44 = vunpack.c.l.b16 %v1603_v52  ;;  %v10410_v52 = vpop.f32.mrf.mxu3  ;;  %vm1062_vm14 = vcmp.eq.s32.totalorder %v984_v58, %v9141_v32 }
 0x28a   :  { %8826 = vset.pattern.permute.xlu2 %v14613_v10  ;;  %14702 = vst [vmem:[#allocation137_spill] sm:$0xff] %v10410_v52  ;;  %v8252_v52 = vsel %vm1062_vm14, 1.0, %v14626_v57 }
 0x28b   :  { %v2277_v21 = vunpack.c.l.b16 %v1157_v46  ;;  %556 = vperm.xlu2 %8826, %v9920_v30   ;;  %v10386_v43 = vpop.permute.xlu2 %535 }
 0x28c   :  { %vm614_vm0 = vcmp.eq.s32.totalorder %v10386_v43, %v9141_v32 }
 0x28d   :  { %v10390_v54 = vpack.c.b16 %v2277_v21, %v2276_v40  ;;  %v8123_v40 = vsel %vm165_vm10, 1.0, %v14626_v57 }
 0x28f   :  { %14698 = vst [vmem:[#allocation133_spill] sm:$0xff] %v10390_v54  ;;  %2966 = vmatmul.bf16.gmra.mxu1 %v10390_v54  ;;  %v1420_v35 = vpop.permute.xlu1 %1419 }
 0x290   :  { %vm1506_vm9 = vcmp.eq.s32.totalorder %v1420_v35, %v9141_v32  ;;  %v10403_v35 = vpop.f32.mrf.mxu2 }
 0x291   :  { %v8312_v45 = vsel %vm1506_vm9, 1.0, %v14626_v57  ;;  %8827 = vset.pattern.permute.xlu1 %v14610_v6  ;;  %14700 = vst [vmem:[#allocation135_spill] sm:$0xff] %v10403_v35  ;;  %v10428_v35 = vpop.permute.xlu0 %1004 }
 0x292   :  { %v1602_v46 = vpack.c.bf16 %v8312_v45, %v8312_v45  ;;  %1443 = vperm.xlu1 %8827, %v10299_v47   ;;  %v261_v47 = vpack.c.bf16 %v8123_v40, %v8123_v40  ;;  %v8315_v45 = vsel %vm1509_vm11, 1.0, %v14626_v57 }
 0x293   :  { %8828 = vset.pattern.permute.xlu2 %v14610_v6 }
 0x294   :  { %v2466_v59 = vunpack.c.l.b16 %v1602_v46  ;;  %1446 = vperm.xlu2 %8828, %v10307_v51   ;;  %v1426_v21 = vpop.permute.xlu2 %1425  ;;  %v1893_v41 = vunpack.c.l.b16 %v261_v47 }
 0x295   :  { %vm1508_vm12 = vcmp.eq.s32.totalorder %v1426_v21, %v9141_v32 }
 0x296   :  { %v10407_v24 = vpack.c.b16 %v2467_v44, %v2466_v59  ;;  %v8314_v51 = vsel %vm1508_vm12, 1.0, %v14626_v57  ;;  %v1605_v59 = vpack.c.bf16 %v8315_v45, %v8315_v45  ;;  %v10434_v45 = vpop.f32.mrf.mxu1 }
 0x297   :  { %v1604_v40 = vpack.c.bf16 %v8314_v51, %v8314_v51  ;;  %14705 = vst [vmem:[#allocation140_spill] sm:$0xff] %v10434_v45 }
 0x298   :  { %14701 = vst [vmem:[#allocation136_spill] sm:$0xff] %v10407_v24  ;;  %3121 = vmatmul.bf16.gmra.mxu2 %v10407_v24  ;;  %v82_v15 = vpop.permute.xlu1 %81  ;;  %v10430_v47 = vpop.f32.mrf.mxu2  ;;  %v2469_v51 = vunpack.c.l.b16 %v1605_v59 }
 0x299   :  { %vm164_vm13 = vcmp.eq.s32.totalorder %v82_v15, %v9141_v32  ;;  %v10425_v15 = vld [vmem:[%s14089_s0 + $0x80] sm:$0xff]  ;;  %14703 = vst [vmem:[#allocation138_spill] sm:$0xff] %v10430_v47  ;;  %v10436_v24 = vpop.f32.mrf.mxu3 }
 0x29a   :  { %v8122_v46 = vsel %vm164_vm13, 1.0, %v14626_v57  ;;  %8830 = vset.pattern.permute.xlu1 %v14619_v5  ;;  %14706 = vst [vmem:[#allocation141_spill] sm:$0xff] %v10436_v24 }
 0x29b   :  { %v260_v44 = vpack.c.bf16 %v8122_v46, %v8122_v46  ;;  %108 = vperm.xlu1 %8830, %v9920_v30   ;;  %v1158_v46 = vpack.c.bf16 %v8252_v52, %v8252_v52 }
 0x29c   :  { %8831 = vset.pattern.permute.xlu2 %v14616_v48 }
 0x29d   :  { %v1892_v21 = vunpack.c.l.b16 %v260_v44  ;;  %1007 = vperm.xlu2 %8831, %v10425_v15   ;;  %v91_v58 = vpop.permute.xlu2 %90  ;;  %v2468_v44 = vunpack.c.l.b16 %v1604_v40  ;;  %v2278_v23 = vunpack.c.l.b16 %v1158_v46 }
 0x29e   :  { %vm167_vm2 = vcmp.eq.s32.totalorder %v91_v58, %v9141_v32 }
 0x29f   :  { %v10432_v30 = vpack.c.b16 %v1893_v41, %v1892_v21  ;;  %v10442_v41 = vpack.c.b16 %v2469_v51, %v2468_v44  ;;  %v8188_v21 = vsel %vm614_vm0, 1.0, %v14626_v57  ;;  %v10457_v51 = vpop.f32.mrf.mxu1 }
 0x2a0   :  { %v10449_v40 = vpop.f32.mrf.mxu2  ;;  %14711 = vst [vmem:[#allocation146_spill] sm:$0xff] %v10457_v51 }
 0x2a1   :  { %14704 = vst [vmem:[#allocation139_spill] sm:$0xff] %v10432_v30  ;;  %3286 = vmatmul.bf16.gmra.mxu3 %v10432_v30  ;;  %v987_v53 = vpop.permute.xlu1 %986  ;;  %v10472_v51 = vpop.f32.mrf.mxu3 }
 0x2a2   :  { %vm1063_vm15 = vcmp.eq.s32.totalorder %v987_v53, %v9141_v32  ;;  %14707 = vst [vmem:[#allocation142_spill] sm:$0xff] %v10442_v41  ;;  %v97_v53 = vpop.permute.xlu0 %96 }
 0x2a3   :  { %v8253_v42 = vsel %vm1063_vm15, 1.0, %v14626_v57  ;;  %8832 = vset.pattern.permute.xlu1 %v14616_v48  ;;  %14708 = vst [vmem:[#allocation143_spill] sm:$0xff] %v10449_v40  ;;  %v8125_v40 = vsel %vm167_vm2, 1.0, %v14626_v57  ;;  %vm169_vm5 = vcmp.eq.s32.totalorder %v97_v53, %v9141_v32  ;;  %vm1069_vm15 = vcmp.eq.s32.totalorder %v10428_v35, %v9141_v32 }
 0x2a4   :  { %v1159_v47 = vpack.c.bf16 %v8253_v42, %v8253_v42  ;;  %1010 = vperm.xlu1 %8832, %v10009_v63   ;;  %v10455_v42 = vpop.f32.mrf.mxu0  ;;  %14712 = vst [vmem:[#allocation147_spill] sm:$0xff] %v10472_v51  ;;  %vm1512_vm2 = vcmp.eq.s32.totalorder %v10211_v34, %v9141_v32 }
 0x2a5   :  { %8833 = vset.pattern.permute.xlu2 %v14613_v10  ;;  %14710 = vst [vmem:[#allocation145_spill] sm:$0xff] %v10455_v42 }
 0x2a6   :  { %v2279_v52 = vunpack.c.l.b16 %v1159_v47  ;;  %559 = vperm.xlu2 %8833, %v10425_v15   ;;  %v993_v59 = vpop.permute.xlu2 %992  ;;  %v710_v47 = vpack.c.bf16 %v8188_v21, %v8188_v21  ;;  %v8930_v21 = vld [vmem:[%s14089_s0 + $0x78] sm:$0xff] }
 0x2a7   :  { %vm1065_vm4 = vcmp.eq.s32.totalorder %v993_v59, %v9141_v32  ;;  %v10495_v59 = vpop.f32.mrf.mxu1 }
 0x2a8   :  { %v10452_v46 = vpack.c.b16 %v2279_v52, %v2278_v23  ;;  %3126 = vmatmul.bf16.gmra.mxu2 %v10442_v41  ;;  %v2086_v52 = vunpack.c.l.b16 %v710_v47  ;;  %14717 = vst [vmem:[#allocation152_spill] sm:$0xff] %v10495_v59 }
 0x2a9   :  { %v10489_v41 = vpop.f32.mrf.mxu3 }
 0x2aa   :  { %14709 = vst [vmem:[#allocation144_spill] sm:$0xff] %v10452_v46  ;;  %2971 = vmatmul.bf16.gmra.mxu1 %v10452_v46  ;;  %v539_v43 = vpop.permute.xlu1 %538  ;;  %v10476_v58 = vpop.permute.xlu0 %105 }
 0x2ab   :  { %vm615_vm1 = vcmp.eq.s32.totalorder %v539_v43, %v9141_v32  ;;  %14715 = vst [vmem:[#allocation150_spill] sm:$0xff] %v10489_v41 }
 0x2ac   :  { %v8189_v44 = vsel %vm615_vm1, 1.0, %v14626_v57  ;;  %8834 = vset.pattern.permute.xlu1 %v14610_v6 }
 0x2ad   :  { %v711_v23 = vpack.c.bf16 %v8189_v44, %v8189_v44  ;;  %1449 = vperm.xlu1 %8834, %v9965_v36   ;;  %v263_v36 = vpack.c.bf16 %v8125_v40, %v8125_v40  ;;  %v10478_v44 = vpop.f32.mrf.mxu0  ;;  %v8255_v40 = vsel %vm1065_vm4, 1.0, %v14626_v57 }
 0x2ae   :  { %8835 = vset.pattern.permute.xlu2 %v14610_v6  ;;  %14714 = vst [vmem:[#allocation149_spill] sm:$0xff] %v10478_v44  ;;  %v8127_v44 = vsel %vm169_vm5, 1.0, %v14626_v57 }
 0x2af   :  { %v2087_v24 = vunpack.c.l.b16 %v711_v23  ;;  %1452 = vperm.xlu2 %8835, %v8930_v21   ;;  %v10470_v43 = vpop.permute.xlu2 %1431  ;;  %v1895_v21 = vunpack.c.l.b16 %v263_v36  ;;  %v1161_v36 = vpack.c.bf16 %v8255_v40, %v8255_v40  ;;  %v10507_v40 = vld [vmem:[%s14089_s0 + $0x98] sm:$0xff]  ;;  %v10519_v61 = vpop.f32.mrf.mxu1 }
 0x2b0   :  { %14721 = vst [vmem:[#allocation156_spill] sm:$0xff] %v10519_v61  ;;  %vm1510_vm10 = vcmp.eq.s32.totalorder %v10470_v43, %v9141_v32 }
 0x2b1   :  { %v10474_v45 = vpack.c.b16 %v2087_v24, %v2086_v52  ;;  %v2281_v53 = vunpack.c.l.b16 %v1161_v36 }
 0x2b3   :  { %14713 = vst [vmem:[#allocation148_spill] sm:$0xff] %v10474_v45  ;;  %2811 = vmatmul.bf16.gmra.mxu0 %v10474_v45  ;;  %v88_v47 = vpop.permute.xlu1 %87 }
 0x2b4   :  { %vm166_vm3 = vcmp.eq.s32.totalorder %v88_v47, %v9141_v32 }
 0x2b5   :  { %v8124_v23 = vsel %vm166_vm3, 1.0, %v14626_v57  ;;  %8836 = vset.pattern.permute.xlu1 %v14619_v5 }
 0x2b6   :  { %v262_v51 = vpack.c.bf16 %v8124_v23, %v8124_v23  ;;  %111 = vperm.xlu1 %8836, %v10425_v15   ;;  %v542_v23 = vpop.permute.xlu0 %541 }
 0x2b7   :  { %8837 = vset.pattern.permute.xlu2 %v14619_v5  ;;  %vm616_vm8 = vcmp.eq.s32.totalorder %v542_v23, %v9141_v32  ;;  %v10513_v23 = vpop.f32.mrf.mxu3 }
 0x2b8   :  { %v1894_v24 = vunpack.c.l.b16 %v262_v51  ;;  %114 = vperm.xlu2 %8837, %v10009_v63   ;;  %v94_v52 = vpop.permute.xlu2 %93  ;;  %v8190_v59 = vsel %vm616_vm8, 1.0, %v14626_v57  ;;  %14718 = vst [vmem:[#allocation153_spill] sm:$0xff] %v10513_v23 }
 0x2b9   :  { %vm168_vm6 = vcmp.eq.s32.totalorder %v94_v52, %v9141_v32  ;;  %v265_v52 = vpack.c.bf16 %v8127_v44, %v8127_v44  ;;  %v712_v29 = vpack.c.bf16 %v8190_v59, %v8190_v59 }
 0x2ba   :  { %v10491_v47 = vpack.c.b16 %v1895_v21, %v1894_v24  ;;  %v8126_v63 = vsel %vm168_vm6, 1.0, %v14626_v57 }
 0x2bb   :  { %v264_v41 = vpack.c.bf16 %v8126_v63, %v8126_v63  ;;  %v1897_v2 = vunpack.c.l.b16 %v265_v52 }
 0x2bc   :  { %14716 = vst [vmem:[#allocation151_spill] sm:$0xff] %v10491_v47  ;;  %3291 = vmatmul.bf16.gmra.mxu3 %v10491_v47  ;;  %v990_v51 = vpop.permute.xlu1 %989 }
 0x2bd   :  { %vm1064_vm7 = vcmp.eq.s32.totalorder %v990_v51, %v9141_v32  ;;  %v1896_v0 = vunpack.c.l.b16 %v264_v41 }
 0x2be   :  { %v8254_v21 = vsel %vm1064_vm7, 1.0, %v14626_v57  ;;  %8838 = vset.pattern.permute.xlu1 %v14616_v48 }
 0x2bf   :  { %v1160_v24 = vpack.c.bf16 %v8254_v21, %v8254_v21  ;;  %1016 = vperm.xlu1 %8838, %v10507_v40   ;;  %v10517_v21 = vpop.f32.mrf.mxu0  ;;  %v10532_v52 = vpop.f32.mrf.mxu3 }
 0x2c0   :  { %8839 = vset.pattern.permute.xlu2 %v14613_v10  ;;  %14720 = vst [vmem:[#allocation155_spill] sm:$0xff] %v10517_v21 }
 0x2c1   :  { %v2280_v51 = vunpack.c.l.b16 %v1160_v24  ;;  %565 = vperm.xlu2 %8839, %v10103_v38   ;;  %v999_v42 = vpop.permute.xlu2 %998  ;;  %v2088_v24 = vunpack.c.l.b16 %v712_v29  ;;  %14723 = vst [vmem:[#allocation158_spill] sm:$0xff] %v10532_v52  ;;  %v10538_v29 = vpop.f32.mrf.mxu2 }
 0x2c2   :  { %14725 = vst [vmem:[#allocation160_spill] sm:$0xff] %v10538_v29  ;;  %vm1067_vm12 = vcmp.eq.s32.totalorder %v999_v42, %v9141_v32 }
 0x2c3   :  { %v10515_v36 = vpack.c.b16 %v2281_v53, %v2280_v51  ;;  %v10525_v53 = vpack.c.b16 %v1897_v2, %v1896_v0  ;;  %v8316_v51 = vsel %vm1510_vm10, 1.0, %v14626_v57 }
 0x2c4   :  { %v1606_v43 = vpack.c.bf16 %v8316_v51, %v8316_v51 }
 0x2c5   :  { %14719 = vst [vmem:[#allocation154_spill] sm:$0xff] %v10515_v36  ;;  %2976 = vmatmul.bf16.gmra.mxu1 %v10515_v36  ;;  %v545_v44 = vpop.permute.xlu1 %544 }
 0x2c6   :  { %vm617_vm9 = vcmp.eq.s32.totalorder %v545_v44, %v9141_v32  ;;  %14722 = vst [vmem:[#allocation157_spill] sm:$0xff] %v10525_v53 }
 0x2c7   :  { %v8191_v63 = vsel %vm617_vm9, 1.0, %v14626_v57  ;;  %8840 = vset.pattern.permute.xlu1 %v14613_v10  ;;  %v10540_v0 = vpop.f32.mrf.mxu0 }
 0x2c8   :  { %v713_v23 = vpack.c.bf16 %v8191_v63, %v8191_v63  ;;  %568 = vperm.xlu1 %8840, %v10507_v40   ;;  %14726 = vst [vmem:[#allocation161_spill] sm:$0xff] %v10540_v0  ;;  %v2470_v63 = vunpack.c.l.b16 %v1606_v43 }
 0x2c9   :  { %8841 = vset.pattern.permute.xlu2 %v14610_v6  ;;  %v10557_v61 = vpop.f32.mrf.mxu2 }
 0x2ca   :  { %v2089_v41 = vunpack.c.l.b16 %v713_v23  ;;  %1455 = vperm.xlu2 %8841, %v10425_v15   ;;  %v551_v59 = vpop.permute.xlu2 %550  ;;  %14729 = vst [vmem:[#allocation164_spill] sm:$0xff] %v10557_v61 }
 0x2cb   :  { %vm619_vm14 = vcmp.eq.s32.totalorder %v551_v59, %v9141_v32 }
 0x2cc   :  { %v10535_v44 = vpack.c.b16 %v2089_v41, %v2088_v24  ;;  %3296 = vmatmul.bf16.gmra.mxu3 %v10525_v53  ;;  %v8257_v41 = vsel %vm1067_vm12, 1.0, %v14626_v57  ;;  %vm172_vm12 = vcmp.eq.s32.totalorder %v10476_v58, %v9141_v32 }
 0x2cd   :  { %v1163_v29 = vpack.c.bf16 %v8257_v41, %v8257_v41  ;;  %v8193_v41 = vsel %vm619_vm14, 1.0, %v14626_v57 }
 0x2ce   :  { %14724 = vst [vmem:[#allocation159_spill] sm:$0xff] %v10535_v44  ;;  %2816 = vmatmul.bf16.gmra.mxu0 %v10535_v44  ;;  %v1435_v2 = vpop.permute.xlu1 %1434 }
 0x2cf   :  { %vm1511_vm11 = vcmp.eq.s32.totalorder %v1435_v2, %v9141_v32  ;;  %v10553_v2 = vpop.f32.mrf.mxu1 }
 0x2d0   :  { %v8317_v15 = vsel %vm1511_vm11, 1.0, %v14626_v57  ;;  %8842 = vset.pattern.permute.xlu1 %v14619_v5  ;;  %14727 = vst [vmem:[#allocation162_spill] sm:$0xff] %v10553_v2  ;;  %v8259_v2 = vsel %vm1069_vm15, 1.0, %v14626_v57 }
 0x2d1   :  { %v1607_v23 = vpack.c.bf16 %v8317_v15, %v8317_v15  ;;  %117 = vperm.xlu1 %8842, %v10103_v38   ;;  %v2283_v15 = vunpack.c.l.b16 %v1163_v29  ;;  %v10577_v29 = vpop.f32.mrf.mxu0  ;;  %v10595_v21 = vpop.f32.mrf.mxu2 }
 0x2d2   :  { %8843 = vset.pattern.permute.xlu2 %v14619_v5  ;;  %14732 = vst [vmem:[#allocation167_spill] sm:$0xff] %v10577_v29 }
 0x2d3   :  { %v2471_v24 = vunpack.c.l.b16 %v1607_v23  ;;  %120 = vperm.xlu2 %8843, %v10507_v40   ;;  %v10551_v51 = vpop.permute.xlu2 %99  ;;  %14735 = vst [vmem:[#allocation170_spill] sm:$0xff] %v10595_v21 }
 0x2d4   :  { %vm170_vm4 = vcmp.eq.s32.totalorder %v10551_v51, %v9141_v32 }
 0x2d5   :  { %v10555_v52 = vpack.c.b16 %v2471_v24, %v2470_v63  ;;  %v8932_v63 = vld [vmem:[%s14089_s0 + $0xa0] sm:$0xff] }
 0x2d7   :  { %14728 = vst [vmem:[#allocation163_spill] sm:$0xff] %v10555_v52  ;;  %3131 = vmatmul.bf16.gmra.mxu2 %v10555_v52  ;;  %v996_v42 = vpop.permute.xlu1 %995  ;;  %v10570_v61 = vpop.f32.mrf.mxu1 }
 0x2d8   :  { %vm1066_vm13 = vcmp.eq.s32.totalorder %v996_v42, %v9141_v32  ;;  %14730 = vst [vmem:[#allocation165_spill] sm:$0xff] %v10570_v61  ;;  %v8318_v61 = vsel %vm1512_vm2, 1.0, %v14626_v57 }
 0x2d9   :  { %v8256_v43 = vsel %vm1066_vm13, 1.0, %v14626_v57  ;;  %8844 = vset.pattern.permute.xlu1 %v14616_v48 }
 0x2da   :  { %v1162_v23 = vpack.c.bf16 %v8256_v43, %v8256_v43  ;;  %1019 = vperm.xlu1 %8844, %v8932_v63   ;;  %v715_v43 = vpack.c.bf16 %v8193_v41, %v8193_v41  ;;  %v1165_v41 = vpack.c.bf16 %v8259_v2, %v8259_v2 }
 0x2db   :  { %8845 = vset.pattern.permute.xlu2 %v14616_v48 }
 0x2dc   :  { %v2282_v24 = vunpack.c.l.b16 %v1162_v23  ;;  %1022 = vperm.xlu2 %8845, %v10151_v12   ;;  %v1002_v42 = vpop.permute.xlu2 %1001 }
 0x2dd   :  { %vm1068_vm0 = vcmp.eq.s32.totalorder %v1002_v42, %v9141_v32 }
 0x2de   :  { %v10574_v59 = vpack.c.b16 %v2283_v15, %v2282_v24  ;;  %v8258_v52 = vsel %vm1068_vm0, 1.0, %v14626_v57  ;;  %v2091_v15 = vunpack.c.l.b16 %v715_v43  ;;  %v1608_v43 = vpack.c.bf16 %v8318_v61, %v8318_v61 }
 0x2df   :  { %v1164_v42 = vpack.c.bf16 %v8258_v52, %v8258_v52  ;;  %v10591_v29 = vpop.f32.mrf.mxu1 }
 0x2e0   :  { %14731 = vst [vmem:[#allocation166_spill] sm:$0xff] %v10574_v59  ;;  %2981 = vmatmul.bf16.gmra.mxu1 %v10574_v59  ;;  %v548_v23 = vpop.permute.xlu1 %547 }
 0x2e1   :  { %vm618_vm1 = vcmp.eq.s32.totalorder %v548_v23, %v9141_v32  ;;  %14733 = vst [vmem:[#allocation168_spill] sm:$0xff] %v10591_v29  ;;  %v2284_v9 = vunpack.c.l.b16 %v1164_v42 }
 0x2e2   :  { %v8192_v35 = vsel %vm618_vm1, 1.0, %v14626_v57  ;;  %8847 = vset.pattern.permute.xlu1 %v14613_v10 }
 0x2e3   :  { %v714_v24 = vpack.c.bf16 %v8192_v35, %v8192_v35  ;;  %574 = vperm.xlu1 %8847, %v10151_v12   ;;  %v2285_v35 = vunpack.c.l.b16 %v1165_v41  ;;  %v10597_v12 = vpop.f32.mrf.mxu0 }
 0x2e4   :  { %8848 = vset.pattern.permute.xlu2 %v14610_v6  ;;  %14736 = vst [vmem:[#allocation171_spill] sm:$0xff] %v10597_v12 }
 0x2e5   :  { %v2090_v23 = vunpack.c.l.b16 %v714_v24  ;;  %1461 = vperm.xlu2 %8848, %v10103_v38   ;;  %v557_v34 = vpop.permute.xlu2 %556  ;;  %v2472_v38 = vunpack.c.l.b16 %v1608_v43  ;;  %v10617_v43 = vpop.f32.mrf.mxu2 }
 0x2e6   :  { %14741 = vst [vmem:[#allocation176_spill] sm:$0xff] %v10617_v43  ;;  %vm621_vm6 = vcmp.eq.s32.totalorder %v557_v34, %v9141_v32 }
 0x2e7   :  { %v10593_v0 = vpack.c.b16 %v2091_v15, %v2090_v23  ;;  %v10603_v15 = vpack.c.b16 %v2285_v35, %v2284_v9  ;;  %v10609_v42 = vpop.f32.mrf.mxu1  ;;  %v8128_v23 = vsel %vm170_vm4, 1.0, %v14626_v57  ;;  %v10615_v9 = vpop.f32.mrf.mxu3 }
 0x2e8   :  { %14738 = vst [vmem:[#allocation173_spill] sm:$0xff] %v10609_v42  ;;  %v266_v51 = vpack.c.bf16 %v8128_v23, %v8128_v23  ;;  %v10635_v23 = vld [vmem:[%s14089_s0 + $0xb8] sm:$0xff] }
 0x2e9   :  { %14734 = vst [vmem:[#allocation169_spill] sm:$0xff] %v10593_v0  ;;  %2821 = vmatmul.bf16.gmra.mxu0 %v10593_v0  ;;  %v1441_v52 = vpop.permute.xlu1 %1440 }
 0x2ea   :  { %vm1513_vm3 = vcmp.eq.s32.totalorder %v1441_v52, %v9141_v32  ;;  %14737 = vst [vmem:[#allocation172_spill] sm:$0xff] %v10603_v15 }
 0x2eb   :  { %v8319_v2 = vsel %vm1513_vm3, 1.0, %v14626_v57  ;;  %8849 = vset.pattern.permute.xlu1 %v14610_v6  ;;  %14740 = vst [vmem:[#allocation175_spill] sm:$0xff] %v10615_v9 }
 0x2ec   :  { %v1609_v24 = vpack.c.bf16 %v8319_v2, %v8319_v2  ;;  %1464 = vperm.xlu1 %8849, %v10507_v40   ;;  %v10627_v2 = vld [vmem:[%s14089_s0 + $0xb0] sm:$0xff] }
 0x2ed   :  { %8850 = vset.pattern.permute.xlu2 %v14619_v5 }
 0x2ee   :  { %v2473_v61 = vunpack.c.l.b16 %v1609_v24  ;;  %123 = vperm.xlu2 %8850, %v8932_v63   ;;  %v1447_v41 = vpop.permute.xlu2 %1446 }
 0x2ef   :  { %v10644_v43 = vpop.f32.mrf.mxu3  ;;  %vm1515_vm8 = vcmp.eq.s32.totalorder %v1447_v41, %v9141_v32  ;;  %v10661_v41 = vpop.f32.mrf.mxu2 }
 0x2f0   :  { %v10612_v52 = vpack.c.b16 %v2473_v61, %v2472_v38  ;;  %2986 = vmatmul.bf16.gmra.mxu1 %v10603_v15  ;;  %v1898_v38 = vunpack.c.l.b16 %v266_v51  ;;  %v8195_v61 = vsel %vm621_vm6, 1.0, %v14626_v57  ;;  %14744 = vst [vmem:[#allocation179_spill] sm:$0xff] %v10644_v43 }
 0x2f1   :  { %v717_v9 = vpack.c.bf16 %v8195_v61, %v8195_v61  ;;  %v8321_v61 = vsel %vm1515_vm8, 1.0, %v14626_v57  ;;  %14747 = vst [vmem:[#allocation182_spill] sm:$0xff] %v10661_v41  ;;  %v8130_v41 = vsel %vm172_vm12, 1.0, %v14626_v57 }
 0x2f2   :  { %14739 = vst [vmem:[#allocation174_spill] sm:$0xff] %v10612_v52  ;;  %3136 = vmatmul.bf16.gmra.mxu2 %v10612_v52  ;;  %v103_v40 = vpop.permute.xlu1 %102  ;;  %v268_v1 = vpack.c.bf16 %v8130_v41, %v8130_v41 }
 0x2f3   :  { %vm171_vm5 = vcmp.eq.s32.totalorder %v103_v40, %v9141_v32  ;;  %v10640_v40 = vpop.f32.mrf.mxu0  ;;  %v2093_v21 = vunpack.c.l.b16 %v717_v9  ;;  %v1611_v9 = vpack.c.bf16 %v8321_v61, %v8321_v61 }
 0x2f4   :  { %v8129_v63 = vsel %vm171_vm5, 1.0, %v14626_v57  ;;  %8851 = vset.pattern.permute.xlu1 %v14616_v48  ;;  %14742 = vst [vmem:[#allocation177_spill] sm:$0xff] %v10640_v40 }
 0x2f5   :  { %v267_v35 = vpack.c.bf16 %v8129_v63, %v8129_v63  ;;  %1025 = vperm.xlu1 %8851, %v10627_v2  }
 0x2f6   :  { %8852 = vset.pattern.permute.xlu2 %v14616_v48 }
 0x2f7   :  { %v1899_v24 = vunpack.c.l.b16 %v267_v35  ;;  %1028 = vperm.xlu2 %8852, %v10635_v23   ;;  %v10638_v34 = vpop.permute.xlu2 %1007  ;;  %v10683_v12 = vpop.f32.mrf.mxu3 }
 0x2f8   :  { %14750 = vst [vmem:[#allocation185_spill] sm:$0xff] %v10683_v12  ;;  %vm1070_vm14 = vcmp.eq.s32.totalorder %v10638_v34, %v9141_v32  ;;  %v10709_v34 = vpop.f32.mrf.mxu1 }
 0x2f9   :  { %v10642_v63 = vpack.c.b16 %v1899_v24, %v1898_v38  ;;  %v563_v38 = vpop.permute.xlu0 %562  ;;  %14755 = vst [vmem:[#allocation190_spill] sm:$0xff] %v10709_v34 }
 0x2fa   :  { %vm623_vm9 = vcmp.eq.s32.totalorder %v563_v38, %v9141_v32 }
 0x2fb   :  { %14743 = vst [vmem:[#allocation178_spill] sm:$0xff] %v10642_v63  ;;  %3301 = vmatmul.bf16.gmra.mxu3 %v10642_v63  ;;  %v554_v51 = vpop.permute.xlu1 %553 }
 0x2fc   :  { %vm620_vm7 = vcmp.eq.s32.totalorder %v554_v51, %v9141_v32  ;;  %v10655_v51 = vpop.f32.mrf.mxu0 }
 0x2fd   :  { %v8194_v35 = vsel %vm620_vm7, 1.0, %v14626_v57  ;;  %8853 = vset.pattern.permute.xlu1 %v14613_v10  ;;  %14745 = vst [vmem:[#allocation180_spill] sm:$0xff] %v10655_v51 }
 0x2fe   :  { %v716_v42 = vpack.c.bf16 %v8194_v35, %v8194_v35  ;;  %577 = vperm.xlu1 %8853, %v10627_v2  }
 0x2ff   :  { %8854 = vset.pattern.permute.xlu2 %v14613_v10 }
 0x300   :  { %v2092_v24 = vunpack.c.l.b16 %v716_v42  ;;  %580 = vperm.xlu2 %8854, %v10635_v23   ;;  %v560_v43 = vpop.permute.xlu2 %559  ;;  %v8197_v42 = vsel %vm623_vm9, 1.0, %v14626_v57 }
 0x301   :  { %vm622_vm10 = vcmp.eq.s32.totalorder %v560_v43, %v9141_v32  ;;  %v2475_v43 = vunpack.c.l.b16 %v1611_v9  ;;  %v719_v61 = vpack.c.bf16 %v8197_v42, %v8197_v42  ;;  %v10677_v58 = vpop.permute.xlu0 %571 }
 0x302   :  { %v10657_v29 = vpack.c.b16 %v2093_v21, %v2092_v24  ;;  %v8196_v52 = vsel %vm622_vm10, 1.0, %v14626_v57  ;;  %v8935_v24 = vld [vmem:[%s14089_s0 + $0xa8] sm:$0xff] }
 0x304   :  { %14746 = vst [vmem:[#allocation181_spill] sm:$0xff] %v10657_v29  ;;  %2826 = vmatmul.bf16.gmra.mxu0 %v10657_v29  ;;  %v1444_v35 = vpop.permute.xlu1 %1443  ;;  %v10679_v40 = vpop.f32.mrf.mxu0 }
 0x305   :  { %vm1514_vm11 = vcmp.eq.s32.totalorder %v1444_v35, %v9141_v32  ;;  %v718_v35 = vpack.c.bf16 %v8196_v52, %v8196_v52  ;;  %14748 = vst [vmem:[#allocation183_spill] sm:$0xff] %v10679_v40  ;;  %v10685_v52 = vpop.f32.mrf.mxu2  ;;  %v1900_v40 = vunpack.c.l.b16 %v268_v1 }
 0x306   :  { %v8320_v21 = vsel %vm1514_vm11, 1.0, %v14626_v57  ;;  %8856 = vset.pattern.permute.xlu1 %v14610_v6  ;;  %14751 = vst [vmem:[#allocation186_spill] sm:$0xff] %v10685_v52 }
 0x307   :  { %v1610_v38 = vpack.c.bf16 %v8320_v21, %v8320_v21  ;;  %1470 = vperm.xlu1 %8856, %v8935_v24   ;;  %v2095_v24 = vunpack.c.l.b16 %v719_v61  ;;  %v2094_v42 = vunpack.c.l.b16 %v718_v35  ;;  %v8260_v35 = vsel %vm1070_vm14, 1.0, %v14626_v57 }
 0x308   :  { %8857 = vset.pattern.permute.xlu2 %v14619_v5 }
 0x309   :  { %v2474_v51 = vunpack.c.l.b16 %v1610_v38  ;;  %129 = vperm.xlu2 %8857, %v10627_v2   ;;  %v1453_v9 = vpop.permute.xlu2 %1452  ;;  %v1459_v1 = vpop.permute.xlu0 %1458 }
 0x30a   :  { %vm1517_vm0 = vcmp.eq.s32.totalorder %v1453_v9, %v9141_v32  ;;  %vm1519_vm3 = vcmp.eq.s32.totalorder %v1459_v1, %v9141_v32 }
 0x30b   :  { %v10681_v21 = vpack.c.b16 %v2475_v43, %v2474_v51  ;;  %v10691_v51 = vpack.c.b16 %v2095_v24, %v2094_v42 }
 0x30c   :  { %v10703_v61 = vpop.f32.mrf.mxu0 }
 0x30d   :  { %14749 = vst [vmem:[#allocation184_spill] sm:$0xff] %v10681_v21  ;;  %3141 = vmatmul.bf16.gmra.mxu2 %v10681_v21  ;;  %v109_v3 = vpop.permute.xlu1 %108  ;;  %v10729_v34 = vpop.f32.mrf.mxu2 }
 0x30e   :  { %vm173_vm13 = vcmp.eq.s32.totalorder %v109_v3, %v9141_v32  ;;  %14752 = vst [vmem:[#allocation187_spill] sm:$0xff] %v10691_v51  ;;  %v10700_v3 = vld [vmem:[%s14089_s0 + $0xc0] sm:$0xff] }
 0x30f   :  { %v8131_v38 = vsel %vm173_vm13, 1.0, %v14626_v57  ;;  %8858 = vset.pattern.permute.xlu1 %v14619_v5  ;;  %14753 = vst [vmem:[#allocation188_spill] sm:$0xff] %v10703_v61 }
 0x310   :  { %v269_v11 = vpack.c.bf16 %v8131_v38, %v8131_v38  ;;  %132 = vperm.xlu1 %8858, %v10635_v23   ;;  %v1166_v38 = vpack.c.bf16 %v8260_v35, %v8260_v35  ;;  %v10724_v35 = vld [vmem:[%s14089_s0 + $0xc8] sm:$0xff]  ;;  %14757 = vst [vmem:[#allocation192_spill] sm:$0xff] %v10729_v34 }
 0x311   :  { %8859 = vset.pattern.permute.xlu2 %v14616_v48  ;;  %v10733_v9 = vpop.permute.xlu0 %1467 }
 0x312   :  { %v1901_v41 = vunpack.c.l.b16 %v269_v11  ;;  %1031 = vperm.xlu2 %8859, %v10700_v3   ;;  %v115_v43 = vpop.permute.xlu2 %114  ;;  %v10711_v11 = vpop.f32.mrf.mxu3 }
 0x313   :  { %14756 = vst [vmem:[#allocation191_spill] sm:$0xff] %v10711_v11  ;;  %v8323_v11 = vsel %vm1517_vm0, 1.0, %v14626_v57  ;;  %vm175_vm2 = vcmp.eq.s32.totalorder %v115_v43, %v9141_v32  ;;  %vm626_vm0 = vcmp.eq.s32.totalorder %v10677_v58, %v9141_v32 }
 0x314   :  { %v10706_v24 = vpack.c.b16 %v1901_v41, %v1900_v40  ;;  %2831 = vmatmul.bf16.gmra.mxu0 %v10691_v51  ;;  %v2286_v41 = vunpack.c.l.b16 %v1166_v38  ;;  %v1613_v21 = vpack.c.bf16 %v8323_v11, %v8323_v11  ;;  %v10735_v38 = vpop.f32.mrf.mxu1 }
 0x315   :  { %14759 = vst [vmem:[#allocation194_spill] sm:$0xff] %v10735_v38  ;;  %v10748_v38 = vpop.f32.mrf.mxu2 }
 0x316   :  { %14754 = vst [vmem:[#allocation189_spill] sm:$0xff] %v10706_v24  ;;  %3306 = vmatmul.bf16.gmra.mxu3 %v10706_v24  ;;  %v1011_v42 = vpop.permute.xlu1 %1010  ;;  %v2477_v26 = vunpack.c.l.b16 %v1613_v21 }
 0x317   :  { %vm1071_vm15 = vcmp.eq.s32.totalorder %v1011_v42, %v9141_v32  ;;  %14761 = vst [vmem:[#allocation196_spill] sm:$0xff] %v10748_v38 }
 0x318   :  { %v8261_v12 = vsel %vm1071_vm15, 1.0, %v14626_v57  ;;  %8861 = vset.pattern.permute.xlu1 %v14613_v10 }
 0x319   :  { %v1167_v40 = vpack.c.bf16 %v8261_v12, %v8261_v12  ;;  %583 = vperm.xlu1 %8861, %v10700_v3   ;;  %v1014_v43 = vpop.permute.xlu0 %1013 }
 0x31a   :  { %8862 = vset.pattern.permute.xlu2 %v14613_v10  ;;  %vm1072_vm6 = vcmp.eq.s32.totalorder %v1014_v43, %v9141_v32 }
 0x31b   :  { %v2287_v52 = vunpack.c.l.b16 %v1167_v40  ;;  %586 = vperm.xlu2 %8862, %v10724_v35   ;;  %v10727_v42 = vpop.permute.xlu2 %565  ;;  %v8262_v38 = vsel %vm1072_vm6, 1.0, %v14626_v57 }
 0x31c   :  { %v10754_v21 = vpop.f32.mrf.mxu1  ;;  %vm624_vm8 = vcmp.eq.s32.totalorder %v10727_v42, %v9141_v32 }
 0x31d   :  { %v10731_v12 = vpack.c.b16 %v2287_v52, %v2286_v41  ;;  %v10744_v52 = vpop.f32.mrf.mxu3  ;;  %v8133_v41 = vsel %vm175_vm2, 1.0, %v14626_v57  ;;  %14763 = vst [vmem:[#allocation198_spill] sm:$0xff] %v10754_v21 }
 0x31e   :  { %14760 = vst [vmem:[#allocation195_spill] sm:$0xff] %v10744_v52 }
 0x31f   :  { %14758 = vst [vmem:[#allocation193_spill] sm:$0xff] %v10731_v12  ;;  %2991 = vmatmul.bf16.gmra.mxu1 %v10731_v12  ;;  %v1450_v40 = vpop.permute.xlu1 %1449 }
 0x320   :  { %vm1516_vm1 = vcmp.eq.s32.totalorder %v1450_v40, %v9141_v32 }
 0x321   :  { %v8322_v61 = vsel %vm1516_vm1, 1.0, %v14626_v57  ;;  %8863 = vset.pattern.permute.xlu1 %v14610_v6 }
 0x322   :  { %v1612_v34 = vpack.c.bf16 %v8322_v61, %v8322_v61  ;;  %1473 = vperm.xlu1 %8863, %v10627_v2   ;;  %v271_v2 = vpack.c.bf16 %v8133_v41, %v8133_v41 }
 0x323   :  { %8864 = vset.pattern.permute.xlu2 %v14610_v6 }
 0x324   :  { %v2476_v11 = vunpack.c.l.b16 %v1612_v34  ;;  %1476 = vperm.xlu2 %8864, %v10635_v23   ;;  %v1456_v40 = vpop.permute.xlu2 %1455  ;;  %v8325_v34 = vsel %vm1519_vm3, 1.0, %v14626_v57  ;;  %v1903_v1 = vunpack.c.l.b16 %v271_v2  ;;  %v10774_v2 = vpop.f32.mrf.mxu2 }
 0x325   :  { %vm1518_vm4 = vcmp.eq.s32.totalorder %v1456_v40, %v9141_v32  ;;  %v1615_v41 = vpack.c.bf16 %v8325_v34, %v8325_v34  ;;  %v10772_v43 = vpop.f32.mrf.mxu3  ;;  %14765 = vst [vmem:[#allocation200_spill] sm:$0xff] %v10774_v2  ;;  %v10778_v34 = vpop.f32.mrf.mxu0 }
 0x326   :  { %v10750_v37 = vpack.c.b16 %v2477_v26, %v2476_v11  ;;  %v8324_v23 = vsel %vm1518_vm4, 1.0, %v14626_v57  ;;  %14764 = vst [vmem:[#allocation199_spill] sm:$0xff] %v10772_v43  ;;  %v10780_v12 = vpop.f32.mrf.mxu1 }
 0x327   :  { %v1614_v40 = vpack.c.bf16 %v8324_v23, %v8324_v23  ;;  %14767 = vst [vmem:[#allocation202_spill] sm:$0xff] %v10778_v34  ;;  %v2479_v23 = vunpack.c.l.b16 %v1615_v41  ;;  %v8200_v34 = vsel %vm626_vm0, 1.0, %v14626_v57 }
 0x328   :  { %14762 = vst [vmem:[#allocation197_spill] sm:$0xff] %v10750_v37  ;;  %3146 = vmatmul.bf16.gmra.mxu2 %v10750_v37  ;;  %v112_v61 = vpop.permute.xlu1 %111 }
 0x329   :  { %vm174_vm5 = vcmp.eq.s32.totalorder %v112_v61, %v9141_v32  ;;  %v10769_v61 = vld [vmem:[%s14089_s0 + $0xd0] sm:$0xff]  ;;  %v2478_v37 = vunpack.c.l.b16 %v1614_v40  ;;  %14768 = vst [vmem:[#allocation203_spill] sm:$0xff] %v10780_v12 }
 0x32a   :  { %v8132_v26 = vsel %vm174_vm5, 1.0, %v14626_v57  ;;  %8865 = vset.pattern.permute.xlu1 %v14619_v5 }
 0x32b   :  { %v270_v11 = vpack.c.bf16 %v8132_v26, %v8132_v26  ;;  %138 = vperm.xlu1 %8865, %v10724_v35  }
 0x32c   :  { %8866 = vset.pattern.permute.xlu2 %v14616_v48  ;;  %v10797_v40 = vpop.f32.mrf.mxu2 }
 0x32d   :  { %v1902_v52 = vunpack.c.l.b16 %v270_v11  ;;  %1037 = vperm.xlu2 %8866, %v10769_v61   ;;  %v121_v21 = vpop.permute.xlu2 %120  ;;  %v1168_v11 = vpack.c.bf16 %v8262_v38, %v8262_v38  ;;  %v8939_v38 = vld [vmem:[%s14089_s0 + $0xd8] sm:$0xff]  ;;  %14771 = vst [vmem:[#allocation206_spill] sm:$0xff] %v10797_v40 }
 0x32e   :  { %vm177_vm10 = vcmp.eq.s32.totalorder %v121_v21, %v9141_v32 }
 0x32f   :  { %v10776_v26 = vpack.c.b16 %v1903_v1, %v1902_v52  ;;  %v2288_v43 = vunpack.c.l.b16 %v1168_v11  ;;  %v10786_v52 = vpack.c.b16 %v2479_v23, %v2478_v37  ;;  %v10794_v1 = vpop.f32.mrf.mxu3  ;;  %v10803_v23 = vpop.f32.mrf.mxu1  ;;  %v8135_v12 = vsel %vm177_vm10, 1.0, %v14626_v57 }
 0x330   :  { %14770 = vst [vmem:[#allocation205_spill] sm:$0xff] %v10794_v1  ;;  %v10805_v11 = vpop.f32.mrf.mxu0  ;;  %vm1522_vm10 = vcmp.eq.s32.totalorder %v10733_v9, %v9141_v32 }
 0x331   :  { %14766 = vst [vmem:[#allocation201_spill] sm:$0xff] %v10776_v26  ;;  %3311 = vmatmul.bf16.gmra.mxu3 %v10776_v26  ;;  %v1017_v49 = vpop.permute.xlu1 %1016 }
 0x332   :  { %vm1073_vm7 = vcmp.eq.s32.totalorder %v1017_v49, %v9141_v32  ;;  %14769 = vst [vmem:[#allocation204_spill] sm:$0xff] %v10786_v52 }
 0x333   :  { %v8263_v4 = vsel %vm1073_vm7, 1.0, %v14626_v57  ;;  %8867 = vset.pattern.permute.xlu1 %v14616_v48  ;;  %14773 = vst [vmem:[#allocation208_spill] sm:$0xff] %v10803_v23 }
 0x334   :  { %v1169_v2 = vpack.c.bf16 %v8263_v4, %v8263_v4  ;;  %1040 = vperm.xlu1 %8867, %v8939_v38   ;;  %v8198_v4 = vsel %vm624_vm8, 1.0, %v14626_v57  ;;  %14774 = vst [vmem:[#allocation209_spill] sm:$0xff] %v10805_v11 }
 0x335   :  { %8868 = vset.pattern.permute.xlu2 %v14613_v10  ;;  %v720_v1 = vpack.c.bf16 %v8198_v4, %v8198_v4 }
 0x336   :  { %v2289_v49 = vunpack.c.l.b16 %v1169_v2  ;;  %589 = vperm.xlu2 %8868, %v10769_v61   ;;  %v1023_v41 = vpop.permute.xlu2 %1022 }
 0x337   :  { %v2096_v40 = vunpack.c.l.b16 %v720_v1  ;;  %vm1075_vm12 = vcmp.eq.s32.totalorder %v1023_v41, %v9141_v32 }
 0x338   :  { %v10800_v37 = vpack.c.b16 %v2289_v49, %v2288_v43  ;;  %3151 = vmatmul.bf16.gmra.mxu2 %v10786_v52  ;;  %v10813_v49 = vpop.permute.xlu0 %1034  ;;  %v10824_v21 = vpop.f32.mrf.mxu0 }
 0x339   :  { %14777 = vst [vmem:[#allocation212_spill] sm:$0xff] %v10824_v21  ;;  %vm1079_vm7 = vcmp.eq.s32.totalorder %v10813_v49, %v9141_v32 }
 0x33a   :  { %14772 = vst [vmem:[#allocation207_spill] sm:$0xff] %v10800_v37  ;;  %2996 = vmatmul.bf16.gmra.mxu1 %v10800_v37  ;;  %v569_v42 = vpop.permute.xlu1 %568 }
 0x33b   :  { %vm625_vm9 = vcmp.eq.s32.totalorder %v569_v42, %v9141_v32  ;;  %v10820_v42 = vpop.f32.mrf.mxu3 }
 0x33c   :  { %v8199_v2 = vsel %vm625_vm9, 1.0, %v14626_v57  ;;  %8870 = vset.pattern.permute.xlu1 %v14610_v6  ;;  %14775 = vst [vmem:[#allocation210_spill] sm:$0xff] %v10820_v42 }
 0x33d   :  { %v721_v43 = vpack.c.bf16 %v8199_v2, %v8199_v2  ;;  %1479 = vperm.xlu1 %8870, %v10700_v3   ;;  %v273_v2 = vpack.c.bf16 %v8135_v12, %v8135_v12  ;;  %v10826_v3 = vpop.f32.mrf.mxu1 }
 0x33e   :  { %8871 = vset.pattern.permute.xlu2 %v14610_v6  ;;  %14778 = vst [vmem:[#allocation213_spill] sm:$0xff] %v10826_v3 }
 0x33f   :  { %v2097_v23 = vunpack.c.l.b16 %v721_v43  ;;  %1482 = vperm.xlu2 %8871, %v10724_v35   ;;  %v10818_v4 = vpop.permute.xlu2 %1461  ;;  %v1905_v35 = vunpack.c.l.b16 %v273_v2 }
 0x340   :  { %v127_v12 = vpop.permute.xlu0 %126  ;;  %vm1520_vm2 = vcmp.eq.s32.totalorder %v10818_v4, %v9141_v32  ;;  %v12_v4 = vstv %s14091_s6 }
 0x341   :  { %v10822_v52 = vpack.c.b16 %v2097_v23, %v2096_v40  ;;  %v10834_v40 = vpop.f32.mrf.mxu2  ;;  %vm179_vm13 = vcmp.eq.s32.totalorder %v127_v12, %v9141_v32  ;;  %v10857_v12 = vld [vmem:[%s14089_s0 + $0xe8] sm:$0xff]  ;;  %13 = vst [vmem:[#allocation2] sm:$0x1] %v12_v4 }
 0x342   :  { %14779 = vst [vmem:[#allocation214_spill] sm:$0xff] %v10834_v40 }
 0x343   :  { %14776 = vst [vmem:[#allocation211_spill] sm:$0xff] %v10822_v52  ;;  %2836 = vmatmul.bf16.gmra.mxu0 %v10822_v52  ;;  %v118_v11 = vpop.permute.xlu1 %117  ;;  %v10837_v23 = vpop.f32.mrf.mxu3 }
 0x344   :  { %vm176_vm11 = vcmp.eq.s32.totalorder %v118_v11, %v9141_v32  ;;  %14780 = vst [vmem:[#allocation215_spill] sm:$0xff] %v10837_v23  ;;  %v8265_v11 = vsel %vm1075_vm12, 1.0, %v14626_v57 }
 0x345   :  { %v8134_v1 = vsel %vm176_vm11, 1.0, %v14626_v57  ;;  %8872 = vset.pattern.permute.xlu1 %v14619_v5  ;;  %v10844_v41 = vpop.f32.mrf.mxu1  ;;  %v1171_v2 = vpack.c.bf16 %v8265_v11, %v8265_v11 }
 0x346   :  { %v272_v43 = vpack.c.bf16 %v8134_v1, %v8134_v1  ;;  %141 = vperm.xlu1 %8872, %v10769_v61   ;;  %14782 = vst [vmem:[#allocation217_spill] sm:$0xff] %v10844_v41  ;;  %v10846_v1 = vpop.f32.mrf.mxu0 }
 0x347   :  { %8873 = vset.pattern.permute.xlu2 %v14619_v5  ;;  %14783 = vst [vmem:[#allocation218_spill] sm:$0xff] %v10846_v1 }
 0x348   :  { %v1904_v42 = vunpack.c.l.b16 %v272_v43  ;;  %144 = vperm.xlu2 %8873, %v8939_v38   ;;  %v124_v3 = vpop.permute.xlu2 %123  ;;  %v8137_v43 = vsel %vm179_vm13, 1.0, %v14626_v57 }
 0x349   :  { %vm178_vm14 = vcmp.eq.s32.totalorder %v124_v3, %v9141_v32  ;;  %v10863_v23 = vpop.f32.mrf.mxu2 }
 0x34a   :  { %v10840_v21 = vpack.c.b16 %v1905_v35, %v1904_v42  ;;  %v8136_v38 = vsel %vm178_vm14, 1.0, %v14626_v57  ;;  %v2291_v35 = vunpack.c.l.b16 %v1171_v2  ;;  %14784 = vst [vmem:[#allocation219_spill] sm:$0xff] %v10863_v23  ;;  %v10868_v2 = vld [vmem:[%s14089_s0 + $0xe0] sm:$0xff] }
 0x34b   :  { %v274_v11 = vpack.c.bf16 %v8136_v38, %v8136_v38  ;;  %v10871_v1 = vpop.f32.mrf.mxu3 }
 0x34c   :  { %14781 = vst [vmem:[#allocation216_spill] sm:$0xff] %v10840_v21  ;;  %3316 = vmatmul.bf16.gmra.mxu3 %v10840_v21  ;;  %v1020_v40 = vpop.permute.xlu1 %1019  ;;  %v722_v21 = vpack.c.bf16 %v8200_v34, %v8200_v34 }
 0x34d   :  { %vm1074_vm15 = vcmp.eq.s32.totalorder %v1020_v40, %v9141_v32  ;;  %v275_v40 = vpack.c.bf16 %v8137_v43, %v8137_v43  ;;  %14785 = vst [vmem:[#allocation220_spill] sm:$0xff] %v10871_v1  ;;  %v1906_v37 = vunpack.c.l.b16 %v274_v11  ;;  %v10878_v23 = vpop.f32.mrf.mxu1 }
 0x34e   :  { %v8264_v42 = vsel %vm1074_vm15, 1.0, %v14626_v57  ;;  %8875 = vset.pattern.permute.xlu1 %v14616_v48  ;;  %v10876_v43 = vpop.f32.mrf.mxu0  ;;  %14788 = vst [vmem:[#allocation223_spill] sm:$0xff] %v10878_v23  ;;  %v2098_v34 = vunpack.c.l.b16 %v722_v21 }
 0x34f   :  { %v1170_v3 = vpack.c.bf16 %v8264_v42, %v8264_v42  ;;  %1046 = vperm.xlu1 %8875, %v10857_v12   ;;  %14787 = vst [vmem:[#allocation222_spill] sm:$0xff] %v10876_v43  ;;  %v1907_v38 = vunpack.c.l.b16 %v275_v40 }
 0x350   :  { %8876 = vset.pattern.permute.xlu2 %v14613_v10 }
 0x351   :  { %v2290_v41 = vunpack.c.l.b16 %v1170_v3  ;;  %595 = vperm.xlu2 %8876, %v10868_v2   ;;  %v1029_v42 = vpop.permute.xlu2 %1028  ;;  %v10884_v26 = vpack.c.b16 %v1907_v38, %v1906_v37 }
 0x352   :  { %vm1077_vm4 = vcmp.eq.s32.totalorder %v1029_v42, %v9141_v32  ;;  %v8068_v42 = vld [vmem:[#allocation2] sm:$0x1] }
 0x353   :  { %v10874_v58 = vpack.c.b16 %v2291_v35, %v2290_v41  ;;  %14789 = vst [vmem:[#allocation224_spill] sm:$0xff] %v10884_v26  ;;  %v10887_v41 = vpop.f32.mrf.mxu2  ;;  %v10892_v35 = vpop.f32.mrf.mxu3  ;;  %v8267_v4 = vsel %vm1077_vm4, 1.0, %v14626_v57  ;;  %8071 = vperm.xlu0 %8889, %v8068_v42  }
 0x354   :  { %14790 = vst [vmem:[#allocation225_spill] sm:$0xff] %v10887_v41  ;;  %v1173_v23 = vpack.c.bf16 %v8267_v4, %v8267_v4  ;;  %v8942_v4 = vld [vmem:[%s14089_s0 + $0xf0] sm:$0xff] }
 0x355   :  { %14786 = vst [vmem:[#allocation221_spill] sm:$0xff] %v10874_v58  ;;  %3001 = vmatmul.bf16.gmra.mxu1 %v10874_v58  ;;  %v575_v3 = vpop.permute.xlu1 %574  ;;  %v10899_v38 = vpop.f32.mrf.mxu1 }
 0x356   :  { %vm627_vm1 = vcmp.eq.s32.totalorder %v575_v3, %v9141_v32  ;;  %14791 = vst [vmem:[#allocation226_spill] sm:$0xff] %v10892_v35  ;;  %v10904_v3 = vpop.f32.mrf.mxu0 }
 0x357   :  { %v8201_v52 = vsel %vm627_vm1, 1.0, %v14626_v57  ;;  %8877 = vset.pattern.permute.xlu1 %v14613_v10  ;;  %14793 = vst [vmem:[#allocation228_spill] sm:$0xff] %v10899_v38 }
 0x358   :  { %v723_v1 = vpack.c.bf16 %v8201_v52, %v8201_v52  ;;  %598 = vperm.xlu1 %8877, %v10857_v12   ;;  %v8326_v52 = vsel %vm1520_vm2, 1.0, %v14626_v57  ;;  %14794 = vst [vmem:[#allocation229_spill] sm:$0xff] %v10904_v3 }
 0x359   :  { %8878 = vset.pattern.permute.xlu2 %v14610_v6 }
 0x35a   :  { %v2099_v40 = vunpack.c.l.b16 %v723_v1  ;;  %1485 = vperm.xlu2 %8878, %v10769_v61   ;;  %v581_v11 = vpop.permute.xlu2 %580  ;;  %v1616_v61 = vpack.c.bf16 %v8326_v52, %v8326_v52 }
 0x35b   :  { %vm629_vm6 = vcmp.eq.s32.totalorder %v581_v11, %v9141_v32  ;;  %v8943_v11 = vld [vmem:[%s14089_s0 + $0xf8] sm:$0xff] }
 0x35c   :  { %v10896_v37 = vpack.c.b16 %v2099_v40, %v2098_v34  ;;  %3321 = vmatmul.bf16.gmra.mxu3 %v10884_v26  ;;  %v10913_v40 = vpop.f32.mrf.mxu2  ;;  %v2480_v35 = vunpack.c.l.b16 %v1616_v61 }
 0x35d   :  { %14795 = vst [vmem:[#allocation230_spill] sm:$0xff] %v10913_v40  ;;  %v10925_v3 = vpop.f32.mrf.mxu1  ;;  %v8203_v40 = vsel %vm629_vm6, 1.0, %v14626_v57 }
 0x35e   :  { %14792 = vst [vmem:[#allocation227_spill] sm:$0xff] %v10896_v37  ;;  %2841 = vmatmul.bf16.gmra.mxu0 %v10896_v37  ;;  %v1465_v21 = vpop.permute.xlu1 %1464 }
 0x35f   :  { %vm1521_vm3 = vcmp.eq.s32.totalorder %v1465_v21, %v9141_v32  ;;  %v10919_v21 = vpop.f32.mrf.mxu3  ;;  %14799 = vst [vmem:[#allocation234_spill] sm:$0xff] %v10925_v3  ;;  %v8269_v3 = vsel %vm1079_vm7, 1.0, %v14626_v57 }
 0x360   :  { %v8327_v1 = vsel %vm1521_vm3, 1.0, %v14626_v57  ;;  %8880 = vset.pattern.permute.xlu1 %v14619_v5  ;;  %14796 = vst [vmem:[#allocation231_spill] sm:$0xff] %v10919_v21 }
 0x361   :  { %v1617_v34 = vpack.c.bf16 %v8327_v1, %v8327_v1  ;;  %147 = vperm.xlu1 %8880, %v10868_v2   ;;  %v10923_v1 = vpop.f32.mrf.mxu0 }
 0x362   :  { %8881 = vset.pattern.permute.xlu2 %v14619_v5  ;;  %14798 = vst [vmem:[#allocation233_spill] sm:$0xff] %v10923_v1 }
 0x363   :  { %v2481_v41 = vunpack.c.l.b16 %v1617_v34  ;;  %150 = vperm.xlu2 %8881, %v10857_v12   ;;  %v10917_v52 = vpop.permute.xlu2 %129 }
 0x364   :  { %v10935_v42 = vpop.f32.mrf.mxu2  ;;  %vm180_vm12 = vcmp.eq.s32.totalorder %v10917_v52, %v9141_v32 }
 0x365   :  { %v10921_v38 = vpack.c.b16 %v2481_v41, %v2480_v35  ;;  %v2293_v41 = vunpack.c.l.b16 %v1173_v23  ;;  %14800 = vst [vmem:[#allocation235_spill] sm:$0xff] %v10935_v42  ;;  %v10949_v42 = vpop.f32.mrf.mxu1 }
 0x366   :  { %14803 = vst [vmem:[#allocation238_spill] sm:$0xff] %v10949_v42 }
 0x367   :  { %14797 = vst [vmem:[#allocation232_spill] sm:$0xff] %v10921_v38  ;;  %3156 = vmatmul.bf16.gmra.mxu2 %v10921_v38  ;;  %v1026_v61 = vpop.permute.xlu1 %1025  ;;  %v10938_v21 = vpop.f32.mrf.mxu3 }
 0x368   :  { %vm1076_vm5 = vcmp.eq.s32.totalorder %v1026_v61, %v9141_v32  ;;  %14801 = vst [vmem:[#allocation236_spill] sm:$0xff] %v10938_v21 }
 0x369   :  { %v8266_v34 = vsel %vm1076_vm5, 1.0, %v14626_v57  ;;  %8882 = vset.pattern.permute.xlu1 %v14616_v48  ;;  %v10951_v21 = vpop.f32.mrf.mxu0 }
 0x36a   :  { %v1172_v35 = vpack.c.bf16 %v8266_v34, %v8266_v34  ;;  %1049 = vperm.xlu1 %8882, %v8942_v4   ;;  %14804 = vst [vmem:[#allocation239_spill] sm:$0xff] %v10951_v21 }
 0x36b   :  { %8883 = vset.pattern.permute.xlu2 %v14616_v48  ;;  %v725_v48 = vpack.c.bf16 %v8203_v40, %v8203_v40 }
 0x36c   :  { %v2292_v61 = vunpack.c.l.b16 %v1172_v35  ;;  %1052 = vperm.xlu2 %8883, %v8943_v11   ;;  %v1032_v23 = vpop.permute.xlu2 %1031  ;;  %v10962_v42 = vpop.f32.mrf.mxu2 }
 0x36d   :  { %vm1078_vm8 = vcmp.eq.s32.totalorder %v1032_v23, %v9141_v32  ;;  %14805 = vst [vmem:[#allocation240_spill] sm:$0xff] %v10962_v42 }
 0x36e   :  { %v10946_v34 = vpack.c.b16 %v2293_v41, %v2292_v61  ;;  %v8268_v38 = vsel %vm1078_vm8, 1.0, %v14626_v57  ;;  %v2101_v41 = vunpack.c.l.b16 %v725_v48  ;;  %v1175_v61 = vpack.c.bf16 %v8269_v3, %v8269_v3 }
 0x36f   :  { %v1174_v23 = vpack.c.bf16 %v8268_v38, %v8268_v38  ;;  %v10966_v1 = vpop.f32.mrf.mxu3  ;;  %v10972_v38 = vpop.f32.mrf.mxu1 }
 0x370   :  { %14802 = vst [vmem:[#allocation237_spill] sm:$0xff] %v10946_v34  ;;  %3006 = vmatmul.bf16.gmra.mxu1 %v10946_v34  ;;  %v578_v35 = vpop.permute.xlu1 %577 }
 0x371   :  { %vm628_vm9 = vcmp.eq.s32.totalorder %v578_v35, %v9141_v32  ;;  %v8328_v35 = vsel %vm1522_vm10, 1.0, %v14626_v57  ;;  %14806 = vst [vmem:[#allocation241_spill] sm:$0xff] %v10966_v1  ;;  %v2294_v3 = vunpack.c.l.b16 %v1174_v23 }
 0x372   :  { %v8202_v49 = vsel %vm628_vm9, 1.0, %v14626_v57  ;;  %8885 = vset.pattern.permute.xlu1 %v14613_v10  ;;  %v10970_v10 = vpop.f32.mrf.mxu0  ;;  %v1618_v48 = vpack.c.bf16 %v8328_v35, %v8328_v35  ;;  %14809 = vst [vmem:[#allocation244_spill] sm:$0xff] %v10972_v38 }
 0x373   :  { %v724_v40 = vpack.c.bf16 %v8202_v49, %v8202_v49  ;;  %604 = vperm.xlu1 %8885, %v8943_v11   ;;  %14808 = vst [vmem:[#allocation243_spill] sm:$0xff] %v10970_v10  ;;  %v2295_v11 = vunpack.c.l.b16 %v1175_v61 }
 0x374   :  { %8886 = vset.pattern.permute.xlu2 %v14610_v6 }
 0x375   :  { %v2100_v21 = vunpack.c.l.b16 %v724_v40  ;;  %1491 = vperm.xlu2 %8886, %v10868_v2   ;;  %v587_v9 = vpop.permute.xlu2 %586  ;;  %v2482_v2 = vunpack.c.l.b16 %v1618_v48 }
 0x376   :  { %vm631_vm14 = vcmp.eq.s32.totalorder %v587_v9, %v9141_v32  ;;  %v8945_v9 = vld [vmem:[%s14089_s0 + $0x8] sm:$0xff] }
 0x377   :  { %v10968_v43 = vpack.c.b16 %v2101_v41, %v2100_v21  ;;  %v10978_v21 = vpack.c.b16 %v2295_v11, %v2294_v3  ;;  %v10981_v41 = vpop.f32.mrf.mxu2  ;;  %v10986_v61 = vpop.f32.mrf.mxu3 }
 0x378   :  { %14811 = vst [vmem:[#allocation246_spill] sm:$0xff] %v10981_v41  ;;  %v10992_v11 = vpop.f32.mrf.mxu1 }
 0x379   :  { %14807 = vst [vmem:[#allocation242_spill] sm:$0xff] %v10968_v43  ;;  %2846 = vmatmul.bf16.gmra.mxu0 %v10968_v43  ;;  %v1471_v49 = vpop.permute.xlu1 %1470 }
 0x37a   :  { %vm1523_vm11 = vcmp.eq.s32.totalorder %v1471_v49, %v9141_v32  ;;  %14810 = vst [vmem:[#allocation245_spill] sm:$0xff] %v10978_v21  ;;  %v136_v49 = vpop.permute.xlu0 %135 }
 0x37b   :  { %v8329_v40 = vsel %vm1523_vm11, 1.0, %v14626_v57  ;;  %8887 = vset.pattern.permute.xlu1 %v14610_v6  ;;  %14812 = vst [vmem:[#allocation247_spill] sm:$0xff] %v10986_v61  ;;  %v8138_v6 = vsel %vm180_vm12, 1.0, %v14626_v57  ;;  %vm182_vm4 = vcmp.eq.s32.totalorder %v136_v49, %v9141_v32 }
 0x37c   :  { %v1619_v1 = vpack.c.bf16 %v8329_v40, %v8329_v40  ;;  %1494 = vperm.xlu1 %8887, %v10857_v12   ;;  %14814 = vst [vmem:[#allocation249_spill] sm:$0xff] %v10992_v11  ;;  %v10994_v12 = vpop.f32.mrf.mxu0  ;;  %v276_v3 = vpack.c.bf16 %v8138_v6, %v8138_v6  ;;  %v8205_v6 = vsel %vm631_vm14, 1.0, %v14626_v57 }
 0x37d   :  { %8888 = vset.pattern.permute.xlu2 %v14619_v5  ;;  %14815 = vst [vmem:[#allocation250_spill] sm:$0xff] %v10994_v12 }
 0x37e   :  { %v2483_v23 = vunpack.c.l.b16 %v1619_v1  ;;  %153 = vperm.xlu2 %8888, %v8942_v4   ;;  %v1477_v35 = vpop.permute.xlu2 %1476  ;;  %v8944_v4 = vld [vmem:[%s14089_s0] sm:$0xff] }
 0x37f   :  { %v11005_v40 = vpop.f32.mrf.mxu2  ;;  %vm1525_vm0 = vcmp.eq.s32.totalorder %v1477_v35, %v9141_v32 }
 0x380   :  { %v10989_v48 = vpack.c.b16 %v2483_v23, %v2482_v2  ;;  %3011 = vmatmul.bf16.gmra.mxu1 %v10978_v21  ;;  %14816 = vst [vmem:[#allocation251_spill] sm:$0xff] %v11005_v40  ;;  %v1908_v2 = vunpack.c.l.b16 %v276_v3  ;;  %v11019_v42 = vpop.f32.mrf.mxu1  ;;  %v8331_v11 = vsel %vm1525_vm0, 1.0, %v14626_v57 }
 0x381   :  { %14820 = vst [vmem:[#allocation255_spill] sm:$0xff] %v11019_v42 }
 0x382   :  { %14813 = vst [vmem:[#allocation248_spill] sm:$0xff] %v10989_v48  ;;  %3161 = vmatmul.bf16.gmra.mxu2 %v10989_v48  ;;  %v133_v52 = vpop.permute.xlu1 %132 }
 0x383   :  { %vm181_vm13 = vcmp.eq.s32.totalorder %v133_v52, %v9141_v32 }
 0x384   :  { %v8139_v5 = vsel %vm181_vm13, 1.0, %v14626_v57  ;;  %8890 = vset.pattern.permute.xlu1 %v14600_v14  ;;  %v11017_v41 = vpop.f32.mrf.mxu0 }
 0x385   :  { %v277_v1 = vpack.c.bf16 %v8139_v5, %v8139_v5  ;;  %1183 = vperm.xlu1 %8890, %v8944_v4   ;;  %v11013_v5 = vpop.f32.mrf.mxu3  ;;  %14819 = vst [vmem:[#allocation254_spill] sm:$0xff] %v11017_v41 }
 0x386   :  { %8891 = vset.pattern.permute.xlu2 %v14600_v14  ;;  %14817 = vst [vmem:[#allocation252_spill] sm:$0xff] %v11013_v5  ;;  %v727_v14 = vpack.c.bf16 %v8205_v6, %v8205_v6 }
 0x387   :  { %v1909_v23 = vunpack.c.l.b16 %v277_v1  ;;  %v11008_v52 = vpop.permute.xlu2 %1037  ;;  %1186 = vperm.xlu2 %8891, %v8945_v9  }
 0x388   :  { %v2103_v40 = vunpack.c.l.b16 %v727_v14  ;;  %v11036_v35 = vpop.f32.mrf.mxu1  ;;  %vm1080_vm6 = vcmp.eq.s32.totalorder %v11008_v52, %v9141_v32 }
 0x389   :  { %v11015_v61 = vpack.c.b16 %v1909_v23, %v1908_v2  ;;  %v11026_v2 = vpop.f32.mrf.mxu2  ;;  %v593_v23 = vpop.permute.xlu0 %592  ;;  %14824 = vst [vmem:[#allocation259_spill] sm:$0xff] %v11036_v35 }
 0x38a   :  { %14821 = vst [vmem:[#allocation256_spill] sm:$0xff] %v11026_v2  ;;  %vm633_vm1 = vcmp.eq.s32.totalorder %v593_v23, %v9141_v32  ;;  %v8140_v2 = vsel %vm182_vm4, 1.0, %v14626_v57 }
 0x38b   :  { %14818 = vst [vmem:[#allocation253_spill] sm:$0xff] %v11015_v61  ;;  %3326 = vmatmul.bf16.gmra.mxu3 %v11015_v61  ;;  %v584_v3 = vpop.permute.xlu1 %583  ;;  %v278_v41 = vpack.c.bf16 %v8140_v2, %v8140_v2 }
 0x38c   :  { %vm630_vm15 = vcmp.eq.s32.totalorder %v584_v3, %v9141_v32  ;;  %v11038_v14 = vpop.f32.mrf.mxu0 }
 0x38d   :  { %v8204_v1 = vsel %vm630_vm15, 1.0, %v14626_v57  ;;  %8892 = vset.pattern.permute.xlu1 %v14604_v28  ;;  %v11029_v6 = vpop.f32.mrf.mxu3  ;;  %14825 = vst [vmem:[#allocation260_spill] sm:$0xff] %v11038_v14 }
 0x38e   :  { %v726_v5 = vpack.c.bf16 %v8204_v1, %v8204_v1  ;;  %735 = vperm.xlu1 %8892, %v8944_v4   ;;  %14822 = vst [vmem:[#allocation257_spill] sm:$0xff] %v11029_v6  ;;  %v1621_v4 = vpack.c.bf16 %v8331_v11, %v8331_v11 }
 0x38f   :  { %8893 = vset.pattern.permute.xlu2 %v14604_v28 }
 0x390   :  { %v2102_v42 = vunpack.c.l.b16 %v726_v5  ;;  %v590_v3 = vpop.permute.xlu2 %589  ;;  %738 = vperm.xlu2 %8893, %v8945_v9   ;;  %v8207_v5 = vsel %vm633_vm1, 1.0, %v14626_v57  ;;  %v11055_v49 = vpop.f32.mrf.mxu1 }
 0x391   :  { %vm632_vm2 = vcmp.eq.s32.totalorder %v590_v3, %v9141_v32  ;;  %v729_v23 = vpack.c.bf16 %v8207_v5, %v8207_v5  ;;  %v11046_v11 = vpop.f32.mrf.mxu2  ;;  %14830 = vst [vmem:[#allocation265_spill] sm:$0xff] %v11055_v49 }
 0x392   :  { %v11032_v38 = vpack.c.b16 %v2103_v40, %v2102_v42  ;;  %v8206_v9 = vsel %vm632_vm2, 1.0, %v14626_v57  ;;  %v2485_v40 = vunpack.c.l.b16 %v1621_v4  ;;  %14826 = vst [vmem:[#allocation261_spill] sm:$0xff] %v11046_v11 }
 0x393   :  { %v728_v3 = vpack.c.bf16 %v8206_v9, %v8206_v9  ;;  %v2105_v12 = vunpack.c.l.b16 %v729_v23  ;;  %v1910_v9 = vunpack.c.l.b16 %v278_v41 }
 0x394   :  { %14823 = vst [vmem:[#allocation258_spill] sm:$0xff] %v11032_v38  ;;  %2851 = vmatmul.bf16.gmra.mxu0 %v11032_v38  ;;  %v1474_v28 = vpop.permute.xlu1 %1473  ;;  %v11053_v14 = vpop.f32.mrf.mxu0 }
 0x395   :  { %vm1524_vm3 = vcmp.eq.s32.totalorder %v1474_v28, %v9141_v32  ;;  %v11049_v35 = vpop.f32.mrf.mxu3  ;;  %14829 = vst [vmem:[#allocation264_spill] sm:$0xff] %v11053_v14  ;;  %v2104_v10 = vunpack.c.l.b16 %v728_v3  ;;  %v8270_v3 = vsel %vm1080_vm6, 1.0, %v14626_v57 }
 0x396   :  { %v8330_v42 = vsel %vm1524_vm3, 1.0, %v14626_v57  ;;  %14827 = vst [vmem:[#allocation262_spill] sm:$0xff] %v11049_v35 }
 0x397   :  { %v1620_v1 = vpack.c.bf16 %v8330_v42, %v8330_v42 }
 0x399   :  { %v2484_v6 = vunpack.c.l.b16 %v1620_v1  ;;  %v1483_v28 = vpop.permute.xlu2 %1482  ;;  %v11060_v1 = vpack.c.b16 %v2105_v12, %v2104_v10  ;;  %v1176_v12 = vpack.c.bf16 %v8270_v3, %v8270_v3 }
 0x39a   :  { %vm1527_vm8 = vcmp.eq.s32.totalorder %v1483_v28, %v9141_v32 }
 0x39b   :  { %v11051_v48 = vpack.c.b16 %v2485_v40, %v2484_v6  ;;  %14831 = vst [vmem:[#allocation266_spill] sm:$0xff] %v11060_v1  ;;  %v11062_v6 = vpop.f32.mrf.mxu2 }
 0x39c   :  { %14832 = vst [vmem:[#allocation267_spill] sm:$0xff] %v11062_v6  ;;  %v11074_v41 = vpop.f32.mrf.mxu0  ;;  %v8333_v6 = vsel %vm1527_vm8, 1.0, %v14626_v57 }
 0x39d   :  { %14828 = vst [vmem:[#allocation263_spill] sm:$0xff] %v11051_v48  ;;  %3166 = vmatmul.bf16.gmra.mxu2 %v11051_v48  ;;  %v139_v4 = vpop.permute.xlu1 %138  ;;  %v11066_v2 = vpop.f32.mrf.mxu3 }
 0x39e   :  { %vm183_vm5 = vcmp.eq.s32.totalorder %v139_v4, %v9141_v32  ;;  %14833 = vst [vmem:[#allocation268_spill] sm:$0xff] %v11066_v2  ;;  %v11072_v4 = vpop.f32.mrf.mxu1 }
 0x39f   :  { %v8141_v5 = vsel %vm183_vm5, 1.0, %v14626_v57  ;;  %14835 = vst [vmem:[#allocation270_spill] sm:$0xff] %v11072_v4 }
 0x3a0   :  { %v279_v42 = vpack.c.bf16 %v8141_v5, %v8141_v5  ;;  %14836 = vst [vmem:[#allocation271_spill] sm:$0xff] %v11074_v41 }
 0x3a2   :  { %v1911_v40 = vunpack.c.l.b16 %v279_v42  ;;  %v145_v23 = vpop.permute.xlu2 %144  ;;  %v1044_v42 = vpop.permute.xlu0 %1043 }
 0x3a3   :  { %vm185_vm10 = vcmp.eq.s32.totalorder %v145_v23, %v9141_v32  ;;  %vm1082_vm14 = vcmp.eq.s32.totalorder %v1044_v42, %v9141_v32 }
 0x3a4   :  { %v11069_v35 = vpack.c.b16 %v1911_v40, %v1910_v9  ;;  %2856 = vmatmul.bf16.gmra.mxu0 %v11060_v1  ;;  %v11080_v9 = vpop.f32.mrf.mxu2  ;;  %v2296_v40 = vunpack.c.l.b16 %v1176_v12  ;;  %v11087_v3 = vpop.f32.mrf.mxu0 }
 0x3a5   :  { %14837 = vst [vmem:[#allocation272_spill] sm:$0xff] %v11080_v9  ;;  %v11083_v4 = vpop.f32.mrf.mxu3 }
 0x3a6   :  { %14834 = vst [vmem:[#allocation269_spill] sm:$0xff] %v11069_v35  ;;  %3331 = vmatmul.bf16.gmra.mxu3 %v11069_v35  ;;  %v1041_v10 = vpop.permute.xlu1 %1040  ;;  %v11089_v48 = vpop.f32.mrf.mxu1 }
 0x3a7   :  { %vm1081_vm7 = vcmp.eq.s32.totalorder %v1041_v10, %v9141_v32  ;;  %14838 = vst [vmem:[#allocation273_spill] sm:$0xff] %v11083_v4  ;;  %v1623_v10 = vpack.c.bf16 %v8333_v6, %v8333_v6  ;;  %v8143_v6 = vsel %vm185_vm10, 1.0, %v14626_v57 }
 0x3a8   :  { %v8271_v52 = vsel %vm1081_vm7, 1.0, %v14626_v57  ;;  %14840 = vst [vmem:[#allocation275_spill] sm:$0xff] %v11087_v3  ;;  %v281_v23 = vpack.c.bf16 %v8143_v6, %v8143_v6 }
 0x3a9   :  { %v1177_v5 = vpack.c.bf16 %v8271_v52, %v8271_v52  ;;  %14841 = vst [vmem:[#allocation276_spill] sm:$0xff] %v11089_v48  ;;  %v2487_v52 = vunpack.c.l.b16 %v1623_v10 }
 0x3ab   :  { %v2297_v2 = vunpack.c.l.b16 %v1177_v5  ;;  %v596_v11 = vpop.permute.xlu2 %595 }
 0x3ac   :  { %v11095_v9 = vpop.f32.mrf.mxu2  ;;  %v11106_v10 = vpop.f32.mrf.mxu0  ;;  %vm634_vm0 = vcmp.eq.s32.totalorder %v596_v11, %v9141_v32 }
 0x3ad   :  { %v11085_v49 = vpack.c.b16 %v2297_v2, %v2296_v40  ;;  %14842 = vst [vmem:[#allocation277_spill] sm:$0xff] %v11095_v9  ;;  %v1489_v2 = vpop.permute.xlu0 %1488  ;;  %v11097_v40 = vpop.f32.mrf.mxu3 }
 0x3ae   :  { %14843 = vst [vmem:[#allocation278_spill] sm:$0xff] %v11097_v40  ;;  %vm1529_vm11 = vcmp.eq.s32.totalorder %v1489_v2, %v9141_v32 }
 0x3af   :  { %14839 = vst [vmem:[#allocation274_spill] sm:$0xff] %v11085_v49  ;;  %3016 = vmatmul.bf16.gmra.mxu1 %v11085_v49  ;;  %v1480_v28 = vpop.permute.xlu1 %1479 }
 0x3b0   :  { %vm1526_vm9 = vcmp.eq.s32.totalorder %v1480_v28, %v9141_v32  ;;  %v11104_v28 = vpop.f32.mrf.mxu1  ;;  %14846 = vst [vmem:[#allocation281_spill] sm:$0xff] %v11106_v10 }
 0x3b1   :  { %v8332_v12 = vsel %vm1526_vm9, 1.0, %v14626_v57  ;;  %14845 = vst [vmem:[#allocation280_spill] sm:$0xff] %v11104_v28 }
 0x3b2   :  { %v1622_v5 = vpack.c.bf16 %v8332_v12, %v8332_v12 }
 0x3b4   :  { %v2486_v4 = vunpack.c.l.b16 %v1622_v5  ;;  %v1486_v48 = vpop.permute.xlu2 %1485  ;;  %v8335_v5 = vsel %vm1529_vm11, 1.0, %v14626_v57  ;;  %v11114_v6 = vpop.f32.mrf.mxu2 }
 0x3b5   :  { %vm1528_vm12 = vcmp.eq.s32.totalorder %v1486_v48, %v9141_v32  ;;  %v1625_v2 = vpack.c.bf16 %v8335_v5, %v8335_v5  ;;  %14847 = vst [vmem:[#allocation282_spill] sm:$0xff] %v11114_v6  ;;  %v11117_v41 = vpop.f32.mrf.mxu3  ;;  %v11121_v14 = vpop.f32.mrf.mxu0 }
 0x3b6   :  { %v11100_v3 = vpack.c.b16 %v2487_v52, %v2486_v4  ;;  %v8334_v40 = vsel %vm1528_vm12, 1.0, %v14626_v57  ;;  %v1913_v52 = vunpack.c.l.b16 %v281_v23  ;;  %14848 = vst [vmem:[#allocation283_spill] sm:$0xff] %v11117_v41 }
 0x3b7   :  { %v1624_v9 = vpack.c.bf16 %v8334_v40, %v8334_v40  ;;  %14850 = vst [vmem:[#allocation285_spill] sm:$0xff] %v11121_v14  ;;  %v2489_v21 = vunpack.c.l.b16 %v1625_v2  ;;  %v8619_v2 = vld [vmem:[%s14090_s1 + $0xb8] sm:$0xff] }
 0x3b8   :  { %14844 = vst [vmem:[#allocation279_spill] sm:$0xff] %v11100_v3  ;;  %3171 = vmatmul.bf16.gmra.mxu2 %v11100_v3  ;;  %v142_v12 = vpop.permute.xlu1 %141  ;;  %v8272_v3 = vsel %vm1082_vm14, 1.0, %v14626_v57  ;;  %v11123_v42 = vpop.f32.mrf.mxu1 }
 0x3b9   :  { %vm184_vm13 = vcmp.eq.s32.totalorder %v142_v12, %v9141_v32  ;;  %v1178_v49 = vpack.c.bf16 %v8272_v3, %v8272_v3  ;;  %v2488_v1 = vunpack.c.l.b16 %v1624_v9  ;;  %14851 = vst [vmem:[#allocation286_spill] sm:$0xff] %v11123_v42  ;;  %4114 = vmatpush.bf16.msrb.mxu2 %v8619_v2 }
 0x3ba   :  { %v8142_v4 = vsel %vm184_vm13, 1.0, %v14626_v57 }
 0x3bb   :  { %v280_v48 = vpack.c.bf16 %v8142_v4, %v8142_v4  ;;  %v2298_v5 = vunpack.c.l.b16 %v1178_v49 }
 0x3bd   :  { %v1912_v28 = vunpack.c.l.b16 %v280_v48  ;;  %v151_v10 = vpop.permute.xlu2 %150  ;;  %v11128_v48 = vpack.c.b16 %v2489_v21, %v2488_v1  ;;  %v11133_v3 = vpop.f32.mrf.mxu3  ;;  %v8627_v21 = vld [vmem:[%s14090_s1 + $0xf8] sm:$0xff] }
 0x3be   :  { %14854 = vst [vmem:[#allocation289_spill] sm:$0xff] %v11133_v3  ;;  %v11147_v11 = vpop.f32.mrf.mxu0  ;;  %5084 = vmatpush.bf16.msrb.mxu3 %v8627_v21  ;;  %vm187_vm2 = vcmp.eq.s32.totalorder %v151_v10, %v9141_v32  ;;  %v11159_v3 = vpop.permute.xlu0 %601  ;;  %v8617_v21 = vld [vmem:[%s14090_s1 + $0xa8] sm:$0xff] }
 0x3bf   :  { %v11119_v12 = vpack.c.b16 %v1913_v52, %v1912_v28  ;;  %14852 = vst [vmem:[#allocation287_spill] sm:$0xff] %v11128_v48  ;;  %v11130_v28 = vpop.f32.mrf.mxu2  ;;  %v8145_v6 = vsel %vm187_vm2, 1.0, %v14626_v57  ;;  %vm636_vm8 = vcmp.eq.s32.totalorder %v11159_v3, %v9141_v32  ;;  %v8633_v3 = vld [vmem:[%s14090_s1 + $0x128] sm:$0xff] }
 0x3c0   :  { %14853 = vst [vmem:[#allocation288_spill] sm:$0xff] %v11130_v28  ;;  %v11145_v49 = vpop.f32.mrf.mxu1 }
 0x3c1   :  { %14849 = vst [vmem:[#allocation284_spill] sm:$0xff] %v11119_v12  ;;  %3336 = vmatmul.bf16.gmra.mxu3 %v11119_v12  ;;  %v1047_v40 = vpop.permute.xlu1 %1046 }
 0x3c2   :  { %vm1083_vm15 = vcmp.eq.s32.totalorder %v1047_v40, %v9141_v32  ;;  %v8208_v40 = vsel %vm634_vm0, 1.0, %v14626_v57  ;;  %14856 = vst [vmem:[#allocation291_spill] sm:$0xff] %v11145_v49  ;;  %vm8104_vm0 = vcmask 1040384  }
 0x3c3   :  { %v8273_v23 = vsel %vm1083_vm15, 1.0, %v14626_v57  ;;  %14857 = vst [vmem:[#allocation292_spill] sm:$0xff] %v11147_v11 }
 0x3c4   :  { %v1179_v4 = vpack.c.bf16 %v8273_v23, %v8273_v23  ;;  %v8618_v23 = vld [vmem:[%s14090_s1 + $0xb0] sm:$0xff] }
 0x3c5   :  { %4115 = vmatpush.bf16.msrb.mxu2 %v8618_v23  ;;  %v11172_v49 = vpop.f32.mrf.mxu3  ;;  %v8625_v23 = vld [vmem:[%s14090_s1 + $0xe8] sm:$0xff] }
 0x3c6   :  { %v2299_v9 = vunpack.c.l.b16 %v1179_v4  ;;  %v1053_v52 = vpop.permute.xlu2 %1052  ;;  %14859 = vst [vmem:[#allocation294_spill] sm:$0xff] %v11172_v49 }
 0x3c7   :  { %vm1085_vm4 = vcmp.eq.s32.totalorder %v1053_v52, %v9141_v32 }
 0x3c8   :  { %v11139_v41 = vpack.c.b16 %v2299_v9, %v2298_v5  ;;  %3176 = vmatmul.bf16.gmra.mxu2 %v11128_v48  ;;  %v730_v5 = vpack.c.bf16 %v8208_v40, %v8208_v40  ;;  %v8626_v9 = vld [vmem:[%s14090_s1 + $0xf0] sm:$0xff]  ;;  %v11164_v40 = vpop.f32.mrf.mxu2  ;;  %v11184_v42 = vpop.f32.mrf.mxu1  ;;  %v8601_v48 = vld [vmem:[%s14090_s1 + $0x28] sm:$0xff]  ;;  %v8275_v52 = vsel %vm1085_vm4, 1.0, %v14626_v57 }
 0x3c9   :  { %5085 = vmatpush.bf16.msrb.mxu3 %v8626_v9  ;;  %14858 = vst [vmem:[#allocation293_spill] sm:$0xff] %v11164_v40  ;;  %4116 = vmatpush.bf16.msrb.mxu2 %v8617_v21  ;;  %v8616_v40 = vld [vmem:[%s14090_s1 + $0xa0] sm:$0xff] }
 0x3ca   :  { %14855 = vst [vmem:[#allocation290_spill] sm:$0xff] %v11139_v41  ;;  %3021 = vmatmul.bf16.gmra.mxu1 %v11139_v41  ;;  %v599_v1 = vpop.permute.xlu1 %598 }
 0x3cb   :  { %vm635_vm1 = vcmp.eq.s32.totalorder %v599_v1, %v9141_v32  ;;  %v2106_v1 = vunpack.c.l.b16 %v730_v5  ;;  %v11179_v5 = vpop.f32.mrf.mxu0  ;;  %14862 = vst [vmem:[#allocation297_spill] sm:$0xff] %v11184_v42 }
 0x3cc   :  { %v8209_v4 = vsel %vm635_vm1, 1.0, %v14626_v57  ;;  %14861 = vst [vmem:[#allocation296_spill] sm:$0xff] %v11179_v5 }
 0x3cd   :  { %v731_v2 = vpack.c.bf16 %v8209_v4, %v8209_v4  ;;  %v8603_v4 = vld [vmem:[%s14090_s1 + $0x38] sm:$0xff]  ;;  %5086 = vmatpush.bf16.msrb.mxu3 %v8625_v23  ;;  %4117 = vmatpush.bf16.msrb.mxu2 %v8616_v40  ;;  %v11204_v5 = vpop.f32.mrf.mxu3 }
 0x3ce   :  { %3400 = vmatpush.bf16.msrb.mxu1 %v8603_v4  ;;  %v8615_v23 = vld [vmem:[%s14090_s1 + $0x98] sm:$0xff]  ;;  %14864 = vst [vmem:[#allocation299_spill] sm:$0xff] %v11204_v5  ;;  %v1181_v5 = vpack.c.bf16 %v8275_v52, %v8275_v52 }
 0x3cf   :  { %v2107_v28 = vunpack.c.l.b16 %v731_v2  ;;  %v11167_v10 = vpop.permute.xlu2 %1491  ;;  %v283_v2 = vpack.c.bf16 %v8145_v6, %v8145_v6  ;;  %v8624_v6 = vld [vmem:[%s14090_s1 + $0xe0] sm:$0xff] }
 0x3d0   :  { %v11199_v42 = vpop.f32.mrf.mxu2  ;;  %vm1530_vm10 = vcmp.eq.s32.totalorder %v11167_v10, %v9141_v32  ;;  %v8630_v10 = vld [vmem:[%s14090_s1 + $0x110] sm:$0xff] }
 0x3d1   :  { %v11177_v9 = vpack.c.b16 %v2107_v28, %v2106_v1  ;;  %v8602_v28 = vld [vmem:[%s14090_s1 + $0x30] sm:$0xff]  ;;  %v1915_v1 = vunpack.c.l.b16 %v283_v2  ;;  %5087 = vmatpush.bf16.msrb.mxu3 %v8624_v6  ;;  %14863 = vst [vmem:[#allocation298_spill] sm:$0xff] %v11199_v42  ;;  %v8623_v2 = vld [vmem:[%s14090_s1 + $0xd8] sm:$0xff]  ;;  %4118 = vmatpush.bf16.msrb.mxu2 %v8615_v23  ;;  %v8600_v23 = vld [vmem:[%s14090_s1 + $0x20] sm:$0xff]  ;;  %v2301_v42 = vunpack.c.l.b16 %v1181_v5 }
 0x3d2   :  { %3401 = vmatpush.bf16.msrb.mxu1 %v8602_v28  ;;  %v8635_v28 = vld [vmem:[%s14090_s1 + $0x138] sm:$0xff] }
 0x3d3   :  { %14860 = vst [vmem:[#allocation295_spill] sm:$0xff] %v11177_v9  ;;  %2861 = vmatmul.bf16.gmra.mxu0 %v11177_v9  ;;  %v148_v49 = vpop.permute.xlu1 %147 }
 0x3d4   :  { %vm186_vm3 = vcmp.eq.s32.totalorder %v148_v49, %v9141_v32  ;;  %v157_v49 = vpop.permute.xlu0 %156  ;;  %6054 = vmatpush.bf16.msrb.mxu0 %v8635_v28  ;;  %v8613_v28 = vld [vmem:[%s14090_s1 + $0x88] sm:$0xff] }
 0x3d5   :  { %v8144_v21 = vsel %vm186_vm3, 1.0, %v14626_v57  ;;  %vm189_vm5 = vcmp.eq.s32.totalorder %v157_v49, %v9141_v32  ;;  %5088 = vmatpush.bf16.msrb.mxu3 %v8623_v2  ;;  %v8634_v49 = vld [vmem:[%s14090_s1 + $0x130] sm:$0xff] }
 0x3d6   :  { %v282_v4 = vpack.c.bf16 %v8144_v21, %v8144_v21  ;;  %3402 = vmatpush.bf16.msrb.mxu1 %v8601_v48  ;;  %v8614_v21 = vld [vmem:[%s14090_s1 + $0x90] sm:$0xff]  ;;  %v11225_v48 = vpop.f32.mrf.mxu0  ;;  %v8147_v52 = vsel %vm189_vm5, 1.0, %v14626_v57 }
 0x3d7   :  { %14867 = vst [vmem:[#allocation302_spill] sm:$0xff] %v11225_v48  ;;  %4119 = vmatpush.bf16.msrb.mxu2 %v8614_v21  ;;  %v285_v48 = vpack.c.bf16 %v8147_v52, %v8147_v52  ;;  %v8612_v52 = vld [vmem:[%s14090_s1 + $0x80] sm:$0xff] }
 0x3d8   :  { %v1914_v11 = vunpack.c.l.b16 %v282_v4  ;;  %v154_v40 = vpop.permute.xlu2 %153  ;;  %v11220_v4 = vpop.f32.mrf.mxu1  ;;  %6055 = vmatpush.bf16.msrb.mxu0 %v8634_v49  ;;  %v8210_v49 = vsel %vm636_vm8, 1.0, %v14626_v57 }
 0x3d9   :  { %vm188_vm6 = vcmp.eq.s32.totalorder %v154_v40, %v9141_v32  ;;  %14866 = vst [vmem:[#allocation301_spill] sm:$0xff] %v11220_v4  ;;  %v11253_v5 = vpop.f32.mrf.mxu2 }
 0x3da   :  { %v11213_v6 = vpack.c.b16 %v1915_v1, %v1914_v11  ;;  %v8622_v1 = vld [vmem:[%s14090_s1 + $0xd0] sm:$0xff]  ;;  %v8146_v40 = vsel %vm188_vm6, 1.0, %v14626_v57  ;;  %3403 = vmatpush.bf16.msrb.mxu1 %v8600_v23  ;;  %v8621_v23 = vld [vmem:[%s14090_s1 + $0xc8] sm:$0xff]  ;;  %14868 = vst [vmem:[#allocation303_spill] sm:$0xff] %v11253_v5 }
 0x3db   :  { %5089 = vmatpush.bf16.msrb.mxu3 %v8622_v1  ;;  %v284_v21 = vpack.c.bf16 %v8146_v40, %v8146_v40  ;;  %4120 = vmatpush.bf16.msrb.mxu2 %v8613_v28  ;;  %v732_v28 = vpack.c.bf16 %v8210_v49, %v8210_v49 }
 0x3dc   :  { %14865 = vst [vmem:[#allocation300_spill] sm:$0xff] %v11213_v6  ;;  %3341 = vmatmul.bf16.gmra.mxu3 %v11213_v6  ;;  %v1050_v11 = vpop.permute.xlu1 %1049  ;;  %6056 = vmatpush.bf16.msrb.mxu0 %v8633_v3  ;;  %v8632_v3 = vld [vmem:[%s14090_s1 + $0x120] sm:$0xff] }
 0x3dd   :  { %vm1084_vm7 = vcmp.eq.s32.totalorder %v1050_v11, %v9141_v32  ;;  %v8599_v11 = vld [vmem:[%s14090_s1 + $0x18] sm:$0xff]  ;;  %v1916_v41 = vunpack.c.l.b16 %v284_v21  ;;  %v8597_v21 = vld [vmem:[%s14090_s1 + $0x8] sm:$0xff] }
 0x3de   :  { %v8274_v2 = vsel %vm1084_vm7, 1.0, %v14626_v57  ;;  %3404 = vmatpush.bf16.msrb.mxu1 %v8599_v11  ;;  %v11265_v14 = vpop.f32.mrf.mxu0  ;;  %v1917_v11 = vunpack.c.l.b16 %v285_v48 }
 0x3df   :  { %v1180_v4 = vpack.c.bf16 %v8274_v2, %v8274_v2  ;;  %v11255_v2 = vpop.f32.mrf.mxu3  ;;  %5090 = vmatpush.bf16.msrb.mxu3 %v8621_v23  ;;  %14871 = vst [vmem:[#allocation306_spill] sm:$0xff] %v11265_v14  ;;  %v8620_v23 = vld [vmem:[%s14090_s1 + $0xc0] sm:$0xff]  ;;  %4121 = vmatpush.bf16.msrb.mxu2 %v8612_v52 }
 0x3e0   :  { %14869 = vst [vmem:[#allocation304_spill] sm:$0xff] %v11255_v2  ;;  %v11273_v2 = vpop.f32.mrf.mxu1  ;;  %6057 = vmatpush.bf16.msrb.mxu0 %v8632_v3  ;;  %v11281_v5 = vpack.c.b16 %v1917_v11, %v1916_v41  ;;  %v8336_v41 = vsel %vm1530_vm10, 1.0, %v14626_v57 }
 0x3e1   :  { %v2300_v1 = vunpack.c.l.b16 %v1180_v4  ;;  %v8598_v4 = vld [vmem:[%s14090_s1 + $0x10] sm:$0xff]  ;;  %14872 = vst [vmem:[#allocation307_spill] sm:$0xff] %v11273_v2  ;;  %v8631_v2 = vld [vmem:[%s14090_s1 + $0x118] sm:$0xff]  ;;  %v11288_v52 = vpop.f32.mrf.mxu2  ;;  %v1187_v3 = vpop.permute.xlu2 %1186 }
 0x3e2   :  { %3405 = vmatpush.bf16.msrb.mxu1 %v8598_v4  ;;  %14873 = vst [vmem:[#allocation308_spill] sm:$0xff] %v11281_v5  ;;  %vm1279_vm12 = vcmp.eq.s32.totalorder %v1187_v3, %v9141_v32 }
 0x3e3   :  { %v11260_v40 = vpack.c.b16 %v2301_v42, %v2300_v1  ;;  %5091 = vmatpush.bf16.msrb.mxu3 %v8620_v23  ;;  %v2108_v1 = vunpack.c.l.b16 %v732_v28  ;;  %14874 = vst [vmem:[#allocation309_spill] sm:$0xff] %v11288_v52  ;;  %v8596_v28 = vld [vmem:[%s14090_s1] sm:$0xff] }
 0x3e4   :  { %6058 = vmatpush.bf16.msrb.mxu0 %v8631_v2 }
 0x3e5   :  { %14870 = vst [vmem:[#allocation305_spill] sm:$0xff] %v11260_v40  ;;  %3026 = vmatmul.bf16.gmra.mxu1 %v11260_v40  ;;  %v605_v42 = vpop.permute.xlu1 %604 }
 0x3e6   :  { %vm637_vm9 = vcmp.eq.s32.totalorder %v605_v42, %v9141_v32  ;;  %3406 = vmatpush.bf16.msrb.mxu1 %v8597_v21  ;;  %v1626_v21 = vpack.c.bf16 %v8336_v41, %v8336_v41  ;;  %v8628_v41 = vld [vmem:[%s14090_s1 + $0x100] sm:$0xff] }
 0x3e7   :  { %v8211_v48 = vsel %vm637_vm9, 1.0, %v14626_v57  ;;  %v11290_v4 = vpop.f32.mrf.mxu3 }
 0x3e8   :  { %v733_v49 = vpack.c.bf16 %v8211_v48, %v8211_v48  ;;  %14875 = vst [vmem:[#allocation310_spill] sm:$0xff] %v11290_v4  ;;  %v11302_v42 = vpop.f32.mrf.mxu1  ;;  %v11304_v48 = vpop.f32.mrf.mxu0  ;;  %6059 = vmatpush.bf16.msrb.mxu0 %v8630_v10  ;;  %v2490_v4 = vunpack.c.l.b16 %v1626_v21 }
 0x3e9   :  { %14877 = vst [vmem:[#allocation312_spill] sm:$0xff] %v11302_v42  ;;  %v8277_v42 = vsel %vm1279_vm12, 1.0, %v14626_v57 }
 0x3ea   :  { %v2109_v23 = vunpack.c.l.b16 %v733_v49  ;;  %14878 = vst [vmem:[#allocation313_spill] sm:$0xff] %v11304_v48  ;;  %3407 = vmatpush.bf16.msrb.mxu1 %v8596_v28  ;;  %v8629_v49 = vld [vmem:[%s14090_s1 + $0x108] sm:$0xff]  ;;  %v11314_v48 = vpop.f32.mrf.mxu2  ;;  %v739_v14 = vpop.permute.xlu2 %738 }
 0x3eb   :  { %14879 = vst [vmem:[#allocation314_spill] sm:$0xff] %v11314_v48  ;;  %vm831_vm14 = vcmp.eq.s32.totalorder %v739_v14, %v9141_v32 }
 0x3ec   :  { %v11296_v11 = vpack.c.b16 %v2109_v23, %v2108_v1  ;;  %3346 = vmatmul.bf16.gmra.mxu3 %v11281_v5  ;;  %6060 = vmatpush.bf16.msrb.mxu0 %v8629_v49  ;;  %v8213_v48 = vsel %vm831_vm14, 1.0, %v14626_v57 }
 0x3ee   :  { %14876 = vst [vmem:[#allocation311_spill] sm:$0xff] %v11296_v11  ;;  %2866 = vmatmul.bf16.gmra.mxu0 %v11296_v11  ;;  %v1495_v2 = vpop.permute.xlu1 %1494 }
 0x3ef   :  { %vm1531_vm11 = vcmp.eq.s32.totalorder %v1495_v2, %v9141_v32  ;;  %v11316_v28 = vpop.f32.mrf.mxu3  ;;  %v1375_v2 = vpack.c.bf16 %v8277_v42, %v8277_v42 }
 0x3f0   :  { %v8337_v1 = vsel %vm1531_vm11, 1.0, %v14626_v57  ;;  %14880 = vst [vmem:[#allocation315_spill] sm:$0xff] %v11316_v28  ;;  %v11323_v3 = vpop.f32.mrf.mxu0  ;;  %6061 = vmatpush.bf16.msrb.mxu0 %v8628_v41  ;;  %v927_v41 = vpack.c.bf16 %v8213_v48, %v8213_v48 }
 0x3f1   :  { %v1627_v23 = vpack.c.bf16 %v8337_v1, %v8337_v1  ;;  %14882 = vst [vmem:[#allocation317_spill] sm:$0xff] %v11323_v3  ;;  %v11325_v1 = vpop.f32.mrf.mxu1 }
 0x3f2   :  { %14883 = vst [vmem:[#allocation318_spill] sm:$0xff] %v11325_v1 }
 0x3f3   :  { %v2491_v52 = vunpack.c.l.b16 %v1627_v23  ;;  %v2367_v23 = vunpack.c.l.b16 %v1375_v2  ;;  %v2175_v2 = vunpack.c.l.b16 %v927_v41 }
 0x3f5   :  { %v11321_v10 = vpack.c.b16 %v2491_v52, %v2490_v4  ;;  %v11331_v52 = vpop.f32.mrf.mxu2 }
 0x3f6   :  { %14884 = vst [vmem:[#allocation319_spill] sm:$0xff] %v11331_v52 }
 0x3f7   :  { %14881 = vst [vmem:[#allocation316_spill] sm:$0xff] %v11321_v10  ;;  %3181 = vmatmul.bf16.gmra.mxu2 %v11321_v10  ;;  %v1184_v21 = vpop.permute.xlu1 %1183  ;;  %v11333_v4 = vpop.f32.mrf.mxu3 }
 0x3f8   :  { %vm1278_vm13 = vcmp.eq.s32.totalorder %v1184_v21, %v9141_v32  ;;  %14885 = vst [vmem:[#allocation320_spill] sm:$0xff] %v11333_v4  ;;  %v11340_v3 = vpop.f32.mrf.mxu0 }
 0x3f9   :  { %v8276_v49 = vsel %vm1278_vm13, 1.0, %v14626_v57  ;;  %v11338_v10 = vpop.f32.mrf.mxu1  ;;  %14888 = vst [vmem:[#allocation323_spill] sm:$0xff] %v11340_v3 }
 0x3fa   :  { %v1374_v28 = vpack.c.bf16 %v8276_v49, %v8276_v49  ;;  %14887 = vst [vmem:[#allocation322_spill] sm:$0xff] %v11338_v10 }
 0x3fc   :  { %v2366_v42 = vunpack.c.l.b16 %v1374_v28 }
 0x3fd   :  { %v11345_v28 = vpop.f32.mrf.mxu2 }
 0x3fe   :  { %v11336_v1 = vpack.c.b16 %v2367_v23, %v2366_v42  ;;  %14889 = vst [vmem:[#allocation324_spill] sm:$0xff] %v11345_v28 }
 0x3ff   :  { %v11347_v52 = vpop.f32.mrf.mxu3 }
 0x400   :  { %14886 = vst [vmem:[#allocation321_spill] sm:$0xff] %v11336_v1  ;;  %3031 = vmatmul.bf16.gmra.mxu1 %v11336_v1  ;;  %v736_v21 = vpop.permute.xlu1 %735  ;;  %v11352_v48 = vpop.f32.mrf.mxu0 }
 0x401   :  { %vm830_vm15 = vcmp.eq.s32.totalorder %v736_v21, %v9141_v32  ;;  %14890 = vst [vmem:[#allocation325_spill] sm:$0xff] %v11347_v52  ;;  %v11354_v42 = vpop.f32.mrf.mxu1 }
 0x402   :  { %v8212_v14 = vsel %vm830_vm15, 1.0, %v14626_v57  ;;  %14892 = vst [vmem:[#allocation327_spill] sm:$0xff] %v11352_v48 }
 0x403   :  { %v926_v49 = vpack.c.bf16 %v8212_v14, %v8212_v14  ;;  %14893 = vst [vmem:[#allocation328_spill] sm:$0xff] %v11354_v42 }
 0x405   :  { %v2174_v4 = vunpack.c.l.b16 %v926_v49  ;;  %v11358_v32 = vpop.f32.mrf.mxu2 }
 0x406   :  { %14894 = vst [vmem:[#allocation329_spill] sm:$0xff] %v11358_v32 }
 0x407   :  { %v11349_v23 = vpack.c.b16 %v2175_v2, %v2174_v4  ;;  %4122 = vmatmul.bf16.vlgmr.msrb.gmra.mxu2 %v10194_v19  ;;  %v11360_v57 = vpop.f32.mrf.mxu3 }
 0x408   :  { %14895 = vst [vmem:[#allocation330_spill] sm:$0xff] %v11360_v57  ;;  %v11365_v4 = vpop.f32.mrf.mxu0 }
 0x409   :  { %14891 = vst [vmem:[#allocation326_spill] sm:$0xff] %v11349_v23  ;;  %2871 = vmatmul.bf16.gmra.mxu0 %v11349_v23  ;;  %5092 = vmatmul.bf16.vlgmr.msrb.gmra.mxu3 %v11349_v23  ;;  %v11363_v41 = vpop.f32.mrf.mxu1 }
 0x40a   :  { %14896 = vst [vmem:[#allocation331_spill] sm:$0xff] %v11363_v41 }
 0x40b   :  { %14897 = vst [vmem:[#allocation332_spill] sm:$0xff] %v11365_v4  ;;  %v14970_v4 = vld [vmem:[#allocation55_spill] sm:$0xff] }
 0x40d   :  { %v11368_v21 = vpop.f32.mrf.mxu2 }
 0x40e   :  { %14898 = vst [vmem:[#allocation333_spill] sm:$0xff] %v11368_v21 }
 0x40f   :  { %v11370_v14 = vpop.f32.mrf.mxu3 }
 0x410   :  { %3408 = vmatmul.bf16.vlgmr.msrb.gmra.mxu1 %v10184_v50  ;;  %14899 = vst [vmem:[#allocation334_spill] sm:$0xff] %v11370_v14  ;;  %v11374_v2 = vpop.f32.mrf.mxu0 }
 0x411   :  { %14900 = vst [vmem:[#allocation335_spill] sm:$0xff] %v11374_v2  ;;  %v11376_v49 = vpop.f32.mrf.mxu1 }
 0x412   :  { %14901 = vst [vmem:[#allocation336_spill] sm:$0xff] %v11376_v49 }
 0x415   :  { %v11380_v52 = vpop.f32.mrf.mxu2 }
 0x416   :  { %14903 = vst [vmem:[#allocation338_spill] sm:$0xff] %v11380_v52 }
 0x417   :  { %4127 = vmatmul.bf16.gmra.mxu2 %v10258_v55  ;;  %v11378_v57 = vpop.f32.mrf.mxu3 }
 0x418   :  { %14902 = vst [vmem:[#allocation337_spill] sm:$0xff] %v11378_v57  ;;  %v11385_v28 = vpop.f32.mrf.mxu0 }
 0x419   :  { %5097 = vmatmul.bf16.gmra.mxu3 %v9251_v17  ;;  %6062 = vmatmul.bf16.vlgmr.msrb.gmra.mxu0 %v10169_v18  ;;  %v11383_v32 = vpop.f32.mrf.mxu1  ;;  %14905 = vst [vmem:[#allocation340_spill] sm:$0xff] %v11385_v28 }
 0x41a   :  { %14904 = vst [vmem:[#allocation339_spill] sm:$0xff] %v11383_v32 }
 0x41d   :  { %v11392_v21 = vpop.f32.mrf.mxu2 }
 0x41e   :  { %14907 = vst [vmem:[#allocation342_spill] sm:$0xff] %v11392_v21 }
 0x41f   :  { %v11390_v14 = vpop.f32.mrf.mxu3 }
 0x420   :  { %3413 = vmatmul.bf16.gmra.mxu1 %v10314_v31  ;;  %14906 = vst [vmem:[#allocation341_spill] sm:$0xff] %v11390_v14  ;;  %v11394_v49 = vpop.f32.mrf.mxu0 }
 0x421   :  { %14908 = vst [vmem:[#allocation343_spill] sm:$0xff] %v11394_v49  ;;  %v11396_v57 = vpop.f32.mrf.mxu1 }
 0x422   :  { %14909 = vst [vmem:[#allocation344_spill] sm:$0xff] %v11396_v57 }
 0x425   :  { %v11399_v52 = vpop.f32.mrf.mxu2 }
 0x426   :  { %14910 = vst [vmem:[#allocation345_spill] sm:$0xff] %v11399_v52 }
 0x427   :  { %4132 = vmatmul.bf16.gmra.mxu2 %v10331_v8  ;;  %v11401_v32 = vpop.f32.mrf.mxu3 }
 0x428   :  { %14911 = vst [vmem:[#allocation346_spill] sm:$0xff] %v11401_v32  ;;  %v11405_v31 = vpop.f32.mrf.mxu0 }
 0x429   :  { %5102 = vmatmul.bf16.gmra.mxu3 %v9303_v33  ;;  %6067 = vmatmul.bf16.gmra.mxu0 %v10237_v62  ;;  %v11403_v41 = vpop.f32.mrf.mxu1  ;;  %14913 = vst [vmem:[#allocation348_spill] sm:$0xff] %v11405_v31 }
 0x42a   :  { %14912 = vst [vmem:[#allocation347_spill] sm:$0xff] %v11403_v41 }
 0x42d   :  { %v11410_v14 = vpop.f32.mrf.mxu2 }
 0x42e   :  { %14914 = vst [vmem:[#allocation349_spill] sm:$0xff] %v11410_v14 }
 0x42f   :  { %v11412_v21 = vpop.f32.mrf.mxu3 }
 0x430   :  { %3418 = vmatmul.bf16.gmra.mxu1 %v10370_v56  ;;  %14915 = vst [vmem:[#allocation350_spill] sm:$0xff] %v11412_v21  ;;  %v11414_v57 = vpop.f32.mrf.mxu0 }
 0x431   :  { %14916 = vst [vmem:[#allocation351_spill] sm:$0xff] %v11414_v57  ;;  %v11416_v56 = vpop.f32.mrf.mxu1 }
 0x432   :  { %14917 = vst [vmem:[#allocation352_spill] sm:$0xff] %v11416_v56 }
 0x435   :  { %v11419_v32 = vpop.f32.mrf.mxu2 }
 0x436   :  { %14918 = vst [vmem:[#allocation353_spill] sm:$0xff] %v11419_v32 }
 0x437   :  { %4137 = vmatmul.bf16.gmra.mxu2 %v10360_v25  ;;  %v11421_v52 = vpop.f32.mrf.mxu3 }
 0x438   :  { %14919 = vst [vmem:[#allocation354_spill] sm:$0xff] %v11421_v52  ;;  %v11426_v42 = vpop.f32.mrf.mxu0 }
 0x439   :  { %5107 = vmatmul.bf16.gmra.mxu3 %v9346_v13  ;;  %6072 = vmatmul.bf16.gmra.mxu0 %v10272_v27  ;;  %v11423_v41 = vpop.f32.mrf.mxu1  ;;  %14921 = vst [vmem:[#allocation356_spill] sm:$0xff] %v11426_v42  ;;  %v14954_v42 = vld [vmem:[#allocation38_spill] sm:$0xff] }
 0x43a   :  { %14920 = vst [vmem:[#allocation355_spill] sm:$0xff] %v11423_v41 }
 0x43d   :  { %v11430_v21 = vpop.f32.mrf.mxu2 }
 0x43e   :  { %14922 = vst [vmem:[#allocation357_spill] sm:$0xff] %v11430_v21 }
 0x43f   :  { %v11432_v14 = vpop.f32.mrf.mxu3 }
 0x440   :  { %3423 = vmatmul.bf16.gmra.mxu1 %v10432_v30  ;;  %14923 = vst [vmem:[#allocation358_spill] sm:$0xff] %v11432_v14  ;;  %v11434_v56 = vpop.f32.mrf.mxu0 }
 0x441   :  { %14924 = vst [vmem:[#allocation359_spill] sm:$0xff] %v11434_v56  ;;  %v11437_v32 = vpop.f32.mrf.mxu1 }
 0x442   :  { %14925 = vst [vmem:[#allocation360_spill] sm:$0xff] %v11437_v32 }
 0x445   :  { %v11439_v52 = vpop.f32.mrf.mxu2 }
 0x446   :  { %14926 = vst [vmem:[#allocation361_spill] sm:$0xff] %v11439_v52 }
 0x447   :  { %4142 = vmatmul.bf16.gmra.mxu2 %v10474_v45  ;;  %v11441_v41 = vpop.f32.mrf.mxu3 }
 0x448   :  { %14927 = vst [vmem:[#allocation362_spill] sm:$0xff] %v11441_v41  ;;  %v11448_v21 = vpop.f32.mrf.mxu0 }
 0x449   :  { %5112 = vmatmul.bf16.gmra.mxu3 %v9380_v60  ;;  %6077 = vmatmul.bf16.gmra.mxu0 %v10390_v54  ;;  %v11444_v30 = vpop.f32.mrf.mxu1  ;;  %14929 = vst [vmem:[#allocation364_spill] sm:$0xff] %v11448_v21 }
 0x44a   :  { %14928 = vst [vmem:[#allocation363_spill] sm:$0xff] %v11444_v30 }
 0x44d   :  { %v11450_v14 = vpop.f32.mrf.mxu2 }
 0x44e   :  { %14930 = vst [vmem:[#allocation365_spill] sm:$0xff] %v11450_v14 }
 0x44f   :  { %v11452_v10 = vpop.f32.mrf.mxu3 }
 0x450   :  { %3428 = vmatmul.bf16.gmra.mxu1 %v10491_v47  ;;  %14931 = vst [vmem:[#allocation366_spill] sm:$0xff] %v11452_v10  ;;  %v11455_v32 = vpop.f32.mrf.mxu0 }
 0x451   :  { %14932 = vst [vmem:[#allocation367_spill] sm:$0xff] %v11455_v32  ;;  %v11457_v52 = vpop.f32.mrf.mxu1 }
 0x452   :  { %14933 = vst [vmem:[#allocation368_spill] sm:$0xff] %v11457_v52 }
 0x455   :  { %v11460_v41 = vpop.f32.mrf.mxu2 }
 0x456   :  { %14934 = vst [vmem:[#allocation369_spill] sm:$0xff] %v11460_v41 }
 0x457   :  { %4147 = vmatmul.bf16.gmra.mxu2 %v10535_v44  ;;  %v14953_v44 = vld [vmem:[#allocation211_spill] sm:$0xff] }
 0x458   :  { %v11468_v14 = vpop.f32.mrf.mxu0 }
 0x459   :  { %5117 = vmatmul.bf16.gmra.mxu3 %v9451_v7  ;;  %6082 = vmatmul.bf16.gmra.mxu0 %v10452_v46  ;;  %14937 = vst [vmem:[#allocation372_spill] sm:$0xff] %v11468_v14 }
 0x45d   :  { %v11471_v10 = vpop.f32.mrf.mxu2 }
 0x45e   :  { %14938 = vst [vmem:[#allocation373_spill] sm:$0xff] %v11471_v10 }
 0x45f   :  { %v11462_v30 = vpop.f32.mrf.mxu3 }
 0x460   :  { %3433 = vmatmul.bf16.gmra.mxu1 %v10525_v53  ;;  %14935 = vst [vmem:[#allocation370_spill] sm:$0xff] %v11462_v30 }
 0x462   :  { %v11466_v47 = vpop.f32.mrf.mxu1 }
 0x463   :  { %14936 = vst [vmem:[#allocation371_spill] sm:$0xff] %v11466_v47 }
 0x467   :  { %4152 = vmatmul.bf16.gmra.mxu2 %v10593_v0  ;;  %v11473_v53 = vpop.f32.mrf.mxu3  ;;  %v14952_v0 = vld [vmem:[#allocation54_spill] sm:$0xff] }
 0x468   :  { %14939 = vst [vmem:[#allocation374_spill] sm:$0xff] %v11473_v53 }
 0x469   :  { %5122 = vmatmul.bf16.gmra.mxu3 %v9499_v16  ;;  %6087 = vmatmul.bf16.gmra.mxu0 %v10515_v36 }
 0x46a   :  { %v11477_v50 = vpop.f32.mrf.mxu1 }
 0x46b   :  { %v11475_v52 = vpop.f32.mrf.mxu0  ;;  %14941 = vst [vmem:[#allocation376_spill] sm:$0xff] %v11477_v50 }
 0x46c   :  { %14940 = vst [vmem:[#allocation375_spill] sm:$0xff] %v11475_v52  ;;  %v14951_v52 = vld [vmem:[#allocation201_spill] sm:$0xff] }
 0x46f   :  { %v11482_v30 = vpop.f32.mrf.mxu3 }
 0x470   :  { %3438 = vmatmul.bf16.gmra.mxu1 %v10642_v63  ;;  %14942 = vst [vmem:[#allocation377_spill] sm:$0xff] %v11482_v30 }
 0x473   :  { %v11488_v63 = vpop.f32.mrf.mxu0 }
 0x474   :  { %14945 = vst [vmem:[#allocation380_spill] sm:$0xff] %v11488_v63 }
 0x477   :  { %4157 = vmatmul.bf16.gmra.mxu2 %v10657_v29  ;;  %v11493_v10 = vpop.f32.mrf.mxu3 }
 0x478   :  { %14947 = vst [vmem:[#allocation382_spill] sm:$0xff] %v11493_v10 }
 0x479   :  { %5127 = vmatmul.bf16.gmra.mxu3 %v9545_v20  ;;  %6092 = vmatmul.bf16.gmra.mxu0 %v10574_v59 }
 0x47a   :  { %v11484_v41 = vpop.f32.mrf.mxu2 }
 0x47b   :  { %14943 = vst [vmem:[#allocation378_spill] sm:$0xff] %v11484_v41 }
 0x47d   :  { %v11486_v47 = vpop.f32.mrf.mxu1 }
 0x47e   :  { %14944 = vst [vmem:[#allocation379_spill] sm:$0xff] %v11486_v47 }
 0x480   :  { %3443 = vmatmul.bf16.gmra.mxu1 %v10706_v24 }
 0x482   :  { %v11491_v53 = vpop.f32.mrf.mxu2 }
 0x483   :  { %14946 = vst [vmem:[#allocation381_spill] sm:$0xff] %v11491_v53 }
 0x485   :  { %v11495_v50 = vpop.f32.mrf.mxu1 }
 0x486   :  { %14948 = vst [vmem:[#allocation383_spill] sm:$0xff] %v11495_v50  ;;  %v11497_v29 = vpop.f32.mrf.mxu0 }
 0x487   :  { %14949 = vst [vmem:[#allocation384_spill] sm:$0xff] %v11497_v29  ;;  %4162 = vmatmul.bf16.gmra.mxu2 %v10691_v51 }
 0x489   :  { %5132 = vmatmul.bf16.gmra.mxu3 %v9578_v39  ;;  %6097 = vmatmul.bf16.gmra.mxu0 %v10603_v15 }
 0x48a   :  { %v4123_v30 = vpop.f32.mrf.mxu2 }
 0x48c   :  { %v5093_v41 = vpop.f32.mrf.mxu3 }
 0x48d   :  { %v3409_v47 = vpop.f32.mrf.mxu1 }
 0x48e   :  { %v3410_v63 = vadd.f32 %v3409_v47, %v9837_v22  ;;  %v11503_v24 = vpop.f32.mrf.mxu0  ;;  %v14955_v22 = vld [vmem:[#allocation193_spill] sm:$0xff] }
 0x48f   :  { %14950 = vst [vmem:[#allocation385_spill] sm:$0xff] %v11503_v24  ;;  %v14956_v24 = vld [vmem:[#allocation59_spill] sm:$0xff] }
 0x490   :  { %v4763_v53 = vadd.f32 %v4123_v30, %v3410_v63  ;;  %3448 = vmatmul.bf16.gmra.mxu1 %v14951_v52 }
 0x492   :  { %v4125_v10 = vpop.f32.mrf.mxu2  ;;  %v5733_v50 = vadd.f32 %v5093_v41, %v4763_v53 }
 0x494   :  { %v5095_v14 = vpop.f32.mrf.mxu3 }
 0x495   :  { %v3411_v29 = vpop.f32.mrf.mxu1 }
 0x496   :  { %v3412_v51 = vadd.f32 %v3411_v29, %v14952_v0  ;;  %v6063_v32 = vpop.f32.mrf.mxu0  ;;  %v14957_v29 = vld [vmem:[#allocation216_spill] sm:$0xff] }
 0x497   :  { %v11507_v21 = vadd.f32 %v6063_v32, %v5733_v50  ;;  %4167 = vmatmul.bf16.gmra.mxu2 %v14953_v44 }
 0x498   :  { %v4764_v56 = vadd.f32 %v4125_v10, %v3412_v51  ;;  %v14958_v10 = vld [vmem:[#allocation62_spill] sm:$0xff] }
 0x499   :  { %5137 = vmatmul.bf16.gmra.mxu3 %v14954_v42  ;;  %6102 = vmatmul.bf16.gmra.mxu0 %v14955_v22 }
 0x49a   :  { %v4128_v47 = vpop.f32.mrf.mxu2  ;;  %v5734_v30 = vadd.f32 %v5095_v14, %v4764_v56  ;;  %v14959_v14 = vld [vmem:[#allocation42_spill] sm:$0xff] }
 0x49c   :  { %v5098_v63 = vpop.f32.mrf.mxu3 }
 0x49d   :  { %v3414_v52 = vpop.f32.mrf.mxu1 }
 0x49e   :  { %v3415_v53 = vadd.f32 %v3414_v52, %v14956_v24  ;;  %v6065_v41 = vpop.f32.mrf.mxu0  ;;  %v14960_v24 = vld [vmem:[#allocation207_spill] sm:$0xff] }
 0x49f   :  { %v11513_v45 = vadd.f32 %v6065_v41, %v5734_v30  ;;  %v14961_v41 = vld [vmem:[#allocation64_spill] sm:$0xff] }
 0x4a0   :  { %v4765_v0 = vadd.f32 %v4128_v47, %v3415_v53  ;;  %3453 = vmatmul.bf16.gmra.mxu1 %v14957_v29 }
 0x4a2   :  { %v4130_v50 = vpop.f32.mrf.mxu2  ;;  %v5735_v32 = vadd.f32 %v5098_v63, %v4765_v0 }
 0x4a4   :  { %v5100_v44 = vpop.f32.mrf.mxu3 }
 0x4a5   :  { %v3416_v51 = vpop.f32.mrf.mxu1 }
 0x4a6   :  { %v3417_v57 = vadd.f32 %v3416_v51, %v14958_v10  ;;  %v6068_v31 = vpop.f32.mrf.mxu0 }
 0x4a7   :  { %v11517_v25 = vadd.f32 %v6068_v31, %v5735_v32  ;;  %4172 = vmatmul.bf16.gmra.mxu2 %v10896_v37 }
 0x4a8   :  { %v4766_v56 = vadd.f32 %v4130_v50, %v3417_v57  ;;  %v14962_v50 = vld [vmem:[#allocation68_spill] sm:$0xff] }
 0x4a9   :  { %5142 = vmatmul.bf16.gmra.mxu3 %v14959_v14  ;;  %6107 = vmatmul.bf16.gmra.mxu0 %v14960_v24 }
 0x4aa   :  { %v4133_v52 = vpop.f32.mrf.mxu2  ;;  %v5736_v47 = vadd.f32 %v5100_v44, %v4766_v56  ;;  %v14963_v56 = vld [vmem:[#allocation46_spill] sm:$0xff] }
 0x4ac   :  { %v5103_v30 = vpop.f32.mrf.mxu3 }
 0x4ad   :  { %v3419_v53 = vpop.f32.mrf.mxu1 }
 0x4ae   :  { %v3420_v63 = vadd.f32 %v3419_v53, %v14961_v41  ;;  %v6070_v0 = vpop.f32.mrf.mxu0 }
 0x4af   :  { %v11523_v29 = vadd.f32 %v6070_v0, %v5736_v47 }
 0x4b0   :  { %v4767_v51 = vadd.f32 %v4133_v52, %v3420_v63  ;;  %3458 = vmatmul.bf16.gmra.mxu1 %v10884_v26  ;;  %v14964_v63 = vld [vmem:[#allocation83_spill] sm:$0xff] }
 0x4b2   :  { %v4135_v31 = vpop.f32.mrf.mxu2  ;;  %v5737_v32 = vadd.f32 %v5103_v30, %v4767_v51 }
 0x4b4   :  { %v5105_v10 = vpop.f32.mrf.mxu3 }
 0x4b5   :  { %v3421_v57 = vpop.f32.mrf.mxu1 }
 0x4b6   :  { %v3422_v37 = vadd.f32 %v3421_v57, %v14962_v50  ;;  %v6073_v49 = vpop.f32.mrf.mxu0 }
 0x4b7   :  { %v11527_v28 = vadd.f32 %v6073_v49, %v5737_v32  ;;  %4177 = vmatmul.bf16.gmra.mxu2 %v10968_v43 }
 0x4b8   :  { %v4768_v44 = vadd.f32 %v4135_v31, %v3422_v37  ;;  %v14965_v31 = vld [vmem:[#allocation89_spill] sm:$0xff] }
 0x4b9   :  { %5147 = vmatmul.bf16.gmra.mxu3 %v14963_v56  ;;  %6112 = vmatmul.bf16.gmra.mxu0 %v10874_v58 }
 0x4ba   :  { %v4138_v47 = vpop.f32.mrf.mxu2  ;;  %v5738_v52 = vadd.f32 %v5105_v10, %v4768_v44  ;;  %v14966_v44 = vld [vmem:[#allocation51_spill] sm:$0xff] }
 0x4bc   :  { %v5108_v53 = vpop.f32.mrf.mxu3 }
 0x4bd   :  { %v3424_v41 = vpop.f32.mrf.mxu1 }
 0x4be   :  { %v3425_v30 = vadd.f32 %v3424_v41, %v14964_v63  ;;  %v6075_v0 = vpop.f32.mrf.mxu0 }
 0x4bf   :  { %v11533_v51 = vadd.f32 %v6075_v0, %v5738_v52 }
 0x4c0   :  { %v4769_v57 = vadd.f32 %v4138_v47, %v3425_v30  ;;  %3463 = vmatmul.bf16.gmra.mxu1 %v11015_v61  ;;  %v14967_v30 = vld [vmem:[#allocation95_spill] sm:$0xff] }
 0x4c2   :  { %v4140_v49 = vpop.f32.mrf.mxu2  ;;  %v5739_v32 = vadd.f32 %v5108_v53, %v4769_v57 }
 0x4c4   :  { %v5110_v50 = vpop.f32.mrf.mxu3 }
 0x4c5   :  { %v3426_v37 = vpop.f32.mrf.mxu1 }
 0x4c6   :  { %v3427_v26 = vadd.f32 %v3426_v37, %v14965_v31  ;;  %v6078_v43 = vpop.f32.mrf.mxu0 }
 0x4c7   :  { %v11537_v8 = vadd.f32 %v6078_v43, %v5739_v32  ;;  %4182 = vmatmul.bf16.gmra.mxu2 %v11032_v38 }
 0x4c8   :  { %v4770_v10 = vadd.f32 %v4140_v49, %v3427_v26  ;;  %v14968_v49 = vld [vmem:[#allocation101_spill] sm:$0xff] }
 0x4c9   :  { %5152 = vmatmul.bf16.gmra.mxu3 %v14966_v44  ;;  %6117 = vmatmul.bf16.gmra.mxu0 %v10946_v34 }
 0x4ca   :  { %v4143_v52 = vpop.f32.mrf.mxu2  ;;  %v5740_v47 = vadd.f32 %v5110_v50, %v4770_v10  ;;  %v14969_v50 = vld [vmem:[#allocation266_spill] sm:$0xff] }
 0x4cc   :  { %v5113_v41 = vpop.f32.mrf.mxu3 }
 0x4cd   :  { %v3429_v63 = vpop.f32.mrf.mxu1 }
 0x4ce   :  { %v3430_v53 = vadd.f32 %v3429_v63, %v14967_v30  ;;  %v6080_v0 = vpop.f32.mrf.mxu0  ;;  %v14971_v63 = vld [vmem:[#allocation245_spill] sm:$0xff] }
 0x4cf   :  { %v11543_v57 = vadd.f32 %v6080_v0, %v5740_v47  ;;  %v14972_v0 = vld [vmem:[#allocation107_spill] sm:$0xff] }
 0x4d0   :  { %v4771_v37 = vadd.f32 %v4143_v52, %v3430_v53  ;;  %3468 = vmatmul.bf16.gmra.mxu1 %v11069_v35 }
 0x4d2   :  { %v4145_v43 = vpop.f32.mrf.mxu2  ;;  %v5741_v32 = vadd.f32 %v5113_v41, %v4771_v37 }
 0x4d4   :  { %v5115_v31 = vpop.f32.mrf.mxu3 }
 0x4d5   :  { %v3431_v26 = vpop.f32.mrf.mxu1 }
 0x4d6   :  { %v3432_v61 = vadd.f32 %v3431_v26, %v14968_v49  ;;  %v6083_v38 = vpop.f32.mrf.mxu0 }
 0x4d7   :  { %v11547_v2 = vadd.f32 %v6083_v38, %v5741_v32  ;;  %4187 = vmatmul.bf16.gmra.mxu2 %v14969_v50 }
 0x4d8   :  { %v4772_v10 = vadd.f32 %v4145_v43, %v3432_v61  ;;  %v14973_v43 = vld [vmem:[#allocation111_spill] sm:$0xff] }
 0x4d9   :  { %5157 = vmatmul.bf16.gmra.mxu3 %v14970_v4  ;;  %6122 = vmatmul.bf16.gmra.mxu0 %v14971_v63 }
 0x4da   :  { %v4148_v47 = vpop.f32.mrf.mxu2  ;;  %v5742_v52 = vadd.f32 %v5115_v31, %v4772_v10  ;;  %v14974_v10 = vld [vmem:[#allocation73_spill] sm:$0xff] }
 0x4dc   :  { %v5118_v30 = vpop.f32.mrf.mxu3 }
 0x4dd   :  { %v3434_v53 = vpop.f32.mrf.mxu1 }
 0x4de   :  { %v3435_v41 = vadd.f32 %v3434_v53, %v14972_v0  ;;  %v6085_v37 = vpop.f32.mrf.mxu0  ;;  %v14975_v53 = vld [vmem:[#allocation274_spill] sm:$0xff] }
 0x4df   :  { %v11553_v35 = vadd.f32 %v6085_v37, %v5742_v52  ;;  %v14976_v37 = vld [vmem:[#allocation117_spill] sm:$0xff] }
 0x4e0   :  { %v4773_v26 = vadd.f32 %v4148_v47, %v3435_v41  ;;  %3473 = vmatmul.bf16.gmra.mxu1 %v11119_v12 }
 0x4e2   :  { %v4150_v38 = vpop.f32.mrf.mxu2  ;;  %v5743_v32 = vadd.f32 %v5118_v30, %v4773_v26 }
 0x4e4   :  { %v5120_v49 = vpop.f32.mrf.mxu3 }
 0x4e5   :  { %v3436_v61 = vpop.f32.mrf.mxu1 }
 0x4e6   :  { %v3437_v50 = vadd.f32 %v3436_v61, %v14973_v43  ;;  %v6088_v55 = vpop.f32.mrf.mxu0 }
 0x4e7   :  { %v11557_v48 = vadd.f32 %v6088_v55, %v5743_v32  ;;  %4192 = vmatmul.bf16.gmra.mxu2 %v11177_v9 }
 0x4e8   :  { %v4774_v31 = vadd.f32 %v4150_v38, %v3437_v50  ;;  %v14977_v38 = vld [vmem:[#allocation120_spill] sm:$0xff] }
 0x4e9   :  { %5162 = vmatmul.bf16.gmra.mxu3 %v14974_v10  ;;  %6127 = vmatmul.bf16.gmra.mxu0 %v14975_v53 }
 0x4ea   :  { %v4153_v52 = vpop.f32.mrf.mxu2  ;;  %v5744_v47 = vadd.f32 %v5120_v49, %v4774_v31  ;;  %v14979_v31 = vld [vmem:[#allocation85_spill] sm:$0xff] }
 0x4ec   :  { %v5123_v0 = vpop.f32.mrf.mxu3 }
 0x4ed   :  { %v3439_v41 = vpop.f32.mrf.mxu1 }
 0x4ee   :  { %v3440_v30 = vadd.f32 %v3439_v41, %v14976_v37  ;;  %v6090_v26 = vpop.f32.mrf.mxu0  ;;  %v14980_v41 = vld [vmem:[#allocation290_spill] sm:$0xff] }
 0x4ef   :  { %v11563_v12 = vadd.f32 %v6090_v26, %v5744_v47  ;;  %v14981_v26 = vld [vmem:[#allocation123_spill] sm:$0xff] }
 0x4f0   :  { %v4775_v61 = vadd.f32 %v4153_v52, %v3440_v30  ;;  %3478 = vmatmul.bf16.gmra.mxu1 %v11213_v6 }
 0x4f2   :  { %v4155_v55 = vpop.f32.mrf.mxu2  ;;  %v5745_v32 = vadd.f32 %v5123_v0, %v4775_v61 }
 0x4f4   :  { %v5125_v43 = vpop.f32.mrf.mxu3 }
 0x4f5   :  { %v3441_v50 = vpop.f32.mrf.mxu1 }
 0x4f6   :  { %v3442_v9 = vadd.f32 %v3441_v50, %v14977_v38  ;;  %v6093_v3 = vpop.f32.mrf.mxu0 }
 0x4f7   :  { %v11567_v19 = vadd.f32 %v6093_v3, %v5745_v32  ;;  %4197 = vmatmul.bf16.gmra.mxu2 %v11296_v11 }
 0x4f8   :  { %v4776_v49 = vadd.f32 %v4155_v55, %v3442_v9  ;;  %v14982_v55 = vld [vmem:[#allocation128_spill] sm:$0xff] }
 0x4f9   :  { %14978 = vst [vmem:[#allocation54_spill] sm:$0xff] %v11567_v19  ;;  %5167 = vmatmul.bf16.gmra.mxu3 %v14979_v31  ;;  %6132 = vmatmul.bf16.gmra.mxu0 %v14980_v41 }
 0x4fa   :  { %v4158_v47 = vpop.f32.mrf.mxu2  ;;  %v5746_v52 = vadd.f32 %v5125_v43, %v4776_v49 }
 0x4fc   :  { %v5128_v37 = vpop.f32.mrf.mxu3 }
 0x4fd   :  { %v3444_v30 = vpop.f32.mrf.mxu1 }
 0x4fe   :  { %v3445_v0 = vadd.f32 %v3444_v30, %v14981_v26  ;;  %v6095_v61 = vpop.f32.mrf.mxu0  ;;  %v14983_v26 = vld [vmem:[#allocation145_spill] sm:$0xff] }
 0x4ff   :  { %v11573_v6 = vadd.f32 %v6095_v61, %v5746_v52 }
 0x500   :  { %v4777_v50 = vadd.f32 %v4158_v47, %v3445_v0  ;;  %3483 = vmatmul.bf16.gmra.mxu1 %v11281_v5 }
 0x502   :  { %v4160_v3 = vpop.f32.mrf.mxu2  ;;  %v5747_v32 = vadd.f32 %v5128_v37, %v4777_v50 }
 0x504   :  { %v5130_v38 = vpop.f32.mrf.mxu3 }
 0x505   :  { %v3446_v9 = vpop.f32.mrf.mxu1 }
 0x506   :  { %v3447_v11 = vadd.f32 %v3446_v9, %v14982_v55  ;;  %v6098_v31 = vpop.f32.mrf.mxu0  ;;  %v14984_v9 = vld [vmem:[#allocation4_spill] sm:$0xff] }
 0x507   :  { %v11577_v19 = vadd.f32 %v6098_v31, %v5747_v32  ;;  %4202 = vmatmul.bf16.gmra.mxu2 %v11349_v23 }
 0x508   :  { %v4778_v43 = vadd.f32 %v4160_v3, %v3447_v11  ;;  %v14985_v3 = vld [vmem:[#allocation149_spill] sm:$0xff] }
 0x509   :  { %5172 = vmatmul.bf16.gmra.mxu3 %v10169_v18  ;;  %6137 = vmatmul.bf16.gmra.mxu0 %v11260_v40 }
 0x50a   :  { %v4163_v49 = vpop.f32.mrf.mxu2  ;;  %v5748_v47 = vadd.f32 %v5130_v38, %v4778_v43 }
 0x50c   :  { %v5133_v52 = vpop.f32.mrf.mxu3 }
 0x50d   :  { %v3449_v30 = vpop.f32.mrf.mxu1 }
 0x50e   :  { %v3450_v37 = vadd.f32 %v3449_v30, %v14983_v26  ;;  %v6100_v0 = vpop.f32.mrf.mxu0  ;;  %v14986_v26 = vld [vmem:[#allocation155_spill] sm:$0xff] }
 0x50f   :  { %v11583_v61 = vadd.f32 %v6100_v0, %v5748_v47 }
 0x510   :  { %v4779_v50 = vadd.f32 %v4163_v49, %v3450_v37  ;;  %3488 = vmatmul.bf16.gmra.mxu1 %v14984_v9 }
 0x512   :  { %v4165_v31 = vpop.f32.mrf.mxu2  ;;  %v5749_v32 = vadd.f32 %v5133_v52, %v4779_v50 }
 0x514   :  { %v5135_v55 = vpop.f32.mrf.mxu3 }
 0x515   :  { %v3451_v11 = vpop.f32.mrf.mxu1 }
 0x516   :  { %v3452_v5 = vadd.f32 %v3451_v11, %v14985_v3  ;;  %v6103_v23 = vpop.f32.mrf.mxu0  ;;  %v14987_v11 = vld [vmem:[#allocation6_spill] sm:$0xff] }
 0x517   :  { %v11587_v18 = vadd.f32 %v6103_v23, %v5749_v32  ;;  %4207 = vmatmul.bf16.gmra.mxu2 %v9251_v17 }
 0x518   :  { %v4780_v38 = vadd.f32 %v4165_v31, %v3452_v5  ;;  %v14988_v31 = vld [vmem:[#allocation161_spill] sm:$0xff] }
 0x519   :  { %5177 = vmatmul.bf16.gmra.mxu3 %v10237_v62  ;;  %6142 = vmatmul.bf16.gmra.mxu0 %v11336_v1 }
 0x51a   :  { %v4168_v43 = vpop.f32.mrf.mxu2  ;;  %v5750_v49 = vadd.f32 %v5135_v55, %v4780_v38  ;;  %v14990_v38 = vld [vmem:[#allocation14_spill] sm:$0xff] }
 0x51c   :  { %v5138_v47 = vpop.f32.mrf.mxu3 }
 0x51d   :  { %v3454_v30 = vpop.f32.mrf.mxu1 }
 0x51e   :  { %v3455_v52 = vadd.f32 %v3454_v30, %v14986_v26  ;;  %v6105_v37 = vpop.f32.mrf.mxu0 }
 0x51f   :  { %v11593_v0 = vadd.f32 %v6105_v37, %v5750_v49 }
 0x520   :  { %v4781_v50 = vadd.f32 %v4168_v43, %v3455_v52  ;;  %3493 = vmatmul.bf16.gmra.mxu1 %v14987_v11  ;;  %v14991_v52 = vld [vmem:[#allocation167_spill] sm:$0xff] }
 0x522   :  { %v4170_v23 = vpop.f32.mrf.mxu2  ;;  %v5751_v32 = vadd.f32 %v5138_v47, %v4781_v50 }
 0x524   :  { %v5140_v3 = vpop.f32.mrf.mxu3 }
 0x525   :  { %v3456_v5 = vpop.f32.mrf.mxu1 }
 0x526   :  { %v3457_v9 = vadd.f32 %v3456_v5, %v14988_v31  ;;  %v6108_v17 = vpop.f32.mrf.mxu0  ;;  %v14992_v31 = vld [vmem:[#allocation8_spill] sm:$0xff] }
 0x527   :  { %v11597_v62 = vadd.f32 %v6108_v17, %v5751_v32  ;;  %4212 = vmatmul.bf16.gmra.mxu2 %v9303_v33 }
 0x528   :  { %v4782_v55 = vadd.f32 %v4170_v23, %v3457_v9  ;;  %v14993_v23 = vld [vmem:[#allocation171_spill] sm:$0xff] }
 0x529   :  { %14989 = vst [vmem:[#allocation59_spill] sm:$0xff] %v11597_v62  ;;  %5182 = vmatmul.bf16.gmra.mxu3 %v10272_v27  ;;  %6147 = vmatmul.bf16.gmra.mxu0 %v14990_v38 }
 0x52a   :  { %v4173_v49 = vpop.f32.mrf.mxu2  ;;  %v5752_v43 = vadd.f32 %v5140_v3, %v4782_v55  ;;  %v14995_v55 = vld [vmem:[#allocation18_spill] sm:$0xff] }
 0x52c   :  { %v5143_v30 = vpop.f32.mrf.mxu3 }
 0x52d   :  { %v3459_v26 = vpop.f32.mrf.mxu1 }
 0x52e   :  { %v3460_v47 = vadd.f32 %v3459_v26, %v14991_v52  ;;  %v6110_v37 = vpop.f32.mrf.mxu0 }
 0x52f   :  { %v11603_v50 = vadd.f32 %v6110_v37, %v5752_v43 }
 0x530   :  { %v4783_v5 = vadd.f32 %v4173_v49, %v3460_v47  ;;  %3498 = vmatmul.bf16.gmra.mxu1 %v14992_v31  ;;  %v14996_v47 = vld [vmem:[#allocation177_spill] sm:$0xff] }
 0x532   :  { %v4175_v17 = vpop.f32.mrf.mxu2  ;;  %v5753_v32 = vadd.f32 %v5143_v30, %v4783_v5 }
 0x534   :  { %v5145_v11 = vpop.f32.mrf.mxu3 }
 0x535   :  { %v3461_v9 = vpop.f32.mrf.mxu1 }
 0x536   :  { %v3462_v33 = vadd.f32 %v3461_v9, %v14993_v23  ;;  %v6113_v27 = vpop.f32.mrf.mxu0  ;;  %v14997_v23 = vld [vmem:[#allocation12_spill] sm:$0xff] }
 0x537   :  { %v11607_v62 = vadd.f32 %v6113_v27, %v5753_v32  ;;  %4217 = vmatmul.bf16.gmra.mxu2 %v9346_v13 }
 0x538   :  { %v4784_v3 = vadd.f32 %v4175_v17, %v3462_v33  ;;  %v14998_v17 = vld [vmem:[#allocation180_spill] sm:$0xff] }
 0x539   :  { %14994 = vst [vmem:[#allocation62_spill] sm:$0xff] %v11607_v62  ;;  %5187 = vmatmul.bf16.gmra.mxu3 %v10390_v54  ;;  %6152 = vmatmul.bf16.gmra.mxu0 %v14995_v55 }
 0x53a   :  { %v4178_v43 = vpop.f32.mrf.mxu2  ;;  %v5754_v49 = vadd.f32 %v5145_v11, %v4784_v3  ;;  %v15000_v3 = vld [vmem:[#allocation19_spill] sm:$0xff] }
 0x53c   :  { %v5148_v26 = vpop.f32.mrf.mxu3 }
 0x53d   :  { %v3464_v52 = vpop.f32.mrf.mxu1 }
 0x53e   :  { %v3465_v30 = vadd.f32 %v3464_v52, %v14996_v47  ;;  %v6115_v37 = vpop.f32.mrf.mxu0 }
 0x53f   :  { %v11613_v5 = vadd.f32 %v6115_v37, %v5754_v49 }
 0x540   :  { %v4785_v9 = vadd.f32 %v4178_v43, %v3465_v30  ;;  %3503 = vmatmul.bf16.gmra.mxu1 %v14997_v23  ;;  %v15001_v30 = vld [vmem:[#allocation183_spill] sm:$0xff] }
 0x542   :  { %v4180_v27 = vpop.f32.mrf.mxu2  ;;  %v5755_v32 = vadd.f32 %v5148_v26, %v4785_v9 }
 0x544   :  { %v5150_v31 = vpop.f32.mrf.mxu3 }
 0x545   :  { %v3466_v33 = vpop.f32.mrf.mxu1 }
 0x546   :  { %v3467_v13 = vadd.f32 %v3466_v33, %v14998_v17  ;;  %v6118_v54 = vpop.f32.mrf.mxu0  ;;  %v15002_v17 = vld [vmem:[#allocation15_spill] sm:$0xff] }
 0x547   :  { %v11617_v62 = vadd.f32 %v6118_v54, %v5755_v32  ;;  %4222 = vmatmul.bf16.gmra.mxu2 %v9380_v60 }
 0x548   :  { %v4786_v11 = vadd.f32 %v4180_v27, %v3467_v13  ;;  %v15003_v27 = vld [vmem:[#allocation188_spill] sm:$0xff] }
 0x549   :  { %14999 = vst [vmem:[#allocation64_spill] sm:$0xff] %v11617_v62  ;;  %5192 = vmatmul.bf16.gmra.mxu3 %v10452_v46  ;;  %6157 = vmatmul.bf16.gmra.mxu0 %v15000_v3 }
 0x54a   :  { %v4183_v49 = vpop.f32.mrf.mxu2  ;;  %v5756_v43 = vadd.f32 %v5150_v31, %v4786_v11  ;;  %v15005_v11 = vld [vmem:[#allocation22_spill] sm:$0xff] }
 0x54c   :  { %v5153_v52 = vpop.f32.mrf.mxu3 }
 0x54d   :  { %v3469_v47 = vpop.f32.mrf.mxu1 }
 0x54e   :  { %v3470_v26 = vadd.f32 %v3469_v47, %v15001_v30  ;;  %v6120_v37 = vpop.f32.mrf.mxu0 }
 0x54f   :  { %v11623_v9 = vadd.f32 %v6120_v37, %v5756_v43 }
 0x550   :  { %v4787_v33 = vadd.f32 %v4183_v49, %v3470_v26  ;;  %3508 = vmatmul.bf16.gmra.mxu1 %v15002_v17  ;;  %v15006_v26 = vld [vmem:[#allocation202_spill] sm:$0xff] }
 0x552   :  { %v4185_v54 = vpop.f32.mrf.mxu2  ;;  %v5757_v32 = vadd.f32 %v5153_v52, %v4787_v33 }
 0x554   :  { %v5155_v23 = vpop.f32.mrf.mxu3 }
 0x555   :  { %v3471_v13 = vpop.f32.mrf.mxu1 }
 0x556   :  { %v3472_v60 = vadd.f32 %v3471_v13, %v15003_v27  ;;  %v6123_v46 = vpop.f32.mrf.mxu0  ;;  %v15007_v27 = vld [vmem:[#allocation23_spill] sm:$0xff] }
 0x557   :  { %v11627_v62 = vadd.f32 %v6123_v46, %v5757_v32  ;;  %4227 = vmatmul.bf16.gmra.mxu2 %v9451_v7 }
 0x558   :  { %v4788_v31 = vadd.f32 %v4185_v54, %v3472_v60  ;;  %v15008_v54 = vld [vmem:[#allocation209_spill] sm:$0xff] }
 0x559   :  { %15004 = vst [vmem:[#allocation68_spill] sm:$0xff] %v11627_v62  ;;  %5197 = vmatmul.bf16.gmra.mxu3 %v10515_v36  ;;  %6162 = vmatmul.bf16.gmra.mxu0 %v15005_v11 }
 0x55a   :  { %v4188_v43 = vpop.f32.mrf.mxu2  ;;  %v5758_v49 = vadd.f32 %v5155_v23, %v4788_v31  ;;  %v15010_v31 = vld [vmem:[#allocation28_spill] sm:$0xff] }
 0x55c   :  { %v5158_v47 = vpop.f32.mrf.mxu3 }
 0x55d   :  { %v3474_v30 = vpop.f32.mrf.mxu1 }
 0x55e   :  { %v3475_v52 = vadd.f32 %v3474_v30, %v15006_v26  ;;  %v6125_v37 = vpop.f32.mrf.mxu0 }
 0x55f   :  { %v11633_v33 = vadd.f32 %v6125_v37, %v5758_v49 }
 0x560   :  { %v4789_v13 = vadd.f32 %v4188_v43, %v3475_v52  ;;  %3513 = vmatmul.bf16.gmra.mxu1 %v15007_v27  ;;  %v15011_v52 = vld [vmem:[#allocation212_spill] sm:$0xff] }
 0x562   :  { %v4190_v46 = vpop.f32.mrf.mxu2  ;;  %v5759_v32 = vadd.f32 %v5158_v47, %v4789_v13 }
 0x564   :  { %v5160_v17 = vpop.f32.mrf.mxu3 }
 0x565   :  { %v3476_v60 = vpop.f32.mrf.mxu1 }
 0x566   :  { %v3477_v7 = vadd.f32 %v3476_v60, %v15008_v54  ;;  %v6128_v36 = vpop.f32.mrf.mxu0  ;;  %v15012_v54 = vld [vmem:[#allocation27_spill] sm:$0xff] }
 0x567   :  { %v11637_v62 = vadd.f32 %v6128_v36, %v5759_v32  ;;  %4232 = vmatmul.bf16.gmra.mxu2 %v9499_v16 }
 0x568   :  { %v4790_v23 = vadd.f32 %v4190_v46, %v3477_v7  ;;  %v15013_v46 = vld [vmem:[#allocation218_spill] sm:$0xff] }
 0x569   :  { %15009 = vst [vmem:[#allocation83_spill] sm:$0xff] %v11637_v62  ;;  %5202 = vmatmul.bf16.gmra.mxu3 %v10574_v59  ;;  %6167 = vmatmul.bf16.gmra.mxu0 %v15010_v31 }
 0x56a   :  { %v4193_v49 = vpop.f32.mrf.mxu2  ;;  %v5760_v43 = vadd.f32 %v5160_v17, %v4790_v23  ;;  %v15015_v23 = vld [vmem:[#allocation32_spill] sm:$0xff] }
 0x56c   :  { %v5163_v30 = vpop.f32.mrf.mxu3 }
 0x56d   :  { %v3479_v26 = vpop.f32.mrf.mxu1 }
 0x56e   :  { %v3480_v47 = vadd.f32 %v3479_v26, %v15011_v52  ;;  %v6130_v37 = vpop.f32.mrf.mxu0 }
 0x56f   :  { %v11643_v13 = vadd.f32 %v6130_v37, %v5760_v43 }
 0x570   :  { %v4791_v60 = vadd.f32 %v4193_v49, %v3480_v47  ;;  %3518 = vmatmul.bf16.gmra.mxu1 %v15012_v54  ;;  %v15016_v47 = vld [vmem:[#allocation222_spill] sm:$0xff] }
 0x572   :  { %v4195_v36 = vpop.f32.mrf.mxu2  ;;  %v5761_v32 = vadd.f32 %v5163_v30, %v4791_v60 }
 0x574   :  { %v5165_v27 = vpop.f32.mrf.mxu3 }
 0x575   :  { %v3481_v7 = vpop.f32.mrf.mxu1 }
 0x576   :  { %v3482_v16 = vadd.f32 %v3481_v7, %v15013_v46  ;;  %v6133_v59 = vpop.f32.mrf.mxu0  ;;  %v15017_v46 = vld [vmem:[#allocation30_spill] sm:$0xff] }
 0x577   :  { %v11647_v62 = vadd.f32 %v6133_v59, %v5761_v32  ;;  %4237 = vmatmul.bf16.gmra.mxu2 %v9545_v20 }
 0x578   :  { %v4792_v17 = vadd.f32 %v4195_v36, %v3482_v16  ;;  %v15018_v36 = vld [vmem:[#allocation229_spill] sm:$0xff] }
 0x579   :  { %15014 = vst [vmem:[#allocation89_spill] sm:$0xff] %v11647_v62  ;;  %5207 = vmatmul.bf16.gmra.mxu3 %v10603_v15  ;;  %6172 = vmatmul.bf16.gmra.mxu0 %v15015_v23 }
 0x57a   :  { %v4198_v43 = vpop.f32.mrf.mxu2  ;;  %v5762_v49 = vadd.f32 %v5165_v27, %v4792_v17  ;;  %v15020_v17 = vld [vmem:[#allocation35_spill] sm:$0xff] }
 0x57c   :  { %v5168_v26 = vpop.f32.mrf.mxu3 }
 0x57d   :  { %v3484_v52 = vpop.f32.mrf.mxu1 }
 0x57e   :  { %v3485_v30 = vadd.f32 %v3484_v52, %v15016_v47  ;;  %v6135_v37 = vpop.f32.mrf.mxu0 }
 0x57f   :  { %v11653_v60 = vadd.f32 %v6135_v37, %v5762_v49 }
 0x580   :  { %v4793_v7 = vadd.f32 %v4198_v43, %v3485_v30  ;;  %3523 = vmatmul.bf16.gmra.mxu1 %v15017_v46  ;;  %v15021_v30 = vld [vmem:[#allocation233_spill] sm:$0xff]  ;;  %v15024_v46 = vld [vmem:[#allocation239_spill] sm:$0xff] }
 0x582   :  { %v4200_v59 = vpop.f32.mrf.mxu2  ;;  %v5763_v32 = vadd.f32 %v5168_v26, %v4793_v7 }
 0x584   :  { %v5170_v54 = vpop.f32.mrf.mxu3 }
 0x585   :  { %v3486_v16 = vpop.f32.mrf.mxu1 }
 0x586   :  { %v3487_v20 = vadd.f32 %v3486_v16, %v15018_v36  ;;  %v6138_v15 = vpop.f32.mrf.mxu0  ;;  %v15023_v36 = vld [vmem:[#allocation34_spill] sm:$0xff] }
 0x587   :  { %v11657_v62 = vadd.f32 %v6138_v15, %v5763_v32  ;;  %4242 = vmatmul.bf16.gmra.mxu2 %v9578_v39 }
 0x588   :  { %v4794_v27 = vadd.f32 %v4200_v59, %v3487_v20  ;;  %v11669_v20 = vld [vmem:[%s14092_s2] ss:$0 sm:$0xff] }
 0x589   :  { %15019 = vst [vmem:[#allocation95_spill] sm:$0xff] %v11657_v62  ;;  %5212 = vmatmul.bf16.gmra.mxu3 %v14955_v22  ;;  %6177 = vmatmul.bf16.gmra.mxu0 %v15020_v17 }
 0x58a   :  { %v4203_v49 = vpop.f32.mrf.mxu2  ;;  %v5764_v43 = vadd.f32 %v5170_v54, %v4794_v27  ;;  %v6963_v54 = vadd.f32 %v11669_v20, %v11507_v21  ;;  %v11684_v21 = vld [vmem:[%s14093_s3 + $0x1] ss:$0 sm:$0xff] }
 0x58c   :  { %v5173_v52 = vpop.f32.mrf.mxu3 }
 0x58d   :  { %v3489_v47 = vpop.f32.mrf.mxu1 }
 0x58e   :  { %v3490_v26 = vadd.f32 %v3489_v47, %v15021_v30  ;;  %v6140_v37 = vpop.f32.mrf.mxu0 }
 0x58f   :  { %v11663_v7 = vadd.f32 %v6140_v37, %v5764_v43  ;;  %v11678_v37 = vld [vmem:[%s14093_s3] ss:$0 sm:$0xff] }
 0x590   :  { %v4795_v16 = vadd.f32 %v4203_v49, %v3490_v26  ;;  %3528 = vmatmul.bf16.gmra.mxu1 %v15023_v36  ;;  %v7219_v26 = vmax.f32 %v6963_v54, 0.0  ;;  %v15026_v36 = vld [vmem:[#allocation243_spill] sm:$0xff] }
 0x591   :  { %15022 = vst [vmem:[#allocation101_spill] sm:$0xff] %v11663_v7 }
 0x592   :  { %v4205_v15 = vpop.f32.mrf.mxu2  ;;  %v5765_v59 = vadd.f32 %v5173_v52, %v4795_v16 }
 0x594   :  { %v5175_v32 = vpop.f32.mrf.mxu3 }
 0x595   :  { %v3491_v27 = vpop.f32.mrf.mxu1 }
 0x596   :  { %v3492_v47 = vadd.f32 %v3491_v27, %v15024_v46  ;;  %v6143_v30 = vpop.f32.mrf.mxu0  ;;  %v15025_v46 = vld [vmem:[#allocation39_spill] sm:$0xff]  ;;  %v11689_v27 = vmul.f32 %v11678_v37, %v7219_v26 }
 0x597   :  { %v6735_v43 = vadd.f32 %v6143_v30, %v5765_v59  ;;  %4247 = vmatmul.bf16.gmra.mxu2 %v14954_v42 }
 0x598   :  { %v4796_v49 = vadd.f32 %v4205_v15, %v3492_v47  ;;  %v6964_v47 = vadd.f32 %v11669_v20, %v11513_v45 }
 0x599   :  { %v6995_v52 = vadd.f32 %v11669_v20, %v6735_v43  ;;  %5217 = vmatmul.bf16.gmra.mxu3 %v14960_v24  ;;  %6182 = vmatmul.bf16.gmra.mxu0 %v15025_v46 }
 0x59a   :  { %v4208_v16 = vpop.f32.mrf.mxu2  ;;  %v5766_v59 = vadd.f32 %v5175_v32, %v4796_v49  ;;  %v15027_v49 = vld [vmem:[#allocation36_spill] sm:$0xff] }
 0x59b   :  { %v7251_v15 = vmax.f32 %v6995_v52, 0.0  ;;  %v7220_v52 = vmax.f32 %v6964_v47, 0.0 }
 0x59c   :  { %v5178_v54 = vpop.f32.mrf.mxu3 }
 0x59d   :  { %v11694_v30 = vmul.f32 %v11684_v21, %v7251_v15  ;;  %v3494_v43 = vpop.f32.mrf.mxu1  ;;  %v11702_v15 = vmul.f32 %v11678_v37, %v7220_v52 }
 0x59e   :  { %v3495_v42 = vadd.f32 %v3494_v43, %v15026_v36  ;;  %v6145_v39 = vpop.f32.mrf.mxu0  ;;  %v6965_v36 = vadd.f32 %v11669_v20, %v11517_v25  ;;  %v15030_v25 = vld [vmem:[#allocation41_spill] sm:$0xff] }
 0x59f   :  { %v6736_v7 = vadd.f32 %v6145_v39, %v5766_v59 }
 0x5a0   :  { %v4797_v32 = vadd.f32 %v4208_v16, %v3495_v42  ;;  %3533 = vmatmul.bf16.gmra.mxu1 %v15027_v49  ;;  %v15029_v42 = vld [vmem:[#allocation250_spill] sm:$0xff] }
 0x5a1   :  { %v6996_v26 = vadd.f32 %v11669_v20, %v6736_v7 }
 0x5a2   :  { %v4210_v46 = vpop.f32.mrf.mxu2  ;;  %v5767_v22 = vadd.f32 %v5178_v54, %v4797_v32  ;;  %v7221_v32 = vmax.f32 %v6965_v36, 0.0  ;;  %v15031_v36 = vld [vmem:[#allocation254_spill] sm:$0xff] }
 0x5a3   :  { %v7252_v45 = vmax.f32 %v6996_v26, 0.0 }
 0x5a4   :  { %v5180_v62 = vpop.f32.mrf.mxu3 }
 0x5a5   :  { %v11707_v43 = vmul.f32 %v11684_v21, %v7252_v45  ;;  %v3496_v39 = vpop.f32.mrf.mxu1 }
 0x5a6   :  { %v3497_v16 = vadd.f32 %v3496_v39, %v15029_v42  ;;  %v6148_v59 = vpop.f32.mrf.mxu0  ;;  %v11717_v39 = vmul.f32 %v11678_v37, %v7221_v32 }
 0x5a7   :  { %15028 = vst [vmem:[#allocation107_spill] sm:$0xff] %v11707_v43  ;;  %v6737_v47 = vadd.f32 %v6148_v59, %v5767_v22  ;;  %4252 = vmatmul.bf16.gmra.mxu2 %v14959_v14  ;;  %v6966_v22 = vadd.f32 %v11669_v20, %v11523_v29 }
 0x5a8   :  { %v4798_v54 = vadd.f32 %v4210_v46, %v3497_v16 }
 0x5a9   :  { %v6997_v52 = vadd.f32 %v11669_v20, %v6737_v47  ;;  %5222 = vmatmul.bf16.gmra.mxu3 %v10874_v58  ;;  %6187 = vmatmul.bf16.gmra.mxu0 %v15030_v25 }
 0x5aa   :  { %v4213_v26 = vpop.f32.mrf.mxu2  ;;  %v5768_v45 = vadd.f32 %v5180_v62, %v4798_v54  ;;  %v15032_v54 = vld [vmem:[#allocation43_spill] sm:$0xff] }
 0x5ab   :  { %v7253_v24 = vmax.f32 %v6997_v52, 0.0  ;;  %v7222_v52 = vmax.f32 %v6966_v22, 0.0 }
 0x5ac   :  { %v5183_v49 = vpop.f32.mrf.mxu3 }
 0x5ad   :  { %v11722_v42 = vmul.f32 %v11684_v21, %v7253_v24  ;;  %v3499_v46 = vpop.f32.mrf.mxu1  ;;  %v11730_v24 = vmul.f32 %v11678_v37, %v7222_v52 }
 0x5ae   :  { %v3500_v16 = vadd.f32 %v3499_v46, %v15031_v36  ;;  %v6150_v59 = vpop.f32.mrf.mxu0  ;;  %v6967_v46 = vadd.f32 %v11669_v20, %v11527_v28  ;;  %v15035_v28 = vld [vmem:[#allocation50_spill] sm:$0xff] }
 0x5af   :  { %v6738_v7 = vadd.f32 %v6150_v59, %v5768_v45 }
 0x5b0   :  { %v4799_v62 = vadd.f32 %v4213_v26, %v3500_v16  ;;  %3538 = vmatmul.bf16.gmra.mxu1 %v15032_v54  ;;  %v15034_v26 = vld [vmem:[#allocation260_spill] sm:$0xff] }
 0x5b1   :  { %v6998_v32 = vadd.f32 %v11669_v20, %v6738_v7 }
 0x5b2   :  { %v4215_v14 = vpop.f32.mrf.mxu2  ;;  %v5769_v58 = vadd.f32 %v5183_v49, %v4799_v62  ;;  %v7223_v62 = vmax.f32 %v6967_v46, 0.0  ;;  %v15036_v46 = vld [vmem:[#allocation264_spill] sm:$0xff] }
 0x5b3   :  { %v7254_v29 = vmax.f32 %v6998_v32, 0.0 }
 0x5b4   :  { %v5185_v43 = vpop.f32.mrf.mxu3 }
 0x5b5   :  { %v11735_v36 = vmul.f32 %v11684_v21, %v7254_v29  ;;  %v3501_v45 = vpop.f32.mrf.mxu1 }
 0x5b6   :  { %v3502_v16 = vadd.f32 %v3501_v45, %v15034_v26  ;;  %v6153_v59 = vpop.f32.mrf.mxu0  ;;  %v11745_v45 = vmul.f32 %v11678_v37, %v7223_v62 }
 0x5b7   :  { %15033 = vst [vmem:[#allocation111_spill] sm:$0xff] %v11735_v36  ;;  %v6739_v22 = vadd.f32 %v6153_v59, %v5769_v58  ;;  %4257 = vmatmul.bf16.gmra.mxu2 %v14963_v56  ;;  %v6968_v58 = vadd.f32 %v11669_v20, %v11533_v51 }
 0x5b8   :  { %v4800_v49 = vadd.f32 %v4215_v14, %v3502_v16 }
 0x5b9   :  { %v6999_v52 = vadd.f32 %v11669_v20, %v6739_v22  ;;  %5227 = vmatmul.bf16.gmra.mxu3 %v10946_v34  ;;  %6192 = vmatmul.bf16.gmra.mxu0 %v15035_v28 }
 0x5ba   :  { %v4218_v32 = vpop.f32.mrf.mxu2  ;;  %v5770_v29 = vadd.f32 %v5185_v43, %v4800_v49  ;;  %v15037_v49 = vld [vmem:[#allocation49_spill] sm:$0xff] }
 0x5bb   :  { %v7255_v47 = vmax.f32 %v6999_v52, 0.0  ;;  %v7224_v52 = vmax.f32 %v6968_v58, 0.0 }
 0x5bc   :  { %v5188_v54 = vpop.f32.mrf.mxu3 }
 0x5bd   :  { %v11750_v26 = vmul.f32 %v11684_v21, %v7255_v47  ;;  %v3504_v14 = vpop.f32.mrf.mxu1  ;;  %v11758_v47 = vmul.f32 %v11678_v37, %v7224_v52 }
 0x5be   :  { %v3505_v16 = vadd.f32 %v3504_v14, %v15036_v46  ;;  %v6155_v59 = vpop.f32.mrf.mxu0  ;;  %v6969_v14 = vadd.f32 %v11669_v20, %v11537_v8  ;;  %v15040_v8 = vld [vmem:[#allocation57_spill] sm:$0xff] }
 0x5bf   :  { %v6740_v7 = vadd.f32 %v6155_v59, %v5770_v29 }
 0x5c0   :  { %v4801_v43 = vadd.f32 %v4218_v32, %v3505_v16  ;;  %3543 = vmatmul.bf16.gmra.mxu1 %v15037_v49  ;;  %v15039_v32 = vld [vmem:[#allocation271_spill] sm:$0xff] }
 0x5c1   :  { %v7000_v62 = vadd.f32 %v11669_v20, %v6740_v7 }
 0x5c2   :  { %v4220_v56 = vpop.f32.mrf.mxu2  ;;  %v5771_v34 = vadd.f32 %v5188_v54, %v4801_v43  ;;  %v7225_v43 = vmax.f32 %v6969_v14, 0.0  ;;  %v15041_v14 = vld [vmem:[#allocation275_spill] sm:$0xff] }
 0x5c3   :  { %v7256_v51 = vmax.f32 %v7000_v62, 0.0 }
 0x5c4   :  { %v5190_v36 = vpop.f32.mrf.mxu3 }
 0x5c5   :  { %v11763_v46 = vmul.f32 %v11684_v21, %v7256_v51  ;;  %v3506_v29 = vpop.f32.mrf.mxu1 }
 0x5c6   :  { %v3507_v16 = vadd.f32 %v3506_v29, %v15039_v32  ;;  %v6158_v59 = vpop.f32.mrf.mxu0  ;;  %v11773_v29 = vmul.f32 %v11678_v37, %v7225_v43 }
 0x5c7   :  { %15038 = vst [vmem:[#allocation117_spill] sm:$0xff] %v11763_v46  ;;  %v6741_v58 = vadd.f32 %v6158_v59, %v5771_v34  ;;  %4262 = vmatmul.bf16.gmra.mxu2 %v14966_v44  ;;  %v6970_v34 = vadd.f32 %v11669_v20, %v11543_v57 }
 0x5c8   :  { %v4802_v54 = vadd.f32 %v4220_v56, %v3507_v16 }
 0x5c9   :  { %v7001_v52 = vadd.f32 %v11669_v20, %v6741_v58  ;;  %5232 = vmatmul.bf16.gmra.mxu3 %v14971_v63  ;;  %6197 = vmatmul.bf16.gmra.mxu0 %v15040_v8 }
 0x5ca   :  { %v4223_v62 = vpop.f32.mrf.mxu2  ;;  %v5772_v51 = vadd.f32 %v5190_v36, %v4802_v54  ;;  %v15042_v54 = vld [vmem:[#allocation53_spill] sm:$0xff] }
 0x5cb   :  { %v7257_v22 = vmax.f32 %v7001_v52, 0.0  ;;  %v7226_v52 = vmax.f32 %v6970_v34, 0.0 }
 0x5cc   :  { %v5193_v49 = vpop.f32.mrf.mxu3 }
 0x5cd   :  { %v11778_v32 = vmul.f32 %v11684_v21, %v7257_v22  ;;  %v3509_v56 = vpop.f32.mrf.mxu1  ;;  %v11786_v22 = vmul.f32 %v11678_v37, %v7226_v52 }
 0x5ce   :  { %v3510_v16 = vadd.f32 %v3509_v56, %v15041_v14  ;;  %v6160_v59 = vpop.f32.mrf.mxu0  ;;  %v6971_v56 = vadd.f32 %v11669_v20, %v11547_v2  ;;  %v15045_v2 = vld [vmem:[#allocation65_spill] sm:$0xff] }
 0x5cf   :  { %v6742_v7 = vadd.f32 %v6160_v59, %v5772_v51 }
 0x5d0   :  { %v4803_v36 = vadd.f32 %v4223_v62, %v3510_v16  ;;  %3548 = vmatmul.bf16.gmra.mxu1 %v15042_v54  ;;  %v15044_v62 = vld [vmem:[#allocation281_spill] sm:$0xff] }
 0x5d1   :  { %v7002_v43 = vadd.f32 %v11669_v20, %v6742_v7 }
 0x5d2   :  { %v4225_v44 = vpop.f32.mrf.mxu2  ;;  %v5773_v63 = vadd.f32 %v5193_v49, %v4803_v36  ;;  %v7227_v36 = vmax.f32 %v6971_v56, 0.0  ;;  %v15046_v56 = vld [vmem:[#allocation285_spill] sm:$0xff] }
 0x5d3   :  { %v7258_v57 = vmax.f32 %v7002_v43, 0.0 }
 0x5d4   :  { %v5195_v46 = vpop.f32.mrf.mxu3 }
 0x5d5   :  { %v11791_v14 = vmul.f32 %v11684_v21, %v7258_v57  ;;  %v3511_v51 = vpop.f32.mrf.mxu1 }
 0x5d6   :  { %v3512_v16 = vadd.f32 %v3511_v51, %v15044_v62  ;;  %v6163_v59 = vpop.f32.mrf.mxu0  ;;  %v11801_v51 = vmul.f32 %v11678_v37, %v7227_v36 }
 0x5d7   :  { %15043 = vst [vmem:[#allocation120_spill] sm:$0xff] %v11791_v14  ;;  %v6743_v34 = vadd.f32 %v6163_v59, %v5773_v63  ;;  %4267 = vmatmul.bf16.gmra.mxu2 %v14970_v4  ;;  %v6972_v63 = vadd.f32 %v11669_v20, %v11553_v35 }
 0x5d8   :  { %v4804_v49 = vadd.f32 %v4225_v44, %v3512_v16 }
 0x5d9   :  { %v7003_v52 = vadd.f32 %v11669_v20, %v6743_v34  ;;  %5237 = vmatmul.bf16.gmra.mxu3 %v14975_v53  ;;  %6202 = vmatmul.bf16.gmra.mxu0 %v15045_v2 }
 0x5da   :  { %v4228_v43 = vpop.f32.mrf.mxu2  ;;  %v5774_v57 = vadd.f32 %v5195_v46, %v4804_v49  ;;  %v15047_v49 = vld [vmem:[#allocation63_spill] sm:$0xff] }
 0x5db   :  { %v7259_v58 = vmax.f32 %v7003_v52, 0.0  ;;  %v7228_v52 = vmax.f32 %v6972_v63, 0.0 }
 0x5dc   :  { %v5198_v54 = vpop.f32.mrf.mxu3 }
 0x5dd   :  { %v11806_v62 = vmul.f32 %v11684_v21, %v7259_v58  ;;  %v3514_v44 = vpop.f32.mrf.mxu1  ;;  %v11814_v58 = vmul.f32 %v11678_v37, %v7228_v52 }
 0x5de   :  { %v3515_v16 = vadd.f32 %v3514_v44, %v15046_v56  ;;  %v6165_v59 = vpop.f32.mrf.mxu0  ;;  %v6973_v44 = vadd.f32 %v11669_v20, %v11557_v48  ;;  %v15051_v48 = vld [vmem:[#allocation76_spill] sm:$0xff] }
 0x5df   :  { %v6744_v7 = vadd.f32 %v6165_v59, %v5774_v57  ;;  %15048 = vst [vmem:[#allocation123_spill] sm:$0xff] %v11814_v58  ;;  %v15055_v58 = vld [vmem:[#allocation54_spill] sm:$0xff] }
 0x5e0   :  { %v4805_v46 = vadd.f32 %v4228_v43, %v3515_v16  ;;  %3553 = vmatmul.bf16.gmra.mxu1 %v15047_v49  ;;  %v15050_v43 = vld [vmem:[#allocation292_spill] sm:$0xff] }
 0x5e1   :  { %v7004_v36 = vadd.f32 %v11669_v20, %v6744_v7 }
 0x5e2   :  { %v4230_v4 = vpop.f32.mrf.mxu2  ;;  %v5775_v53 = vadd.f32 %v5198_v54, %v4805_v46  ;;  %v7229_v46 = vmax.f32 %v6973_v44, 0.0  ;;  %v15053_v44 = vld [vmem:[#allocation296_spill] sm:$0xff] }
 0x5e3   :  { %v7260_v35 = vmax.f32 %v7004_v36, 0.0 }
 0x5e4   :  { %v5200_v14 = vpop.f32.mrf.mxu3 }
 0x5e5   :  { %v11819_v56 = vmul.f32 %v11684_v21, %v7260_v35  ;;  %v3516_v57 = vpop.f32.mrf.mxu1 }
 0x5e6   :  { %v3517_v16 = vadd.f32 %v3516_v57, %v15050_v43  ;;  %v6168_v59 = vpop.f32.mrf.mxu0  ;;  %v11829_v57 = vmul.f32 %v11678_v37, %v7229_v46 }
 0x5e7   :  { %15049 = vst [vmem:[#allocation128_spill] sm:$0xff] %v11819_v56  ;;  %v6745_v63 = vadd.f32 %v6168_v59, %v5775_v53  ;;  %4272 = vmatmul.bf16.gmra.mxu2 %v14974_v10  ;;  %v6974_v53 = vadd.f32 %v11669_v20, %v11563_v12 }
 0x5e8   :  { %v4806_v54 = vadd.f32 %v4230_v4, %v3517_v16 }
 0x5e9   :  { %v7005_v52 = vadd.f32 %v11669_v20, %v6745_v63  ;;  %5242 = vmatmul.bf16.gmra.mxu3 %v14980_v41  ;;  %6207 = vmatmul.bf16.gmra.mxu0 %v15051_v48 }
 0x5ea   :  { %v4233_v36 = vpop.f32.mrf.mxu2  ;;  %v5776_v35 = vadd.f32 %v5200_v14, %v4806_v54  ;;  %v15054_v54 = vld [vmem:[#allocation67_spill] sm:$0xff] }
 0x5eb   :  { %v7261_v34 = vmax.f32 %v7005_v52, 0.0  ;;  %v7230_v52 = vmax.f32 %v6974_v53, 0.0 }
 0x5ec   :  { %v5203_v49 = vpop.f32.mrf.mxu3 }
 0x5ed   :  { %v11834_v43 = vmul.f32 %v11684_v21, %v7261_v34  ;;  %v3519_v4 = vpop.f32.mrf.mxu1  ;;  %v11842_v34 = vmul.f32 %v11678_v37, %v7230_v52 }
 0x5ee   :  { %v3520_v16 = vadd.f32 %v3519_v4, %v15053_v44  ;;  %v6170_v59 = vpop.f32.mrf.mxu0  ;;  %v6975_v4 = vadd.f32 %v11669_v20, %v15055_v58  ;;  %v15059_v58 = vld [vmem:[#allocation82_spill] sm:$0xff] }
 0x5ef   :  { %15052 = vst [vmem:[#allocation145_spill] sm:$0xff] %v11834_v43  ;;  %v6746_v7 = vadd.f32 %v6170_v59, %v5776_v35 }
 0x5f0   :  { %v4807_v14 = vadd.f32 %v4233_v36, %v3520_v16  ;;  %3558 = vmatmul.bf16.gmra.mxu1 %v15054_v54  ;;  %v15057_v36 = vld [vmem:[#allocation302_spill] sm:$0xff] }
 0x5f1   :  { %v7006_v46 = vadd.f32 %v11669_v20, %v6746_v7 }
 0x5f2   :  { %v4235_v10 = vpop.f32.mrf.mxu2  ;;  %v5777_v41 = vadd.f32 %v5203_v49, %v4807_v14  ;;  %v15058_v49 = vld [vmem:[#allocation85_spill] sm:$0xff] }
 0x5f3   :  { %v7262_v12 = vmax.f32 %v7006_v46, 0.0  ;;  %v7231_v46 = vmax.f32 %v6975_v4, 0.0  ;;  %v15061_v4 = vld [vmem:[#allocation306_spill] sm:$0xff] }
 0x5f4   :  { %v5205_v56 = vpop.f32.mrf.mxu3 }
 0x5f5   :  { %v11847_v44 = vmul.f32 %v11684_v21, %v7262_v12  ;;  %v3521_v35 = vpop.f32.mrf.mxu1 }
 0x5f6   :  { %v3522_v16 = vadd.f32 %v3521_v35, %v15057_v36  ;;  %v6173_v59 = vpop.f32.mrf.mxu0  ;;  %v11857_v35 = vmul.f32 %v11678_v37, %v7231_v46 }
 0x5f7   :  { %15056 = vst [vmem:[#allocation149_spill] sm:$0xff] %v11847_v44  ;;  %v6747_v53 = vadd.f32 %v6173_v59, %v5777_v41  ;;  %4277 = vmatmul.bf16.gmra.mxu2 %v15058_v49  ;;  %v6976_v41 = vadd.f32 %v11669_v20, %v11573_v6 }
 0x5f8   :  { %v4808_v14 = vadd.f32 %v4235_v10, %v3522_v16 }
 0x5f9   :  { %v7007_v52 = vadd.f32 %v11669_v20, %v6747_v53  ;;  %5247 = vmatmul.bf16.gmra.mxu3 %v11260_v40  ;;  %6212 = vmatmul.bf16.gmra.mxu0 %v15059_v58 }
 0x5fa   :  { %v4238_v12 = vpop.f32.mrf.mxu2  ;;  %v5778_v63 = vadd.f32 %v5205_v56, %v4808_v14  ;;  %v15062_v14 = vld [vmem:[#allocation88_spill] sm:$0xff] }
 0x5fb   :  { %v7263_v54 = vmax.f32 %v7007_v52, 0.0  ;;  %v7232_v52 = vmax.f32 %v6976_v41, 0.0 }
 0x5fc   :  { %v5208_v43 = vpop.f32.mrf.mxu3 }
 0x5fd   :  { %v11862_v36 = vmul.f32 %v11684_v21, %v7263_v54  ;;  %v3524_v10 = vpop.f32.mrf.mxu1  ;;  %v11870_v54 = vmul.f32 %v11678_v37, %v7232_v52 }
 0x5fe   :  { %v3525_v16 = vadd.f32 %v3524_v10, %v15061_v4  ;;  %v6175_v59 = vpop.f32.mrf.mxu0  ;;  %v6977_v10 = vadd.f32 %v11669_v20, %v11577_v19  ;;  %v15066_v19 = vld [vmem:[#allocation103_spill] sm:$0xff] }
 0x5ff   :  { %15060 = vst [vmem:[#allocation155_spill] sm:$0xff] %v11862_v36  ;;  %v6748_v7 = vadd.f32 %v6175_v59, %v5778_v63 }
 0x600   :  { %v4809_v56 = vadd.f32 %v4238_v12, %v3525_v16  ;;  %3563 = vmatmul.bf16.gmra.mxu1 %v15062_v14  ;;  %v15064_v12 = vld [vmem:[#allocation313_spill] sm:$0xff] }
 0x601   :  { %v7008_v46 = vadd.f32 %v11669_v20, %v6748_v7 }
 0x602   :  { %v4240_v49 = vpop.f32.mrf.mxu2  ;;  %v5779_v40 = vadd.f32 %v5208_v43, %v4809_v56  ;;  %v15065_v43 = vld [vmem:[#allocation94_spill] sm:$0xff] }
 0x603   :  { %v7264_v6 = vmax.f32 %v7008_v46, 0.0  ;;  %v7233_v46 = vmax.f32 %v6977_v10, 0.0  ;;  %v15068_v10 = vld [vmem:[#allocation317_spill] sm:$0xff] }
 0x604   :  { %v5210_v44 = vpop.f32.mrf.mxu3 }
 0x605   :  { %v11875_v4 = vmul.f32 %v11684_v21, %v7264_v6  ;;  %v3526_v63 = vpop.f32.mrf.mxu1 }
 0x606   :  { %v3527_v16 = vadd.f32 %v3526_v63, %v15064_v12  ;;  %v6178_v59 = vpop.f32.mrf.mxu0  ;;  %v11885_v63 = vmul.f32 %v11678_v37, %v7233_v46 }
 0x607   :  { %15063 = vst [vmem:[#allocation161_spill] sm:$0xff] %v11875_v4  ;;  %v6749_v41 = vadd.f32 %v6178_v59, %v5779_v40  ;;  %4282 = vmatmul.bf16.gmra.mxu2 %v15065_v43  ;;  %v6978_v40 = vadd.f32 %v11669_v20, %v11583_v61 }
 0x608   :  { %v4810_v56 = vadd.f32 %v4240_v49, %v3527_v16 }
 0x609   :  { %v7009_v52 = vadd.f32 %v11669_v20, %v6749_v41  ;;  %5252 = vmatmul.bf16.gmra.mxu3 %v11336_v1  ;;  %6217 = vmatmul.bf16.gmra.mxu0 %v15066_v19 }
 0x60a   :  { %v4243_v6 = vpop.f32.mrf.mxu2  ;;  %v5780_v53 = vadd.f32 %v5210_v44, %v4810_v56  ;;  %v15069_v56 = vld [vmem:[#allocation99_spill] sm:$0xff] }
 0x60b   :  { %v7265_v14 = vmax.f32 %v7009_v52, 0.0  ;;  %v7234_v52 = vmax.f32 %v6978_v40, 0.0 }
 0x60c   :  { %v5213_v36 = vpop.f32.mrf.mxu3 }
 0x60d   :  { %v11890_v12 = vmul.f32 %v11684_v21, %v7265_v14  ;;  %v3529_v49 = vpop.f32.mrf.mxu1  ;;  %v11898_v14 = vmul.f32 %v11678_v37, %v7234_v52 }
 0x60e   :  { %v3530_v16 = vadd.f32 %v3529_v49, %v15068_v10  ;;  %v6180_v59 = vpop.f32.mrf.mxu0  ;;  %v6979_v49 = vadd.f32 %v11669_v20, %v11587_v18  ;;  %v15074_v18 = vld [vmem:[#allocation114_spill] sm:$0xff] }
 0x60f   :  { %15067 = vst [vmem:[#allocation167_spill] sm:$0xff] %v11890_v12  ;;  %v6750_v7 = vadd.f32 %v6180_v59, %v5780_v53 }
 0x610   :  { %v4811_v44 = vadd.f32 %v4243_v6, %v3530_v16  ;;  %3568 = vmatmul.bf16.gmra.mxu1 %v15069_v56  ;;  %15070 = vst [vmem:[#allocation171_spill] sm:$0xff] %v11898_v14  ;;  %v15072_v6 = vld [vmem:[#allocation323_spill] sm:$0xff] }
 0x611   :  { %v7010_v46 = vadd.f32 %v11669_v20, %v6750_v7  ;;  %v15079_v14 = vld [vmem:[#allocation59_spill] sm:$0xff] }
 0x612   :  { %v4245_v43 = vpop.f32.mrf.mxu2  ;;  %v5781_v1 = vadd.f32 %v5213_v36, %v4811_v44  ;;  %v15073_v36 = vld [vmem:[#allocation106_spill] sm:$0xff] }
 0x613   :  { %v7266_v61 = vmax.f32 %v7010_v46, 0.0  ;;  %v7235_v46 = vmax.f32 %v6979_v49, 0.0  ;;  %v15076_v49 = vld [vmem:[#allocation327_spill] sm:$0xff] }
 0x614   :  { %v5215_v4 = vpop.f32.mrf.mxu3 }
 0x615   :  { %v11903_v10 = vmul.f32 %v11684_v21, %v7266_v61  ;;  %v3531_v53 = vpop.f32.mrf.mxu1 }
 0x616   :  { %v3532_v16 = vadd.f32 %v3531_v53, %v15072_v6  ;;  %v6183_v59 = vpop.f32.mrf.mxu0  ;;  %v11913_v53 = vmul.f32 %v11678_v37, %v7235_v46 }
 0x617   :  { %15071 = vst [vmem:[#allocation177_spill] sm:$0xff] %v11903_v10  ;;  %v6751_v40 = vadd.f32 %v6183_v59, %v5781_v1  ;;  %4287 = vmatmul.bf16.gmra.mxu2 %v15073_v36  ;;  %v6980_v1 = vadd.f32 %v11669_v20, %v11593_v0 }
 0x618   :  { %v4812_v44 = vadd.f32 %v4245_v43, %v3532_v16 }
 0x619   :  { %v7011_v52 = vadd.f32 %v11669_v20, %v6751_v40  ;;  %5257 = vmatmul.bf16.gmra.mxu3 %v14990_v38  ;;  %6222 = vmatmul.bf16.gmra.mxu0 %v15074_v18 }
 0x61a   :  { %v4248_v61 = vpop.f32.mrf.mxu2  ;;  %v5782_v41 = vadd.f32 %v5215_v4, %v4812_v44  ;;  %v15077_v44 = vld [vmem:[#allocation109_spill] sm:$0xff] }
 0x61b   :  { %v7267_v56 = vmax.f32 %v7011_v52, 0.0  ;;  %v7236_v52 = vmax.f32 %v6980_v1, 0.0 }
 0x61c   :  { %v5218_v12 = vpop.f32.mrf.mxu3 }
 0x61d   :  { %v11918_v6 = vmul.f32 %v11684_v21, %v7267_v56  ;;  %v3534_v43 = vpop.f32.mrf.mxu1  ;;  %v11926_v56 = vmul.f32 %v11678_v37, %v7236_v52 }
 0x61e   :  { %v3535_v16 = vadd.f32 %v3534_v43, %v15076_v49  ;;  %v6185_v59 = vpop.f32.mrf.mxu0  ;;  %v6981_v43 = vadd.f32 %v11669_v20, %v15079_v14  ;;  %v15083_v14 = vld [vmem:[#allocation124_spill] sm:$0xff] }
 0x61f   :  { %15075 = vst [vmem:[#allocation180_spill] sm:$0xff] %v11918_v6  ;;  %v6752_v7 = vadd.f32 %v6185_v59, %v5782_v41 }
 0x620   :  { %v4813_v4 = vadd.f32 %v4248_v61, %v3535_v16  ;;  %3573 = vmatmul.bf16.gmra.mxu1 %v15077_v44  ;;  %15078 = vst [vmem:[#allocation183_spill] sm:$0xff] %v11926_v56  ;;  %v15081_v61 = vld [vmem:[#allocation332_spill] sm:$0xff]  ;;  %v15088_v56 = vld [vmem:[#allocation62_spill] sm:$0xff] }
 0x621   :  { %v7012_v46 = vadd.f32 %v11669_v20, %v6752_v7 }
 0x622   :  { %v4250_v36 = vpop.f32.mrf.mxu2  ;;  %v5783_v38 = vadd.f32 %v5218_v12, %v4813_v4  ;;  %v15082_v12 = vld [vmem:[#allocation112_spill] sm:$0xff] }
 0x623   :  { %v7268_v0 = vmax.f32 %v7012_v46, 0.0  ;;  %v7237_v46 = vmax.f32 %v6981_v43, 0.0  ;;  %v15085_v43 = vld [vmem:[#allocation335_spill] sm:$0xff] }
 0x624   :  { %v5220_v10 = vpop.f32.mrf.mxu3 }
 0x625   :  { %v11931_v49 = vmul.f32 %v11684_v21, %v7268_v0  ;;  %v3536_v41 = vpop.f32.mrf.mxu1 }
 0x626   :  { %v3537_v16 = vadd.f32 %v3536_v41, %v15081_v61  ;;  %v6188_v59 = vpop.f32.mrf.mxu0  ;;  %v11941_v41 = vmul.f32 %v11678_v37, %v7237_v46 }
 0x627   :  { %15080 = vst [vmem:[#allocation188_spill] sm:$0xff] %v11931_v49  ;;  %v6753_v1 = vadd.f32 %v6188_v59, %v5783_v38  ;;  %4292 = vmatmul.bf16.gmra.mxu2 %v15082_v12  ;;  %v6982_v38 = vadd.f32 %v11669_v20, %v11603_v50 }
 0x628   :  { %v4814_v4 = vadd.f32 %v4250_v36, %v3537_v16 }
 0x629   :  { %v7013_v52 = vadd.f32 %v11669_v20, %v6753_v1  ;;  %5262 = vmatmul.bf16.gmra.mxu3 %v14995_v55  ;;  %6227 = vmatmul.bf16.gmra.mxu0 %v15083_v14 }
 0x62a   :  { %v4253_v0 = vpop.f32.mrf.mxu2  ;;  %v5784_v40 = vadd.f32 %v5220_v10, %v4814_v4  ;;  %v15086_v4 = vld [vmem:[#allocation121_spill] sm:$0xff] }
 0x62b   :  { %v7269_v44 = vmax.f32 %v7013_v52, 0.0  ;;  %v7238_v52 = vmax.f32 %v6982_v38, 0.0 }
 0x62c   :  { %v5223_v6 = vpop.f32.mrf.mxu3 }
 0x62d   :  { %v11946_v61 = vmul.f32 %v11684_v21, %v7269_v44  ;;  %v3539_v36 = vpop.f32.mrf.mxu1  ;;  %v11954_v44 = vmul.f32 %v11678_v37, %v7238_v52 }
 0x62e   :  { %v3540_v16 = vadd.f32 %v3539_v36, %v15085_v43  ;;  %v6190_v59 = vpop.f32.mrf.mxu0  ;;  %v6983_v36 = vadd.f32 %v11669_v20, %v15088_v56  ;;  %v15092_v56 = vld [vmem:[#allocation136_spill] sm:$0xff] }
 0x62f   :  { %15084 = vst [vmem:[#allocation202_spill] sm:$0xff] %v11946_v61  ;;  %v6754_v7 = vadd.f32 %v6190_v59, %v5784_v40 }
 0x630   :  { %v4815_v10 = vadd.f32 %v4253_v0, %v3540_v16  ;;  %3578 = vmatmul.bf16.gmra.mxu1 %v15086_v4  ;;  %15087 = vst [vmem:[#allocation209_spill] sm:$0xff] %v11954_v44  ;;  %v15090_v0 = vld [vmem:[#allocation340_spill] sm:$0xff] }
 0x631   :  { %v7014_v46 = vadd.f32 %v11669_v20, %v6754_v7  ;;  %v15097_v44 = vld [vmem:[#allocation64_spill] sm:$0xff] }
 0x632   :  { %v4255_v12 = vpop.f32.mrf.mxu2  ;;  %v5785_v55 = vadd.f32 %v5223_v6, %v4815_v10  ;;  %v15091_v6 = vld [vmem:[#allocation133_spill] sm:$0xff] }
 0x633   :  { %v7270_v50 = vmax.f32 %v7014_v46, 0.0  ;;  %v7239_v46 = vmax.f32 %v6983_v36, 0.0  ;;  %v15094_v36 = vld [vmem:[#allocation343_spill] sm:$0xff] }
 0x634   :  { %v5225_v49 = vpop.f32.mrf.mxu3 }
 0x635   :  { %v11959_v43 = vmul.f32 %v11684_v21, %v7270_v50  ;;  %v3541_v40 = vpop.f32.mrf.mxu1 }
 0x636   :  { %v3542_v16 = vadd.f32 %v3541_v40, %v15090_v0  ;;  %v6193_v59 = vpop.f32.mrf.mxu0  ;;  %v11969_v40 = vmul.f32 %v11678_v37, %v7239_v46 }
 0x637   :  { %15089 = vst [vmem:[#allocation212_spill] sm:$0xff] %v11959_v43  ;;  %v6755_v38 = vadd.f32 %v6193_v59, %v5785_v55  ;;  %4297 = vmatmul.bf16.gmra.mxu2 %v15091_v6  ;;  %v6984_v55 = vadd.f32 %v11669_v20, %v11613_v5 }
 0x638   :  { %v4816_v10 = vadd.f32 %v4255_v12, %v3542_v16 }
 0x639   :  { %v7015_v52 = vadd.f32 %v11669_v20, %v6755_v38  ;;  %5267 = vmatmul.bf16.gmra.mxu3 %v15000_v3  ;;  %6232 = vmatmul.bf16.gmra.mxu0 %v15092_v56 }
 0x63a   :  { %v4258_v50 = vpop.f32.mrf.mxu2  ;;  %v5786_v1 = vadd.f32 %v5225_v49, %v4816_v10  ;;  %v15095_v10 = vld [vmem:[#allocation127_spill] sm:$0xff] }
 0x63b   :  { %v7271_v4 = vmax.f32 %v7015_v52, 0.0  ;;  %v7240_v52 = vmax.f32 %v6984_v55, 0.0 }
 0x63c   :  { %v5228_v61 = vpop.f32.mrf.mxu3 }
 0x63d   :  { %v11974_v0 = vmul.f32 %v11684_v21, %v7271_v4  ;;  %v3544_v12 = vpop.f32.mrf.mxu1  ;;  %v11982_v4 = vmul.f32 %v11678_v37, %v7240_v52 }
 0x63e   :  { %v3545_v16 = vadd.f32 %v3544_v12, %v15094_v36  ;;  %v6195_v59 = vpop.f32.mrf.mxu0  ;;  %v6985_v12 = vadd.f32 %v11669_v20, %v15097_v44  ;;  %v15101_v44 = vld [vmem:[#allocation142_spill] sm:$0xff] }
 0x63f   :  { %15093 = vst [vmem:[#allocation218_spill] sm:$0xff] %v11974_v0  ;;  %v6756_v7 = vadd.f32 %v6195_v59, %v5786_v1 }
 0x640   :  { %v4817_v49 = vadd.f32 %v4258_v50, %v3545_v16  ;;  %3583 = vmatmul.bf16.gmra.mxu1 %v15095_v10  ;;  %15096 = vst [vmem:[#allocation222_spill] sm:$0xff] %v11982_v4  ;;  %v15099_v50 = vld [vmem:[#allocation348_spill] sm:$0xff] }
 0x641   :  { %v7016_v46 = vadd.f32 %v11669_v20, %v6756_v7  ;;  %v15106_v4 = vld [vmem:[#allocation68_spill] sm:$0xff] }
 0x642   :  { %v4260_v6 = vpop.f32.mrf.mxu2  ;;  %v5787_v3 = vadd.f32 %v5228_v61, %v4817_v49  ;;  %v15100_v61 = vld [vmem:[#allocation144_spill] sm:$0xff] }
 0x643   :  { %v7272_v5 = vmax.f32 %v7016_v46, 0.0  ;;  %v7241_v46 = vmax.f32 %v6985_v12, 0.0  ;;  %v15103_v12 = vld [vmem:[#allocation351_spill] sm:$0xff] }
 0x644   :  { %v5230_v43 = vpop.f32.mrf.mxu3 }
 0x645   :  { %v11987_v36 = vmul.f32 %v11684_v21, %v7272_v5  ;;  %v3546_v1 = vpop.f32.mrf.mxu1 }
 0x646   :  { %v3547_v16 = vadd.f32 %v3546_v1, %v15099_v50  ;;  %v6198_v59 = vpop.f32.mrf.mxu0  ;;  %v11997_v1 = vmul.f32 %v11678_v37, %v7241_v46 }
 0x647   :  { %15098 = vst [vmem:[#allocation229_spill] sm:$0xff] %v11987_v36  ;;  %v6757_v55 = vadd.f32 %v6198_v59, %v5787_v3  ;;  %4302 = vmatmul.bf16.gmra.mxu2 %v15100_v61  ;;  %v6986_v3 = vadd.f32 %v11669_v20, %v11623_v9 }
 0x648   :  { %v4818_v49 = vadd.f32 %v4260_v6, %v3547_v16 }
 0x649   :  { %v7017_v52 = vadd.f32 %v11669_v20, %v6757_v55  ;;  %5272 = vmatmul.bf16.gmra.mxu3 %v15005_v11  ;;  %6237 = vmatmul.bf16.gmra.mxu0 %v15101_v44 }
 0x64a   :  { %v4263_v5 = vpop.f32.mrf.mxu2  ;;  %v5788_v38 = vadd.f32 %v5230_v43, %v4818_v49  ;;  %v15104_v49 = vld [vmem:[#allocation148_spill] sm:$0xff] }
 0x64b   :  { %v7273_v10 = vmax.f32 %v7017_v52, 0.0  ;;  %v7242_v52 = vmax.f32 %v6986_v3, 0.0 }
 0x64c   :  { %v5233_v0 = vpop.f32.mrf.mxu3 }
 0x64d   :  { %v12002_v50 = vmul.f32 %v11684_v21, %v7273_v10  ;;  %v3549_v6 = vpop.f32.mrf.mxu1  ;;  %v12010_v10 = vmul.f32 %v11678_v37, %v7242_v52 }
 0x64e   :  { %v3550_v16 = vadd.f32 %v3549_v6, %v15103_v12  ;;  %v6200_v59 = vpop.f32.mrf.mxu0  ;;  %v6987_v6 = vadd.f32 %v11669_v20, %v15106_v4  ;;  %v15110_v4 = vld [vmem:[#allocation163_spill] sm:$0xff] }
 0x64f   :  { %15102 = vst [vmem:[#allocation233_spill] sm:$0xff] %v12002_v50  ;;  %v6758_v7 = vadd.f32 %v6200_v59, %v5788_v38 }
 0x650   :  { %v4819_v43 = vadd.f32 %v4263_v5, %v3550_v16  ;;  %3588 = vmatmul.bf16.gmra.mxu1 %v15104_v49  ;;  %15105 = vst [vmem:[#allocation239_spill] sm:$0xff] %v12010_v10  ;;  %v15108_v5 = vld [vmem:[#allocation356_spill] sm:$0xff]  ;;  %v15115_v10 = vld [vmem:[#allocation83_spill] sm:$0xff] }
 0x651   :  { %v7018_v46 = vadd.f32 %v11669_v20, %v6758_v7 }
 0x652   :  { %v4265_v61 = vpop.f32.mrf.mxu2  ;;  %v5789_v11 = vadd.f32 %v5233_v0, %v4819_v43  ;;  %v15109_v0 = vld [vmem:[#allocation154_spill] sm:$0xff] }
 0x653   :  { %v7274_v9 = vmax.f32 %v7018_v46, 0.0  ;;  %v7243_v46 = vmax.f32 %v6987_v6, 0.0  ;;  %v15112_v6 = vld [vmem:[#allocation359_spill] sm:$0xff] }
 0x654   :  { %v5235_v36 = vpop.f32.mrf.mxu3 }
 0x655   :  { %v12015_v12 = vmul.f32 %v11684_v21, %v7274_v9  ;;  %v3551_v38 = vpop.f32.mrf.mxu1 }
 0x656   :  { %v3552_v16 = vadd.f32 %v3551_v38, %v15108_v5  ;;  %v6203_v59 = vpop.f32.mrf.mxu0  ;;  %v12025_v38 = vmul.f32 %v11678_v37, %v7243_v46 }
 0x657   :  { %15107 = vst [vmem:[#allocation243_spill] sm:$0xff] %v12015_v12  ;;  %v6759_v3 = vadd.f32 %v6203_v59, %v5789_v11  ;;  %4307 = vmatmul.bf16.gmra.mxu2 %v15109_v0  ;;  %v6988_v11 = vadd.f32 %v11669_v20, %v11633_v33 }
 0x658   :  { %v4820_v43 = vadd.f32 %v4265_v61, %v3552_v16 }
 0x659   :  { %v7019_v52 = vadd.f32 %v11669_v20, %v6759_v3  ;;  %5277 = vmatmul.bf16.gmra.mxu3 %v15010_v31  ;;  %6242 = vmatmul.bf16.gmra.mxu0 %v15110_v4 }
 0x65a   :  { %v4268_v9 = vpop.f32.mrf.mxu2  ;;  %v5790_v55 = vadd.f32 %v5235_v36, %v4820_v43  ;;  %v15113_v43 = vld [vmem:[#allocation159_spill] sm:$0xff] }
 0x65b   :  { %v7275_v49 = vmax.f32 %v7019_v52, 0.0  ;;  %v7244_v52 = vmax.f32 %v6988_v11, 0.0 }
 0x65c   :  { %v5238_v50 = vpop.f32.mrf.mxu3 }
 0x65d   :  { %v12030_v5 = vmul.f32 %v11684_v21, %v7275_v49  ;;  %v3554_v61 = vpop.f32.mrf.mxu1  ;;  %v12038_v49 = vmul.f32 %v11678_v37, %v7244_v52 }
 0x65e   :  { %v3555_v16 = vadd.f32 %v3554_v61, %v15112_v6  ;;  %v6205_v59 = vpop.f32.mrf.mxu0  ;;  %v6989_v61 = vadd.f32 %v11669_v20, %v15115_v10  ;;  %v15119_v10 = vld [vmem:[#allocation174_spill] sm:$0xff] }
 0x65f   :  { %15111 = vst [vmem:[#allocation250_spill] sm:$0xff] %v12030_v5  ;;  %v6760_v7 = vadd.f32 %v6205_v59, %v5790_v55 }
 0x660   :  { %v4821_v36 = vadd.f32 %v4268_v9, %v3555_v16  ;;  %3593 = vmatmul.bf16.gmra.mxu1 %v15113_v43  ;;  %15114 = vst [vmem:[#allocation254_spill] sm:$0xff] %v12038_v49  ;;  %v15117_v9 = vld [vmem:[#allocation364_spill] sm:$0xff]  ;;  %v15125_v49 = vld [vmem:[#allocation89_spill] sm:$0xff] }
 0x661   :  { %v7020_v46 = vadd.f32 %v11669_v20, %v6760_v7 }
 0x662   :  { %v4270_v0 = vpop.f32.mrf.mxu2  ;;  %v5791_v31 = vadd.f32 %v5238_v50, %v4821_v36  ;;  %v15118_v50 = vld [vmem:[#allocation166_spill] sm:$0xff] }
 0x663   :  { %v7276_v33 = vmax.f32 %v7020_v46, 0.0  ;;  %v7245_v46 = vmax.f32 %v6989_v61, 0.0  ;;  %v15122_v61 = vld [vmem:[#allocation367_spill] sm:$0xff] }
 0x664   :  { %v5240_v12 = vpop.f32.mrf.mxu3 }
 0x665   :  { %v12043_v6 = vmul.f32 %v11684_v21, %v7276_v33  ;;  %v3556_v55 = vpop.f32.mrf.mxu1 }
 0x666   :  { %v3557_v16 = vadd.f32 %v3556_v55, %v15117_v9  ;;  %v6208_v59 = vpop.f32.mrf.mxu0  ;;  %v12053_v55 = vmul.f32 %v11678_v37, %v7245_v46 }
 0x667   :  { %15116 = vst [vmem:[#allocation260_spill] sm:$0xff] %v12043_v6  ;;  %v6761_v11 = vadd.f32 %v6208_v59, %v5791_v31  ;;  %4312 = vmatmul.bf16.gmra.mxu2 %v15118_v50  ;;  %v6990_v31 = vadd.f32 %v11669_v20, %v11643_v13 }
 0x668   :  { %v4822_v36 = vadd.f32 %v4270_v0, %v3557_v16  ;;  %15120 = vst [vmem:[#allocation264_spill] sm:$0xff] %v12053_v55 }
 0x669   :  { %v7021_v52 = vadd.f32 %v11669_v20, %v6761_v11  ;;  %5282 = vmatmul.bf16.gmra.mxu3 %v15015_v23  ;;  %6247 = vmatmul.bf16.gmra.mxu0 %v15119_v10 }
 0x66a   :  { %v4273_v33 = vpop.f32.mrf.mxu2  ;;  %v5792_v3 = vadd.f32 %v5240_v12, %v4822_v36  ;;  %v15123_v36 = vld [vmem:[#allocation169_spill] sm:$0xff] }
 0x66b   :  { %v7277_v43 = vmax.f32 %v7021_v52, 0.0  ;;  %v7246_v52 = vmax.f32 %v6990_v31, 0.0 }
 0x66c   :  { %v5243_v5 = vpop.f32.mrf.mxu3 }
 0x66d   :  { %v12058_v9 = vmul.f32 %v11684_v21, %v7277_v43  ;;  %v3559_v0 = vpop.f32.mrf.mxu1  ;;  %v12066_v43 = vmul.f32 %v11678_v37, %v7246_v52 }
 0x66e   :  { %v3560_v16 = vadd.f32 %v3559_v0, %v15122_v61  ;;  %v6210_v59 = vpop.f32.mrf.mxu0  ;;  %v6991_v0 = vadd.f32 %v11669_v20, %v15125_v49  ;;  %v15129_v49 = vld [vmem:[#allocation184_spill] sm:$0xff] }
 0x66f   :  { %15121 = vst [vmem:[#allocation271_spill] sm:$0xff] %v12058_v9  ;;  %v6762_v7 = vadd.f32 %v6210_v59, %v5792_v3 }
 0x670   :  { %v4823_v12 = vadd.f32 %v4273_v33, %v3560_v16  ;;  %3598 = vmatmul.bf16.gmra.mxu1 %v15123_v36  ;;  %15124 = vst [vmem:[#allocation275_spill] sm:$0xff] %v12066_v43  ;;  %v15127_v33 = vld [vmem:[#allocation372_spill] sm:$0xff] }
 0x671   :  { %v7022_v46 = vadd.f32 %v11669_v20, %v6762_v7 }
 0x672   :  { %v4275_v50 = vpop.f32.mrf.mxu2  ;;  %v5793_v23 = vadd.f32 %v5243_v5, %v4823_v12  ;;  %v15128_v5 = vld [vmem:[#allocation172_spill] sm:$0xff] }
 0x673   :  { %v7278_v13 = vmax.f32 %v7022_v46, 0.0  ;;  %v7247_v46 = vmax.f32 %v6991_v0, 0.0  ;;  %v15132_v0 = vld [vmem:[#allocation375_spill] sm:$0xff] }
 0x674   :  { %v5245_v6 = vpop.f32.mrf.mxu3 }
 0x675   :  { %v12071_v61 = vmul.f32 %v11684_v21, %v7278_v13  ;;  %v3561_v3 = vpop.f32.mrf.mxu1 }
 0x676   :  { %v3562_v16 = vadd.f32 %v3561_v3, %v15127_v33  ;;  %v6213_v59 = vpop.f32.mrf.mxu0  ;;  %v12081_v3 = vmul.f32 %v11678_v37, %v7247_v46 }
 0x677   :  { %15126 = vst [vmem:[#allocation281_spill] sm:$0xff] %v12071_v61  ;;  %v6763_v31 = vadd.f32 %v6213_v59, %v5793_v23  ;;  %4317 = vmatmul.bf16.gmra.mxu2 %v15128_v5  ;;  %v6992_v23 = vadd.f32 %v11669_v20, %v11653_v60 }
 0x678   :  { %v4824_v12 = vadd.f32 %v4275_v50, %v3562_v16  ;;  %15130 = vst [vmem:[#allocation285_spill] sm:$0xff] %v12081_v3 }
 0x679   :  { %v7023_v52 = vadd.f32 %v11669_v20, %v6763_v31  ;;  %5287 = vmatmul.bf16.gmra.mxu3 %v15020_v17  ;;  %6252 = vmatmul.bf16.gmra.mxu0 %v15129_v49  ;;  %v15139_v31 = vld [vmem:[#allocation39_spill] sm:$0xff] }
 0x67a   :  { %v4278_v13 = vpop.f32.mrf.mxu2  ;;  %v5794_v11 = vadd.f32 %v5245_v6, %v4824_v12  ;;  %v15133_v12 = vld [vmem:[#allocation181_spill] sm:$0xff] }
 0x67b   :  { %v7279_v36 = vmax.f32 %v7023_v52, 0.0  ;;  %v7248_v52 = vmax.f32 %v6992_v23, 0.0 }
 0x67c   :  { %v5248_v9 = vpop.f32.mrf.mxu3 }
 0x67d   :  { %v12086_v33 = vmul.f32 %v11684_v21, %v7279_v36  ;;  %v3564_v50 = vpop.f32.mrf.mxu1  ;;  %v12094_v36 = vmul.f32 %v11678_v37, %v7248_v52 }
 0x67e   :  { %v3565_v16 = vadd.f32 %v3564_v50, %v15132_v0  ;;  %v6215_v59 = vpop.f32.mrf.mxu0  ;;  %v12099_v50 = vld [vmem:[%s14092_s2] ss:$0 sm:$0xff]  ;;  %v15135_v0 = vld [vmem:[#allocation95_spill] sm:$0xff] }
 0x67f   :  { %15131 = vst [vmem:[#allocation292_spill] sm:$0xff] %v12086_v33  ;;  %v6764_v7 = vadd.f32 %v6215_v59, %v5794_v11  ;;  %v6993_v11 = vadd.f32 %v12099_v50, %v15135_v0  ;;  %v15138_v59 = vld [vmem:[#allocation193_spill] sm:$0xff] }
 0x680   :  { %v4825_v6 = vadd.f32 %v4278_v13, %v3565_v16  ;;  %3603 = vmatmul.bf16.gmra.mxu1 %v15133_v12  ;;  %15134 = vst [vmem:[#allocation296_spill] sm:$0xff] %v12094_v36  ;;  %v15140_v0 = vld [vmem:[#allocation197_spill] sm:$0xff] }
 0x681   :  { %v7024_v46 = vadd.f32 %v11669_v20, %v6764_v7  ;;  %v15137_v20 = vld [vmem:[#allocation380_spill] sm:$0xff]  ;;  %v7249_v52 = vmax.f32 %v6993_v11, 0.0  ;;  %v8948_v11 = vld [vmem:[%s14093_s3 + $0x1] ss:$0 sm:$0xff] }
 0x682   :  { %v4280_v5 = vpop.f32.mrf.mxu2  ;;  %v5795_v17 = vadd.f32 %v5248_v9, %v4825_v6 }
 0x683   :  { %v7280_v60 = vmax.f32 %v7024_v46, 0.0 }
 0x684   :  { %v5250_v61 = vpop.f32.mrf.mxu3 }
 0x685   :  { %v12104_v13 = vmul.f32 %v11684_v21, %v7280_v60  ;;  %v3566_v23 = vpop.f32.mrf.mxu1 }
 0x686   :  { %v3567_v7 = vadd.f32 %v3566_v23, %v15137_v20  ;;  %v6218_v9 = vpop.f32.mrf.mxu0  ;;  %v8947_v23 = vld [vmem:[%s14093_s3] ss:$0 sm:$0xff] }
 0x687   :  { %15136 = vst [vmem:[#allocation54_spill] sm:$0xff] %v12104_v13  ;;  %v6765_v37 = vadd.f32 %v6218_v9, %v5795_v17  ;;  %4322 = vmatmul.bf16.gmra.mxu2 %v15138_v59  ;;  %v12116_v20 = vmul.f32 %v8947_v23, %v7249_v52  ;;  %v15141_v17 = vld [vmem:[#allocation101_spill] sm:$0xff]  ;;  %v15143_v52 = vld [vmem:[#allocation187_spill] sm:$0xff] }
 0x688   :  { %v4826_v6 = vadd.f32 %v4280_v5, %v3567_v7  ;;  %v6994_v5 = vadd.f32 %v12099_v50, %v15141_v17 }
 0x689   :  { %v7025_v46 = vadd.f32 %v12099_v50, %v6765_v37  ;;  %5292 = vmatmul.bf16.gmra.mxu3 %v15139_v31  ;;  %6257 = vmatmul.bf16.gmra.mxu0 %v15140_v0  ;;  %v15142_v37 = vld [vmem:[#allocation384_spill] sm:$0xff] }
 0x68a   :  { %v4283_v21 = vpop.f32.mrf.mxu2  ;;  %v5796_v60 = vadd.f32 %v5250_v61, %v4826_v6  ;;  %v7250_v31 = vmax.f32 %v6994_v5, 0.0 }
 0x68b   :  { %v7281_v12 = vmax.f32 %v7025_v46, 0.0 }
 0x68c   :  { %v5253_v33 = vpop.f32.mrf.mxu3 }
 0x68d   :  { %v12123_v7 = vmul.f32 %v8948_v11, %v7281_v12  ;;  %v3569_v9 = vpop.f32.mrf.mxu1  ;;  %v12130_v12 = vmul.f32 %v8947_v23, %v7250_v31 }
 0x68e   :  { %v3570_v61 = vadd.f32 %v3569_v9, %v15142_v37  ;;  %v6220_v6 = vpop.f32.mrf.mxu0  ;;  %v15144_v37 = vld [vmem:[#allocation385_spill] sm:$0xff] }
 0x68f   :  { %v6766_v16 = vadd.f32 %v6220_v6, %v5796_v60  ;;  %v15147_v6 = vld [vmem:[#allocation52_spill] sm:$0xff] }
 0x690   :  { %v4827_v59 = vadd.f32 %v4283_v21, %v3570_v61  ;;  %3608 = vmatmul.bf16.gmra.mxu1 %v15143_v52  ;;  %v15145_v61 = vld [vmem:[#allocation207_spill] sm:$0xff] }
 0x691   :  { %v7026_v17 = vadd.f32 %v12099_v50, %v6766_v16  ;;  %v15149_v21 = vld [vmem:[#allocation211_spill] sm:$0xff] }
 0x692   :  { %v4285_v13 = vpop.f32.mrf.mxu2  ;;  %v5797_v36 = vadd.f32 %v5253_v33, %v4827_v59  ;;  %v12142_v33 = vld [vmem:[%s14093_s3 + $0x2] ss:$0 sm:$0xff] }
 0x693   :  { %v7282_v3 = vmax.f32 %v7026_v17, 0.0  ;;  %v15148_v17 = vmax.f32 %v11689_v27, %v11694_v30  ;;  %v15151_v27 = vld [vmem:[#allocation107_spill] sm:$0xff] }
 0x694   :  { %v5255_v0 = vpop.f32.mrf.mxu3  ;;  %v15152_v30 = vmax.f32 %v11702_v15, %v15151_v27  ;;  %v15155_v15 = vld [vmem:[#allocation70_spill] sm:$0xff]  ;;  %v15157_v27 = vld [vmem:[#allocation227_spill] sm:$0xff] }
 0x695   :  { %v12132_v43 = vmul.f32 %v8948_v11, %v7282_v3  ;;  %v3571_v9 = vpop.f32.mrf.mxu1  ;;  %v15146_v3 = vld [vmem:[#allocation204_spill] sm:$0xff] }
 0x696   :  { %v3572_v55 = vadd.f32 %v3571_v9, %v15144_v37  ;;  %v6223_v49 = vpop.f32.mrf.mxu0 }
 0x697   :  { %v6767_v60 = vadd.f32 %v6223_v49, %v5797_v36  ;;  %4327 = vmatmul.bf16.gmra.mxu2 %v15145_v61 }
 0x698   :  { %v4828_v5 = vadd.f32 %v4285_v13, %v3572_v55 }
 0x699   :  { %v7027_v16 = vadd.f32 %v12099_v50, %v6767_v60  ;;  %5297 = vmatmul.bf16.gmra.mxu3 %v15030_v25  ;;  %6262 = vmatmul.bf16.gmra.mxu0 %v15146_v3 }
 0x69a   :  { %v4288_v31 = vpop.f32.mrf.mxu2  ;;  %v5798_v59 = vadd.f32 %v5255_v0, %v4828_v5 }
 0x69b   :  { %v7283_v23 = vmax.f32 %v7027_v16, 0.0 }
 0x69c   :  { %v5258_v11 = vpop.f32.mrf.mxu3 }
 0x69d   :  { %v7571_v49 = vmul.f32 %v12142_v33, %v7283_v23  ;;  %v3574_v36 = vpop.f32.mrf.mxu1 }
 0x69e   :  { %v3575_v55 = vadd.f32 %v3574_v36, %v15147_v6  ;;  %v6225_v13 = vpop.f32.mrf.mxu0  ;;  %v15150_v36 = vld [vmem:[#allocation56_spill] sm:$0xff] }
 0x69f   :  { %v12151_v9 = vmax.f32 %v15148_v17, %v7571_v49  ;;  %v6768_v37 = vadd.f32 %v6225_v13, %v5798_v59  ;;  %v15153_v59 = vld [vmem:[#allocation221_spill] sm:$0xff] }
 0x6a0   :  { %v4829_v60 = vadd.f32 %v4288_v31, %v3575_v55  ;;  %3613 = vmatmul.bf16.gmra.mxu1 %v15149_v21 }
 0x6a1   :  { %v7028_v46 = vadd.f32 %v12099_v50, %v6768_v37 }
 0x6a2   :  { %v4290_v0 = vpop.f32.mrf.mxu2  ;;  %v5799_v5 = vadd.f32 %v5258_v11, %v4829_v60 }
 0x6a3   :  { %v7284_v16 = vmax.f32 %v7028_v46, 0.0  ;;  %v15154_v46 = vld [vmem:[#allocation232_spill] sm:$0xff] }
 0x6a4   :  { %v5260_v52 = vpop.f32.mrf.mxu3 }
 0x6a5   :  { %v7572_v23 = vmul.f32 %v12142_v33, %v7284_v16  ;;  %v3576_v61 = vpop.f32.mrf.mxu1 }
 0x6a6   :  { %v3577_v6 = vadd.f32 %v3576_v61, %v15150_v36  ;;  %v6228_v25 = vpop.f32.mrf.mxu0 }
 0x6a7   :  { %v12160_v49 = vmax.f32 %v15152_v30, %v7572_v23  ;;  %v6769_v31 = vadd.f32 %v6228_v25, %v5799_v5  ;;  %4332 = vmatmul.bf16.gmra.mxu2 %v15153_v59  ;;  %v15156_v25 = vmax.f32 %v11717_v39, %v11722_v42  ;;  %v15159_v39 = vld [vmem:[#allocation111_spill] sm:$0xff] }
 0x6a8   :  { %v4830_v55 = vadd.f32 %v4290_v0, %v3577_v6  ;;  %v15160_v42 = vmax.f32 %v11730_v24, %v15159_v39  ;;  %v15163_v24 = vld [vmem:[#allocation80_spill] sm:$0xff]  ;;  %v15165_v39 = vld [vmem:[#allocation242_spill] sm:$0xff] }
 0x6a9   :  { %v7029_v13 = vadd.f32 %v12099_v50, %v6769_v31  ;;  %5302 = vmatmul.bf16.gmra.mxu3 %v15035_v28  ;;  %6267 = vmatmul.bf16.gmra.mxu0 %v15154_v46 }
 0x6aa   :  { %v4293_v11 = vpop.f32.mrf.mxu2  ;;  %v5800_v17 = vadd.f32 %v5260_v52, %v4830_v55 }
 0x6ab   :  { %v7285_v37 = vmax.f32 %v7029_v13, 0.0 }
 0x6ac   :  { %v5263_v61 = vpop.f32.mrf.mxu3 }
 0x6ad   :  { %v7573_v60 = vmul.f32 %v12142_v33, %v7285_v37  ;;  %v3579_v16 = vpop.f32.mrf.mxu1 }
 0x6ae   :  { %v3580_v23 = vadd.f32 %v3579_v16, %v15155_v15  ;;  %v6230_v36 = vpop.f32.mrf.mxu0  ;;  %v15158_v16 = vld [vmem:[#allocation74_spill] sm:$0xff] }
 0x6af   :  { %v12171_v0 = vmax.f32 %v15156_v25, %v7573_v60  ;;  %v6770_v5 = vadd.f32 %v6230_v36, %v5800_v17  ;;  %v15161_v17 = vld [vmem:[#allocation237_spill] sm:$0xff] }
 0x6b0   :  { %v4831_v6 = vadd.f32 %v4293_v11, %v3580_v23  ;;  %3618 = vmatmul.bf16.gmra.mxu1 %v15157_v27 }
 0x6b1   :  { %v7030_v30 = vadd.f32 %v12099_v50, %v6770_v5 }
 0x6b2   :  { %v4295_v52 = vpop.f32.mrf.mxu2  ;;  %v5801_v31 = vadd.f32 %v5263_v61, %v4831_v6  ;;  %v15162_v61 = vld [vmem:[#allocation248_spill] sm:$0xff] }
 0x6b3   :  { %v7286_v55 = vmax.f32 %v7030_v30, 0.0 }
 0x6b4   :  { %v5265_v13 = vpop.f32.mrf.mxu3 }
 0x6b5   :  { %v7574_v37 = vmul.f32 %v12142_v33, %v7286_v55  ;;  %v3581_v21 = vpop.f32.mrf.mxu1 }
 0x6b6   :  { %v3582_v15 = vadd.f32 %v3581_v21, %v15158_v16  ;;  %v6233_v59 = vpop.f32.mrf.mxu0 }
 0x6b7   :  { %v12180_v60 = vmax.f32 %v15160_v42, %v7574_v37  ;;  %v6771_v11 = vadd.f32 %v6233_v59, %v5801_v31  ;;  %4337 = vmatmul.bf16.gmra.mxu2 %v15161_v17  ;;  %v15164_v59 = vmax.f32 %v11745_v45, %v11750_v26  ;;  %v15167_v45 = vld [vmem:[#allocation117_spill] sm:$0xff] }
 0x6b8   :  { %v4832_v23 = vadd.f32 %v4295_v52, %v3582_v15  ;;  %v15168_v26 = vmax.f32 %v11758_v47, %v15167_v45  ;;  %v15171_v47 = vld [vmem:[#allocation92_spill] sm:$0xff]  ;;  %v15173_v45 = vld [vmem:[#allocation258_spill] sm:$0xff] }
 0x6b9   :  { %v7031_v36 = vadd.f32 %v12099_v50, %v6771_v11  ;;  %5307 = vmatmul.bf16.gmra.mxu3 %v15040_v8  ;;  %6272 = vmatmul.bf16.gmra.mxu0 %v15162_v61 }
 0x6ba   :  { %v4298_v25 = vpop.f32.mrf.mxu2  ;;  %v5802_v5 = vadd.f32 %v5265_v13, %v4832_v23 }
 0x6bb   :  { %v7287_v6 = vmax.f32 %v7031_v36, 0.0 }
 0x6bc   :  { %v5268_v21 = vpop.f32.mrf.mxu3 }
 0x6bd   :  { %v7575_v30 = vmul.f32 %v12142_v33, %v7287_v6  ;;  %v3584_v55 = vpop.f32.mrf.mxu1 }
 0x6be   :  { %v3585_v37 = vadd.f32 %v3584_v55, %v15163_v24  ;;  %v6235_v16 = vpop.f32.mrf.mxu0  ;;  %v15166_v55 = vld [vmem:[#allocation86_spill] sm:$0xff] }
 0x6bf   :  { %v12191_v52 = vmax.f32 %v15164_v59, %v7575_v30  ;;  %v6772_v31 = vadd.f32 %v6235_v16, %v5802_v5  ;;  %v15169_v5 = vld [vmem:[#allocation245_spill] sm:$0xff] }
 0x6c0   :  { %v4833_v15 = vadd.f32 %v4298_v25, %v3585_v37  ;;  %3623 = vmatmul.bf16.gmra.mxu1 %v15165_v39 }
 0x6c1   :  { %v7032_v42 = vadd.f32 %v12099_v50, %v6772_v31 }
 0x6c2   :  { %v4300_v13 = vpop.f32.mrf.mxu2  ;;  %v5803_v11 = vadd.f32 %v5268_v21, %v4833_v15  ;;  %v15170_v21 = vld [vmem:[#allocation263_spill] sm:$0xff] }
 0x6c3   :  { %v7288_v23 = vmax.f32 %v7032_v42, 0.0 }
 0x6c4   :  { %v5270_v36 = vpop.f32.mrf.mxu3 }
 0x6c5   :  { %v7576_v6 = vmul.f32 %v12142_v33, %v7288_v23  ;;  %v3586_v27 = vpop.f32.mrf.mxu1 }
 0x6c6   :  { %v3587_v24 = vadd.f32 %v3586_v27, %v15166_v55  ;;  %v6238_v17 = vpop.f32.mrf.mxu0 }
 0x6c7   :  { %v12200_v30 = vmax.f32 %v15168_v26, %v7576_v6  ;;  %v6773_v25 = vadd.f32 %v6238_v17, %v5803_v11  ;;  %4342 = vmatmul.bf16.gmra.mxu2 %v15169_v5  ;;  %v15172_v17 = vmax.f32 %v11773_v29, %v11778_v32  ;;  %v15175_v29 = vld [vmem:[#allocation120_spill] sm:$0xff] }
 0x6c8   :  { %v4834_v37 = vadd.f32 %v4300_v13, %v3587_v24  ;;  %v15176_v32 = vmax.f32 %v11786_v22, %v15175_v29  ;;  %v15180_v22 = vld [vmem:[#allocation102_spill] sm:$0xff] }
 0x6c9   :  { %v7033_v16 = vadd.f32 %v12099_v50, %v6773_v25  ;;  %5312 = vmatmul.bf16.gmra.mxu3 %v15045_v2  ;;  %6277 = vmatmul.bf16.gmra.mxu0 %v15170_v21  ;;  %v15182_v29 = vld [vmem:[#allocation266_spill] sm:$0xff] }
 0x6ca   :  { %v4303_v59 = vpop.f32.mrf.mxu2  ;;  %v5804_v31 = vadd.f32 %v5270_v36, %v4834_v37 }
 0x6cb   :  { %v7289_v15 = vmax.f32 %v7033_v16, 0.0 }
 0x6cc   :  { %v5273_v27 = vpop.f32.mrf.mxu3 }
 0x6cd   :  { %v7577_v42 = vmul.f32 %v12142_v33, %v7289_v15  ;;  %v3589_v23 = vpop.f32.mrf.mxu1 }
 0x6ce   :  { %v3590_v6 = vadd.f32 %v3589_v23, %v15171_v47  ;;  %v6240_v55 = vpop.f32.mrf.mxu0  ;;  %v15174_v23 = vld [vmem:[#allocation96_spill] sm:$0xff] }
 0x6cf   :  { %v12211_v13 = vmax.f32 %v15172_v17, %v7577_v42  ;;  %v6774_v11 = vadd.f32 %v6240_v55, %v5804_v31  ;;  %v15178_v31 = vld [vmem:[#allocation274_spill] sm:$0xff] }
 0x6d0   :  { %v4835_v24 = vadd.f32 %v4303_v59, %v3590_v6  ;;  %3628 = vmatmul.bf16.gmra.mxu1 %v15173_v45 }
 0x6d1   :  { %v7034_v26 = vadd.f32 %v12099_v50, %v6774_v11 }
 0x6d2   :  { %v4305_v36 = vpop.f32.mrf.mxu2  ;;  %v5805_v25 = vadd.f32 %v5273_v27, %v4835_v24  ;;  %v15179_v27 = vld [vmem:[#allocation279_spill] sm:$0xff] }
 0x6d3   :  { %v7290_v37 = vmax.f32 %v7034_v26, 0.0 }
 0x6d4   :  { %v5275_v16 = vpop.f32.mrf.mxu3 }
 0x6d5   :  { %v7578_v15 = vmul.f32 %v12142_v33, %v7290_v37  ;;  %v3591_v39 = vpop.f32.mrf.mxu1 }
 0x6d6   :  { %v3592_v47 = vadd.f32 %v3591_v39, %v15174_v23  ;;  %v6243_v5 = vpop.f32.mrf.mxu0 }
 0x6d7   :  { %v12220_v42 = vmax.f32 %v15176_v32, %v7578_v15  ;;  %v6775_v59 = vadd.f32 %v6243_v5, %v5805_v25  ;;  %4347 = vmatmul.bf16.gmra.mxu2 %v15178_v31  ;;  %v15181_v5 = vmax.f32 %v11801_v51, %v11806_v62  ;;  %v15185_v51 = vld [vmem:[#allocation128_spill] sm:$0xff] }
 0x6d8   :  { %v4836_v6 = vadd.f32 %v4305_v36, %v3592_v47 }
 0x6d9   :  { %15177 = vst [vmem:[#allocation302_spill] sm:$0xff] %v12220_v42  ;;  %v7035_v55 = vadd.f32 %v12099_v50, %v6775_v59  ;;  %5317 = vmatmul.bf16.gmra.mxu3 %v15051_v48  ;;  %6282 = vmatmul.bf16.gmra.mxu0 %v15179_v27  ;;  %v15184_v48 = vld [vmem:[#allocation123_spill] sm:$0xff]  ;;  %v15335_v42 = vld [vmem:[#allocation286_spill] sm:$0xff] }
 0x6da   :  { %v4308_v17 = vpop.f32.mrf.mxu2  ;;  %v5806_v11 = vadd.f32 %v5275_v16, %v4836_v6  ;;  %v15186_v62 = vmax.f32 %v15184_v48, %v15185_v51  ;;  %v15190_v48 = vld [vmem:[#allocation108_spill] sm:$0xff] }
 0x6db   :  { %v7291_v24 = vmax.f32 %v7035_v55, 0.0 }
 0x6dc   :  { %v5278_v39 = vpop.f32.mrf.mxu3 }
 0x6dd   :  { %v7579_v26 = vmul.f32 %v12142_v33, %v7291_v24  ;;  %v3594_v37 = vpop.f32.mrf.mxu1 }
 0x6de   :  { %v3595_v15 = vadd.f32 %v3594_v37, %v15180_v22  ;;  %v6245_v23 = vpop.f32.mrf.mxu0  ;;  %v15183_v37 = vld [vmem:[#allocation105_spill] sm:$0xff] }
 0x6df   :  { %v12231_v36 = vmax.f32 %v15181_v5, %v7579_v26  ;;  %v6776_v25 = vadd.f32 %v6245_v23, %v5806_v11  ;;  %v15188_v11 = vld [vmem:[#allocation290_spill] sm:$0xff] }
 0x6e0   :  { %v4837_v47 = vadd.f32 %v4308_v17, %v3595_v15  ;;  %3633 = vmatmul.bf16.gmra.mxu1 %v15182_v29 }
 0x6e1   :  { %v7036_v32 = vadd.f32 %v12099_v50, %v6776_v25 }
 0x6e2   :  { %v4310_v16 = vpop.f32.mrf.mxu2  ;;  %v5807_v59 = vadd.f32 %v5278_v39, %v4837_v47  ;;  %v15189_v39 = vld [vmem:[#allocation287_spill] sm:$0xff] }
 0x6e3   :  { %v7292_v6 = vmax.f32 %v7036_v32, 0.0 }
 0x6e4   :  { %v5280_v55 = vpop.f32.mrf.mxu3 }
 0x6e5   :  { %v7580_v24 = vmul.f32 %v12142_v33, %v7292_v6  ;;  %v3596_v45 = vpop.f32.mrf.mxu1 }
 0x6e6   :  { %v3597_v22 = vadd.f32 %v3596_v45, %v15183_v37  ;;  %v6248_v31 = vpop.f32.mrf.mxu0 }
 0x6e7   :  { %v12240_v26 = vmax.f32 %v15186_v62, %v7580_v24  ;;  %v6777_v17 = vadd.f32 %v6248_v31, %v5807_v59  ;;  %4352 = vmatmul.bf16.gmra.mxu2 %v15188_v11  ;;  %v15191_v31 = vld [vmem:[#allocation145_spill] sm:$0xff]  ;;  %v15193_v62 = vld [vmem:[#allocation295_spill] sm:$0xff] }
 0x6e8   :  { %v4838_v15 = vadd.f32 %v4310_v16, %v3597_v22  ;;  %v15192_v59 = vmax.f32 %v11829_v57, %v15191_v31  ;;  %v15195_v57 = vld [vmem:[#allocation149_spill] sm:$0xff] }
 0x6e9   :  { %15187 = vst [vmem:[#allocation306_spill] sm:$0xff] %v12240_v26  ;;  %v7037_v23 = vadd.f32 %v12099_v50, %v6777_v17  ;;  %5322 = vmatmul.bf16.gmra.mxu3 %v15059_v58  ;;  %6287 = vmatmul.bf16.gmra.mxu0 %v15189_v39  ;;  %v15342_v26 = vld [vmem:[#allocation297_spill] sm:$0xff] }
 0x6ea   :  { %v4313_v5 = vpop.f32.mrf.mxu2  ;;  %v5808_v25 = vadd.f32 %v5280_v55, %v4838_v15 }
 0x6eb   :  { %v7293_v47 = vmax.f32 %v7037_v23, 0.0 }
 0x6ec   :  { %v5283_v45 = vpop.f32.mrf.mxu3 }
 0x6ed   :  { %v7581_v32 = vmul.f32 %v12142_v33, %v7293_v47  ;;  %v3599_v6 = vpop.f32.mrf.mxu1 }
 0x6ee   :  { %v3600_v24 = vadd.f32 %v3599_v6, %v15190_v48  ;;  %v6250_v37 = vpop.f32.mrf.mxu0  ;;  %v15194_v6 = vld [vmem:[#allocation113_spill] sm:$0xff] }
 0x6ef   :  { %v12251_v16 = vmax.f32 %v15192_v59, %v7581_v32  ;;  %v6778_v22 = vadd.f32 %v6250_v37, %v5808_v25  ;;  %v15196_v32 = vmax.f32 %v11842_v34, %v15195_v57  ;;  %v15198_v25 = vld [vmem:[#allocation305_spill] sm:$0xff]  ;;  %v15200_v34 = vld [vmem:[#allocation130_spill] sm:$0xff] }
 0x6f0   :  { %v4839_v51 = vadd.f32 %v4313_v5, %v3600_v24  ;;  %3638 = vmatmul.bf16.gmra.mxu1 %v15193_v62 }
 0x6f1   :  { %v7038_v17 = vadd.f32 %v12099_v50, %v6778_v22 }
 0x6f2   :  { %v4315_v55 = vpop.f32.mrf.mxu2  ;;  %v5809_v15 = vadd.f32 %v5283_v45, %v4839_v51  ;;  %v15199_v45 = vld [vmem:[#allocation316_spill] sm:$0xff] }
 0x6f3   :  { %v7294_v23 = vmax.f32 %v7038_v17, 0.0 }
 0x6f4   :  { %v5285_v29 = vpop.f32.mrf.mxu3 }
 0x6f5   :  { %v7582_v47 = vmul.f32 %v12142_v33, %v7294_v23  ;;  %v3601_v11 = vpop.f32.mrf.mxu1 }
 0x6f6   :  { %v3602_v48 = vadd.f32 %v3601_v11, %v15194_v6  ;;  %v6253_v58 = vpop.f32.mrf.mxu0 }
 0x6f7   :  { %v12260_v31 = vmax.f32 %v15196_v32, %v7582_v47  ;;  %v6779_v5 = vadd.f32 %v6253_v58, %v5809_v15  ;;  %4357 = vmatmul.bf16.gmra.mxu2 %v15198_v25  ;;  %v15201_v58 = vld [vmem:[#allocation155_spill] sm:$0xff] }
 0x6f8   :  { %v4840_v24 = vadd.f32 %v4315_v55, %v3602_v48  ;;  %v15202_v15 = vmax.f32 %v11857_v35, %v15201_v58  ;;  %v15203_v32 = vld [vmem:[#allocation311_spill] sm:$0xff]  ;;  %v15205_v35 = vld [vmem:[#allocation161_spill] sm:$0xff] }
 0x6f9   :  { %15197 = vst [vmem:[#allocation313_spill] sm:$0xff] %v12260_v31  ;;  %v7039_v37 = vadd.f32 %v12099_v50, %v6779_v5  ;;  %5327 = vmatmul.bf16.gmra.mxu3 %v15066_v19  ;;  %6292 = vmatmul.bf16.gmra.mxu0 %v15199_v45  ;;  %v15349_v31 = vld [vmem:[#allocation307_spill] sm:$0xff] }
 0x6fa   :  { %v4318_v59 = vpop.f32.mrf.mxu2  ;;  %v5810_v22 = vadd.f32 %v5285_v29, %v4840_v24 }
 0x6fb   :  { %v7295_v51 = vmax.f32 %v7039_v37, 0.0 }
 0x6fc   :  { %v5288_v11 = vpop.f32.mrf.mxu3 }
 0x6fd   :  { %v7583_v17 = vmul.f32 %v12142_v33, %v7295_v51  ;;  %v3604_v23 = vpop.f32.mrf.mxu1 }
 0x6fe   :  { %v3605_v47 = vadd.f32 %v3604_v23, %v15200_v34  ;;  %v6255_v6 = vpop.f32.mrf.mxu0  ;;  %v15204_v23 = vld [vmem:[#allocation134_spill] sm:$0xff] }
 0x6ff   :  { %v12271_v55 = vmax.f32 %v15202_v15, %v7583_v17  ;;  %v6780_v48 = vadd.f32 %v6255_v6, %v5810_v22  ;;  %v15206_v17 = vmax.f32 %v11870_v54, %v15205_v35  ;;  %v15208_v22 = vld [vmem:[#allocation321_spill] sm:$0xff]  ;;  %v15210_v54 = vld [vmem:[#allocation140_spill] sm:$0xff] }
 0x700   :  { %v4841_v57 = vadd.f32 %v4318_v59, %v3605_v47  ;;  %3643 = vmatmul.bf16.gmra.mxu1 %v15203_v32 }
 0x701   :  { %v7040_v5 = vadd.f32 %v12099_v50, %v6780_v48 }
 0x702   :  { %v4320_v29 = vpop.f32.mrf.mxu2  ;;  %v5811_v24 = vadd.f32 %v5288_v11, %v4841_v57  ;;  %v15209_v11 = vld [vmem:[#allocation3_spill] sm:$0xff] }
 0x703   :  { %v7296_v37 = vmax.f32 %v7040_v5, 0.0 }
 0x704   :  { %v5290_v62 = vpop.f32.mrf.mxu3 }
 0x705   :  { %v7584_v51 = vmul.f32 %v12142_v33, %v7296_v37  ;;  %v3606_v25 = vpop.f32.mrf.mxu1 }
 0x706   :  { %v3607_v34 = vadd.f32 %v3606_v25, %v15204_v23  ;;  %v6258_v19 = vpop.f32.mrf.mxu0 }
 0x707   :  { %v12280_v58 = vmax.f32 %v15206_v17, %v7584_v51  ;;  %v6781_v59 = vadd.f32 %v6258_v19, %v5811_v24  ;;  %4362 = vmatmul.bf16.gmra.mxu2 %v15208_v22  ;;  %v15211_v19 = vld [vmem:[#allocation167_spill] sm:$0xff]  ;;  %v15213_v17 = vld [vmem:[#allocation326_spill] sm:$0xff] }
 0x708   :  { %v4842_v47 = vadd.f32 %v4320_v29, %v3607_v34  ;;  %v15212_v24 = vmax.f32 %v11885_v63, %v15211_v19  ;;  %v15216_v63 = vld [vmem:[#allocation177_spill] sm:$0xff] }
 0x709   :  { %15207 = vst [vmem:[#allocation317_spill] sm:$0xff] %v12280_v58  ;;  %v7041_v6 = vadd.f32 %v12099_v50, %v6781_v59  ;;  %5332 = vmatmul.bf16.gmra.mxu3 %v15074_v18  ;;  %6297 = vmatmul.bf16.gmra.mxu0 %v15209_v11  ;;  %v15215_v58 = vld [vmem:[#allocation171_spill] sm:$0xff] }
 0x70a   :  { %v4323_v15 = vpop.f32.mrf.mxu2  ;;  %v5812_v48 = vadd.f32 %v5290_v62, %v4842_v47 }
 0x70b   :  { %v7297_v57 = vmax.f32 %v7041_v6, 0.0 }
 0x70c   :  { %v5293_v25 = vpop.f32.mrf.mxu3 }
 0x70d   :  { %v7585_v5 = vmul.f32 %v12142_v33, %v7297_v57  ;;  %v3609_v37 = vpop.f32.mrf.mxu1 }
 0x70e   :  { %v3610_v51 = vadd.f32 %v3609_v37, %v15210_v54  ;;  %v6260_v23 = vpop.f32.mrf.mxu0  ;;  %v15214_v37 = vld [vmem:[#allocation146_spill] sm:$0xff] }
 0x70f   :  { %v12291_v29 = vmax.f32 %v15212_v24, %v7585_v5  ;;  %v6782_v34 = vadd.f32 %v6260_v23, %v5812_v48  ;;  %v15217_v5 = vmax.f32 %v15215_v58, %v15216_v63  ;;  %v15219_v48 = vld [vmem:[#allocation14_spill] sm:$0xff]  ;;  %v15221_v58 = vld [vmem:[#allocation152_spill] sm:$0xff] }
 0x710   :  { %v4843_v35 = vadd.f32 %v4323_v15, %v3610_v51  ;;  %3648 = vmatmul.bf16.gmra.mxu1 %v15213_v17 }
 0x711   :  { %v7042_v59 = vadd.f32 %v12099_v50, %v6782_v34 }
 0x712   :  { %v4325_v62 = vpop.f32.mrf.mxu2  ;;  %v5813_v47 = vadd.f32 %v5293_v25, %v4843_v35  ;;  %v15220_v25 = vld [vmem:[#allocation5_spill] sm:$0xff] }
 0x713   :  { %v7298_v6 = vmax.f32 %v7042_v59, 0.0 }
 0x714   :  { %v5295_v32 = vpop.f32.mrf.mxu3 }
 0x715   :  { %v7586_v57 = vmul.f32 %v12142_v33, %v7298_v6  ;;  %v3611_v22 = vpop.f32.mrf.mxu1 }
 0x716   :  { %v3612_v54 = vadd.f32 %v3611_v22, %v15214_v37  ;;  %v6263_v18 = vpop.f32.mrf.mxu0 }
 0x717   :  { %v12300_v19 = vmax.f32 %v15217_v5, %v7586_v57  ;;  %v6783_v15 = vadd.f32 %v6263_v18, %v5813_v47  ;;  %4367 = vmatmul.bf16.gmra.mxu2 %v15219_v48  ;;  %v15222_v18 = vld [vmem:[#allocation180_spill] sm:$0xff]  ;;  %v15224_v5 = vld [vmem:[#allocation9_spill] sm:$0xff] }
 0x718   :  { %v4844_v51 = vadd.f32 %v4325_v62, %v3612_v54  ;;  %v15223_v47 = vmax.f32 %v11913_v53, %v15222_v18  ;;  %v15227_v53 = vld [vmem:[#allocation188_spill] sm:$0xff] }
 0x719   :  { %15218 = vst [vmem:[#allocation323_spill] sm:$0xff] %v12300_v19  ;;  %v7043_v23 = vadd.f32 %v12099_v50, %v6783_v15  ;;  %5337 = vmatmul.bf16.gmra.mxu3 %v15083_v14  ;;  %6302 = vmatmul.bf16.gmra.mxu0 %v15220_v25  ;;  %v15226_v19 = vld [vmem:[#allocation183_spill] sm:$0xff] }
 0x71a   :  { %v4328_v24 = vpop.f32.mrf.mxu2  ;;  %v5814_v34 = vadd.f32 %v5295_v32, %v4844_v51 }
 0x71b   :  { %v7299_v35 = vmax.f32 %v7043_v23, 0.0 }
 0x71c   :  { %v5298_v22 = vpop.f32.mrf.mxu3 }
 0x71d   :  { %v7587_v59 = vmul.f32 %v12142_v33, %v7299_v35  ;;  %v3614_v6 = vpop.f32.mrf.mxu1 }
 0x71e   :  { %v3615_v57 = vadd.f32 %v3614_v6, %v15221_v58  ;;  %v6265_v37 = vpop.f32.mrf.mxu0  ;;  %v15225_v6 = vld [vmem:[#allocation156_spill] sm:$0xff] }
 0x71f   :  { %v12311_v62 = vmax.f32 %v15223_v47, %v7587_v59  ;;  %v6784_v54 = vadd.f32 %v6265_v37, %v5814_v34  ;;  %v15228_v59 = vmax.f32 %v15226_v19, %v15227_v53  ;;  %v15230_v34 = vld [vmem:[#allocation18_spill] sm:$0xff] }
 0x720   :  { %v4845_v63 = vadd.f32 %v4328_v24, %v3615_v57  ;;  %3653 = vmatmul.bf16.gmra.mxu1 %v15224_v5  ;;  %v15232_v19 = vld [vmem:[#allocation162_spill] sm:$0xff] }
 0x721   :  { %v7044_v15 = vadd.f32 %v12099_v50, %v6784_v54 }
 0x722   :  { %v4330_v32 = vpop.f32.mrf.mxu2  ;;  %v5815_v51 = vadd.f32 %v5298_v22, %v4845_v63  ;;  %v15231_v22 = vld [vmem:[#allocation7_spill] sm:$0xff] }
 0x723   :  { %v7300_v23 = vmax.f32 %v7044_v15, 0.0 }
 0x724   :  { %v5300_v17 = vpop.f32.mrf.mxu3 }
 0x725   :  { %v7588_v35 = vmul.f32 %v12142_v33, %v7300_v23  ;;  %v3616_v48 = vpop.f32.mrf.mxu1 }
 0x726   :  { %v3617_v58 = vadd.f32 %v3616_v48, %v15225_v6  ;;  %v6268_v14 = vpop.f32.mrf.mxu0 }
 0x727   :  { %v12320_v18 = vmax.f32 %v15228_v59, %v7588_v35  ;;  %v6785_v24 = vadd.f32 %v6268_v14, %v5815_v51  ;;  %4372 = vmatmul.bf16.gmra.mxu2 %v15230_v34  ;;  %v15233_v14 = vld [vmem:[#allocation202_spill] sm:$0xff]  ;;  %v15235_v59 = vld [vmem:[#allocation11_spill] sm:$0xff] }
 0x728   :  { %v4846_v57 = vadd.f32 %v4330_v32, %v3617_v58  ;;  %v15234_v51 = vmax.f32 %v11941_v41, %v15233_v14  ;;  %v15238_v41 = vld [vmem:[#allocation212_spill] sm:$0xff] }
 0x729   :  { %15229 = vst [vmem:[#allocation327_spill] sm:$0xff] %v12320_v18  ;;  %v7045_v37 = vadd.f32 %v12099_v50, %v6785_v24  ;;  %5342 = vmatmul.bf16.gmra.mxu3 %v15092_v56  ;;  %6307 = vmatmul.bf16.gmra.mxu0 %v15231_v22  ;;  %v15237_v18 = vld [vmem:[#allocation209_spill] sm:$0xff] }
 0x72a   :  { %v4333_v47 = vpop.f32.mrf.mxu2  ;;  %v5816_v54 = vadd.f32 %v5300_v17, %v4846_v57 }
 0x72b   :  { %v7301_v63 = vmax.f32 %v7045_v37, 0.0 }
 0x72c   :  { %v5303_v48 = vpop.f32.mrf.mxu3 }
 0x72d   :  { %v7589_v15 = vmul.f32 %v12142_v33, %v7301_v63  ;;  %v3619_v23 = vpop.f32.mrf.mxu1 }
 0x72e   :  { %v3620_v35 = vadd.f32 %v3619_v23, %v15232_v19  ;;  %v6270_v6 = vpop.f32.mrf.mxu0  ;;  %v15236_v23 = vld [vmem:[#allocation165_spill] sm:$0xff] }
 0x72f   :  { %v12331_v32 = vmax.f32 %v15234_v51, %v7589_v15  ;;  %v6786_v58 = vadd.f32 %v6270_v6, %v5816_v54  ;;  %v15239_v15 = vmax.f32 %v15237_v18, %v15238_v41  ;;  %v15241_v54 = vld [vmem:[#allocation19_spill] sm:$0xff]  ;;  %v15243_v18 = vld [vmem:[#allocation168_spill] sm:$0xff] }
 0x730   :  { %v4847_v53 = vadd.f32 %v4333_v47, %v3620_v35  ;;  %3658 = vmatmul.bf16.gmra.mxu1 %v15235_v59 }
 0x731   :  { %v7046_v24 = vadd.f32 %v12099_v50, %v6786_v58 }
 0x732   :  { %v4335_v17 = vpop.f32.mrf.mxu2  ;;  %v5817_v57 = vadd.f32 %v5303_v48, %v4847_v53  ;;  %v15242_v48 = vld [vmem:[#allocation10_spill] sm:$0xff] }
 0x733   :  { %v7302_v37 = vmax.f32 %v7046_v24, 0.0 }
 0x734   :  { %v5305_v5 = vpop.f32.mrf.mxu3 }
 0x735   :  { %v7590_v63 = vmul.f32 %v12142_v33, %v7302_v37  ;;  %v3621_v34 = vpop.f32.mrf.mxu1 }
 0x736   :  { %v3622_v19 = vadd.f32 %v3621_v34, %v15236_v23  ;;  %v6273_v56 = vpop.f32.mrf.mxu0 }
 0x737   :  { %v12340_v14 = vmax.f32 %v15239_v15, %v7590_v63  ;;  %v6787_v47 = vadd.f32 %v6273_v56, %v5817_v57  ;;  %4377 = vmatmul.bf16.gmra.mxu2 %v15241_v54  ;;  %v15244_v56 = vld [vmem:[#allocation218_spill] sm:$0xff]  ;;  %v15246_v15 = vld [vmem:[#allocation13_spill] sm:$0xff] }
 0x738   :  { %v4848_v35 = vadd.f32 %v4335_v17, %v3622_v19  ;;  %v15245_v57 = vmax.f32 %v11969_v40, %v15244_v56  ;;  %v15249_v40 = vld [vmem:[#allocation229_spill] sm:$0xff] }
 0x739   :  { %15240 = vst [vmem:[#allocation59_spill] sm:$0xff] %v12340_v14  ;;  %v7047_v6 = vadd.f32 %v12099_v50, %v6787_v47  ;;  %5347 = vmatmul.bf16.gmra.mxu3 %v15101_v44  ;;  %6312 = vmatmul.bf16.gmra.mxu0 %v15242_v48  ;;  %v15248_v14 = vld [vmem:[#allocation222_spill] sm:$0xff] }
 0x73a   :  { %v4338_v51 = vpop.f32.mrf.mxu2  ;;  %v5818_v58 = vadd.f32 %v5305_v5, %v4848_v35 }
 0x73b   :  { %v7303_v53 = vmax.f32 %v7047_v6, 0.0 }
 0x73c   :  { %v5308_v34 = vpop.f32.mrf.mxu3 }
 0x73d   :  { %v7591_v24 = vmul.f32 %v12142_v33, %v7303_v53  ;;  %v3624_v37 = vpop.f32.mrf.mxu1 }
 0x73e   :  { %v3625_v63 = vadd.f32 %v3624_v37, %v15243_v18  ;;  %v6275_v23 = vpop.f32.mrf.mxu0  ;;  %v15247_v37 = vld [vmem:[#allocation173_spill] sm:$0xff] }
 0x73f   :  { %v12351_v17 = vmax.f32 %v15245_v57, %v7591_v24  ;;  %v6788_v19 = vadd.f32 %v6275_v23, %v5818_v58  ;;  %v15250_v24 = vmax.f32 %v15248_v14, %v15249_v40  ;;  %v15252_v58 = vld [vmem:[#allocation22_spill] sm:$0xff] }
 0x740   :  { %v4849_v41 = vadd.f32 %v4338_v51, %v3625_v63  ;;  %3663 = vmatmul.bf16.gmra.mxu1 %v15246_v15  ;;  %v15254_v14 = vld [vmem:[#allocation190_spill] sm:$0xff] }
 0x741   :  { %v7048_v47 = vadd.f32 %v12099_v50, %v6788_v19 }
 0x742   :  { %v4340_v5 = vpop.f32.mrf.mxu2  ;;  %v5819_v35 = vadd.f32 %v5308_v34, %v4849_v41  ;;  %v15253_v34 = vld [vmem:[#allocation16_spill] sm:$0xff] }
 0x743   :  { %v7304_v6 = vmax.f32 %v7048_v47, 0.0 }
 0x744   :  { %v5310_v59 = vpop.f32.mrf.mxu3 }
 0x745   :  { %v7592_v53 = vmul.f32 %v12142_v33, %v7304_v6  ;;  %v3626_v54 = vpop.f32.mrf.mxu1 }
 0x746   :  { %v3627_v18 = vadd.f32 %v3626_v54, %v15247_v37  ;;  %v6278_v44 = vpop.f32.mrf.mxu0 }
 0x747   :  { %v12360_v56 = vmax.f32 %v15250_v24, %v7592_v53  ;;  %v6789_v51 = vadd.f32 %v6278_v44, %v5819_v35  ;;  %4382 = vmatmul.bf16.gmra.mxu2 %v15252_v58  ;;  %v15255_v44 = vld [vmem:[#allocation233_spill] sm:$0xff] }
 0x748   :  { %v4850_v63 = vadd.f32 %v4340_v5, %v3627_v18  ;;  %v15256_v35 = vmax.f32 %v11997_v1, %v15255_v44  ;;  %v15258_v24 = vld [vmem:[#allocation17_spill] sm:$0xff]  ;;  %v15261_v1 = vld [vmem:[#allocation243_spill] sm:$0xff] }
 0x749   :  { %15251 = vst [vmem:[#allocation332_spill] sm:$0xff] %v12360_v56  ;;  %v7049_v23 = vadd.f32 %v12099_v50, %v6789_v51  ;;  %5352 = vmatmul.bf16.gmra.mxu3 %v15110_v4  ;;  %6317 = vmatmul.bf16.gmra.mxu0 %v15253_v34  ;;  %v15260_v56 = vld [vmem:[#allocation239_spill] sm:$0xff] }
 0x74a   :  { %v4343_v57 = vpop.f32.mrf.mxu2  ;;  %v5820_v19 = vadd.f32 %v5310_v59, %v4850_v63 }
 0x74b   :  { %v7305_v41 = vmax.f32 %v7049_v23, 0.0 }
 0x74c   :  { %v5313_v54 = vpop.f32.mrf.mxu3 }
 0x74d   :  { %v7593_v47 = vmul.f32 %v12142_v33, %v7305_v41  ;;  %v3629_v6 = vpop.f32.mrf.mxu1 }
 0x74e   :  { %v3630_v53 = vadd.f32 %v3629_v6, %v15254_v14  ;;  %v6280_v37 = vpop.f32.mrf.mxu0  ;;  %v15259_v6 = vld [vmem:[#allocation194_spill] sm:$0xff] }
 0x74f   :  { %v12371_v5 = vmax.f32 %v15256_v35, %v7593_v47  ;;  %v6790_v18 = vadd.f32 %v6280_v37, %v5820_v19  ;;  %v15262_v47 = vmax.f32 %v15260_v56, %v15261_v1  ;;  %v15264_v19 = vld [vmem:[#allocation28_spill] sm:$0xff]  ;;  %v15266_v56 = vld [vmem:[#allocation198_spill] sm:$0xff] }
 0x750   :  { %v4851_v40 = vadd.f32 %v4343_v57, %v3630_v53  ;;  %3668 = vmatmul.bf16.gmra.mxu1 %v15258_v24 }
 0x751   :  { %15257 = vst [vmem:[#allocation335_spill] sm:$0xff] %v12371_v5  ;;  %v7050_v51 = vadd.f32 %v12099_v50, %v6790_v18  ;;  %v15399_v5 = vld [vmem:[#allocation360_spill] sm:$0xff] }
 0x752   :  { %v4345_v59 = vpop.f32.mrf.mxu2  ;;  %v5821_v63 = vadd.f32 %v5313_v54, %v4851_v40  ;;  %v15265_v54 = vld [vmem:[#allocation20_spill] sm:$0xff] }
 0x753   :  { %v7306_v23 = vmax.f32 %v7050_v51, 0.0 }
 0x754   :  { %v5315_v15 = vpop.f32.mrf.mxu3 }
 0x755   :  { %v7594_v41 = vmul.f32 %v12142_v33, %v7306_v23  ;;  %v3631_v58 = vpop.f32.mrf.mxu1 }
 0x756   :  { %v3632_v14 = vadd.f32 %v3631_v58, %v15259_v6  ;;  %v6283_v4 = vpop.f32.mrf.mxu0 }
 0x757   :  { %v12380_v44 = vmax.f32 %v15262_v47, %v7594_v41  ;;  %v6791_v57 = vadd.f32 %v6283_v4, %v5821_v63  ;;  %4387 = vmatmul.bf16.gmra.mxu2 %v15264_v19  ;;  %v15267_v4 = vld [vmem:[#allocation250_spill] sm:$0xff]  ;;  %v15270_v47 = vld [vmem:[#allocation21_spill] sm:$0xff] }
 0x758   :  { %v4852_v53 = vadd.f32 %v4345_v59, %v3632_v14  ;;  %v15268_v63 = vmax.f32 %v12025_v38, %v15267_v4  ;;  %v15273_v38 = vld [vmem:[#allocation260_spill] sm:$0xff] }
 0x759   :  { %15263 = vst [vmem:[#allocation62_spill] sm:$0xff] %v12380_v44  ;;  %v7051_v37 = vadd.f32 %v12099_v50, %v6791_v57  ;;  %5357 = vmatmul.bf16.gmra.mxu3 %v15119_v10  ;;  %6322 = vmatmul.bf16.gmra.mxu0 %v15265_v54  ;;  %v15272_v44 = vld [vmem:[#allocation254_spill] sm:$0xff] }
 0x75a   :  { %v4348_v35 = vpop.f32.mrf.mxu2  ;;  %v5822_v18 = vadd.f32 %v5315_v15, %v4852_v53 }
 0x75b   :  { %v7307_v40 = vmax.f32 %v7051_v37, 0.0 }
 0x75c   :  { %v5318_v58 = vpop.f32.mrf.mxu3 }
 0x75d   :  { %v7595_v51 = vmul.f32 %v12142_v33, %v7307_v40  ;;  %v3634_v23 = vpop.f32.mrf.mxu1 }
 0x75e   :  { %v3635_v41 = vadd.f32 %v3634_v23, %v15266_v56  ;;  %v6285_v6 = vpop.f32.mrf.mxu0  ;;  %v15271_v23 = vld [vmem:[#allocation203_spill] sm:$0xff] }
 0x75f   :  { %v12391_v59 = vmax.f32 %v15268_v63, %v7595_v51  ;;  %v6792_v14 = vadd.f32 %v6285_v6, %v5822_v18  ;;  %v15274_v51 = vmax.f32 %v15272_v44, %v15273_v38  ;;  %v15276_v18 = vld [vmem:[#allocation32_spill] sm:$0xff] }
 0x760   :  { %v4853_v1 = vadd.f32 %v4348_v35, %v3635_v41  ;;  %3673 = vmatmul.bf16.gmra.mxu1 %v15270_v47  ;;  %v15278_v63 = vld [vmem:[#allocation24_spill] sm:$0xff]  ;;  %v15284_v47 = vld [vmem:[#allocation25_spill] sm:$0xff] }
 0x761   :  { %15269 = vst [vmem:[#allocation340_spill] sm:$0xff] %v12391_v59  ;;  %v7052_v57 = vadd.f32 %v12099_v50, %v6792_v14  ;;  %v15279_v44 = vld [vmem:[#allocation208_spill] sm:$0xff] }
 0x762   :  { %v4350_v15 = vpop.f32.mrf.mxu2  ;;  %v5823_v53 = vadd.f32 %v5318_v58, %v4853_v1  ;;  %v15277_v58 = vld [vmem:[#allocation184_spill] sm:$0xff] }
 0x763   :  { %v7308_v37 = vmax.f32 %v7052_v57, 0.0 }
 0x764   :  { %v5320_v24 = vpop.f32.mrf.mxu3 }
 0x765   :  { %v7596_v40 = vmul.f32 %v12142_v33, %v7308_v37  ;;  %v3636_v19 = vpop.f32.mrf.mxu1 }
 0x766   :  { %v3637_v56 = vadd.f32 %v3636_v19, %v15271_v23  ;;  %v6288_v10 = vpop.f32.mrf.mxu0 }
 0x767   :  { %v12400_v4 = vmax.f32 %v15274_v51, %v7596_v40  ;;  %v6793_v35 = vadd.f32 %v6288_v10, %v5823_v53  ;;  %4392 = vmatmul.bf16.gmra.mxu2 %v15276_v18  ;;  %v15280_v10 = vld [vmem:[#allocation264_spill] sm:$0xff]  ;;  %v15281_v53 = vld [vmem:[#allocation271_spill] sm:$0xff] }
 0x768   :  { %v4854_v41 = vadd.f32 %v4350_v15, %v3637_v56  ;;  %v15282_v51 = vmax.f32 %v15280_v10, %v15281_v53  ;;  %v15287_v10 = vld [vmem:[#allocation281_spill] sm:$0xff] }
 0x769   :  { %15275 = vst [vmem:[#allocation343_spill] sm:$0xff] %v12400_v4  ;;  %v7053_v6 = vadd.f32 %v12099_v50, %v6793_v35  ;;  %5362 = vmatmul.bf16.gmra.mxu3 %v15277_v58  ;;  %6327 = vmatmul.bf16.gmra.mxu0 %v15278_v63  ;;  %v15286_v63 = vld [vmem:[#allocation275_spill] sm:$0xff] }
 0x76a   :  { %v4353_v14 = vpop.f32.mrf.mxu2  ;;  %v5824_v1 = vadd.f32 %v5320_v24, %v4854_v41 }
 0x76b   :  { %v7309_v57 = vmax.f32 %v7053_v6, 0.0 }
 0x76c   :  { %v5323_v19 = vpop.f32.mrf.mxu3 }
 0x76d   :  { %v7597_v37 = vmul.f32 %v12142_v33, %v7309_v57  ;;  %v3639_v23 = vpop.f32.mrf.mxu1 }
 0x76e   :  { %v3640_v40 = vadd.f32 %v3639_v23, %v15279_v44  ;;  %v6290_v38 = vpop.f32.mrf.mxu0  ;;  %v15285_v23 = vld [vmem:[#allocation213_spill] sm:$0xff] }
 0x76f   :  { %v12411_v15 = vmax.f32 %v15282_v51, %v7597_v37  ;;  %v6794_v56 = vadd.f32 %v6290_v38, %v5824_v1  ;;  %v15288_v37 = vmax.f32 %v15286_v63, %v15287_v10  ;;  %v15290_v1 = vld [vmem:[#allocation35_spill] sm:$0xff]  ;;  %v15293_v63 = vld [vmem:[#allocation217_spill] sm:$0xff] }
 0x770   :  { %v4855_v35 = vadd.f32 %v4353_v14, %v3640_v40  ;;  %3678 = vmatmul.bf16.gmra.mxu1 %v15284_v47  ;;  %v15297_v47 = vld [vmem:[#allocation29_spill] sm:$0xff] }
 0x771   :  { %15283 = vst [vmem:[#allocation64_spill] sm:$0xff] %v12411_v15  ;;  %v7054_v18 = vadd.f32 %v12099_v50, %v6794_v56 }
 0x772   :  { %v4355_v24 = vpop.f32.mrf.mxu2  ;;  %v5825_v41 = vadd.f32 %v5323_v19, %v4855_v35  ;;  %v15291_v19 = vld [vmem:[#allocation197_spill] sm:$0xff] }
 0x773   :  { %v7310_v6 = vmax.f32 %v7054_v18, 0.0  ;;  %v15292_v18 = vld [vmem:[#allocation26_spill] sm:$0xff] }
 0x774   :  { %v5325_v58 = vpop.f32.mrf.mxu3 }
 0x775   :  { %v7598_v57 = vmul.f32 %v12142_v33, %v7310_v6  ;;  %v3641_v4 = vpop.f32.mrf.mxu1 }
 0x776   :  { %v3642_v44 = vadd.f32 %v3641_v4, %v15285_v23  ;;  %v6293_v59 = vpop.f32.mrf.mxu0 }
 0x777   :  { %v12420_v53 = vmax.f32 %v15288_v37, %v7598_v57  ;;  %v6795_v14 = vadd.f32 %v6293_v59, %v5825_v41  ;;  %4397 = vmatmul.bf16.gmra.mxu2 %v15290_v1  ;;  %v15294_v59 = vld [vmem:[#allocation285_spill] sm:$0xff]  ;;  %v15295_v41 = vld [vmem:[#allocation292_spill] sm:$0xff] }
 0x778   :  { %v4856_v40 = vadd.f32 %v4355_v24, %v3642_v44  ;;  %v15296_v37 = vmax.f32 %v15294_v59, %v15295_v41  ;;  %v15300_v59 = vld [vmem:[#allocation54_spill] sm:$0xff] }
 0x779   :  { %15289 = vst [vmem:[#allocation348_spill] sm:$0xff] %v12420_v53  ;;  %v7055_v38 = vadd.f32 %v12099_v50, %v6795_v14  ;;  %5367 = vmatmul.bf16.gmra.mxu3 %v15291_v19  ;;  %6332 = vmatmul.bf16.gmra.mxu0 %v15292_v18  ;;  %v15299_v18 = vld [vmem:[#allocation296_spill] sm:$0xff] }
 0x77a   :  { %v4358_v51 = vpop.f32.mrf.mxu2  ;;  %v5826_v56 = vadd.f32 %v5325_v58, %v4856_v40 }
 0x77b   :  { %v7311_v35 = vmax.f32 %v7055_v38, 0.0 }
 0x77c   :  { %v5328_v4 = vpop.f32.mrf.mxu3 }
 0x77d   :  { %v7599_v6 = vmul.f32 %v12142_v33, %v7311_v35  ;;  %v3644_v23 = vpop.f32.mrf.mxu1 }
 0x77e   :  { %v3645_v57 = vadd.f32 %v3644_v23, %v15293_v63  ;;  %v6295_v10 = vpop.f32.mrf.mxu0  ;;  %v15298_v23 = vld [vmem:[#allocation223_spill] sm:$0xff] }
 0x77f   :  { %v12431_v24 = vmax.f32 %v15296_v37, %v7599_v6  ;;  %v6796_v44 = vadd.f32 %v6295_v10, %v5826_v56  ;;  %v15301_v6 = vmax.f32 %v15299_v18, %v15300_v59  ;;  %v15302_v56 = vld [vmem:[#allocation39_spill] sm:$0xff]  ;;  %v15304_v18 = vld [vmem:[#allocation228_spill] sm:$0xff] }
 0x780   :  { %v4857_v14 = vadd.f32 %v4358_v51, %v3645_v57  ;;  %3683 = vmatmul.bf16.gmra.mxu1 %v15297_v47  ;;  %v15306_v59 = vld [vmem:[#allocation31_spill] sm:$0xff] }
 0x781   :  { %v7056_v1 = vadd.f32 %v12099_v50, %v6796_v44 }
 0x782   :  { %v4360_v58 = vpop.f32.mrf.mxu2  ;;  %v5827_v40 = vadd.f32 %v5328_v4, %v4857_v14 }
 0x783   :  { %v7312_v38 = vmax.f32 %v7056_v1, 0.0  ;;  %v15303_v1 = vld [vmem:[#allocation33_spill] sm:$0xff] }
 0x784   :  { %v5330_v19 = vpop.f32.mrf.mxu3 }
 0x785   :  { %v7600_v35 = vmul.f32 %v12142_v33, %v7312_v38  ;;  %v3646_v53 = vpop.f32.mrf.mxu1 }
 0x786   :  { %v3647_v63 = vadd.f32 %v3646_v53, %v15298_v23  ;;  %v6298_v15 = vpop.f32.mrf.mxu0 }
 0x787   :  { %v12440_v41 = vmax.f32 %v15301_v6, %v7600_v35  ;;  %v6797_v51 = vadd.f32 %v6298_v15, %v5827_v40  ;;  %4402 = vmatmul.bf16.gmra.mxu2 %v15302_v56  ;;  %v15305_v15 = vmax.f32 %v12116_v20, %v12123_v7  ;;  %v15308_v20 = vmax.f32 %v12130_v12, %v12132_v43 }
 0x788   :  { %v4858_v57 = vadd.f32 %v4360_v58, %v3647_v63 }
 0x789   :  { %v7057_v10 = vadd.f32 %v12099_v50, %v6797_v51  ;;  %5372 = vmatmul.bf16.gmra.mxu3 %v15146_v3  ;;  %6337 = vmatmul.bf16.gmra.mxu0 %v15303_v1 }
 0x78a   :  { %v4363_v4 = vpop.f32.mrf.mxu2  ;;  %v5828_v37 = vadd.f32 %v5330_v19, %v4858_v57 }
 0x78b   :  { %v7313_v44 = vmax.f32 %v7057_v10, 0.0 }
 0x78c   :  { %v5333_v53 = vpop.f32.mrf.mxu3 }
 0x78d   :  { %v7601_v14 = vmul.f32 %v12142_v33, %v7313_v44  ;;  %v3649_v38 = vpop.f32.mrf.mxu1 }
 0x78e   :  { %v3650_v35 = vadd.f32 %v3649_v38, %v15304_v18  ;;  %v6300_v23 = vpop.f32.mrf.mxu0  ;;  %v15307_v38 = vld [vmem:[#allocation234_spill] sm:$0xff] }
 0x78f   :  { %v12451_v58 = vmax.f32 %v15305_v15, %v7601_v14  ;;  %v6798_v40 = vadd.f32 %v6300_v23, %v5828_v37  ;;  %v15310_v37 = vld [vmem:[#allocation41_spill] sm:$0xff] }
 0x790   :  { %v4859_v63 = vadd.f32 %v4363_v4, %v3650_v35  ;;  %3688 = vmatmul.bf16.gmra.mxu1 %v15306_v59 }
 0x791   :  { %v7058_v6 = vadd.f32 %v12099_v50, %v6798_v40  ;;  %v15312_v40 = vld [vmem:[#allocation238_spill] sm:$0xff] }
 0x792   :  { %v4365_v19 = vpop.f32.mrf.mxu2  ;;  %v5829_v51 = vadd.f32 %v5333_v53, %v4859_v63  ;;  %v12467_v53 = vld [vmem:[%s14093_s3 + $0x3] ss:$0 sm:$0xff] }
 0x793   :  { %v7314_v57 = vmax.f32 %v7058_v6, 0.0 }
 0x794   :  { %v5335_v10 = vpop.f32.mrf.mxu3 }
 0x795   :  { %v7602_v44 = vmul.f32 %v12142_v33, %v7314_v57  ;;  %v3651_v47 = vpop.f32.mrf.mxu1  ;;  %v15311_v33 = vld [vmem:[#allocation37_spill] sm:$0xff] }
 0x796   :  { %v3652_v18 = vadd.f32 %v3651_v47, %v15307_v38  ;;  %v6303_v56 = vpop.f32.mrf.mxu0 }
 0x797   :  { %v12460_v7 = vmax.f32 %v15308_v20, %v7602_v44  ;;  %v6799_v4 = vadd.f32 %v6303_v56, %v5829_v51  ;;  %4407 = vmatmul.bf16.gmra.mxu2 %v15310_v37  ;;  %v15313_v44 = vld [vmem:[#allocation38_spill] sm:$0xff]  ;;  %v15319_v37 = vld [vmem:[#allocation255_spill] sm:$0xff] }
 0x798   :  { %v4860_v14 = vadd.f32 %v4365_v19, %v3652_v18  ;;  %v15317_v19 = vld [vmem:[#allocation42_spill] sm:$0xff] }
 0x799   :  { %15309 = vst [vmem:[#allocation351_spill] sm:$0xff] %v12460_v7  ;;  %v7059_v35 = vadd.f32 %v12099_v50, %v6799_v4  ;;  %5377 = vmatmul.bf16.gmra.mxu3 %v15154_v46  ;;  %6342 = vmatmul.bf16.gmra.mxu0 %v15311_v33 }
 0x79a   :  { %v4368_v47 = vpop.f32.mrf.mxu2  ;;  %v5830_v23 = vadd.f32 %v5335_v10, %v4860_v14 }
 0x79b   :  { %v7315_v43 = vmax.f32 %v7059_v35, 0.0 }
 0x79c   :  { %v5338_v12 = vpop.f32.mrf.mxu3 }
 0x79d   :  { %v12472_v56 = vmul.f32 %v12467_v53, %v7315_v43  ;;  %v3654_v15 = vpop.f32.mrf.mxu1  ;;  %v15314_v43 = vld [vmem:[#allocation244_spill] sm:$0xff] }
 0x79e   :  { %v3655_v63 = vadd.f32 %v3654_v15, %v15312_v40  ;;  %v6305_v6 = vpop.f32.mrf.mxu0 }
 0x79f   :  { %v6800_v51 = vadd.f32 %v6305_v6, %v5830_v23 }
 0x7a0   :  { %v4861_v57 = vadd.f32 %v4368_v47, %v3655_v63  ;;  %3693 = vmatmul.bf16.gmra.mxu1 %v15313_v44  ;;  %v15315_v63 = vld [vmem:[#allocation40_spill] sm:$0xff] }
 0x7a1   :  { %v7060_v38 = vadd.f32 %v12099_v50, %v6800_v51  ;;  %v12489_v50 = vld [vmem:[%s14092_s2] ss:$0 sm:$0xff] }
 0x7a2   :  { %v4370_v18 = vpop.f32.mrf.mxu2  ;;  %v5831_v10 = vadd.f32 %v5338_v12, %v4861_v57 }
 0x7a3   :  { %v7316_v20 = vmax.f32 %v7060_v38, 0.0 }
 0x7a4   :  { %v5340_v4 = vpop.f32.mrf.mxu3 }
 0x7a5   :  { %v12480_v14 = vmul.f32 %v12467_v53, %v7316_v20  ;;  %v3656_v35 = vpop.f32.mrf.mxu1 }
 0x7a6   :  { %v3657_v15 = vadd.f32 %v3656_v35, %v15314_v43  ;;  %v6308_v40 = vpop.f32.mrf.mxu0 }
 0x7a7   :  { %v6801_v23 = vadd.f32 %v6308_v40, %v5831_v10  ;;  %4412 = vmatmul.bf16.gmra.mxu2 %v15035_v28 }
 0x7a8   :  { %v4862_v47 = vadd.f32 %v4370_v18, %v3657_v15  ;;  %v15316_v18 = vld [vmem:[#allocation249_spill] sm:$0xff] }
 0x7a9   :  { %v7061_v12 = vadd.f32 %v12489_v50, %v6801_v23  ;;  %5382 = vmatmul.bf16.gmra.mxu3 %v15162_v61  ;;  %6347 = vmatmul.bf16.gmra.mxu0 %v15315_v63 }
 0x7aa   :  { %v4373_v6 = vpop.f32.mrf.mxu2  ;;  %v5832_v51 = vadd.f32 %v5340_v4, %v4862_v47 }
 0x7ab   :  { %v7317_v57 = vmax.f32 %v7061_v12, 0.0 }
 0x7ac   :  { %v5343_v38 = vpop.f32.mrf.mxu3 }
 0x7ad   :  { %v12495_v10 = vmul.f32 %v12467_v53, %v7317_v57  ;;  %v3659_v20 = vpop.f32.mrf.mxu1 }
 0x7ae   :  { %v3660_v35 = vadd.f32 %v3659_v20, %v15316_v18  ;;  %v6310_v43 = vpop.f32.mrf.mxu0 }
 0x7af   :  { %v6802_v40 = vadd.f32 %v6310_v43, %v5832_v51 }
 0x7b0   :  { %v4863_v23 = vadd.f32 %v4373_v6, %v3660_v35  ;;  %3698 = vmatmul.bf16.gmra.mxu1 %v15317_v19 }
 0x7b1   :  { %v7062_v44 = vadd.f32 %v12489_v50, %v6802_v40 }
 0x7b2   :  { %v4375_v59 = vpop.f32.mrf.mxu2  ;;  %v5833_v4 = vadd.f32 %v5343_v38, %v4863_v23 }
 0x7b3   :  { %v7318_v47 = vmax.f32 %v7062_v44, 0.0  ;;  %v15320_v44 = vld [vmem:[#allocation44_spill] sm:$0xff] }
 0x7b4   :  { %v5345_v12 = vpop.f32.mrf.mxu3 }
 0x7b5   :  { %v12503_v57 = vmul.f32 %v12467_v53, %v7318_v47  ;;  %v3661_v28 = vpop.f32.mrf.mxu1  ;;  %v15321_v47 = vld [vmem:[#allocation259_spill] sm:$0xff] }
 0x7b6   :  { %v3662_v20 = vadd.f32 %v3661_v28, %v15319_v37  ;;  %v6313_v18 = vpop.f32.mrf.mxu0 }
 0x7b7   :  { %15318 = vst [vmem:[#allocation68_spill] sm:$0xff] %v12503_v57  ;;  %v6803_v51 = vadd.f32 %v6313_v18, %v5833_v4  ;;  %4417 = vmatmul.bf16.gmra.mxu2 %v15040_v8  ;;  %v15324_v57 = vld [vmem:[#allocation265_spill] sm:$0xff] }
 0x7b8   :  { %v4864_v6 = vadd.f32 %v4375_v59, %v3662_v20 }
 0x7b9   :  { %v7063_v35 = vadd.f32 %v12489_v50, %v6803_v51  ;;  %5387 = vmatmul.bf16.gmra.mxu3 %v15170_v21  ;;  %6352 = vmatmul.bf16.gmra.mxu0 %v15320_v44  ;;  %v15322_v51 = vld [vmem:[#allocation46_spill] sm:$0xff] }
 0x7ba   :  { %v4378_v38 = vpop.f32.mrf.mxu2  ;;  %v5834_v43 = vadd.f32 %v5345_v12, %v4864_v6 }
 0x7bb   :  { %v7319_v40 = vmax.f32 %v7063_v35, 0.0 }
 0x7bc   :  { %v5348_v23 = vpop.f32.mrf.mxu3 }
 0x7bd   :  { %v12513_v28 = vmul.f32 %v12467_v53, %v7319_v40  ;;  %v3664_v37 = vpop.f32.mrf.mxu1 }
 0x7be   :  { %v3665_v15 = vadd.f32 %v3664_v37, %v15321_v47  ;;  %v6315_v4 = vpop.f32.mrf.mxu0 }
 0x7bf   :  { %v6804_v20 = vadd.f32 %v6315_v4, %v5834_v43 }
 0x7c0   :  { %v4865_v18 = vadd.f32 %v4378_v38, %v3665_v15  ;;  %3703 = vmatmul.bf16.gmra.mxu1 %v15322_v51 }
 0x7c1   :  { %v7064_v19 = vadd.f32 %v12489_v50, %v6804_v20 }
 0x7c2   :  { %v4380_v8 = vpop.f32.mrf.mxu2  ;;  %v5835_v12 = vadd.f32 %v5348_v23, %v4865_v18 }
 0x7c3   :  { %v7320_v6 = vmax.f32 %v7064_v19, 0.0  ;;  %v15325_v19 = vld [vmem:[#allocation47_spill] sm:$0xff] }
 0x7c4   :  { %v5350_v35 = vpop.f32.mrf.mxu3 }
 0x7c5   :  { %v12521_v40 = vmul.f32 %v12467_v53, %v7320_v6  ;;  %v3666_v21 = vpop.f32.mrf.mxu1  ;;  %v15326_v6 = vld [vmem:[#allocation270_spill] sm:$0xff] }
 0x7c6   :  { %v3667_v37 = vadd.f32 %v3666_v21, %v15324_v57  ;;  %v6318_v47 = vpop.f32.mrf.mxu0 }
 0x7c7   :  { %15323 = vst [vmem:[#allocation356_spill] sm:$0xff] %v12521_v40  ;;  %v6805_v43 = vadd.f32 %v6318_v47, %v5835_v12  ;;  %4422 = vmatmul.bf16.gmra.mxu2 %v15045_v2  ;;  %v15329_v40 = vld [vmem:[#allocation276_spill] sm:$0xff] }
 0x7c8   :  { %v4866_v15 = vadd.f32 %v4380_v8, %v3667_v37 }
 0x7c9   :  { %v7065_v38 = vadd.f32 %v12489_v50, %v6805_v43  ;;  %5392 = vmatmul.bf16.gmra.mxu3 %v15179_v27  ;;  %6357 = vmatmul.bf16.gmra.mxu0 %v15325_v19  ;;  %v15327_v43 = vld [vmem:[#allocation51_spill] sm:$0xff] }
 0x7ca   :  { %v4383_v23 = vpop.f32.mrf.mxu2  ;;  %v5836_v4 = vadd.f32 %v5350_v35, %v4866_v15 }
 0x7cb   :  { %v7321_v20 = vmax.f32 %v7065_v38, 0.0 }
 0x7cc   :  { %v5353_v18 = vpop.f32.mrf.mxu3 }
 0x7cd   :  { %v12531_v21 = vmul.f32 %v12467_v53, %v7321_v20  ;;  %v3669_v57 = vpop.f32.mrf.mxu1 }
 0x7ce   :  { %v3670_v59 = vadd.f32 %v3669_v57, %v15326_v6  ;;  %v6320_v12 = vpop.f32.mrf.mxu0 }
 0x7cf   :  { %v6806_v37 = vadd.f32 %v6320_v12, %v5836_v4 }
 0x7d0   :  { %v4867_v47 = vadd.f32 %v4383_v23, %v3670_v59  ;;  %3708 = vmatmul.bf16.gmra.mxu1 %v15327_v43  ;;  %v15330_v59 = vld [vmem:[#allocation76_spill] sm:$0xff] }
 0x7d1   :  { %v7066_v51 = vadd.f32 %v12489_v50, %v6806_v37  ;;  %v15332_v43 = vld [vmem:[#allocation280_spill] sm:$0xff] }
 0x7d2   :  { %v4385_v2 = vpop.f32.mrf.mxu2  ;;  %v5837_v35 = vadd.f32 %v5353_v18, %v4867_v47 }
 0x7d3   :  { %v7322_v15 = vmax.f32 %v7066_v51, 0.0  ;;  %v15331_v51 = vld [vmem:[#allocation60_spill] sm:$0xff] }
 0x7d4   :  { %v5355_v38 = vpop.f32.mrf.mxu3 }
 0x7d5   :  { %v12539_v20 = vmul.f32 %v12467_v53, %v7322_v15  ;;  %v3671_v27 = vpop.f32.mrf.mxu1 }
 0x7d6   :  { %v3672_v57 = vadd.f32 %v3671_v27, %v15329_v40  ;;  %v6323_v6 = vpop.f32.mrf.mxu0 }
 0x7d7   :  { %15328 = vst [vmem:[#allocation359_spill] sm:$0xff] %v12539_v20  ;;  %v6807_v4 = vadd.f32 %v6323_v6, %v5837_v35  ;;  %4427 = vmatmul.bf16.gmra.mxu2 %v15330_v59 }
 0x7d8   :  { %v4868_v23 = vadd.f32 %v4385_v2, %v3672_v57 }
 0x7d9   :  { %v7067_v12 = vadd.f32 %v12489_v50, %v6807_v4  ;;  %5397 = vmatmul.bf16.gmra.mxu3 %v15189_v39  ;;  %6362 = vmatmul.bf16.gmra.mxu0 %v15331_v51  ;;  %v15333_v4 = vld [vmem:[#allocation55_spill] sm:$0xff] }
 0x7da   :  { %v4388_v18 = vpop.f32.mrf.mxu2  ;;  %v5838_v37 = vadd.f32 %v5355_v38, %v4868_v23 }
 0x7db   :  { %v7323_v47 = vmax.f32 %v7067_v12, 0.0 }
 0x7dc   :  { %v5358_v15 = vpop.f32.mrf.mxu3 }
 0x7dd   :  { %v12549_v27 = vmul.f32 %v12467_v53, %v7323_v47  ;;  %v3674_v40 = vpop.f32.mrf.mxu1 }
 0x7de   :  { %v3675_v8 = vadd.f32 %v3674_v40, %v15332_v43  ;;  %v6325_v35 = vpop.f32.mrf.mxu0 }
 0x7df   :  { %v6808_v57 = vadd.f32 %v6325_v35, %v5838_v37 }
 0x7e0   :  { %v4869_v6 = vadd.f32 %v4388_v18, %v3675_v8  ;;  %3713 = vmatmul.bf16.gmra.mxu1 %v15333_v4  ;;  %v15336_v8 = vld [vmem:[#allocation82_spill] sm:$0xff]  ;;  %v15339_v4 = vld [vmem:[#allocation291_spill] sm:$0xff] }
 0x7e1   :  { %v7068_v59 = vadd.f32 %v12489_v50, %v6808_v57 }
 0x7e2   :  { %v4390_v39 = vpop.f32.mrf.mxu2  ;;  %v5839_v38 = vadd.f32 %v5358_v15, %v4869_v6 }
 0x7e3   :  { %v7324_v23 = vmax.f32 %v7068_v59, 0.0  ;;  %v15337_v59 = vld [vmem:[#allocation69_spill] sm:$0xff] }
 0x7e4   :  { %v5360_v12 = vpop.f32.mrf.mxu3 }
 0x7e5   :  { %v12557_v47 = vmul.f32 %v12467_v53, %v7324_v23  ;;  %v3676_v20 = vpop.f32.mrf.mxu1 }
 0x7e6   :  { %v3677_v43 = vadd.f32 %v3676_v20, %v15335_v42  ;;  %v6328_v40 = vpop.f32.mrf.mxu0 }
 0x7e7   :  { %15334 = vst [vmem:[#allocation83_spill] sm:$0xff] %v12557_v47  ;;  %v6809_v37 = vadd.f32 %v6328_v40, %v5839_v38  ;;  %4432 = vmatmul.bf16.gmra.mxu2 %v15336_v8 }
 0x7e8   :  { %v4870_v18 = vadd.f32 %v4390_v39, %v3677_v43 }
 0x7e9   :  { %v7069_v35 = vadd.f32 %v12489_v50, %v6809_v37  ;;  %5402 = vmatmul.bf16.gmra.mxu3 %v15199_v45  ;;  %6367 = vmatmul.bf16.gmra.mxu0 %v15337_v59  ;;  %v15340_v37 = vld [vmem:[#allocation73_spill] sm:$0xff] }
 0x7ea   :  { %v4393_v15 = vpop.f32.mrf.mxu2  ;;  %v5840_v57 = vadd.f32 %v5360_v12, %v4870_v18 }
 0x7eb   :  { %v7325_v6 = vmax.f32 %v7069_v35, 0.0 }
 0x7ec   :  { %v5363_v23 = vpop.f32.mrf.mxu3 }
 0x7ed   :  { %v12567_v42 = vmul.f32 %v12467_v53, %v7325_v6  ;;  %v3679_v20 = vpop.f32.mrf.mxu1 }
 0x7ee   :  { %v3680_v2 = vadd.f32 %v3679_v20, %v15339_v4  ;;  %v6330_v38 = vpop.f32.mrf.mxu0 }
 0x7ef   :  { %15338 = vst [vmem:[#allocation364_spill] sm:$0xff] %v12567_v42  ;;  %v6810_v43 = vadd.f32 %v6330_v38, %v5840_v57  ;;  %v15357_v42 = vld [vmem:[#allocation318_spill] sm:$0xff] }
 0x7f0   :  { %v4871_v40 = vadd.f32 %v4393_v15, %v3680_v2  ;;  %3718 = vmatmul.bf16.gmra.mxu1 %v15340_v37  ;;  %v15343_v2 = vld [vmem:[#allocation103_spill] sm:$0xff]  ;;  %v15346_v37 = vld [vmem:[#allocation301_spill] sm:$0xff] }
 0x7f1   :  { %v7070_v8 = vadd.f32 %v12489_v50, %v6810_v43 }
 0x7f2   :  { %v4395_v45 = vpop.f32.mrf.mxu2  ;;  %v5841_v12 = vadd.f32 %v5363_v23, %v4871_v40 }
 0x7f3   :  { %v7326_v18 = vmax.f32 %v7070_v8, 0.0  ;;  %v15344_v8 = vld [vmem:[#allocation79_spill] sm:$0xff] }
 0x7f4   :  { %v5365_v35 = vpop.f32.mrf.mxu3 }
 0x7f5   :  { %v12575_v6 = vmul.f32 %v12467_v53, %v7326_v18  ;;  %v3681_v47 = vpop.f32.mrf.mxu1 }
 0x7f6   :  { %v3682_v4 = vadd.f32 %v3681_v47, %v15342_v26  ;;  %v6333_v20 = vpop.f32.mrf.mxu0 }
 0x7f7   :  { %15341 = vst [vmem:[#allocation367_spill] sm:$0xff] %v12575_v6  ;;  %v6811_v57 = vadd.f32 %v6333_v20, %v5841_v12  ;;  %4437 = vmatmul.bf16.gmra.mxu2 %v15343_v2 }
 0x7f8   :  { %v4872_v15 = vadd.f32 %v4395_v45, %v3682_v4 }
 0x7f9   :  { %v7071_v38 = vadd.f32 %v12489_v50, %v6811_v57  ;;  %5407 = vmatmul.bf16.gmra.mxu3 %v15209_v11  ;;  %6372 = vmatmul.bf16.gmra.mxu0 %v15344_v8  ;;  %v15347_v57 = vld [vmem:[#allocation85_spill] sm:$0xff] }
 0x7fa   :  { %v4398_v23 = vpop.f32.mrf.mxu2  ;;  %v5842_v43 = vadd.f32 %v5365_v35, %v4872_v15 }
 0x7fb   :  { %v7327_v40 = vmax.f32 %v7071_v38, 0.0 }
 0x7fc   :  { %v5368_v18 = vpop.f32.mrf.mxu3 }
 0x7fd   :  { %v12585_v26 = vmul.f32 %v12467_v53, %v7327_v40  ;;  %v3684_v47 = vpop.f32.mrf.mxu1 }
 0x7fe   :  { %v3685_v39 = vadd.f32 %v3684_v47, %v15346_v37  ;;  %v6335_v12 = vpop.f32.mrf.mxu0 }
 0x7ff   :  { %15345 = vst [vmem:[#allocation89_spill] sm:$0xff] %v12585_v26  ;;  %v6812_v4 = vadd.f32 %v6335_v12, %v5842_v43  ;;  %v15365_v26 = vld [vmem:[#allocation328_spill] sm:$0xff] }
 0x800   :  { %v4873_v20 = vadd.f32 %v4398_v23, %v3685_v39  ;;  %3723 = vmatmul.bf16.gmra.mxu1 %v15347_v57  ;;  %v15351_v39 = vld [vmem:[#allocation114_spill] sm:$0xff]  ;;  %v15354_v57 = vld [vmem:[#allocation312_spill] sm:$0xff] }
 0x801   :  { %v7072_v2 = vadd.f32 %v12489_v50, %v6812_v4 }
 0x802   :  { %v4400_v11 = vpop.f32.mrf.mxu2  ;;  %v5843_v35 = vadd.f32 %v5368_v18, %v4873_v20 }
 0x803   :  { %v7328_v15 = vmax.f32 %v7072_v2, 0.0  ;;  %v15352_v2 = vld [vmem:[#allocation91_spill] sm:$0xff] }
 0x804   :  { %v5370_v38 = vpop.f32.mrf.mxu3 }
 0x805   :  { %v12593_v40 = vmul.f32 %v12467_v53, %v7328_v15  ;;  %v3686_v6 = vpop.f32.mrf.mxu1 }
 0x806   :  { %v3687_v37 = vadd.f32 %v3686_v6, %v15349_v31  ;;  %v6338_v47 = vpop.f32.mrf.mxu0 }
 0x807   :  { %15348 = vst [vmem:[#allocation372_spill] sm:$0xff] %v12593_v40  ;;  %v6813_v43 = vadd.f32 %v6338_v47, %v5843_v35  ;;  %4442 = vmatmul.bf16.gmra.mxu2 %v15351_v39 }
 0x808   :  { %v4874_v23 = vadd.f32 %v4400_v11, %v3687_v37 }
 0x809   :  { %v7073_v12 = vadd.f32 %v12489_v50, %v6813_v43  ;;  %5412 = vmatmul.bf16.gmra.mxu3 %v15220_v25  ;;  %6377 = vmatmul.bf16.gmra.mxu0 %v15352_v2  ;;  %v15355_v43 = vld [vmem:[#allocation94_spill] sm:$0xff] }
 0x80a   :  { %v4403_v18 = vpop.f32.mrf.mxu2  ;;  %v5844_v4 = vadd.f32 %v5370_v38, %v4874_v23 }
 0x80b   :  { %v7329_v20 = vmax.f32 %v7073_v12, 0.0 }
 0x80c   :  { %v5373_v15 = vpop.f32.mrf.mxu3 }
 0x80d   :  { %v12603_v31 = vmul.f32 %v12467_v53, %v7329_v20  ;;  %v3689_v6 = vpop.f32.mrf.mxu1 }
 0x80e   :  { %v3690_v45 = vadd.f32 %v3689_v6, %v15354_v57  ;;  %v6340_v35 = vpop.f32.mrf.mxu0 }
 0x80f   :  { %15353 = vst [vmem:[#allocation375_spill] sm:$0xff] %v12603_v31  ;;  %v6814_v37 = vadd.f32 %v6340_v35, %v5844_v4  ;;  %v15373_v31 = vld [vmem:[#allocation336_spill] sm:$0xff] }
 0x810   :  { %v4875_v47 = vadd.f32 %v4403_v18, %v3690_v45  ;;  %3728 = vmatmul.bf16.gmra.mxu1 %v15355_v43  ;;  %v15359_v45 = vld [vmem:[#allocation124_spill] sm:$0xff] }
 0x811   :  { %v7074_v39 = vadd.f32 %v12489_v50, %v6814_v37 }
 0x812   :  { %v4405_v25 = vpop.f32.mrf.mxu2  ;;  %v5845_v38 = vadd.f32 %v5373_v15, %v4875_v47 }
 0x813   :  { %v7330_v23 = vmax.f32 %v7074_v39, 0.0  ;;  %v15360_v39 = vld [vmem:[#allocation97_spill] sm:$0xff] }
 0x814   :  { %v5375_v12 = vpop.f32.mrf.mxu3 }
 0x815   :  { %v12611_v20 = vmul.f32 %v12467_v53, %v7330_v23  ;;  %v3691_v40 = vpop.f32.mrf.mxu1  ;;  %v15362_v23 = vld [vmem:[#allocation322_spill] sm:$0xff] }
 0x816   :  { %v3692_v57 = vadd.f32 %v3691_v40, %v15357_v42  ;;  %v6343_v6 = vpop.f32.mrf.mxu0 }
 0x817   :  { %15356 = vst [vmem:[#allocation95_spill] sm:$0xff] %v12611_v20  ;;  %v6815_v4 = vadd.f32 %v6343_v6, %v5845_v38  ;;  %4447 = vmatmul.bf16.gmra.mxu2 %v15359_v45 }
 0x818   :  { %v4876_v18 = vadd.f32 %v4405_v25, %v3692_v57 }
 0x819   :  { %v7075_v35 = vadd.f32 %v12489_v50, %v6815_v4  ;;  %5417 = vmatmul.bf16.gmra.mxu3 %v15231_v22  ;;  %6382 = vmatmul.bf16.gmra.mxu0 %v15360_v39  ;;  %v15363_v4 = vld [vmem:[#allocation106_spill] sm:$0xff] }
 0x81a   :  { %v4408_v15 = vpop.f32.mrf.mxu2  ;;  %v5846_v37 = vadd.f32 %v5375_v12, %v4876_v18 }
 0x81b   :  { %v7331_v47 = vmax.f32 %v7075_v35, 0.0 }
 0x81c   :  { %v5378_v43 = vpop.f32.mrf.mxu3 }
 0x81d   :  { %v12621_v42 = vmul.f32 %v12467_v53, %v7331_v47  ;;  %v3694_v40 = vpop.f32.mrf.mxu1 }
 0x81e   :  { %v3695_v11 = vadd.f32 %v3694_v40, %v15362_v23  ;;  %v6345_v38 = vpop.f32.mrf.mxu0 }
 0x81f   :  { %15361 = vst [vmem:[#allocation380_spill] sm:$0xff] %v12621_v42  ;;  %v6816_v57 = vadd.f32 %v6345_v38, %v5846_v37  ;;  %v15381_v42 = vld [vmem:[#allocation344_spill] sm:$0xff] }
 0x820   :  { %v4877_v6 = vadd.f32 %v4408_v15, %v3695_v11  ;;  %3733 = vmatmul.bf16.gmra.mxu1 %v15363_v4  ;;  %v15367_v11 = vld [vmem:[#allocation136_spill] sm:$0xff] }
 0x821   :  { %v7076_v45 = vadd.f32 %v12489_v50, %v6816_v57 }
 0x822   :  { %v4410_v22 = vpop.f32.mrf.mxu2  ;;  %v5847_v12 = vadd.f32 %v5378_v43, %v4877_v6 }
 0x823   :  { %v7332_v18 = vmax.f32 %v7076_v45, 0.0  ;;  %v15368_v45 = vld [vmem:[#allocation118_spill] sm:$0xff] }
 0x824   :  { %v5380_v35 = vpop.f32.mrf.mxu3 }
 0x825   :  { %v12629_v47 = vmul.f32 %v12467_v53, %v7332_v18  ;;  %v3696_v20 = vpop.f32.mrf.mxu1  ;;  %v15370_v18 = vld [vmem:[#allocation331_spill] sm:$0xff] }
 0x826   :  { %v3697_v40 = vadd.f32 %v3696_v20, %v15365_v26  ;;  %v6348_v23 = vpop.f32.mrf.mxu0 }
 0x827   :  { %15364 = vst [vmem:[#allocation101_spill] sm:$0xff] %v12629_v47  ;;  %v6817_v37 = vadd.f32 %v6348_v23, %v5847_v12  ;;  %4452 = vmatmul.bf16.gmra.mxu2 %v15367_v11 }
 0x828   :  { %v4878_v15 = vadd.f32 %v4410_v22, %v3697_v40 }
 0x829   :  { %v7077_v38 = vadd.f32 %v12489_v50, %v6817_v37  ;;  %5422 = vmatmul.bf16.gmra.mxu3 %v15242_v48  ;;  %6387 = vmatmul.bf16.gmra.mxu0 %v15368_v45  ;;  %v15371_v37 = vld [vmem:[#allocation112_spill] sm:$0xff] }
 0x82a   :  { %v4413_v43 = vpop.f32.mrf.mxu2  ;;  %v5848_v57 = vadd.f32 %v5380_v35, %v4878_v15 }
 0x82b   :  { %v7333_v6 = vmax.f32 %v7077_v38, 0.0 }
 0x82c   :  { %v5383_v4 = vpop.f32.mrf.mxu3 }
 0x82d   :  { %v12639_v26 = vmul.f32 %v12467_v53, %v7333_v6  ;;  %v3699_v20 = vpop.f32.mrf.mxu1 }
 0x82e   :  { %v3700_v25 = vadd.f32 %v3699_v20, %v15370_v18  ;;  %v6350_v12 = vpop.f32.mrf.mxu0 }
 0x82f   :  { %15369 = vst [vmem:[#allocation384_spill] sm:$0xff] %v12639_v26  ;;  %v6818_v40 = vadd.f32 %v6350_v12, %v5848_v57  ;;  %v15389_v26 = vld [vmem:[#allocation352_spill] sm:$0xff] }
 0x830   :  { %v4879_v23 = vadd.f32 %v4413_v43, %v3700_v25  ;;  %3738 = vmatmul.bf16.gmra.mxu1 %v15371_v37  ;;  %v15375_v25 = vld [vmem:[#allocation142_spill] sm:$0xff] }
 0x831   :  { %v7078_v11 = vadd.f32 %v12489_v50, %v6818_v40 }
 0x832   :  { %v4415_v48 = vpop.f32.mrf.mxu2  ;;  %v5849_v35 = vadd.f32 %v5383_v4, %v4879_v23 }
 0x833   :  { %v7334_v15 = vmax.f32 %v7078_v11, 0.0  ;;  %v15376_v11 = vld [vmem:[#allocation129_spill] sm:$0xff] }
 0x834   :  { %v5385_v38 = vpop.f32.mrf.mxu3 }
 0x835   :  { %v12647_v6 = vmul.f32 %v12467_v53, %v7334_v15  ;;  %v3701_v47 = vpop.f32.mrf.mxu1  ;;  %v15378_v15 = vld [vmem:[#allocation339_spill] sm:$0xff] }
 0x836   :  { %v3702_v20 = vadd.f32 %v3701_v47, %v15373_v31  ;;  %v6353_v18 = vpop.f32.mrf.mxu0 }
 0x837   :  { %15372 = vst [vmem:[#allocation385_spill] sm:$0xff] %v12647_v6  ;;  %v6819_v57 = vadd.f32 %v6353_v18, %v5849_v35  ;;  %4457 = vmatmul.bf16.gmra.mxu2 %v15375_v25 }
 0x838   :  { %v4880_v43 = vadd.f32 %v4415_v48, %v3702_v20 }
 0x839   :  { %v7079_v12 = vadd.f32 %v12489_v50, %v6819_v57  ;;  %5427 = vmatmul.bf16.gmra.mxu3 %v15253_v34  ;;  %6392 = vmatmul.bf16.gmra.mxu0 %v15376_v11  ;;  %v15379_v57 = vld [vmem:[#allocation133_spill] sm:$0xff] }
 0x83a   :  { %v4418_v4 = vpop.f32.mrf.mxu2  ;;  %v5850_v40 = vadd.f32 %v5385_v38, %v4880_v43 }
 0x83b   :  { %v7335_v23 = vmax.f32 %v7079_v12, 0.0 }
 0x83c   :  { %v5388_v37 = vpop.f32.mrf.mxu3 }
 0x83d   :  { %v12657_v31 = vmul.f32 %v12467_v53, %v7335_v23  ;;  %v3704_v47 = vpop.f32.mrf.mxu1 }
 0x83e   :  { %v3705_v22 = vadd.f32 %v3704_v47, %v15378_v15  ;;  %v6355_v35 = vpop.f32.mrf.mxu0 }
 0x83f   :  { %15377 = vst [vmem:[#allocation52_spill] sm:$0xff] %v12657_v31  ;;  %v6820_v20 = vadd.f32 %v6355_v35, %v5850_v40 }
 0x840   :  { %v4881_v18 = vadd.f32 %v4418_v4, %v3705_v22  ;;  %3743 = vmatmul.bf16.gmra.mxu1 %v15379_v57  ;;  %v15383_v22 = vld [vmem:[#allocation163_spill] sm:$0xff] }
 0x841   :  { %v7080_v25 = vadd.f32 %v12489_v50, %v6820_v20 }
 0x842   :  { %v4420_v34 = vpop.f32.mrf.mxu2  ;;  %v5851_v38 = vadd.f32 %v5388_v37, %v4881_v18 }
 0x843   :  { %v7336_v43 = vmax.f32 %v7080_v25, 0.0  ;;  %v15384_v25 = vld [vmem:[#allocation139_spill] sm:$0xff] }
 0x844   :  { %v5390_v12 = vpop.f32.mrf.mxu3 }
 0x845   :  { %v12665_v23 = vmul.f32 %v12467_v53, %v7336_v43  ;;  %v3706_v6 = vpop.f32.mrf.mxu1  ;;  %v15386_v43 = vld [vmem:[#allocation347_spill] sm:$0xff] }
 0x846   :  { %v3707_v47 = vadd.f32 %v3706_v6, %v15381_v42  ;;  %v6358_v15 = vpop.f32.mrf.mxu0 }
 0x847   :  { %15380 = vst [vmem:[#allocation56_spill] sm:$0xff] %v12665_v23  ;;  %v6821_v40 = vadd.f32 %v6358_v15, %v5851_v38  ;;  %4462 = vmatmul.bf16.gmra.mxu2 %v15383_v22 }
 0x848   :  { %v4882_v4 = vadd.f32 %v4420_v34, %v3707_v47 }
 0x849   :  { %v7081_v35 = vadd.f32 %v12489_v50, %v6821_v40  ;;  %5432 = vmatmul.bf16.gmra.mxu3 %v15265_v54  ;;  %6397 = vmatmul.bf16.gmra.mxu0 %v15384_v25  ;;  %v15387_v40 = vld [vmem:[#allocation144_spill] sm:$0xff] }
 0x84a   :  { %v4423_v37 = vpop.f32.mrf.mxu2  ;;  %v5852_v20 = vadd.f32 %v5390_v12, %v4882_v4 }
 0x84b   :  { %v7337_v18 = vmax.f32 %v7081_v35, 0.0 }
 0x84c   :  { %v5393_v57 = vpop.f32.mrf.mxu3 }
 0x84d   :  { %v12675_v42 = vmul.f32 %v12467_v53, %v7337_v18  ;;  %v3709_v6 = vpop.f32.mrf.mxu1 }
 0x84e   :  { %v3710_v48 = vadd.f32 %v3709_v6, %v15386_v43  ;;  %v6360_v38 = vpop.f32.mrf.mxu0 }
 0x84f   :  { %15385 = vst [vmem:[#allocation107_spill] sm:$0xff] %v12675_v42  ;;  %v6822_v47 = vadd.f32 %v6360_v38, %v5852_v20  ;;  %v15395_v42 = vld [vmem:[#allocation355_spill] sm:$0xff] }
 0x850   :  { %v4883_v15 = vadd.f32 %v4423_v37, %v3710_v48  ;;  %3748 = vmatmul.bf16.gmra.mxu1 %v15387_v40  ;;  %v15391_v48 = vld [vmem:[#allocation174_spill] sm:$0xff] }
 0x851   :  { %v7082_v22 = vadd.f32 %v12489_v50, %v6822_v47  ;;  %v15392_v47 = vld [vmem:[#allocation24_spill] sm:$0xff] }
 0x852   :  { %v4425_v54 = vpop.f32.mrf.mxu2  ;;  %v5853_v12 = vadd.f32 %v5393_v57, %v4883_v15 }
 0x853   :  { %v7338_v4 = vmax.f32 %v7082_v22, 0.0  ;;  %v15393_v22 = vld [vmem:[#allocation151_spill] sm:$0xff] }
 0x854   :  { %v5395_v35 = vpop.f32.mrf.mxu3 }
 0x855   :  { %v12683_v18 = vmul.f32 %v12467_v53, %v7338_v4  ;;  %v3711_v23 = vpop.f32.mrf.mxu1 }
 0x856   :  { %v3712_v6 = vadd.f32 %v3711_v23, %v15389_v26  ;;  %v6363_v43 = vpop.f32.mrf.mxu0 }
 0x857   :  { %15388 = vst [vmem:[#allocation70_spill] sm:$0xff] %v12683_v18  ;;  %v6823_v20 = vadd.f32 %v6363_v43, %v5853_v12  ;;  %4467 = vmatmul.bf16.gmra.mxu2 %v15391_v48  ;;  %v15397_v48 = vld [vmem:[#allocation154_spill] sm:$0xff]  ;;  %v15408_v43 = vld [vmem:[#allocation368_spill] sm:$0xff] }
 0x858   :  { %v4884_v37 = vadd.f32 %v4425_v54, %v3712_v6 }
 0x859   :  { %v7083_v38 = vadd.f32 %v12489_v50, %v6823_v20  ;;  %5437 = vmatmul.bf16.gmra.mxu3 %v15392_v47  ;;  %6402 = vmatmul.bf16.gmra.mxu0 %v15393_v22 }
 0x85a   :  { %v4428_v57 = vpop.f32.mrf.mxu2  ;;  %v5854_v15 = vadd.f32 %v5395_v35, %v4884_v37 }
 0x85b   :  { %v7339_v40 = vmax.f32 %v7083_v38, 0.0 }
 0x85c   :  { %v5398_v4 = vpop.f32.mrf.mxu3 }
 0x85d   :  { %v12693_v26 = vmul.f32 %v12467_v53, %v7339_v40  ;;  %v3714_v23 = vpop.f32.mrf.mxu1 }
 0x85e   :  { %v3715_v34 = vadd.f32 %v3714_v23, %v15395_v42  ;;  %v6365_v12 = vpop.f32.mrf.mxu0 }
 0x85f   :  { %15394 = vst [vmem:[#allocation74_spill] sm:$0xff] %v12693_v26  ;;  %v6824_v6 = vadd.f32 %v6365_v12, %v5854_v15  ;;  %v15402_v12 = vld [vmem:[#allocation26_spill] sm:$0xff]  ;;  %v15404_v26 = vld [vmem:[#allocation363_spill] sm:$0xff] }
 0x860   :  { %v4885_v20 = vadd.f32 %v4428_v57, %v3715_v34  ;;  %3753 = vmatmul.bf16.gmra.mxu1 %v15397_v48  ;;  %v15401_v34 = vld [vmem:[#allocation184_spill] sm:$0xff] }
 0x861   :  { %v7084_v47 = vadd.f32 %v12489_v50, %v6824_v6 }
 0x862   :  { %v4430_v18 = vpop.f32.mrf.mxu2  ;;  %v5855_v35 = vadd.f32 %v5398_v4, %v4885_v20 }
 0x863   :  { %v7340_v37 = vmax.f32 %v7084_v47, 0.0  ;;  %v15403_v47 = vld [vmem:[#allocation157_spill] sm:$0xff] }
 0x864   :  { %v5400_v38 = vpop.f32.mrf.mxu3 }
 0x865   :  { %v12701_v40 = vmul.f32 %v12467_v53, %v7340_v37  ;;  %v3716_v31 = vpop.f32.mrf.mxu1 }
 0x866   :  { %v3717_v42 = vadd.f32 %v3716_v31, %v15399_v5  ;;  %v6368_v23 = vpop.f32.mrf.mxu0 }
 0x867   :  { %15398 = vst [vmem:[#allocation111_spill] sm:$0xff] %v12701_v40  ;;  %v6825_v15 = vadd.f32 %v6368_v23, %v5855_v35  ;;  %4472 = vmatmul.bf16.gmra.mxu2 %v15401_v34  ;;  %v15405_v23 = vld [vmem:[#allocation64_spill] sm:$0xff]  ;;  %v15406_v34 = vld [vmem:[#allocation166_spill] sm:$0xff] }
 0x868   :  { %v4886_v48 = vadd.f32 %v4430_v18, %v3717_v42 }
 0x869   :  { %v7085_v57 = vadd.f32 %v12489_v50, %v6825_v15  ;;  %5442 = vmatmul.bf16.gmra.mxu3 %v15402_v12  ;;  %6407 = vmatmul.bf16.gmra.mxu0 %v15403_v47  ;;  %v15415_v47 = vld [vmem:[#allocation376_spill] sm:$0xff] }
 0x86a   :  { %v4433_v4 = vpop.f32.mrf.mxu2  ;;  %v5856_v6 = vadd.f32 %v5400_v38, %v4886_v48 }
 0x86b   :  { %v7341_v20 = vmax.f32 %v7085_v57, 0.0 }
 0x86c   :  { %v5403_v37 = vpop.f32.mrf.mxu3 }
 0x86d   :  { %v12711_v5 = vmul.f32 %v12467_v53, %v7341_v20  ;;  %v3719_v31 = vpop.f32.mrf.mxu1 }
 0x86e   :  { %v3720_v54 = vadd.f32 %v3719_v31, %v15404_v26  ;;  %v6370_v35 = vpop.f32.mrf.mxu0 }
 0x86f   :  { %v6826_v42 = vadd.f32 %v6370_v35, %v5856_v6 }
 0x870   :  { %v4887_v15 = vadd.f32 %v4433_v4, %v3720_v54  ;;  %3758 = vmatmul.bf16.gmra.mxu1 %v15406_v34  ;;  %v15410_v54 = vld [vmem:[#allocation197_spill] sm:$0xff] }
 0x871   :  { %v7086_v12 = vadd.f32 %v12489_v50, %v6826_v42 }
 0x872   :  { %v4435_v40 = vpop.f32.mrf.mxu2  ;;  %v5857_v38 = vadd.f32 %v5403_v37, %v4887_v15 }
 0x873   :  { %v7342_v48 = vmax.f32 %v7086_v12, 0.0  ;;  %v15411_v12 = vld [vmem:[#allocation178_spill] sm:$0xff] }
 0x874   :  { %v5405_v57 = vpop.f32.mrf.mxu3 }
 0x875   :  { %v12719_v20 = vmul.f32 %v12467_v53, %v7342_v48  ;;  %v3721_v22 = vpop.f32.mrf.mxu1  ;;  %v15412_v48 = vld [vmem:[#allocation371_spill] sm:$0xff] }
 0x876   :  { %v3722_v26 = vadd.f32 %v3721_v22, %v15408_v43  ;;  %v6373_v31 = vpop.f32.mrf.mxu0 }
 0x877   :  { %15407 = vst [vmem:[#allocation80_spill] sm:$0xff] %v12719_v20  ;;  %v6827_v6 = vadd.f32 %v6373_v31, %v5857_v38  ;;  %4477 = vmatmul.bf16.gmra.mxu2 %v15410_v54 }
 0x878   :  { %v4888_v34 = vadd.f32 %v4435_v40, %v3722_v26 }
 0x879   :  { %v7087_v4 = vadd.f32 %v12489_v50, %v6827_v6  ;;  %5447 = vmatmul.bf16.gmra.mxu3 %v15303_v1  ;;  %6412 = vmatmul.bf16.gmra.mxu0 %v15411_v12  ;;  %v15413_v6 = vld [vmem:[#allocation172_spill] sm:$0xff] }
 0x87a   :  { %v4438_v37 = vpop.f32.mrf.mxu2  ;;  %v5858_v35 = vadd.f32 %v5405_v57, %v4888_v34 }
 0x87b   :  { %v7343_v42 = vmax.f32 %v7087_v4, 0.0 }
 0x87c   :  { %v5408_v15 = vpop.f32.mrf.mxu3 }
 0x87d   :  { %v12729_v22 = vmul.f32 %v12467_v53, %v7343_v42  ;;  %v3724_v43 = vpop.f32.mrf.mxu1 }
 0x87e   :  { %v3725_v18 = vadd.f32 %v3724_v43, %v15412_v48  ;;  %v6375_v38 = vpop.f32.mrf.mxu0 }
 0x87f   :  { %v6828_v26 = vadd.f32 %v6375_v38, %v5858_v35 }
 0x880   :  { %v4889_v31 = vadd.f32 %v4438_v37, %v3725_v18  ;;  %3763 = vmatmul.bf16.gmra.mxu1 %v15413_v6  ;;  %v15417_v6 = vld [vmem:[#allocation379_spill] sm:$0xff] }
 0x881   :  { %v7088_v54 = vadd.f32 %v12489_v50, %v6828_v26 }
 0x882   :  { %v4440_v1 = vpop.f32.mrf.mxu2  ;;  %v5859_v57 = vadd.f32 %v5408_v15, %v4889_v31 }
 0x883   :  { %v7344_v34 = vmax.f32 %v7088_v54, 0.0  ;;  %v15416_v54 = vld [vmem:[#allocation189_spill] sm:$0xff] }
 0x884   :  { %v5410_v4 = vpop.f32.mrf.mxu3 }
 0x885   :  { %v12737_v42 = vmul.f32 %v12467_v53, %v7344_v34  ;;  %v3726_v20 = vpop.f32.mrf.mxu1 }
 0x886   :  { %v3727_v43 = vadd.f32 %v3726_v20, %v15415_v47  ;;  %v6378_v48 = vpop.f32.mrf.mxu0 }
 0x887   :  { %15414 = vst [vmem:[#allocation86_spill] sm:$0xff] %v12737_v42  ;;  %v6829_v35 = vadd.f32 %v6378_v48, %v5859_v57  ;;  %4482 = vmatmul.bf16.gmra.mxu2 %v15146_v3  ;;  %v15420_v42 = vld [vmem:[#allocation383_spill] sm:$0xff] }
 0x888   :  { %v4890_v18 = vadd.f32 %v4440_v1, %v3727_v43  ;;  %v15424_v1 = vld [vmem:[#allocation207_spill] sm:$0xff] }
 0x889   :  { %v7089_v37 = vadd.f32 %v12489_v50, %v6829_v35  ;;  %5452 = vmatmul.bf16.gmra.mxu3 %v15311_v33  ;;  %6417 = vmatmul.bf16.gmra.mxu0 %v15416_v54  ;;  %v15418_v35 = vld [vmem:[#allocation193_spill] sm:$0xff] }
 0x88a   :  { %v4443_v15 = vpop.f32.mrf.mxu2  ;;  %v5860_v38 = vadd.f32 %v5410_v4, %v4890_v18 }
 0x88b   :  { %v7345_v26 = vmax.f32 %v7089_v37, 0.0 }
 0x88c   :  { %v5413_v31 = vpop.f32.mrf.mxu3 }
 0x88d   :  { %v12747_v47 = vmul.f32 %v12467_v53, %v7345_v26  ;;  %v3729_v20 = vpop.f32.mrf.mxu1 }
 0x88e   :  { %v3730_v34 = vadd.f32 %v3729_v20, %v15417_v6  ;;  %v6380_v57 = vpop.f32.mrf.mxu0 }
 0x88f   :  { %v6830_v43 = vadd.f32 %v6380_v57, %v5860_v38 }
 0x890   :  { %v4891_v48 = vadd.f32 %v4443_v15, %v3730_v34  ;;  %3768 = vmatmul.bf16.gmra.mxu1 %v15418_v35  ;;  %v15422_v35 = vld [vmem:[#allocation72_spill] sm:$0xff] }
 0x891   :  { %v7090_v40 = vadd.f32 %v12489_v50, %v6830_v43 }
 0x892   :  { %v4445_v3 = vpop.f32.mrf.mxu2  ;;  %v5861_v4 = vadd.f32 %v5413_v31, %v4891_v48 }
 0x893   :  { %v7346_v18 = vmax.f32 %v7090_v40, 0.0  ;;  %v12765_v40 = vld [vmem:[%s14093_s3 + $0x4] ss:$0 sm:$0xff] }
 0x894   :  { %v5415_v37 = vpop.f32.mrf.mxu3 }
 0x895   :  { %v12755_v26 = vmul.f32 %v12467_v53, %v7346_v18  ;;  %v3731_v33 = vpop.f32.mrf.mxu1  ;;  %v15421_v53 = vld [vmem:[#allocation201_spill] sm:$0xff]  ;;  %v15423_v18 = vmax.f32 %v12151_v9, %v12472_v56  ;;  %v15426_v9 = vmax.f32 %v12160_v49, %v12480_v14  ;;  %v15428_v49 = vld [vmem:[#allocation78_spill] sm:$0xff] }
 0x896   :  { %v3732_v20 = vadd.f32 %v3731_v33, %v15420_v42  ;;  %v6383_v6 = vpop.f32.mrf.mxu0 }
 0x897   :  { %15419 = vst [vmem:[#allocation117_spill] sm:$0xff] %v12755_v26  ;;  %v6831_v38 = vadd.f32 %v6383_v6, %v5861_v4  ;;  %4487 = vmatmul.bf16.gmra.mxu2 %v15154_v46 }
 0x898   :  { %v4892_v15 = vadd.f32 %v4445_v3, %v3732_v20 }
 0x899   :  { %v7091_v34 = vadd.f32 %v12489_v50, %v6831_v38  ;;  %5457 = vmatmul.bf16.gmra.mxu3 %v15315_v63  ;;  %6422 = vmatmul.bf16.gmra.mxu0 %v15421_v53 }
 0x89a   :  { %v4448_v33 = vpop.f32.mrf.mxu2  ;;  %v5862_v42 = vadd.f32 %v5415_v37, %v4892_v15 }
 0x89b   :  { %v7347_v31 = vmax.f32 %v7091_v34, 0.0 }
 0x89c   :  { %v5418_v57 = vpop.f32.mrf.mxu3 }
 0x89d   :  { %v7635_v43 = vmul.f32 %v12765_v40, %v7347_v31  ;;  %v3734_v48 = vpop.f32.mrf.mxu1 }
 0x89e   :  { %v3735_v3 = vadd.f32 %v3734_v48, %v15422_v35  ;;  %v6385_v4 = vpop.f32.mrf.mxu0  ;;  %v15425_v48 = vld [vmem:[#allocation75_spill] sm:$0xff] }
 0x89f   :  { %v12774_v20 = vmax.f32 %v15423_v18, %v7635_v43  ;;  %v6832_v6 = vadd.f32 %v6385_v4, %v5862_v42 }
 0x8a0   :  { %v4893_v38 = vadd.f32 %v4448_v33, %v3735_v3  ;;  %3773 = vmatmul.bf16.gmra.mxu1 %v15424_v1 }
 0x8a1   :  { %v7092_v46 = vadd.f32 %v12489_v50, %v6832_v6 }
 0x8a2   :  { %v4450_v37 = vpop.f32.mrf.mxu2  ;;  %v5863_v15 = vadd.f32 %v5418_v57, %v4893_v38 }
 0x8a3   :  { %v7348_v34 = vmax.f32 %v7092_v46, 0.0  ;;  %v15427_v46 = vld [vmem:[#allocation216_spill] sm:$0xff] }
 0x8a4   :  { %v5420_v63 = vpop.f32.mrf.mxu3 }
 0x8a5   :  { %v7636_v31 = vmul.f32 %v12765_v40, %v7348_v34  ;;  %v3736_v26 = vpop.f32.mrf.mxu1  ;;  %v15430_v34 = vld [vmem:[#allocation221_spill] sm:$0xff] }
 0x8a6   :  { %v3737_v35 = vadd.f32 %v3736_v26, %v15425_v48  ;;  %v6388_v7 = vpop.f32.mrf.mxu0 }
 0x8a7   :  { %v12783_v56 = vmax.f32 %v15426_v9, %v7636_v31  ;;  %v6833_v33 = vadd.f32 %v6388_v7, %v5863_v15  ;;  %4492 = vmatmul.bf16.gmra.mxu2 %v15162_v61  ;;  %v15429_v7 = vmax.f32 %v12171_v0, %v12495_v10  ;;  %v15432_v0 = vld [vmem:[#allocation68_spill] sm:$0xff]  ;;  %v15458_v61 = vld [vmem:[#allocation306_spill] sm:$0xff] }
 0x8a8   :  { %v4894_v1 = vadd.f32 %v4450_v37, %v3737_v35  ;;  %v15433_v10 = vmax.f32 %v12180_v60, %v15432_v0  ;;  %v15436_v60 = vld [vmem:[#allocation100_spill] sm:$0xff] }
 0x8a9   :  { %v7093_v42 = vadd.f32 %v12489_v50, %v6833_v33  ;;  %5462 = vmatmul.bf16.gmra.mxu3 %v15320_v44  ;;  %6427 = vmatmul.bf16.gmra.mxu0 %v15427_v46 }
 0x8aa   :  { %v4453_v57 = vpop.f32.mrf.mxu2  ;;  %v5864_v43 = vadd.f32 %v5420_v63, %v4894_v1 }
 0x8ab   :  { %v7349_v3 = vmax.f32 %v7093_v42, 0.0  ;;  %v15431_v42 = vld [vmem:[#allocation84_spill] sm:$0xff] }
 0x8ac   :  { %v5423_v26 = vpop.f32.mrf.mxu3 }
 0x8ad   :  { %v7637_v4 = vmul.f32 %v12765_v40, %v7349_v3  ;;  %v3739_v18 = vpop.f32.mrf.mxu1 }
 0x8ae   :  { %v3740_v14 = vadd.f32 %v3739_v18, %v15428_v49  ;;  %v6390_v6 = vpop.f32.mrf.mxu0 }
 0x8af   :  { %v12794_v38 = vmax.f32 %v15429_v7, %v7637_v4  ;;  %v6834_v37 = vadd.f32 %v6390_v6, %v5864_v43  ;;  %v15434_v43 = vld [vmem:[#allocation263_spill] sm:$0xff] }
 0x8b0   :  { %v4895_v15 = vadd.f32 %v4453_v57, %v3740_v14  ;;  %3778 = vmatmul.bf16.gmra.mxu1 %v15430_v34 }
 0x8b1   :  { %v7094_v31 = vadd.f32 %v12489_v50, %v6834_v37 }
 0x8b2   :  { %v4455_v63 = vpop.f32.mrf.mxu2  ;;  %v5865_v48 = vadd.f32 %v5423_v26, %v4895_v15  ;;  %v15435_v26 = vld [vmem:[#allocation224_spill] sm:$0xff] }
 0x8b3   :  { %v7350_v35 = vmax.f32 %v7094_v31, 0.0 }
 0x8b4   :  { %v5425_v9 = vpop.f32.mrf.mxu3 }
 0x8b5   :  { %v7638_v33 = vmul.f32 %v12765_v40, %v7350_v35  ;;  %v3741_v1 = vpop.f32.mrf.mxu1 }
 0x8b6   :  { %v3742_v3 = vadd.f32 %v3741_v1, %v15431_v42  ;;  %v6393_v18 = vpop.f32.mrf.mxu0 }
 0x8b7   :  { %v12803_v4 = vmax.f32 %v15433_v10, %v7638_v33  ;;  %v6835_v57 = vadd.f32 %v6393_v18, %v5865_v48  ;;  %4497 = vmatmul.bf16.gmra.mxu2 %v15434_v43  ;;  %v15437_v48 = vmax.f32 %v12191_v52, %v12513_v28  ;;  %v15440_v52 = vld [vmem:[#allocation356_spill] sm:$0xff] }
 0x8b8   :  { %v4896_v49 = vadd.f32 %v4455_v63, %v3742_v3  ;;  %v15438_v3 = vld [vmem:[#allocation237_spill] sm:$0xff]  ;;  %v15441_v28 = vmax.f32 %v12200_v30, %v15440_v52  ;;  %v15444_v30 = vld [vmem:[#allocation110_spill] sm:$0xff] }
 0x8b9   :  { %v7095_v14 = vadd.f32 %v12489_v50, %v6835_v57  ;;  %5467 = vmatmul.bf16.gmra.mxu3 %v15325_v19  ;;  %6432 = vmatmul.bf16.gmra.mxu0 %v15435_v26 }
 0x8ba   :  { %v4458_v6 = vpop.f32.mrf.mxu2  ;;  %v5866_v7 = vadd.f32 %v5425_v9, %v4896_v49 }
 0x8bb   :  { %v7351_v37 = vmax.f32 %v7095_v14, 0.0 }
 0x8bc   :  { %v5428_v15 = vpop.f32.mrf.mxu3 }
 0x8bd   :  { %v7639_v34 = vmul.f32 %v12765_v40, %v7351_v37  ;;  %v3744_v31 = vpop.f32.mrf.mxu1  ;;  %v15439_v37 = vld [vmem:[#allocation104_spill] sm:$0xff] }
 0x8be   :  { %v3745_v35 = vadd.f32 %v3744_v31, %v15436_v60  ;;  %v6395_v33 = vpop.f32.mrf.mxu0 }
 0x8bf   :  { %v12814_v63 = vmax.f32 %v15437_v48, %v7639_v34  ;;  %v6836_v1 = vadd.f32 %v6395_v33, %v5866_v7  ;;  %v15442_v7 = vld [vmem:[#allocation279_spill] sm:$0xff] }
 0x8c0   :  { %v4897_v42 = vadd.f32 %v4458_v6, %v3745_v35  ;;  %3783 = vmatmul.bf16.gmra.mxu1 %v15438_v3 }
 0x8c1   :  { %v7096_v18 = vadd.f32 %v12489_v50, %v6836_v1 }
 0x8c2   :  { %v4460_v9 = vpop.f32.mrf.mxu2  ;;  %v5867_v0 = vadd.f32 %v5428_v15, %v4897_v42  ;;  %v15443_v15 = vld [vmem:[#allocation253_spill] sm:$0xff] }
 0x8c3   :  { %v7352_v10 = vmax.f32 %v7096_v18, 0.0 }
 0x8c4   :  { %v5430_v57 = vpop.f32.mrf.mxu3 }
 0x8c5   :  { %v7640_v49 = vmul.f32 %v12765_v40, %v7352_v10  ;;  %v3746_v14 = vpop.f32.mrf.mxu1 }
 0x8c6   :  { %v3747_v31 = vadd.f32 %v3746_v14, %v15439_v37  ;;  %v6398_v60 = vpop.f32.mrf.mxu0 }
 0x8c7   :  { %v12823_v34 = vmax.f32 %v15441_v28, %v7640_v49  ;;  %v6837_v6 = vadd.f32 %v6398_v60, %v5867_v0  ;;  %4502 = vmatmul.bf16.gmra.mxu2 %v15442_v7  ;;  %v15445_v0 = vmax.f32 %v12211_v13, %v12531_v21  ;;  %v15447_v21 = vld [vmem:[#allocation116_spill] sm:$0xff] }
 0x8c8   :  { %v4898_v35 = vadd.f32 %v4460_v9, %v3747_v31  ;;  %v15446_v31 = vld [vmem:[#allocation245_spill] sm:$0xff] }
 0x8c9   :  { %v7097_v33 = vadd.f32 %v12489_v50, %v6837_v6  ;;  %5472 = vmatmul.bf16.gmra.mxu3 %v15331_v51  ;;  %6437 = vmatmul.bf16.gmra.mxu0 %v15443_v15 }
 0x8ca   :  { %v4463_v48 = vpop.f32.mrf.mxu2  ;;  %v5868_v1 = vadd.f32 %v5430_v57, %v4898_v35  ;;  %v12840_v57 = vld [vmem:[%s14092_s2] ss:$0 sm:$0xff] }
 0x8cb   :  { %v7353_v42 = vmax.f32 %v7097_v33, 0.0 }
 0x8cc   :  { %v5433_v3 = vpop.f32.mrf.mxu3 }
 0x8cd   :  { %v7641_v18 = vmul.f32 %v12765_v40, %v7353_v42  ;;  %v3749_v10 = vpop.f32.mrf.mxu1 }
 0x8ce   :  { %v3750_v49 = vadd.f32 %v3749_v10, %v15444_v30  ;;  %v6400_v14 = vpop.f32.mrf.mxu0 }
 0x8cf   :  { %v12834_v9 = vmax.f32 %v15445_v0, %v7641_v18  ;;  %v6838_v50 = vadd.f32 %v6400_v14, %v5868_v1  ;;  %v15449_v18 = vld [vmem:[#allocation359_spill] sm:$0xff] }
 0x8d0   :  { %v4899_v37 = vadd.f32 %v4463_v48, %v3750_v49  ;;  %3788 = vmatmul.bf16.gmra.mxu1 %v15446_v31  ;;  %v15448_v48 = vld [vmem:[#allocation302_spill] sm:$0xff]  ;;  %v15452_v14 = vld [vmem:[#allocation287_spill] sm:$0xff] }
 0x8d1   :  { %v7098_v60 = vadd.f32 %v12840_v57, %v6838_v50  ;;  %v15450_v10 = vmax.f32 %v15448_v48, %v15449_v18  ;;  %v15454_v48 = vld [vmem:[#allocation122_spill] sm:$0xff] }
 0x8d2   :  { %v4465_v52 = vpop.f32.mrf.mxu2  ;;  %v5869_v28 = vadd.f32 %v5433_v3, %v4899_v37  ;;  %v15453_v3 = vld [vmem:[#allocation269_spill] sm:$0xff] }
 0x8d3   :  { %v7354_v6 = vmax.f32 %v7098_v60, 0.0 }
 0x8d4   :  { %v5435_v35 = vpop.f32.mrf.mxu3 }
 0x8d5   :  { %v7642_v33 = vmul.f32 %v12765_v40, %v7354_v6  ;;  %v3751_v13 = vpop.f32.mrf.mxu1 }
 0x8d6   :  { %v3752_v42 = vadd.f32 %v3751_v13, %v15447_v21  ;;  %v6403_v1 = vpop.f32.mrf.mxu0 }
 0x8d7   :  { %v12848_v30 = vmax.f32 %v15450_v10, %v7642_v33  ;;  %v6839_v49 = vadd.f32 %v6403_v1, %v5869_v28  ;;  %4507 = vmatmul.bf16.gmra.mxu2 %v15452_v14  ;;  %v15455_v28 = vmax.f32 %v12231_v36, %v12549_v27  ;;  %v15456_v10 = vld [vmem:[#allocation274_spill] sm:$0xff]  ;;  %v15459_v36 = vld [vmem:[#allocation83_spill] sm:$0xff] }
 0x8d8   :  { %v4900_v0 = vadd.f32 %v4465_v52, %v3752_v42  ;;  %v15460_v27 = vmax.f32 %v15458_v61, %v15459_v36  ;;  %v15464_v61 = vld [vmem:[#allocation132_spill] sm:$0xff]  ;;  %v15467_v36 = vld [vmem:[#allocation290_spill] sm:$0xff] }
 0x8d9   :  { %15451 = vst [vmem:[#allocation92_spill] sm:$0xff] %v12848_v30  ;;  %v7099_v50 = vadd.f32 %v12840_v57, %v6839_v49  ;;  %5477 = vmatmul.bf16.gmra.mxu3 %v15337_v59  ;;  %6442 = vmatmul.bf16.gmra.mxu0 %v15453_v3  ;;  %v15618_v30 = vld [vmem:[#allocation314_spill] sm:$0xff] }
 0x8da   :  { %v4468_v37 = vpop.f32.mrf.mxu2  ;;  %v5870_v31 = vadd.f32 %v5435_v35, %v4900_v0 }
 0x8db   :  { %v7355_v60 = vmax.f32 %v7099_v50, 0.0 }
 0x8dc   :  { %v5438_v6 = vpop.f32.mrf.mxu3 }
 0x8dd   :  { %v7643_v13 = vmul.f32 %v12765_v40, %v7355_v60  ;;  %v3754_v21 = vpop.f32.mrf.mxu1 }
 0x8de   :  { %v3755_v33 = vadd.f32 %v3754_v21, %v15454_v48  ;;  %v6405_v18 = vpop.f32.mrf.mxu0  ;;  %v15457_v21 = vld [vmem:[#allocation126_spill] sm:$0xff] }
 0x8df   :  { %v12859_v52 = vmax.f32 %v15455_v28, %v7643_v13  ;;  %v6840_v42 = vadd.f32 %v6405_v18, %v5870_v31  ;;  %v15462_v31 = vld [vmem:[#allocation316_spill] sm:$0xff] }
 0x8e0   :  { %v4901_v1 = vadd.f32 %v4468_v37, %v3755_v33  ;;  %3793 = vmatmul.bf16.gmra.mxu1 %v15456_v10 }
 0x8e1   :  { %v7100_v49 = vadd.f32 %v12840_v57, %v6840_v42 }
 0x8e2   :  { %v4470_v35 = vpop.f32.mrf.mxu2  ;;  %v5871_v0 = vadd.f32 %v5438_v6, %v4901_v1  ;;  %v15463_v6 = vld [vmem:[#allocation284_spill] sm:$0xff] }
 0x8e3   :  { %v7356_v50 = vmax.f32 %v7100_v49, 0.0 }
 0x8e4   :  { %v5440_v14 = vpop.f32.mrf.mxu3 }
 0x8e5   :  { %v7644_v60 = vmul.f32 %v12765_v40, %v7356_v50  ;;  %v3756_v7 = vpop.f32.mrf.mxu1 }
 0x8e6   :  { %v3757_v48 = vadd.f32 %v3756_v7, %v15457_v21  ;;  %v6408_v43 = vpop.f32.mrf.mxu0 }
 0x8e7   :  { %v12868_v13 = vmax.f32 %v15460_v27, %v7644_v60  ;;  %v6841_v37 = vadd.f32 %v6408_v43, %v5871_v0  ;;  %4512 = vmatmul.bf16.gmra.mxu2 %v15462_v31  ;;  %v15465_v43 = vld [vmem:[#allocation364_spill] sm:$0xff] }
 0x8e8   :  { %v4902_v33 = vadd.f32 %v4470_v35, %v3757_v48  ;;  %v15466_v0 = vmax.f32 %v12251_v16, %v15465_v43  ;;  %v15470_v16 = vld [vmem:[#allocation367_spill] sm:$0xff] }
 0x8e9   :  { %15461 = vst [vmem:[#allocation96_spill] sm:$0xff] %v12868_v13  ;;  %v7101_v18 = vadd.f32 %v12840_v57, %v6841_v37  ;;  %5482 = vmatmul.bf16.gmra.mxu3 %v15344_v8  ;;  %6447 = vmatmul.bf16.gmra.mxu0 %v15463_v6  ;;  %v15469_v13 = vld [vmem:[#allocation313_spill] sm:$0xff] }
 0x8ea   :  { %v4473_v28 = vpop.f32.mrf.mxu2  ;;  %v5872_v42 = vadd.f32 %v5440_v14, %v4902_v33 }
 0x8eb   :  { %v7357_v1 = vmax.f32 %v7101_v18, 0.0 }
 0x8ec   :  { %v5443_v7 = vpop.f32.mrf.mxu3 }
 0x8ed   :  { %v7645_v10 = vmul.f32 %v12765_v40, %v7357_v1  ;;  %v3759_v49 = vpop.f32.mrf.mxu1 }
 0x8ee   :  { %v3760_v50 = vadd.f32 %v3759_v49, %v15464_v61  ;;  %v6410_v60 = vpop.f32.mrf.mxu0  ;;  %v15468_v49 = vld [vmem:[#allocation135_spill] sm:$0xff] }
 0x8ef   :  { %v12879_v35 = vmax.f32 %v15466_v0, %v7645_v10  ;;  %v6842_v21 = vadd.f32 %v6410_v60, %v5872_v42  ;;  %v15471_v10 = vmax.f32 %v15469_v13, %v15470_v16  ;;  %v15473_v42 = vld [vmem:[#allocation3_spill] sm:$0xff]  ;;  %v15475_v13 = vld [vmem:[#allocation138_spill] sm:$0xff]  ;;  %v15478_v16 = vld [vmem:[#allocation305_spill] sm:$0xff] }
 0x8f0   :  { %v4903_v48 = vadd.f32 %v4473_v28, %v3760_v50  ;;  %3798 = vmatmul.bf16.gmra.mxu1 %v15467_v36 }
 0x8f1   :  { %v7102_v27 = vadd.f32 %v12840_v57, %v6842_v21 }
 0x8f2   :  { %v4475_v14 = vpop.f32.mrf.mxu2  ;;  %v5873_v37 = vadd.f32 %v5443_v7, %v4903_v48  ;;  %v15474_v7 = vld [vmem:[#allocation300_spill] sm:$0xff] }
 0x8f3   :  { %v7358_v33 = vmax.f32 %v7102_v27, 0.0 }
 0x8f4   :  { %v5445_v18 = vpop.f32.mrf.mxu3 }
 0x8f5   :  { %v7646_v1 = vmul.f32 %v12765_v40, %v7358_v33  ;;  %v3761_v31 = vpop.f32.mrf.mxu1 }
 0x8f6   :  { %v3762_v61 = vadd.f32 %v3761_v31, %v15468_v49  ;;  %v6413_v8 = vpop.f32.mrf.mxu0 }
 0x8f7   :  { %v12888_v43 = vmax.f32 %v15471_v10, %v7646_v1  ;;  %v6843_v28 = vadd.f32 %v6413_v8, %v5873_v37  ;;  %4517 = vmatmul.bf16.gmra.mxu2 %v15473_v42  ;;  %v15476_v8 = vld [vmem:[#allocation89_spill] sm:$0xff] }
 0x8f8   :  { %v4904_v50 = vadd.f32 %v4475_v14, %v3762_v61  ;;  %v15477_v37 = vmax.f32 %v12271_v55, %v15476_v8  ;;  %v15481_v55 = vld [vmem:[#allocation372_spill] sm:$0xff] }
 0x8f9   :  { %15472 = vst [vmem:[#allocation120_spill] sm:$0xff] %v12888_v43  ;;  %v7103_v60 = vadd.f32 %v12840_v57, %v6843_v28  ;;  %5487 = vmatmul.bf16.gmra.mxu3 %v15352_v2  ;;  %6452 = vmatmul.bf16.gmra.mxu0 %v15474_v7  ;;  %v15480_v43 = vld [vmem:[#allocation317_spill] sm:$0xff] }
 0x8fa   :  { %v4478_v0 = vpop.f32.mrf.mxu2  ;;  %v5874_v21 = vadd.f32 %v5445_v18, %v4904_v50 }
 0x8fb   :  { %v7359_v48 = vmax.f32 %v7103_v60, 0.0 }
 0x8fc   :  { %v5448_v31 = vpop.f32.mrf.mxu3 }
 0x8fd   :  { %v7647_v36 = vmul.f32 %v12765_v40, %v7359_v48  ;;  %v3764_v27 = vpop.f32.mrf.mxu1 }
 0x8fe   :  { %v3765_v33 = vadd.f32 %v3764_v27, %v15475_v13  ;;  %v6415_v1 = vpop.f32.mrf.mxu0  ;;  %v15479_v27 = vld [vmem:[#allocation143_spill] sm:$0xff] }
 0x8ff   :  { %v12899_v14 = vmax.f32 %v15477_v37, %v7647_v36  ;;  %v6844_v49 = vadd.f32 %v6415_v1, %v5874_v21  ;;  %v15482_v36 = vmax.f32 %v15480_v43, %v15481_v55  ;;  %v15484_v21 = vld [vmem:[#allocation5_spill] sm:$0xff]  ;;  %v15486_v43 = vld [vmem:[#allocation160_spill] sm:$0xff] }
 0x900   :  { %v4905_v61 = vadd.f32 %v4478_v0, %v3765_v33  ;;  %3803 = vmatmul.bf16.gmra.mxu1 %v15478_v16  ;;  %v15489_v55 = vld [vmem:[#allocation321_spill] sm:$0xff] }
 0x901   :  { %v7104_v10 = vadd.f32 %v12840_v57, %v6844_v49 }
 0x902   :  { %v4480_v18 = vpop.f32.mrf.mxu2  ;;  %v5875_v28 = vadd.f32 %v5448_v31, %v4905_v61  ;;  %v15485_v31 = vld [vmem:[#allocation308_spill] sm:$0xff] }
 0x903   :  { %v7360_v50 = vmax.f32 %v7104_v10, 0.0 }
 0x904   :  { %v5450_v60 = vpop.f32.mrf.mxu3 }
 0x905   :  { %v7648_v48 = vmul.f32 %v12765_v40, %v7360_v50  ;;  %v3766_v42 = vpop.f32.mrf.mxu1 }
 0x906   :  { %v3767_v13 = vadd.f32 %v3766_v42, %v15479_v27  ;;  %v6418_v2 = vpop.f32.mrf.mxu0 }
 0x907   :  { %v12908_v8 = vmax.f32 %v15482_v36, %v7648_v48  ;;  %v6845_v0 = vadd.f32 %v6418_v2, %v5875_v28  ;;  %4522 = vmatmul.bf16.gmra.mxu2 %v15484_v21  ;;  %v15487_v2 = vld [vmem:[#allocation375_spill] sm:$0xff] }
 0x908   :  { %v4906_v33 = vadd.f32 %v4480_v18, %v3767_v13  ;;  %v15488_v28 = vmax.f32 %v12291_v29, %v15487_v2  ;;  %v15492_v29 = vld [vmem:[#allocation95_spill] sm:$0xff] }
 0x909   :  { %15483 = vst [vmem:[#allocation102_spill] sm:$0xff] %v12908_v8  ;;  %v7105_v1 = vadd.f32 %v12840_v57, %v6845_v0  ;;  %5492 = vmatmul.bf16.gmra.mxu3 %v15360_v39  ;;  %6457 = vmatmul.bf16.gmra.mxu0 %v15485_v31  ;;  %v15491_v8 = vld [vmem:[#allocation323_spill] sm:$0xff] }
 0x90a   :  { %v4483_v37 = vpop.f32.mrf.mxu2  ;;  %v5876_v49 = vadd.f32 %v5450_v60, %v4906_v33 }
 0x90b   :  { %v7361_v61 = vmax.f32 %v7105_v1, 0.0 }
 0x90c   :  { %v5453_v42 = vpop.f32.mrf.mxu3 }
 0x90d   :  { %v7649_v16 = vmul.f32 %v12765_v40, %v7361_v61  ;;  %v3769_v10 = vpop.f32.mrf.mxu1 }
 0x90e   :  { %v3770_v50 = vadd.f32 %v3769_v10, %v15486_v43  ;;  %v6420_v48 = vpop.f32.mrf.mxu0  ;;  %v15490_v10 = vld [vmem:[#allocation164_spill] sm:$0xff] }
 0x90f   :  { %v12919_v18 = vmax.f32 %v15488_v28, %v7649_v16  ;;  %v6846_v27 = vadd.f32 %v6420_v48, %v5876_v49  ;;  %v15493_v16 = vmax.f32 %v15491_v8, %v15492_v29  ;;  %v15495_v49 = vld [vmem:[#allocation7_spill] sm:$0xff]  ;;  %v15497_v8 = vld [vmem:[#allocation170_spill] sm:$0xff] }
 0x910   :  { %v4907_v13 = vadd.f32 %v4483_v37, %v3770_v50  ;;  %3808 = vmatmul.bf16.gmra.mxu1 %v15489_v55  ;;  %v15500_v29 = vld [vmem:[#allocation14_spill] sm:$0xff] }
 0x911   :  { %v7106_v36 = vadd.f32 %v12840_v57, %v6846_v27 }
 0x912   :  { %v4485_v60 = vpop.f32.mrf.mxu2  ;;  %v5877_v0 = vadd.f32 %v5453_v42, %v4907_v13  ;;  %v15496_v42 = vld [vmem:[#allocation4_spill] sm:$0xff] }
 0x913   :  { %v7362_v33 = vmax.f32 %v7106_v36, 0.0 }
 0x914   :  { %v5455_v1 = vpop.f32.mrf.mxu3 }
 0x915   :  { %v7650_v61 = vmul.f32 %v12765_v40, %v7362_v33  ;;  %v3771_v21 = vpop.f32.mrf.mxu1 }
 0x916   :  { %v3772_v43 = vadd.f32 %v3771_v21, %v15490_v10  ;;  %v6423_v39 = vpop.f32.mrf.mxu0 }
 0x917   :  { %v12928_v2 = vmax.f32 %v15493_v16, %v7650_v61  ;;  %v6847_v37 = vadd.f32 %v6423_v39, %v5877_v0  ;;  %4527 = vmatmul.bf16.gmra.mxu2 %v15495_v49  ;;  %v15498_v39 = vld [vmem:[#allocation380_spill] sm:$0xff] }
 0x918   :  { %v4908_v50 = vadd.f32 %v4485_v60, %v3772_v43  ;;  %v15499_v0 = vmax.f32 %v12311_v62, %v15498_v39  ;;  %v15503_v62 = vld [vmem:[#allocation101_spill] sm:$0xff] }
 0x919   :  { %15494 = vst [vmem:[#allocation105_spill] sm:$0xff] %v12928_v2  ;;  %v7107_v48 = vadd.f32 %v12840_v57, %v6847_v37  ;;  %5497 = vmatmul.bf16.gmra.mxu3 %v15368_v45  ;;  %6462 = vmatmul.bf16.gmra.mxu0 %v15496_v42  ;;  %v15502_v2 = vld [vmem:[#allocation327_spill] sm:$0xff] }
 0x91a   :  { %v4488_v28 = vpop.f32.mrf.mxu2  ;;  %v5878_v27 = vadd.f32 %v5455_v1, %v4908_v50 }
 0x91b   :  { %v7363_v13 = vmax.f32 %v7107_v48, 0.0 }
 0x91c   :  { %v5458_v21 = vpop.f32.mrf.mxu3 }
 0x91d   :  { %v7651_v55 = vmul.f32 %v12765_v40, %v7363_v13  ;;  %v3774_v36 = vpop.f32.mrf.mxu1 }
 0x91e   :  { %v3775_v33 = vadd.f32 %v3774_v36, %v15497_v8  ;;  %v6425_v61 = vpop.f32.mrf.mxu0  ;;  %v15501_v36 = vld [vmem:[#allocation176_spill] sm:$0xff] }
 0x91f   :  { %v12939_v60 = vmax.f32 %v15499_v0, %v7651_v55  ;;  %v6848_v10 = vadd.f32 %v6425_v61, %v5878_v27  ;;  %v15504_v55 = vmax.f32 %v15502_v2, %v15503_v62  ;;  %v15506_v27 = vld [vmem:[#allocation10_spill] sm:$0xff] }
 0x920   :  { %v4909_v43 = vadd.f32 %v4488_v28, %v3775_v33  ;;  %3813 = vmatmul.bf16.gmra.mxu1 %v15500_v29  ;;  %v15508_v2 = vld [vmem:[#allocation182_spill] sm:$0xff] }
 0x921   :  { %v7108_v16 = vadd.f32 %v12840_v57, %v6848_v10  ;;  %v15512_v62 = vld [vmem:[#allocation18_spill] sm:$0xff] }
 0x922   :  { %v4490_v1 = vpop.f32.mrf.mxu2  ;;  %v5879_v37 = vadd.f32 %v5458_v21, %v4909_v43  ;;  %v15507_v21 = vld [vmem:[#allocation6_spill] sm:$0xff] }
 0x923   :  { %v7364_v50 = vmax.f32 %v7108_v16, 0.0 }
 0x924   :  { %v5460_v48 = vpop.f32.mrf.mxu3 }
 0x925   :  { %v7652_v13 = vmul.f32 %v12765_v40, %v7364_v50  ;;  %v3776_v49 = vpop.f32.mrf.mxu1 }
 0x926   :  { %v3777_v8 = vadd.f32 %v3776_v49, %v15501_v36  ;;  %v6428_v45 = vpop.f32.mrf.mxu0 }
 0x927   :  { %v12948_v39 = vmax.f32 %v15504_v55, %v7652_v13  ;;  %v6849_v28 = vadd.f32 %v6428_v45, %v5879_v37  ;;  %4532 = vmatmul.bf16.gmra.mxu2 %v15506_v27  ;;  %v15509_v45 = vld [vmem:[#allocation384_spill] sm:$0xff] }
 0x928   :  { %v4910_v33 = vadd.f32 %v4490_v1, %v3777_v8  ;;  %v15510_v37 = vmax.f32 %v12331_v32, %v15509_v45  ;;  %v15515_v32 = vld [vmem:[#allocation385_spill] sm:$0xff] }
 0x929   :  { %15505 = vst [vmem:[#allocation123_spill] sm:$0xff] %v12948_v39  ;;  %v7109_v61 = vadd.f32 %v12840_v57, %v6849_v28  ;;  %5502 = vmatmul.bf16.gmra.mxu3 %v15376_v11  ;;  %6467 = vmatmul.bf16.gmra.mxu0 %v15507_v21  ;;  %v15514_v39 = vld [vmem:[#allocation59_spill] sm:$0xff] }
 0x92a   :  { %v4493_v0 = vpop.f32.mrf.mxu2  ;;  %v5880_v10 = vadd.f32 %v5460_v48, %v4910_v33 }
 0x92b   :  { %v7365_v43 = vmax.f32 %v7109_v61, 0.0 }
 0x92c   :  { %v5463_v49 = vpop.f32.mrf.mxu3 }
 0x92d   :  { %v7653_v29 = vmul.f32 %v12765_v40, %v7365_v43  ;;  %v3779_v16 = vpop.f32.mrf.mxu1 }
 0x92e   :  { %v3780_v50 = vadd.f32 %v3779_v16, %v15508_v2  ;;  %v6430_v13 = vpop.f32.mrf.mxu0  ;;  %v15513_v16 = vld [vmem:[#allocation186_spill] sm:$0xff] }
 0x92f   :  { %v12959_v1 = vmax.f32 %v15510_v37, %v7653_v29  ;;  %v6850_v36 = vadd.f32 %v6430_v13, %v5880_v10  ;;  %v15516_v29 = vmax.f32 %v15514_v39, %v15515_v32  ;;  %v15518_v10 = vld [vmem:[#allocation16_spill] sm:$0xff]  ;;  %v15524_v32 = vld [vmem:[#allocation19_spill] sm:$0xff] }
 0x930   :  { %v4911_v8 = vadd.f32 %v4493_v0, %v3780_v50  ;;  %3818 = vmatmul.bf16.gmra.mxu1 %v15512_v62  ;;  %v15520_v39 = vld [vmem:[#allocation192_spill] sm:$0xff] }
 0x931   :  { %15511 = vst [vmem:[#allocation128_spill] sm:$0xff] %v12959_v1  ;;  %v7110_v55 = vadd.f32 %v12840_v57, %v6850_v36  ;;  %v15660_v1 = vld [vmem:[#allocation357_spill] sm:$0xff] }
 0x932   :  { %v4495_v48 = vpop.f32.mrf.mxu2  ;;  %v5881_v28 = vadd.f32 %v5463_v49, %v4911_v8  ;;  %v15519_v49 = vld [vmem:[#allocation8_spill] sm:$0xff] }
 0x933   :  { %v7366_v33 = vmax.f32 %v7110_v55, 0.0 }
 0x934   :  { %v5465_v61 = vpop.f32.mrf.mxu3 }
 0x935   :  { %v7654_v43 = vmul.f32 %v12765_v40, %v7366_v33  ;;  %v3781_v27 = vpop.f32.mrf.mxu1 }
 0x936   :  { %v3782_v2 = vadd.f32 %v3781_v27, %v15513_v16  ;;  %v6433_v11 = vpop.f32.mrf.mxu0 }
 0x937   :  { %v12968_v45 = vmax.f32 %v15516_v29, %v7654_v43  ;;  %v6851_v0 = vadd.f32 %v6433_v11, %v5881_v28  ;;  %4537 = vmatmul.bf16.gmra.mxu2 %v15518_v10  ;;  %v15521_v11 = vld [vmem:[#allocation52_spill] sm:$0xff] }
 0x938   :  { %v4912_v50 = vadd.f32 %v4495_v48, %v3782_v2  ;;  %v15522_v28 = vmax.f32 %v12351_v17, %v15521_v11  ;;  %v15527_v17 = vld [vmem:[#allocation56_spill] sm:$0xff] }
 0x939   :  { %15517 = vst [vmem:[#allocation108_spill] sm:$0xff] %v12968_v45  ;;  %v7111_v13 = vadd.f32 %v12840_v57, %v6851_v0  ;;  %5507 = vmatmul.bf16.gmra.mxu3 %v15384_v25  ;;  %6472 = vmatmul.bf16.gmra.mxu0 %v15519_v49  ;;  %v15526_v45 = vld [vmem:[#allocation332_spill] sm:$0xff] }
 0x93a   :  { %v4498_v37 = vpop.f32.mrf.mxu2  ;;  %v5882_v36 = vadd.f32 %v5465_v61, %v4912_v50 }
 0x93b   :  { %v7367_v8 = vmax.f32 %v7111_v13, 0.0 }
 0x93c   :  { %v5468_v27 = vpop.f32.mrf.mxu3 }
 0x93d   :  { %v7655_v62 = vmul.f32 %v12765_v40, %v7367_v8  ;;  %v3784_v55 = vpop.f32.mrf.mxu1 }
 0x93e   :  { %v3785_v33 = vadd.f32 %v3784_v55, %v15520_v39  ;;  %v6435_v43 = vpop.f32.mrf.mxu0  ;;  %v15525_v55 = vld [vmem:[#allocation196_spill] sm:$0xff] }
 0x93f   :  { %v12979_v48 = vmax.f32 %v15522_v28, %v7655_v62  ;;  %v6852_v16 = vadd.f32 %v6435_v43, %v5882_v36  ;;  %v15528_v62 = vmax.f32 %v15526_v45, %v15527_v17  ;;  %v15530_v36 = vld [vmem:[#allocation20_spill] sm:$0xff] }
 0x940   :  { %v4913_v2 = vadd.f32 %v4498_v37, %v3785_v33  ;;  %3823 = vmatmul.bf16.gmra.mxu1 %v15524_v32  ;;  %v15532_v28 = vld [vmem:[#allocation12_spill] sm:$0xff] }
 0x941   :  { %15523 = vst [vmem:[#allocation145_spill] sm:$0xff] %v12979_v48  ;;  %v7112_v29 = vadd.f32 %v12840_v57, %v6852_v16  ;;  %v15533_v45 = vld [vmem:[#allocation200_spill] sm:$0xff] }
 0x942   :  { %v4500_v61 = vpop.f32.mrf.mxu2  ;;  %v5883_v0 = vadd.f32 %v5468_v27, %v4913_v2  ;;  %v15531_v27 = vld [vmem:[#allocation151_spill] sm:$0xff] }
 0x943   :  { %v7368_v50 = vmax.f32 %v7112_v29, 0.0 }
 0x944   :  { %v5470_v13 = vpop.f32.mrf.mxu3 }
 0x945   :  { %v7656_v8 = vmul.f32 %v12765_v40, %v7368_v50  ;;  %v3786_v10 = vpop.f32.mrf.mxu1 }
 0x946   :  { %v3787_v39 = vadd.f32 %v3786_v10, %v15525_v55  ;;  %v6438_v25 = vpop.f32.mrf.mxu0 }
 0x947   :  { %v12988_v11 = vmax.f32 %v15528_v62, %v7656_v8  ;;  %v6853_v37 = vadd.f32 %v6438_v25, %v5883_v0  ;;  %4542 = vmatmul.bf16.gmra.mxu2 %v15530_v36  ;;  %v15534_v25 = vld [vmem:[#allocation335_spill] sm:$0xff] }
 0x948   :  { %v4914_v33 = vadd.f32 %v4500_v61, %v3787_v39  ;;  %v15535_v0 = vld [vmem:[#allocation107_spill] sm:$0xff] }
 0x949   :  { %15529 = vst [vmem:[#allocation113_spill] sm:$0xff] %v12988_v11  ;;  %v7113_v43 = vadd.f32 %v12840_v57, %v6853_v37  ;;  %5512 = vmatmul.bf16.gmra.mxu3 %v15531_v27  ;;  %6477 = vmatmul.bf16.gmra.mxu0 %v15532_v28  ;;  %v15536_v17 = vmax.f32 %v15534_v25, %v15535_v0  ;;  %v15538_v37 = vld [vmem:[#allocation22_spill] sm:$0xff] }
 0x94a   :  { %v4503_v16 = vpop.f32.mrf.mxu2  ;;  %v5884_v2 = vadd.f32 %v5470_v13, %v4914_v33  ;;  %v15540_v28 = vld [vmem:[#allocation62_spill] sm:$0xff] }
 0x94b   :  { %v7369_v32 = vmax.f32 %v7113_v43, 0.0  ;;  %v15541_v25 = vld [vmem:[#allocation70_spill] sm:$0xff] }
 0x94c   :  { %v5473_v10 = vpop.f32.mrf.mxu3 }
 0x94d   :  { %v7657_v29 = vmul.f32 %v12765_v40, %v7369_v32  ;;  %v3789_v50 = vpop.f32.mrf.mxu1 }
 0x94e   :  { %v3790_v8 = vadd.f32 %v3789_v50, %v15533_v45  ;;  %v6440_v55 = vpop.f32.mrf.mxu0  ;;  %v15539_v50 = vld [vmem:[#allocation206_spill] sm:$0xff] }
 0x94f   :  { %v12999_v61 = vmax.f32 %v15536_v17, %v7657_v29  ;;  %v6854_v39 = vadd.f32 %v6440_v55, %v5884_v2  ;;  %v15542_v29 = vmax.f32 %v15540_v28, %v15541_v25  ;;  %v15544_v2 = vld [vmem:[#allocation24_spill] sm:$0xff]  ;;  %v15547_v28 = vld [vmem:[#allocation214_spill] sm:$0xff] }
 0x950   :  { %v4915_v62 = vadd.f32 %v4503_v16, %v3790_v8  ;;  %3828 = vmatmul.bf16.gmra.mxu1 %v15538_v37 }
 0x951   :  { %15537 = vst [vmem:[#allocation149_spill] sm:$0xff] %v12999_v61  ;;  %v7114_v36 = vadd.f32 %v12840_v57, %v6854_v39 }
 0x952   :  { %v4505_v13 = vpop.f32.mrf.mxu2  ;;  %v5885_v33 = vadd.f32 %v5473_v10, %v4915_v62  ;;  %v15545_v10 = vld [vmem:[#allocation157_spill] sm:$0xff] }
 0x953   :  { %v7370_v43 = vmax.f32 %v7114_v36, 0.0  ;;  %v15546_v36 = vld [vmem:[#allocation15_spill] sm:$0xff] }
 0x954   :  { %v5475_v27 = vpop.f32.mrf.mxu3 }
 0x955   :  { %v7658_v32 = vmul.f32 %v12765_v40, %v7370_v43  ;;  %v3791_v11 = vpop.f32.mrf.mxu1 }
 0x956   :  { %v3792_v45 = vadd.f32 %v3791_v11, %v15539_v50  ;;  %v6443_v48 = vpop.f32.mrf.mxu0 }
 0x957   :  { %v13008_v0 = vmax.f32 %v15542_v29, %v7658_v32  ;;  %v6855_v16 = vadd.f32 %v6443_v48, %v5885_v33  ;;  %4547 = vmatmul.bf16.gmra.mxu2 %v15544_v2  ;;  %v15548_v48 = vld [vmem:[#allocation340_spill] sm:$0xff]  ;;  %v15549_v33 = vld [vmem:[#allocation74_spill] sm:$0xff] }
 0x958   :  { %v4916_v8 = vadd.f32 %v4505_v13, %v3792_v45  ;;  %v15550_v25 = vmax.f32 %v15548_v48, %v15549_v33  ;;  %v15554_v48 = vld [vmem:[#allocation111_spill] sm:$0xff] }
 0x959   :  { %15543 = vst [vmem:[#allocation130_spill] sm:$0xff] %v13008_v0  ;;  %v7115_v55 = vadd.f32 %v12840_v57, %v6855_v16  ;;  %5517 = vmatmul.bf16.gmra.mxu3 %v15545_v10  ;;  %6482 = vmatmul.bf16.gmra.mxu0 %v15546_v36  ;;  %v15551_v16 = vld [vmem:[#allocation28_spill] sm:$0xff]  ;;  %v15553_v36 = vld [vmem:[#allocation343_spill] sm:$0xff] }
 0x95a   :  { %v4508_v17 = vpop.f32.mrf.mxu2  ;;  %v5886_v39 = vadd.f32 %v5475_v27, %v4916_v8 }
 0x95b   :  { %v7371_v62 = vmax.f32 %v7115_v55, 0.0 }
 0x95c   :  { %v5478_v11 = vpop.f32.mrf.mxu3 }
 0x95d   :  { %v7659_v37 = vmul.f32 %v12765_v40, %v7371_v62  ;;  %v3794_v43 = vpop.f32.mrf.mxu1 }
 0x95e   :  { %v3795_v32 = vadd.f32 %v3794_v43, %v15547_v28  ;;  %v6445_v50 = vpop.f32.mrf.mxu0  ;;  %v15552_v43 = vld [vmem:[#allocation219_spill] sm:$0xff] }
 0x95f   :  { %v13019_v13 = vmax.f32 %v15550_v25, %v7659_v37  ;;  %v6856_v45 = vadd.f32 %v6445_v50, %v5886_v39  ;;  %v15555_v37 = vmax.f32 %v15553_v36, %v15554_v48  ;;  %v15557_v39 = vld [vmem:[#allocation26_spill] sm:$0xff]  ;;  %v15559_v36 = vld [vmem:[#allocation225_spill] sm:$0xff] }
 0x960   :  { %v4917_v29 = vadd.f32 %v4508_v17, %v3795_v32  ;;  %3833 = vmatmul.bf16.gmra.mxu1 %v15551_v16 }
 0x961   :  { %v7116_v2 = vadd.f32 %v12840_v57, %v6856_v45 }
 0x962   :  { %v4510_v27 = vpop.f32.mrf.mxu2  ;;  %v5887_v8 = vadd.f32 %v5478_v11, %v4917_v29 }
 0x963   :  { %v7372_v55 = vmax.f32 %v7116_v2, 0.0  ;;  %v15558_v2 = vld [vmem:[#allocation23_spill] sm:$0xff] }
 0x964   :  { %v5480_v10 = vpop.f32.mrf.mxu3 }
 0x965   :  { %v7660_v62 = vmul.f32 %v12765_v40, %v7372_v55  ;;  %v3796_v0 = vpop.f32.mrf.mxu1 }
 0x966   :  { %v3797_v28 = vadd.f32 %v3796_v0, %v15552_v43  ;;  %v6448_v61 = vpop.f32.mrf.mxu0 }
 0x967   :  { %v13028_v33 = vmax.f32 %v15555_v37, %v7660_v62  ;;  %v6857_v17 = vadd.f32 %v6448_v61, %v5887_v8  ;;  %4552 = vmatmul.bf16.gmra.mxu2 %v15557_v39  ;;  %v15560_v61 = vmax.f32 %v15405_v23, %v12711_v5  ;;  %v15564_v5 = vld [vmem:[#allocation80_spill] sm:$0xff] }
 0x968   :  { %v4918_v32 = vadd.f32 %v4510_v27, %v3797_v28  ;;  %v15561_v28 = vld [vmem:[#allocation32_spill] sm:$0xff] }
 0x969   :  { %15556 = vst [vmem:[#allocation155_spill] sm:$0xff] %v13028_v33  ;;  %v7117_v50 = vadd.f32 %v12840_v57, %v6857_v17  ;;  %5522 = vmatmul.bf16.gmra.mxu3 %v15411_v12  ;;  %6487 = vmatmul.bf16.gmra.mxu0 %v15558_v2  ;;  %v15563_v12 = vld [vmem:[#allocation348_spill] sm:$0xff]  ;;  %v15682_v33 = vld [vmem:[#allocation381_spill] sm:$0xff] }
 0x96a   :  { %v4513_v11 = vpop.f32.mrf.mxu2  ;;  %v5888_v25 = vadd.f32 %v5480_v10, %v4918_v32  ;;  %v15565_v23 = vmax.f32 %v15563_v12, %v15564_v5  ;;  %v15568_v12 = vld [vmem:[#allocation235_spill] sm:$0xff] }
 0x96b   :  { %v7373_v45 = vmax.f32 %v7117_v50, 0.0 }
 0x96c   :  { %v5483_v0 = vpop.f32.mrf.mxu3 }
 0x96d   :  { %v7661_v29 = vmul.f32 %v12765_v40, %v7373_v45  ;;  %v3799_v16 = vpop.f32.mrf.mxu1 }
 0x96e   :  { %v3800_v55 = vadd.f32 %v3799_v16, %v15559_v36  ;;  %v6450_v62 = vpop.f32.mrf.mxu0  ;;  %v15562_v16 = vld [vmem:[#allocation230_spill] sm:$0xff] }
 0x96f   :  { %v13039_v27 = vmax.f32 %v15560_v61, %v7661_v29  ;;  %v6858_v8 = vadd.f32 %v6450_v62, %v5888_v25  ;;  %v15566_v25 = vld [vmem:[#allocation33_spill] sm:$0xff] }
 0x970   :  { %v4919_v43 = vadd.f32 %v4513_v11, %v3800_v55  ;;  %3838 = vmatmul.bf16.gmra.mxu1 %v15561_v28 }
 0x971   :  { %v7118_v48 = vadd.f32 %v12840_v57, %v6858_v8 }
 0x972   :  { %v4515_v10 = vpop.f32.mrf.mxu2  ;;  %v5889_v37 = vadd.f32 %v5483_v0, %v4919_v43  ;;  %v15567_v0 = vld [vmem:[#allocation27_spill] sm:$0xff] }
 0x973   :  { %v7374_v17 = vmax.f32 %v7118_v48, 0.0 }
 0x974   :  { %v5485_v32 = vpop.f32.mrf.mxu3 }
 0x975   :  { %v7662_v50 = vmul.f32 %v12765_v40, %v7374_v17  ;;  %v3801_v45 = vpop.f32.mrf.mxu1 }
 0x976   :  { %v3802_v36 = vadd.f32 %v3801_v45, %v15562_v16  ;;  %v6453_v39 = vpop.f32.mrf.mxu0 }
 0x977   :  { %v13048_v29 = vmax.f32 %v15565_v23, %v7662_v50  ;;  %v6859_v11 = vadd.f32 %v6453_v39, %v5889_v37  ;;  %4557 = vmatmul.bf16.gmra.mxu2 %v15566_v25  ;;  %v15569_v39 = vmax.f32 %v12431_v24, %v12729_v22  ;;  %v15572_v24 = vld [vmem:[#allocation86_spill] sm:$0xff] }
 0x978   :  { %v4920_v55 = vadd.f32 %v4515_v10, %v3802_v36  ;;  %v15570_v36 = vld [vmem:[#allocation35_spill] sm:$0xff]  ;;  %v15573_v22 = vmax.f32 %v12440_v41, %v15572_v24  ;;  %v15577_v41 = vld [vmem:[#allocation246_spill] sm:$0xff] }
 0x979   :  { %v7119_v62 = vadd.f32 %v12840_v57, %v6859_v11  ;;  %5527 = vmatmul.bf16.gmra.mxu3 %v15416_v54  ;;  %6492 = vmatmul.bf16.gmra.mxu0 %v15567_v0 }
 0x97a   :  { %v4518_v61 = vpop.f32.mrf.mxu2  ;;  %v5890_v8 = vadd.f32 %v5485_v32, %v4920_v55 }
 0x97b   :  { %v7375_v43 = vmax.f32 %v7119_v62, 0.0 }
 0x97c   :  { %v5488_v28 = vpop.f32.mrf.mxu3 }
 0x97d   :  { %v7663_v48 = vmul.f32 %v12765_v40, %v7375_v43  ;;  %v3804_v17 = vpop.f32.mrf.mxu1 }
 0x97e   :  { %v3805_v50 = vadd.f32 %v3804_v17, %v15568_v12  ;;  %v6455_v45 = vpop.f32.mrf.mxu0  ;;  %v15571_v17 = vld [vmem:[#allocation240_spill] sm:$0xff] }
 0x97f   :  { %v13059_v10 = vmax.f32 %v15569_v39, %v7663_v48  ;;  %v6860_v37 = vadd.f32 %v6455_v45, %v5890_v8  ;;  %v15575_v8 = vld [vmem:[#allocation37_spill] sm:$0xff] }
 0x980   :  { %v4921_v16 = vadd.f32 %v4518_v61, %v3805_v50  ;;  %3843 = vmatmul.bf16.gmra.mxu1 %v15570_v36 }
 0x981   :  { %v7120_v5 = vadd.f32 %v12840_v57, %v6860_v37 }
 0x982   :  { %v4520_v32 = vpop.f32.mrf.mxu2  ;;  %v5891_v23 = vadd.f32 %v5488_v28, %v4921_v16  ;;  %v15576_v28 = vld [vmem:[#allocation30_spill] sm:$0xff] }
 0x983   :  { %v7376_v11 = vmax.f32 %v7120_v5, 0.0 }
 0x984   :  { %v5490_v55 = vpop.f32.mrf.mxu3 }
 0x985   :  { %v7664_v62 = vmul.f32 %v12765_v40, %v7376_v11  ;;  %v3806_v43 = vpop.f32.mrf.mxu1 }
 0x986   :  { %v3807_v12 = vadd.f32 %v3806_v43, %v15571_v17  ;;  %v6458_v25 = vpop.f32.mrf.mxu0 }
 0x987   :  { %v13068_v48 = vmax.f32 %v15573_v22, %v7664_v62  ;;  %v6861_v61 = vadd.f32 %v6458_v25, %v5891_v23  ;;  %4562 = vmatmul.bf16.gmra.mxu2 %v15575_v8  ;;  %v15578_v25 = vmax.f32 %v12451_v58, %v12747_v47  ;;  %v15582_v58 = vld [vmem:[#allocation117_spill] sm:$0xff] }
 0x988   :  { %v4922_v50 = vadd.f32 %v4520_v32, %v3807_v12  ;;  %v15579_v12 = vld [vmem:[#allocation39_spill] sm:$0xff] }
 0x989   :  { %15574 = vst [vmem:[#allocation134_spill] sm:$0xff] %v13068_v48  ;;  %v7121_v45 = vadd.f32 %v12840_v57, %v6861_v61  ;;  %5532 = vmatmul.bf16.gmra.mxu3 %v15421_v53  ;;  %6497 = vmatmul.bf16.gmra.mxu0 %v15576_v28  ;;  %v15581_v53 = vld [vmem:[#allocation351_spill] sm:$0xff]  ;;  %v15693_v48 = vld [vmem:[#allocation61_spill] sm:$0xff] }
 0x98a   :  { %v4523_v39 = vpop.f32.mrf.mxu2  ;;  %v5892_v37 = vadd.f32 %v5490_v55, %v4922_v50  ;;  %v15583_v47 = vmax.f32 %v15581_v53, %v15582_v58 }
 0x98b   :  { %v7377_v16 = vmax.f32 %v7121_v45, 0.0 }
 0x98c   :  { %v5493_v36 = vpop.f32.mrf.mxu3 }
 0x98d   :  { %v7665_v5 = vmul.f32 %v12765_v40, %v7377_v16  ;;  %v3809_v11 = vpop.f32.mrf.mxu1 }
 0x98e   :  { %v3810_v62 = vadd.f32 %v3809_v11, %v15577_v41  ;;  %v6460_v43 = vpop.f32.mrf.mxu0  ;;  %v15580_v11 = vld [vmem:[#allocation251_spill] sm:$0xff] }
 0x98f   :  { %v13079_v32 = vmax.f32 %v15578_v25, %v7665_v5  ;;  %v6862_v23 = vadd.f32 %v6460_v43, %v5892_v37  ;;  %v15585_v37 = vld [vmem:[#allocation40_spill] sm:$0xff] }
 0x990   :  { %v4923_v17 = vadd.f32 %v4523_v39, %v3810_v62  ;;  %3848 = vmatmul.bf16.gmra.mxu1 %v15579_v12 }
 0x991   :  { %v7122_v24 = vadd.f32 %v12840_v57, %v6862_v23 }
 0x992   :  { %v4525_v55 = vpop.f32.mrf.mxu2  ;;  %v5893_v22 = vadd.f32 %v5493_v36, %v4923_v17  ;;  %v13095_v36 = vld [vmem:[%s14093_s3 + $0x5] ss:$0 sm:$0xff] }
 0x993   :  { %v7378_v61 = vmax.f32 %v7122_v24, 0.0  ;;  %v15587_v24 = vld [vmem:[#allocation256_spill] sm:$0xff] }
 0x994   :  { %v5495_v50 = vpop.f32.mrf.mxu3 }
 0x995   :  { %v7666_v45 = vmul.f32 %v12765_v40, %v7378_v61  ;;  %v3811_v16 = vpop.f32.mrf.mxu1  ;;  %v15586_v40 = vld [vmem:[#allocation34_spill] sm:$0xff] }
 0x996   :  { %v3812_v41 = vadd.f32 %v3811_v16, %v15580_v11  ;;  %v6463_v8 = vpop.f32.mrf.mxu0  ;;  %v15588_v11 = vld [vmem:[#allocation41_spill] sm:$0xff] }
 0x997   :  { %v13088_v5 = vmax.f32 %v15583_v47, %v7666_v45  ;;  %v6863_v39 = vadd.f32 %v6463_v8, %v5893_v22  ;;  %4567 = vmatmul.bf16.gmra.mxu2 %v15585_v37 }
 0x998   :  { %v4924_v62 = vadd.f32 %v4525_v55, %v3812_v41 }
 0x999   :  { %15584 = vst [vmem:[#allocation161_spill] sm:$0xff] %v13088_v5  ;;  %v7123_v43 = vadd.f32 %v12840_v57, %v6863_v39  ;;  %5537 = vmatmul.bf16.gmra.mxu3 %v15427_v46  ;;  %6502 = vmatmul.bf16.gmra.mxu0 %v15586_v40 }
 0x99a   :  { %v4528_v25 = vpop.f32.mrf.mxu2  ;;  %v5894_v23 = vadd.f32 %v5495_v50, %v4924_v62 }
 0x99b   :  { %v7379_v53 = vmax.f32 %v7123_v43, 0.0 }
 0x99c   :  { %v5498_v17 = vpop.f32.mrf.mxu3 }
 0x99d   :  { %v13100_v8 = vmul.f32 %v13095_v36, %v7379_v53  ;;  %v3814_v12 = vpop.f32.mrf.mxu1  ;;  %v15589_v53 = vld [vmem:[#allocation261_spill] sm:$0xff] }
 0x99e   :  { %v3815_v55 = vadd.f32 %v3814_v12, %v15587_v24  ;;  %v6465_v22 = vpop.f32.mrf.mxu0 }
 0x99f   :  { %v6864_v45 = vadd.f32 %v6465_v22, %v5894_v23 }
 0x9a0   :  { %v4925_v16 = vadd.f32 %v4528_v25, %v3815_v55  ;;  %3853 = vmatmul.bf16.gmra.mxu1 %v15588_v11 }
 0x9a1   :  { %v7124_v41 = vadd.f32 %v12840_v57, %v6864_v45 }
 0x9a2   :  { %v4530_v58 = vpop.f32.mrf.mxu2  ;;  %v5895_v50 = vadd.f32 %v5498_v17, %v4925_v16  ;;  %v15590_v17 = vld [vmem:[#allocation36_spill] sm:$0xff] }
 0x9a3   :  { %v7380_v47 = vmax.f32 %v7124_v41, 0.0 }
 0x9a4   :  { %v5500_v39 = vpop.f32.mrf.mxu3 }
 0x9a5   :  { %v13108_v62 = vmul.f32 %v13095_v36, %v7380_v47  ;;  %v3816_v43 = vpop.f32.mrf.mxu1 }
 0x9a6   :  { %v3817_v12 = vadd.f32 %v3816_v43, %v15589_v53  ;;  %v6468_v24 = vpop.f32.mrf.mxu0  ;;  %v15591_v43 = vld [vmem:[#allocation267_spill] sm:$0xff] }
 0x9a7   :  { %v6865_v23 = vadd.f32 %v6468_v24, %v5895_v50  ;;  %4572 = vmatmul.bf16.gmra.mxu2 %v15320_v44 }
 0x9a8   :  { %v4926_v25 = vadd.f32 %v4530_v58, %v3817_v12 }
 0x9a9   :  { %v7125_v55 = vadd.f32 %v12840_v57, %v6865_v23  ;;  %5542 = vmatmul.bf16.gmra.mxu3 %v15435_v26  ;;  %6507 = vmatmul.bf16.gmra.mxu0 %v15590_v17  ;;  %v15592_v23 = vld [vmem:[#allocation50_spill] sm:$0xff]  ;;  %v15594_v26 = vld [vmem:[#allocation272_spill] sm:$0xff] }
 0x9aa   :  { %v4533_v22 = vpop.f32.mrf.mxu2  ;;  %v5896_v45 = vadd.f32 %v5500_v39, %v4926_v25 }
 0x9ab   :  { %v7381_v16 = vmax.f32 %v7125_v55, 0.0 }
 0x9ac   :  { %v5503_v11 = vpop.f32.mrf.mxu3 }
 0x9ad   :  { %v13118_v41 = vmul.f32 %v13095_v36, %v7381_v16  ;;  %v3819_v47 = vpop.f32.mrf.mxu1 }
 0x9ae   :  { %v3820_v53 = vadd.f32 %v3819_v47, %v15591_v43  ;;  %v6470_v50 = vpop.f32.mrf.mxu0 }
 0x9af   :  { %v6866_v12 = vadd.f32 %v6470_v50, %v5896_v45 }
 0x9b0   :  { %v4927_v24 = vadd.f32 %v4533_v22, %v3820_v53  ;;  %3858 = vmatmul.bf16.gmra.mxu1 %v15592_v23  ;;  %v15596_v23 = vld [vmem:[#allocation277_spill] sm:$0xff] }
 0x9b1   :  { %v7126_v61 = vadd.f32 %v12840_v57, %v6866_v12 }
 0x9b2   :  { %v4535_v44 = vpop.f32.mrf.mxu2  ;;  %v5897_v39 = vadd.f32 %v5503_v11, %v4927_v24 }
 0x9b3   :  { %v7382_v25 = vmax.f32 %v7126_v61, 0.0  ;;  %v15595_v61 = vld [vmem:[#allocation43_spill] sm:$0xff] }
 0x9b4   :  { %v5505_v55 = vpop.f32.mrf.mxu3 }
 0x9b5   :  { %v13126_v16 = vmul.f32 %v13095_v36, %v7382_v25  ;;  %v3821_v37 = vpop.f32.mrf.mxu1 }
 0x9b6   :  { %v3822_v47 = vadd.f32 %v3821_v37, %v15594_v26  ;;  %v6473_v43 = vpop.f32.mrf.mxu0 }
 0x9b7   :  { %15593 = vst [vmem:[#allocation140_spill] sm:$0xff] %v13126_v16  ;;  %v6867_v45 = vadd.f32 %v6473_v43, %v5897_v39  ;;  %4577 = vmatmul.bf16.gmra.mxu2 %v15325_v19  ;;  %v15599_v16 = vld [vmem:[#allocation282_spill] sm:$0xff] }
 0x9b8   :  { %v4928_v22 = vadd.f32 %v4535_v44, %v3822_v47 }
 0x9b9   :  { %v7127_v53 = vadd.f32 %v12840_v57, %v6867_v45  ;;  %5547 = vmatmul.bf16.gmra.mxu3 %v15443_v15  ;;  %6512 = vmatmul.bf16.gmra.mxu0 %v15595_v61  ;;  %v15597_v45 = vld [vmem:[#allocation57_spill] sm:$0xff] }
 0x9ba   :  { %v4538_v11 = vpop.f32.mrf.mxu2  ;;  %v5898_v50 = vadd.f32 %v5505_v55, %v4928_v22 }
 0x9bb   :  { %v7383_v12 = vmax.f32 %v7127_v53, 0.0 }
 0x9bc   :  { %v5508_v24 = vpop.f32.mrf.mxu3 }
 0x9bd   :  { %v13136_v26 = vmul.f32 %v13095_v36, %v7383_v12  ;;  %v3824_v37 = vpop.f32.mrf.mxu1 }
 0x9be   :  { %v3825_v25 = vadd.f32 %v3824_v37, %v15596_v23  ;;  %v6475_v39 = vpop.f32.mrf.mxu0 }
 0x9bf   :  { %v6868_v47 = vadd.f32 %v6475_v39, %v5898_v50 }
 0x9c0   :  { %v4929_v43 = vadd.f32 %v4538_v11, %v3825_v25  ;;  %3863 = vmatmul.bf16.gmra.mxu1 %v15597_v45  ;;  %v15601_v45 = vld [vmem:[#allocation288_spill] sm:$0xff] }
 0x9c1   :  { %v7128_v58 = vadd.f32 %v12840_v57, %v6868_v47 }
 0x9c2   :  { %v4540_v19 = vpop.f32.mrf.mxu2  ;;  %v5899_v55 = vadd.f32 %v5508_v24, %v4929_v43 }
 0x9c3   :  { %v7384_v22 = vmax.f32 %v7128_v58, 0.0  ;;  %v15600_v58 = vld [vmem:[#allocation49_spill] sm:$0xff] }
 0x9c4   :  { %v5510_v53 = vpop.f32.mrf.mxu3 }
 0x9c5   :  { %v13144_v12 = vmul.f32 %v13095_v36, %v7384_v22  ;;  %v3826_v15 = vpop.f32.mrf.mxu1 }
 0x9c6   :  { %v3827_v37 = vadd.f32 %v3826_v15, %v15599_v16  ;;  %v6478_v23 = vpop.f32.mrf.mxu0 }
 0x9c7   :  { %15598 = vst [vmem:[#allocation167_spill] sm:$0xff] %v13144_v12  ;;  %v6869_v50 = vadd.f32 %v6478_v23, %v5899_v55  ;;  %4582 = vmatmul.bf16.gmra.mxu2 %v15331_v51  ;;  %v15604_v12 = vld [vmem:[#allocation293_spill] sm:$0xff] }
 0x9c8   :  { %v4930_v11 = vadd.f32 %v4540_v19, %v3827_v37 }
 0x9c9   :  { %v7129_v25 = vadd.f32 %v12840_v57, %v6869_v50  ;;  %5552 = vmatmul.bf16.gmra.mxu3 %v15453_v3  ;;  %6517 = vmatmul.bf16.gmra.mxu0 %v15600_v58  ;;  %v15602_v50 = vld [vmem:[#allocation65_spill] sm:$0xff] }
 0x9ca   :  { %v4543_v24 = vpop.f32.mrf.mxu2  ;;  %v5900_v39 = vadd.f32 %v5510_v53, %v4930_v11 }
 0x9cb   :  { %v7385_v47 = vmax.f32 %v7129_v25, 0.0 }
 0x9cc   :  { %v5513_v43 = vpop.f32.mrf.mxu3 }
 0x9cd   :  { %v13154_v15 = vmul.f32 %v13095_v36, %v7385_v47  ;;  %v3829_v16 = vpop.f32.mrf.mxu1 }
 0x9ce   :  { %v3830_v22 = vadd.f32 %v3829_v16, %v15601_v45  ;;  %v6480_v55 = vpop.f32.mrf.mxu0 }
 0x9cf   :  { %v6870_v37 = vadd.f32 %v6480_v55, %v5900_v39 }
 0x9d0   :  { %v4931_v23 = vadd.f32 %v4543_v24, %v3830_v22  ;;  %3868 = vmatmul.bf16.gmra.mxu1 %v15602_v50  ;;  %v15607_v50 = vld [vmem:[#allocation298_spill] sm:$0xff] }
 0x9d1   :  { %v7130_v44 = vadd.f32 %v12840_v57, %v6870_v37 }
 0x9d2   :  { %v4545_v51 = vpop.f32.mrf.mxu2  ;;  %v5901_v53 = vadd.f32 %v5513_v43, %v4931_v23 }
 0x9d3   :  { %v7386_v11 = vmax.f32 %v7130_v44, 0.0  ;;  %v15605_v44 = vld [vmem:[#allocation53_spill] sm:$0xff] }
 0x9d4   :  { %v5515_v25 = vpop.f32.mrf.mxu3 }
 0x9d5   :  { %v13162_v47 = vmul.f32 %v13095_v36, %v7386_v11  ;;  %v3831_v3 = vpop.f32.mrf.mxu1 }
 0x9d6   :  { %v3832_v16 = vadd.f32 %v3831_v3, %v15604_v12  ;;  %v6483_v45 = vpop.f32.mrf.mxu0 }
 0x9d7   :  { %15603 = vst [vmem:[#allocation146_spill] sm:$0xff] %v13162_v47  ;;  %v6871_v39 = vadd.f32 %v6483_v45, %v5901_v53  ;;  %4587 = vmatmul.bf16.gmra.mxu2 %v15337_v59  ;;  %v15610_v47 = vld [vmem:[#allocation303_spill] sm:$0xff] }
 0x9d8   :  { %v4932_v24 = vadd.f32 %v4545_v51, %v3832_v16 }
 0x9d9   :  { %v7131_v22 = vadd.f32 %v12840_v57, %v6871_v39  ;;  %5557 = vmatmul.bf16.gmra.mxu3 %v15463_v6  ;;  %6522 = vmatmul.bf16.gmra.mxu0 %v15605_v44  ;;  %v15608_v39 = vld [vmem:[#allocation76_spill] sm:$0xff] }
 0x9da   :  { %v4548_v43 = vpop.f32.mrf.mxu2  ;;  %v5902_v55 = vadd.f32 %v5515_v25, %v4932_v24 }
 0x9db   :  { %v7387_v37 = vmax.f32 %v7131_v22, 0.0 }
 0x9dc   :  { %v5518_v23 = vpop.f32.mrf.mxu3 }
 0x9dd   :  { %v13172_v3 = vmul.f32 %v13095_v36, %v7387_v37  ;;  %v3834_v12 = vpop.f32.mrf.mxu1 }
 0x9de   :  { %v3835_v11 = vadd.f32 %v3834_v12, %v15607_v50  ;;  %v6485_v53 = vpop.f32.mrf.mxu0 }
 0x9df   :  { %15606 = vst [vmem:[#allocation171_spill] sm:$0xff] %v13172_v3  ;;  %v6872_v16 = vadd.f32 %v6485_v53, %v5902_v55  ;;  %v15626_v3 = vld [vmem:[#allocation324_spill] sm:$0xff] }
 0x9e0   :  { %v4933_v45 = vadd.f32 %v4548_v43, %v3835_v11  ;;  %3873 = vmatmul.bf16.gmra.mxu1 %v15608_v39  ;;  %v15612_v43 = vld [vmem:[#allocation79_spill] sm:$0xff] }
 0x9e1   :  { %v7132_v19 = vadd.f32 %v12840_v57, %v6872_v16 }
 0x9e2   :  { %v4550_v59 = vpop.f32.mrf.mxu2  ;;  %v5903_v25 = vadd.f32 %v5518_v23, %v4933_v45 }
 0x9e3   :  { %v7388_v24 = vmax.f32 %v7132_v19, 0.0  ;;  %v15613_v19 = vld [vmem:[#allocation63_spill] sm:$0xff] }
 0x9e4   :  { %v5520_v22 = vpop.f32.mrf.mxu3 }
 0x9e5   :  { %v13180_v37 = vmul.f32 %v13095_v36, %v7388_v24  ;;  %v3836_v6 = vpop.f32.mrf.mxu1  ;;  %v15615_v24 = vld [vmem:[#allocation309_spill] sm:$0xff] }
 0x9e6   :  { %v3837_v12 = vadd.f32 %v3836_v6, %v15610_v47  ;;  %v6488_v50 = vpop.f32.mrf.mxu0 }
 0x9e7   :  { %15609 = vst [vmem:[#allocation177_spill] sm:$0xff] %v13180_v37  ;;  %v6873_v55 = vadd.f32 %v6488_v50, %v5903_v25  ;;  %4592 = vmatmul.bf16.gmra.mxu2 %v15612_v43 }
 0x9e8   :  { %v4934_v11 = vadd.f32 %v4550_v59, %v3837_v12  ;;  %v15624_v59 = vld [vmem:[#allocation103_spill] sm:$0xff] }
 0x9e9   :  { %v7133_v53 = vadd.f32 %v12840_v57, %v6873_v55  ;;  %5562 = vmatmul.bf16.gmra.mxu3 %v15474_v7  ;;  %6527 = vmatmul.bf16.gmra.mxu0 %v15613_v19  ;;  %v15616_v55 = vld [vmem:[#allocation82_spill] sm:$0xff] }
 0x9ea   :  { %v4553_v23 = vpop.f32.mrf.mxu2  ;;  %v5904_v16 = vadd.f32 %v5520_v22, %v4934_v11 }
 0x9eb   :  { %v7389_v45 = vmax.f32 %v7133_v53, 0.0 }
 0x9ec   :  { %v5523_v39 = vpop.f32.mrf.mxu3 }
 0x9ed   :  { %v13190_v6 = vmul.f32 %v13095_v36, %v7389_v45  ;;  %v3839_v47 = vpop.f32.mrf.mxu1 }
 0x9ee   :  { %v3840_v51 = vadd.f32 %v3839_v47, %v15615_v24  ;;  %v6490_v25 = vpop.f32.mrf.mxu0 }
 0x9ef   :  { %15614 = vst [vmem:[#allocation152_spill] sm:$0xff] %v13190_v6  ;;  %v6874_v12 = vadd.f32 %v6490_v25, %v5904_v16  ;;  %v15634_v6 = vld [vmem:[#allocation333_spill] sm:$0xff] }
 0x9f0   :  { %v4935_v50 = vadd.f32 %v4553_v23, %v3840_v51  ;;  %3878 = vmatmul.bf16.gmra.mxu1 %v15616_v55  ;;  %v15620_v51 = vld [vmem:[#allocation91_spill] sm:$0xff] }
 0x9f1   :  { %v7134_v43 = vadd.f32 %v12840_v57, %v6874_v12  ;;  %v13207_v57 = vld [vmem:[%s14092_s2] ss:$0 sm:$0xff] }
 0x9f2   :  { %v4555_v7 = vpop.f32.mrf.mxu2  ;;  %v5905_v22 = vadd.f32 %v5523_v39, %v4935_v50  ;;  %v15621_v39 = vld [vmem:[#allocation67_spill] sm:$0xff] }
 0x9f3   :  { %v7390_v11 = vmax.f32 %v7134_v43, 0.0 }
 0x9f4   :  { %v5525_v53 = vpop.f32.mrf.mxu3 }
 0x9f5   :  { %v13198_v45 = vmul.f32 %v13095_v36, %v7390_v11  ;;  %v3841_v37 = vpop.f32.mrf.mxu1 }
 0x9f6   :  { %v3842_v47 = vadd.f32 %v3841_v37, %v15618_v30  ;;  %v6493_v24 = vpop.f32.mrf.mxu0 }
 0x9f7   :  { %15617 = vst [vmem:[#allocation180_spill] sm:$0xff] %v13198_v45  ;;  %v6875_v16 = vadd.f32 %v6493_v24, %v5905_v22  ;;  %4597 = vmatmul.bf16.gmra.mxu2 %v15620_v51 }
 0x9f8   :  { %v4936_v23 = vadd.f32 %v4555_v7, %v3842_v47  ;;  %v15623_v7 = vld [vmem:[#allocation319_spill] sm:$0xff] }
 0x9f9   :  { %v7135_v43 = vadd.f32 %v13207_v57, %v6875_v16  ;;  %5567 = vmatmul.bf16.gmra.mxu3 %v15485_v31  ;;  %6532 = vmatmul.bf16.gmra.mxu0 %v15621_v39 }
 0x9fa   :  { %v4558_v30 = vpop.f32.mrf.mxu2  ;;  %v5906_v37 = vadd.f32 %v5525_v53, %v4936_v23 }
 0x9fb   :  { %v7391_v25 = vmax.f32 %v7135_v43, 0.0 }
 0x9fc   :  { %v5528_v12 = vpop.f32.mrf.mxu3 }
 0x9fd   :  { %v13213_v50 = vmul.f32 %v13095_v36, %v7391_v25  ;;  %v3844_v55 = vpop.f32.mrf.mxu1 }
 0x9fe   :  { %v3845_v22 = vadd.f32 %v3844_v55, %v15623_v7  ;;  %v6495_v11 = vpop.f32.mrf.mxu0 }
 0x9ff   :  { %15622 = vst [vmem:[#allocation156_spill] sm:$0xff] %v13213_v50  ;;  %v6876_v24 = vadd.f32 %v6495_v11, %v5906_v37  ;;  %v15642_v50 = vld [vmem:[#allocation342_spill] sm:$0xff] }
 0xa00   :  { %v4937_v16 = vadd.f32 %v4558_v30, %v3845_v22  ;;  %3883 = vmatmul.bf16.gmra.mxu1 %v15624_v59  ;;  %v15628_v30 = vld [vmem:[#allocation97_spill] sm:$0xff] }
 0xa01   :  { %v7136_v51 = vadd.f32 %v13207_v57, %v6876_v24 }
 0xa02   :  { %v4560_v31 = vpop.f32.mrf.mxu2  ;;  %v5907_v53 = vadd.f32 %v5528_v12, %v4937_v16 }
 0xa03   :  { %v7392_v23 = vmax.f32 %v7136_v51, 0.0  ;;  %v15629_v51 = vld [vmem:[#allocation88_spill] sm:$0xff] }
 0xa04   :  { %v5530_v43 = vpop.f32.mrf.mxu3 }
 0xa05   :  { %v13221_v25 = vmul.f32 %v13095_v36, %v7392_v23  ;;  %v3846_v45 = vpop.f32.mrf.mxu1  ;;  %v15631_v23 = vld [vmem:[#allocation329_spill] sm:$0xff] }
 0xa06   :  { %v3847_v55 = vadd.f32 %v3846_v45, %v15626_v3  ;;  %v6498_v7 = vpop.f32.mrf.mxu0 }
 0xa07   :  { %15625 = vst [vmem:[#allocation183_spill] sm:$0xff] %v13221_v25  ;;  %v6877_v37 = vadd.f32 %v6498_v7, %v5907_v53  ;;  %4602 = vmatmul.bf16.gmra.mxu2 %v15628_v30 }
 0xa08   :  { %v4938_v59 = vadd.f32 %v4560_v31, %v3847_v55 }
 0xa09   :  { %v7137_v22 = vadd.f32 %v13207_v57, %v6877_v37  ;;  %5572 = vmatmul.bf16.gmra.mxu3 %v15496_v42  ;;  %6537 = vmatmul.bf16.gmra.mxu0 %v15629_v51  ;;  %v15632_v37 = vld [vmem:[#allocation114_spill] sm:$0xff] }
 0xa0a   :  { %v4563_v12 = vpop.f32.mrf.mxu2  ;;  %v5908_v11 = vadd.f32 %v5530_v43, %v4938_v59 }
 0xa0b   :  { %v7393_v24 = vmax.f32 %v7137_v22, 0.0 }
 0xa0c   :  { %v5533_v16 = vpop.f32.mrf.mxu3 }
 0xa0d   :  { %v13231_v3 = vmul.f32 %v13095_v36, %v7393_v24  ;;  %v3849_v45 = vpop.f32.mrf.mxu1 }
 0xa0e   :  { %v3850_v47 = vadd.f32 %v3849_v45, %v15631_v23  ;;  %v6500_v53 = vpop.f32.mrf.mxu0 }
 0xa0f   :  { %15630 = vst [vmem:[#allocation188_spill] sm:$0xff] %v13231_v3  ;;  %v6878_v55 = vadd.f32 %v6500_v53, %v5908_v11  ;;  %v15650_v3 = vld [vmem:[#allocation349_spill] sm:$0xff] }
 0xa10   :  { %v4939_v7 = vadd.f32 %v4563_v12, %v3850_v47  ;;  %3888 = vmatmul.bf16.gmra.mxu1 %v15632_v37  ;;  %v15636_v47 = vld [vmem:[#allocation118_spill] sm:$0xff] }
 0xa11   :  { %v7138_v30 = vadd.f32 %v13207_v57, %v6878_v55 }
 0xa12   :  { %v4565_v42 = vpop.f32.mrf.mxu2  ;;  %v5909_v43 = vadd.f32 %v5533_v16, %v4939_v7  ;;  %v15637_v16 = vld [vmem:[#allocation99_spill] sm:$0xff] }
 0xa13   :  { %v7394_v59 = vmax.f32 %v7138_v30, 0.0 }
 0xa14   :  { %v5535_v22 = vpop.f32.mrf.mxu3 }
 0xa15   :  { %v13239_v24 = vmul.f32 %v13095_v36, %v7394_v59  ;;  %v3851_v25 = vpop.f32.mrf.mxu1  ;;  %v15639_v59 = vld [vmem:[#allocation338_spill] sm:$0xff] }
 0xa16   :  { %v3852_v45 = vadd.f32 %v3851_v25, %v15634_v6  ;;  %v6503_v23 = vpop.f32.mrf.mxu0 }
 0xa17   :  { %15633 = vst [vmem:[#allocation162_spill] sm:$0xff] %v13239_v24  ;;  %v6879_v11 = vadd.f32 %v6503_v23, %v5909_v43  ;;  %4607 = vmatmul.bf16.gmra.mxu2 %v15636_v47 }
 0xa18   :  { %v4940_v12 = vadd.f32 %v4565_v42, %v3852_v45 }
 0xa19   :  { %v7139_v53 = vadd.f32 %v13207_v57, %v6879_v11  ;;  %5577 = vmatmul.bf16.gmra.mxu3 %v15507_v21  ;;  %6542 = vmatmul.bf16.gmra.mxu0 %v15637_v16  ;;  %v15640_v11 = vld [vmem:[#allocation124_spill] sm:$0xff] }
 0xa1a   :  { %v4568_v55 = vpop.f32.mrf.mxu2  ;;  %v5910_v7 = vadd.f32 %v5535_v22, %v4940_v12 }
 0xa1b   :  { %v7395_v37 = vmax.f32 %v7139_v53, 0.0 }
 0xa1c   :  { %v5538_v30 = vpop.f32.mrf.mxu3 }
 0xa1d   :  { %v13249_v6 = vmul.f32 %v13095_v36, %v7395_v37  ;;  %v3854_v25 = vpop.f32.mrf.mxu1 }
 0xa1e   :  { %v3855_v31 = vadd.f32 %v3854_v25, %v15639_v59  ;;  %v6505_v43 = vpop.f32.mrf.mxu0 }
 0xa1f   :  { %15638 = vst [vmem:[#allocation202_spill] sm:$0xff] %v13249_v6  ;;  %v6880_v45 = vadd.f32 %v6505_v43, %v5910_v7 }
 0xa20   :  { %v4941_v23 = vadd.f32 %v4568_v55, %v3855_v31  ;;  %3893 = vmatmul.bf16.gmra.mxu1 %v15640_v11  ;;  %v15644_v31 = vld [vmem:[#allocation129_spill] sm:$0xff] }
 0xa21   :  { %v7140_v47 = vadd.f32 %v13207_v57, %v6880_v45 }
 0xa22   :  { %v4570_v21 = vpop.f32.mrf.mxu2  ;;  %v5911_v22 = vadd.f32 %v5538_v30, %v4941_v23  ;;  %v15645_v30 = vld [vmem:[#allocation109_spill] sm:$0xff] }
 0xa23   :  { %v7396_v12 = vmax.f32 %v7140_v47, 0.0 }
 0xa24   :  { %v5540_v53 = vpop.f32.mrf.mxu3 }
 0xa25   :  { %v13257_v37 = vmul.f32 %v13095_v36, %v7396_v12  ;;  %v3856_v24 = vpop.f32.mrf.mxu1  ;;  %v15647_v12 = vld [vmem:[#allocation345_spill] sm:$0xff] }
 0xa26   :  { %v3857_v25 = vadd.f32 %v3856_v24, %v15642_v50  ;;  %v6508_v59 = vpop.f32.mrf.mxu0 }
 0xa27   :  { %15641 = vst [vmem:[#allocation165_spill] sm:$0xff] %v13257_v37  ;;  %v6881_v7 = vadd.f32 %v6508_v59, %v5911_v22  ;;  %4612 = vmatmul.bf16.gmra.mxu2 %v15644_v31 }
 0xa28   :  { %v4942_v55 = vadd.f32 %v4570_v21, %v3857_v25 }
 0xa29   :  { %v7141_v43 = vadd.f32 %v13207_v57, %v6881_v7  ;;  %5582 = vmatmul.bf16.gmra.mxu3 %v15519_v49  ;;  %6547 = vmatmul.bf16.gmra.mxu0 %v15645_v30  ;;  %v15648_v7 = vld [vmem:[#allocation136_spill] sm:$0xff] }
 0xa2a   :  { %v4573_v45 = vpop.f32.mrf.mxu2  ;;  %v5912_v23 = vadd.f32 %v5540_v53, %v4942_v55 }
 0xa2b   :  { %v7397_v11 = vmax.f32 %v7141_v43, 0.0 }
 0xa2c   :  { %v5543_v47 = vpop.f32.mrf.mxu3 }
 0xa2d   :  { %v13267_v50 = vmul.f32 %v13095_v36, %v7397_v11  ;;  %v3859_v24 = vpop.f32.mrf.mxu1 }
 0xa2e   :  { %v3860_v42 = vadd.f32 %v3859_v24, %v15647_v12  ;;  %v6510_v22 = vpop.f32.mrf.mxu0 }
 0xa2f   :  { %15646 = vst [vmem:[#allocation209_spill] sm:$0xff] %v13267_v50  ;;  %v6882_v25 = vadd.f32 %v6510_v22, %v5912_v23  ;;  %v15656_v50 = vld [vmem:[#allocation353_spill] sm:$0xff] }
 0xa30   :  { %v4943_v59 = vadd.f32 %v4573_v45, %v3860_v42  ;;  %3898 = vmatmul.bf16.gmra.mxu1 %v15648_v7  ;;  %v15652_v42 = vld [vmem:[#allocation139_spill] sm:$0xff] }
 0xa31   :  { %v7142_v31 = vadd.f32 %v13207_v57, %v6882_v25  ;;  %v15653_v25 = vld [vmem:[#allocation12_spill] sm:$0xff] }
 0xa32   :  { %v4575_v49 = vpop.f32.mrf.mxu2  ;;  %v5913_v53 = vadd.f32 %v5543_v47, %v4943_v59  ;;  %v15654_v47 = vld [vmem:[#allocation121_spill] sm:$0xff] }
 0xa33   :  { %v7398_v55 = vmax.f32 %v7142_v31, 0.0 }
 0xa34   :  { %v5545_v43 = vpop.f32.mrf.mxu3 }
 0xa35   :  { %v13275_v11 = vmul.f32 %v13095_v36, %v7398_v55  ;;  %v3861_v37 = vpop.f32.mrf.mxu1 }
 0xa36   :  { %v3862_v24 = vadd.f32 %v3861_v37, %v15650_v3  ;;  %v6513_v12 = vpop.f32.mrf.mxu0 }
 0xa37   :  { %15649 = vst [vmem:[#allocation212_spill] sm:$0xff] %v13275_v11  ;;  %v6883_v23 = vadd.f32 %v6513_v12, %v5913_v53  ;;  %4617 = vmatmul.bf16.gmra.mxu2 %v15652_v42  ;;  %v15658_v42 = vld [vmem:[#allocation142_spill] sm:$0xff]  ;;  %v15669_v12 = vld [vmem:[#allocation365_spill] sm:$0xff] }
 0xa38   :  { %v4944_v45 = vadd.f32 %v4575_v49, %v3862_v24 }
 0xa39   :  { %v7143_v22 = vadd.f32 %v13207_v57, %v6883_v23  ;;  %5587 = vmatmul.bf16.gmra.mxu3 %v15653_v25  ;;  %6552 = vmatmul.bf16.gmra.mxu0 %v15654_v47 }
 0xa3a   :  { %v4578_v59 = vpop.f32.mrf.mxu2  ;;  %v5914_v7 = vadd.f32 %v5545_v43, %v4944_v45 }
 0xa3b   :  { %v7399_v31 = vmax.f32 %v7143_v22, 0.0 }
 0xa3c   :  { %v5548_v55 = vpop.f32.mrf.mxu3 }
 0xa3d   :  { %v13285_v3 = vmul.f32 %v13095_v36, %v7399_v31  ;;  %v3864_v37 = vpop.f32.mrf.mxu1 }
 0xa3e   :  { %v3865_v21 = vadd.f32 %v3864_v37, %v15656_v50  ;;  %v6515_v53 = vpop.f32.mrf.mxu0 }
 0xa3f   :  { %15655 = vst [vmem:[#allocation168_spill] sm:$0xff] %v13285_v3  ;;  %v6884_v24 = vadd.f32 %v6515_v53, %v5914_v7  ;;  %v15665_v3 = vld [vmem:[#allocation361_spill] sm:$0xff] }
 0xa40   :  { %v4945_v23 = vadd.f32 %v4578_v59, %v3865_v21  ;;  %3903 = vmatmul.bf16.gmra.mxu1 %v15658_v42  ;;  %v15662_v21 = vld [vmem:[#allocation151_spill] sm:$0xff] }
 0xa41   :  { %v7144_v25 = vadd.f32 %v13207_v57, %v6884_v24  ;;  %v15663_v24 = vld [vmem:[#allocation15_spill] sm:$0xff] }
 0xa42   :  { %v4580_v11 = vpop.f32.mrf.mxu2  ;;  %v5915_v43 = vadd.f32 %v5548_v55, %v4945_v23 }
 0xa43   :  { %v7400_v45 = vmax.f32 %v7144_v25, 0.0  ;;  %v15664_v25 = vld [vmem:[#allocation127_spill] sm:$0xff] }
 0xa44   :  { %v5550_v22 = vpop.f32.mrf.mxu3 }
 0xa45   :  { %v13293_v31 = vmul.f32 %v13095_v36, %v7400_v45  ;;  %v3866_v6 = vpop.f32.mrf.mxu1 }
 0xa46   :  { %v3867_v50 = vadd.f32 %v3866_v6, %v15660_v1  ;;  %v6518_v37 = vpop.f32.mrf.mxu0 }
 0xa47   :  { %15659 = vst [vmem:[#allocation218_spill] sm:$0xff] %v13293_v31  ;;  %v6885_v7 = vadd.f32 %v6518_v37, %v5915_v43  ;;  %4622 = vmatmul.bf16.gmra.mxu2 %v15662_v21  ;;  %v15666_v37 = vld [vmem:[#allocation149_spill] sm:$0xff]  ;;  %v15667_v21 = vld [vmem:[#allocation163_spill] sm:$0xff] }
 0xa48   :  { %v4946_v59 = vadd.f32 %v4580_v11, %v3867_v50 }
 0xa49   :  { %v7145_v53 = vadd.f32 %v13207_v57, %v6885_v7  ;;  %5592 = vmatmul.bf16.gmra.mxu3 %v15663_v24  ;;  %6557 = vmatmul.bf16.gmra.mxu0 %v15664_v25  ;;  %v15676_v25 = vld [vmem:[#allocation373_spill] sm:$0xff] }
 0xa4a   :  { %v4583_v55 = vpop.f32.mrf.mxu2  ;;  %v5916_v23 = vadd.f32 %v5550_v22, %v4946_v59 }
 0xa4b   :  { %v7401_v42 = vmax.f32 %v7145_v53, 0.0 }
 0xa4c   :  { %v5553_v45 = vpop.f32.mrf.mxu3 }
 0xa4d   :  { %v13303_v1 = vmul.f32 %v13095_v36, %v7401_v42  ;;  %v3869_v6 = vpop.f32.mrf.mxu1 }
 0xa4e   :  { %v3870_v49 = vadd.f32 %v3869_v6, %v15665_v3  ;;  %v6520_v43 = vpop.f32.mrf.mxu0 }
 0xa4f   :  { %v6886_v50 = vadd.f32 %v6520_v43, %v5916_v23 }
 0xa50   :  { %v4947_v7 = vadd.f32 %v4583_v55, %v3870_v49  ;;  %3908 = vmatmul.bf16.gmra.mxu1 %v15667_v21  ;;  %v15671_v49 = vld [vmem:[#allocation157_spill] sm:$0xff] }
 0xa51   :  { %v7146_v24 = vadd.f32 %v13207_v57, %v6886_v50 }
 0xa52   :  { %v4585_v31 = vpop.f32.mrf.mxu2  ;;  %v5917_v22 = vadd.f32 %v5553_v45, %v4947_v7 }
 0xa53   :  { %v7402_v59 = vmax.f32 %v7146_v24, 0.0  ;;  %v15672_v24 = vld [vmem:[#allocation148_spill] sm:$0xff] }
 0xa54   :  { %v5555_v53 = vpop.f32.mrf.mxu3 }
 0xa55   :  { %v13311_v42 = vmul.f32 %v13095_v36, %v7402_v59  ;;  %v3871_v47 = vpop.f32.mrf.mxu1  ;;  %v15673_v59 = vld [vmem:[#allocation369_spill] sm:$0xff] }
 0xa56   :  { %v3872_v3 = vadd.f32 %v3871_v47, %v15669_v12  ;;  %v6523_v6 = vpop.f32.mrf.mxu0 }
 0xa57   :  { %15668 = vst [vmem:[#allocation173_spill] sm:$0xff] %v13311_v42  ;;  %v6887_v23 = vadd.f32 %v6523_v6, %v5917_v22  ;;  %4627 = vmatmul.bf16.gmra.mxu2 %v15671_v49 }
 0xa58   :  { %v4948_v55 = vadd.f32 %v4585_v31, %v3872_v3 }
 0xa59   :  { %v7147_v43 = vadd.f32 %v13207_v57, %v6887_v23  ;;  %5597 = vmatmul.bf16.gmra.mxu3 %v15558_v2  ;;  %6562 = vmatmul.bf16.gmra.mxu0 %v15672_v24  ;;  %v15674_v23 = vld [vmem:[#allocation174_spill] sm:$0xff] }
 0xa5a   :  { %v4588_v45 = vpop.f32.mrf.mxu2  ;;  %v5918_v50 = vadd.f32 %v5555_v53, %v4948_v55 }
 0xa5b   :  { %v7403_v7 = vmax.f32 %v7147_v43, 0.0 }
 0xa5c   :  { %v5558_v21 = vpop.f32.mrf.mxu3 }
 0xa5d   :  { %v13321_v47 = vmul.f32 %v13095_v36, %v7403_v7  ;;  %v3874_v12 = vpop.f32.mrf.mxu1 }
 0xa5e   :  { %v3875_v11 = vadd.f32 %v3874_v12, %v15673_v59  ;;  %v6525_v22 = vpop.f32.mrf.mxu0 }
 0xa5f   :  { %v6888_v3 = vadd.f32 %v6525_v22, %v5918_v50 }
 0xa60   :  { %v4949_v6 = vadd.f32 %v4588_v45, %v3875_v11  ;;  %3913 = vmatmul.bf16.gmra.mxu1 %v15674_v23  ;;  %v15677_v11 = vld [vmem:[#allocation178_spill] sm:$0xff] }
 0xa61   :  { %v7148_v49 = vadd.f32 %v13207_v57, %v6888_v3 }
 0xa62   :  { %v4590_v2 = vpop.f32.mrf.mxu2  ;;  %v5919_v53 = vadd.f32 %v5558_v21, %v4949_v6  ;;  %v15678_v21 = vld [vmem:[#allocation159_spill] sm:$0xff] }
 0xa63   :  { %v7404_v55 = vmax.f32 %v7148_v49, 0.0 }
 0xa64   :  { %v5560_v43 = vpop.f32.mrf.mxu3 }
 0xa65   :  { %v13329_v7 = vmul.f32 %v13095_v36, %v7404_v55  ;;  %v3876_v42 = vpop.f32.mrf.mxu1  ;;  %v15679_v55 = vld [vmem:[#allocation378_spill] sm:$0xff] }
 0xa66   :  { %v3877_v12 = vadd.f32 %v3876_v42, %v15676_v25  ;;  %v6528_v59 = vpop.f32.mrf.mxu0 }
 0xa67   :  { %15675 = vst [vmem:[#allocation222_spill] sm:$0xff] %v13329_v7  ;;  %v6889_v50 = vadd.f32 %v6528_v59, %v5919_v53  ;;  %4632 = vmatmul.bf16.gmra.mxu2 %v15677_v11 }
 0xa68   :  { %v4950_v45 = vadd.f32 %v4590_v2, %v3877_v12 }
 0xa69   :  { %v7149_v22 = vadd.f32 %v13207_v57, %v6889_v50  ;;  %5602 = vmatmul.bf16.gmra.mxu3 %v15567_v0  ;;  %6567 = vmatmul.bf16.gmra.mxu0 %v15678_v21  ;;  %v15680_v50 = vld [vmem:[#allocation184_spill] sm:$0xff] }
 0xa6a   :  { %v4593_v3 = vpop.f32.mrf.mxu2  ;;  %v5920_v6 = vadd.f32 %v5560_v43, %v4950_v45 }
 0xa6b   :  { %v7405_v23 = vmax.f32 %v7149_v22, 0.0 }
 0xa6c   :  { %v5563_v49 = vpop.f32.mrf.mxu3 }
 0xa6d   :  { %v13339_v25 = vmul.f32 %v13095_v36, %v7405_v23  ;;  %v3879_v42 = vpop.f32.mrf.mxu1 }
 0xa6e   :  { %v3880_v31 = vadd.f32 %v3879_v42, %v15679_v55  ;;  %v6530_v53 = vpop.f32.mrf.mxu0 }
 0xa6f   :  { %v6890_v12 = vadd.f32 %v6530_v53, %v5920_v6 }
 0xa70   :  { %v4951_v59 = vadd.f32 %v4593_v3, %v3880_v31  ;;  %3918 = vmatmul.bf16.gmra.mxu1 %v15680_v50 }
 0xa71   :  { %v7150_v11 = vadd.f32 %v13207_v57, %v6890_v12 }
 0xa72   :  { %v4595_v0 = vpop.f32.mrf.mxu2  ;;  %v5921_v43 = vadd.f32 %v5563_v49, %v4951_v59  ;;  %v15683_v49 = vld [vmem:[#allocation169_spill] sm:$0xff] }
 0xa73   :  { %v7406_v45 = vmax.f32 %v7150_v11, 0.0  ;;  %v15684_v11 = vld [vmem:[#allocation45_spill] sm:$0xff] }
 0xa74   :  { %v5565_v22 = vpop.f32.mrf.mxu3 }
 0xa75   :  { %v13347_v23 = vmul.f32 %v13095_v36, %v7406_v45  ;;  %v3881_v7 = vpop.f32.mrf.mxu1 }
 0xa76   :  { %v3882_v42 = vadd.f32 %v3881_v7, %v15682_v33  ;;  %v6533_v55 = vpop.f32.mrf.mxu0 }
 0xa77   :  { %15681 = vst [vmem:[#allocation229_spill] sm:$0xff] %v13347_v23  ;;  %v6891_v6 = vadd.f32 %v6533_v55, %v5921_v43  ;;  %4637 = vmatmul.bf16.gmra.mxu2 %v15416_v54  ;;  %v15685_v55 = vld [vmem:[#allocation197_spill] sm:$0xff]  ;;  %v15687_v23 = vld [vmem:[#allocation48_spill] sm:$0xff] }
 0xa78   :  { %v4952_v31 = vadd.f32 %v4595_v0, %v3882_v42 }
 0xa79   :  { %v7151_v3 = vadd.f32 %v13207_v57, %v6891_v6  ;;  %5607 = vmatmul.bf16.gmra.mxu3 %v15576_v28  ;;  %6572 = vmatmul.bf16.gmra.mxu0 %v15683_v49 }
 0xa7a   :  { %v4598_v53 = vpop.f32.mrf.mxu2  ;;  %v5922_v12 = vadd.f32 %v5565_v22, %v4952_v31 }
 0xa7b   :  { %v7407_v59 = vmax.f32 %v7151_v3, 0.0 }
 0xa7c   :  { %v5568_v50 = vpop.f32.mrf.mxu3 }
 0xa7d   :  { %v13357_v33 = vmul.f32 %v13095_v36, %v7407_v59  ;;  %v3884_v7 = vpop.f32.mrf.mxu1 }
 0xa7e   :  { %v3885_v45 = vadd.f32 %v3884_v7, %v15684_v11  ;;  %v6535_v43 = vpop.f32.mrf.mxu0 }
 0xa7f   :  { %v6892_v0 = vadd.f32 %v6535_v43, %v5922_v12 }
 0xa80   :  { %v4953_v42 = vadd.f32 %v4598_v53, %v3885_v45  ;;  %3923 = vmatmul.bf16.gmra.mxu1 %v15685_v55  ;;  %v15688_v53 = vld [vmem:[#allocation201_spill] sm:$0xff] }
 0xa81   :  { %v7152_v6 = vadd.f32 %v13207_v57, %v6892_v0 }
 0xa82   :  { %v4600_v2 = vpop.f32.mrf.mxu2  ;;  %v5923_v22 = vadd.f32 %v5568_v50, %v4953_v42  ;;  %v15689_v50 = vld [vmem:[#allocation181_spill] sm:$0xff] }
 0xa83   :  { %v7408_v31 = vmax.f32 %v7152_v6, 0.0 }
 0xa84   :  { %v5570_v3 = vpop.f32.mrf.mxu3 }
 0xa85   :  { %v13365_v59 = vmul.f32 %v13095_v36, %v7408_v31  ;;  %v3886_v28 = vpop.f32.mrf.mxu1  ;;  %v15690_v31 = vld [vmem:[#allocation58_spill] sm:$0xff] }
 0xa86   :  { %v3887_v7 = vadd.f32 %v3886_v28, %v15687_v23  ;;  %v6538_v11 = vpop.f32.mrf.mxu0 }
 0xa87   :  { %15686 = vst [vmem:[#allocation190_spill] sm:$0xff] %v13365_v59  ;;  %v6893_v12 = vadd.f32 %v6538_v11, %v5923_v22  ;;  %4642 = vmatmul.bf16.gmra.mxu2 %v15688_v53 }
 0xa88   :  { %v4954_v45 = vadd.f32 %v4600_v2, %v3887_v7 }
 0xa89   :  { %v7153_v43 = vadd.f32 %v13207_v57, %v6893_v12  ;;  %5612 = vmatmul.bf16.gmra.mxu3 %v15586_v40  ;;  %6577 = vmatmul.bf16.gmra.mxu0 %v15689_v50  ;;  %v15691_v12 = vld [vmem:[#allocation204_spill] sm:$0xff] }
 0xa8a   :  { %v4603_v0 = vpop.f32.mrf.mxu2  ;;  %v5924_v42 = vadd.f32 %v5570_v3, %v4954_v45 }
 0xa8b   :  { %v7409_v55 = vmax.f32 %v7153_v43, 0.0 }
 0xa8c   :  { %v5573_v6 = vpop.f32.mrf.mxu3 }
 0xa8d   :  { %v13375_v28 = vmul.f32 %v13095_v36, %v7409_v55  ;;  %v3889_v23 = vpop.f32.mrf.mxu1 }
 0xa8e   :  { %v3890_v54 = vadd.f32 %v3889_v23, %v15690_v31  ;;  %v6540_v22 = vpop.f32.mrf.mxu0 }
 0xa8f   :  { %v6894_v7 = vadd.f32 %v6540_v22, %v5924_v42 }
 0xa90   :  { %v4955_v11 = vadd.f32 %v4603_v0, %v3890_v54  ;;  %3928 = vmatmul.bf16.gmra.mxu1 %v15691_v12 }
 0xa91   :  { %v7154_v53 = vadd.f32 %v13207_v57, %v6894_v7 }
 0xa92   :  { %v4605_v40 = vpop.f32.mrf.mxu2  ;;  %v5925_v3 = vadd.f32 %v5573_v6, %v4955_v11  ;;  %v13393_v6 = vld [vmem:[%s14093_s3 + $0x6] ss:$0 sm:$0xff] }
 0xa93   :  { %v7410_v45 = vmax.f32 %v7154_v53, 0.0 }
 0xa94   :  { %v5575_v43 = vpop.f32.mrf.mxu3 }
 0xa95   :  { %v13383_v55 = vmul.f32 %v13095_v36, %v7410_v45  ;;  %v3891_v59 = vpop.f32.mrf.mxu1  ;;  %v15694_v36 = vld [vmem:[#allocation187_spill] sm:$0xff] }
 0xa96   :  { %v3892_v23 = vadd.f32 %v3891_v59, %v15693_v48  ;;  %v6543_v31 = vpop.f32.mrf.mxu0 }
 0xa97   :  { %15692 = vst [vmem:[#allocation233_spill] sm:$0xff] %v13383_v55  ;;  %v6895_v42 = vadd.f32 %v6543_v31, %v5925_v3  ;;  %4647 = vmatmul.bf16.gmra.mxu2 %v15427_v46  ;;  %v15695_v46 = vld [vmem:[#allocation66_spill] sm:$0xff]  ;;  %v15696_v3 = vmax.f32 %v12774_v20, %v13100_v8  ;;  %v15699_v20 = vmax.f32 %v12783_v56, %v13108_v62  ;;  %v15702_v56 = vld [vmem:[#allocation77_spill] sm:$0xff] }
 0xa98   :  { %v4956_v54 = vadd.f32 %v4605_v40, %v3892_v23 }
 0xa99   :  { %v7155_v0 = vadd.f32 %v13207_v57, %v6895_v42  ;;  %5617 = vmatmul.bf16.gmra.mxu3 %v15590_v17  ;;  %6582 = vmatmul.bf16.gmra.mxu0 %v15694_v36  ;;  %v15697_v42 = vld [vmem:[#allocation232_spill] sm:$0xff] }
 0xa9a   :  { %v4608_v48 = vpop.f32.mrf.mxu2  ;;  %v5926_v59 = vadd.f32 %v5575_v43, %v4956_v54 }
 0xa9b   :  { %v7411_v22 = vmax.f32 %v7155_v0, 0.0 }
 0xa9c   :  { %v5578_v7 = vpop.f32.mrf.mxu3 }
 0xa9d   :  { %v7699_v11 = vmul.f32 %v13393_v6, %v7411_v22  ;;  %v3894_v12 = vpop.f32.mrf.mxu1 }
 0xa9e   :  { %v3895_v40 = vadd.f32 %v3894_v12, %v15695_v46  ;;  %v6545_v53 = vpop.f32.mrf.mxu0  ;;  %v15698_v12 = vld [vmem:[#allocation71_spill] sm:$0xff] }
 0xa9f   :  { %v13402_v45 = vmax.f32 %v15696_v3, %v7699_v11  ;;  %v6896_v23 = vadd.f32 %v6545_v53, %v5926_v59  ;;  %v15700_v59 = vld [vmem:[#allocation224_spill] sm:$0xff] }
 0xaa0   :  { %v4957_v31 = vadd.f32 %v4608_v48, %v3895_v40  ;;  %3933 = vmatmul.bf16.gmra.mxu1 %v15697_v42 }
 0xaa1   :  { %v7156_v2 = vadd.f32 %v13207_v57, %v6896_v23 }
 0xaa2   :  { %v4610_v43 = vpop.f32.mrf.mxu2  ;;  %v5927_v54 = vadd.f32 %v5578_v7, %v4957_v31 }
 0xaa3   :  { %v7412_v0 = vmax.f32 %v7156_v2, 0.0  ;;  %v15701_v2 = vld [vmem:[#allocation211_spill] sm:$0xff] }
 0xaa4   :  { %v5580_v17 = vpop.f32.mrf.mxu3 }
 0xaa5   :  { %v7700_v22 = vmul.f32 %v13393_v6, %v7412_v0  ;;  %v3896_v55 = vpop.f32.mrf.mxu1 }
 0xaa6   :  { %v3897_v46 = vadd.f32 %v3896_v55, %v15698_v12  ;;  %v6548_v5 = vpop.f32.mrf.mxu0 }
 0xaa7   :  { %v13411_v8 = vmax.f32 %v15699_v20, %v7700_v22  ;;  %v6897_v48 = vadd.f32 %v6548_v5, %v5927_v54  ;;  %4652 = vmatmul.bf16.gmra.mxu2 %v15700_v59  ;;  %v15703_v5 = vmax.f32 %v12794_v38, %v13118_v41  ;;  %v15704_v22 = vld [vmem:[#allocation248_spill] sm:$0xff] }
 0xaa8   :  { %v4958_v11 = vadd.f32 %v4610_v43, %v3897_v46  ;;  %v15706_v38 = vld [vmem:[#allocation140_spill] sm:$0xff] }
 0xaa9   :  { %v7157_v40 = vadd.f32 %v13207_v57, %v6897_v48  ;;  %5622 = vmatmul.bf16.gmra.mxu3 %v15595_v61  ;;  %6587 = vmatmul.bf16.gmra.mxu0 %v15701_v2  ;;  %v15707_v41 = vmax.f32 %v12803_v4, %v15706_v38  ;;  %v15710_v4 = vld [vmem:[#allocation87_spill] sm:$0xff] }
 0xaaa   :  { %v4613_v7 = vpop.f32.mrf.mxu2  ;;  %v5928_v53 = vadd.f32 %v5580_v17, %v4958_v11 }
 0xaab   :  { %v7413_v3 = vmax.f32 %v7157_v40, 0.0  ;;  %v15705_v40 = vld [vmem:[#allocation81_spill] sm:$0xff] }
 0xaac   :  { %v5583_v55 = vpop.f32.mrf.mxu3 }
 0xaad   :  { %v7701_v23 = vmul.f32 %v13393_v6, %v7413_v3  ;;  %v3899_v31 = vpop.f32.mrf.mxu1 }
 0xaae   :  { %v3900_v62 = vadd.f32 %v3899_v31, %v15702_v56  ;;  %v6550_v42 = vpop.f32.mrf.mxu0 }
 0xaaf   :  { %v13422_v43 = vmax.f32 %v15703_v5, %v7701_v23  ;;  %v6898_v54 = vadd.f32 %v6550_v42, %v5928_v53  ;;  %v15708_v53 = vld [vmem:[#allocation253_spill] sm:$0xff] }
 0xab0   :  { %v4959_v0 = vadd.f32 %v4613_v7, %v3900_v62  ;;  %3938 = vmatmul.bf16.gmra.mxu1 %v15704_v22 }
 0xab1   :  { %v7158_v12 = vadd.f32 %v13207_v57, %v6898_v54 }
 0xab2   :  { %v4615_v17 = vpop.f32.mrf.mxu2  ;;  %v5929_v46 = vadd.f32 %v5583_v55, %v4959_v0  ;;  %v15709_v55 = vld [vmem:[#allocation227_spill] sm:$0xff] }
 0xab3   :  { %v7414_v20 = vmax.f32 %v7158_v12, 0.0 }
 0xab4   :  { %v5585_v48 = vpop.f32.mrf.mxu3 }
 0xab5   :  { %v7702_v59 = vmul.f32 %v13393_v6, %v7414_v20  ;;  %v3901_v11 = vpop.f32.mrf.mxu1 }
 0xab6   :  { %v3902_v3 = vadd.f32 %v3901_v11, %v15705_v40  ;;  %v6553_v31 = vpop.f32.mrf.mxu0 }
 0xab7   :  { %v13431_v23 = vmax.f32 %v15707_v41, %v7702_v59  ;;  %v6899_v7 = vadd.f32 %v6553_v31, %v5929_v46  ;;  %4657 = vmatmul.bf16.gmra.mxu2 %v15708_v53  ;;  %v15711_v46 = vmax.f32 %v12814_v63, %v13136_v26  ;;  %v15714_v63 = vld [vmem:[#allocation167_spill] sm:$0xff] }
 0xab8   :  { %v4960_v56 = vadd.f32 %v4615_v17, %v3902_v3  ;;  %v15712_v3 = vld [vmem:[#allocation263_spill] sm:$0xff]  ;;  %v15715_v26 = vmax.f32 %v12823_v34, %v15714_v63  ;;  %v15718_v34 = vld [vmem:[#allocation93_spill] sm:$0xff] }
 0xab9   :  { %v7159_v62 = vadd.f32 %v13207_v57, %v6899_v7  ;;  %5627 = vmatmul.bf16.gmra.mxu3 %v15600_v58  ;;  %6592 = vmatmul.bf16.gmra.mxu0 %v15709_v55 }
 0xaba   :  { %v4618_v42 = vpop.f32.mrf.mxu2  ;;  %v5930_v5 = vadd.f32 %v5585_v48, %v4960_v56 }
 0xabb   :  { %v7415_v54 = vmax.f32 %v7159_v62, 0.0  ;;  %v15713_v62 = vld [vmem:[#allocation90_spill] sm:$0xff] }
 0xabc   :  { %v5588_v0 = vpop.f32.mrf.mxu3 }
 0xabd   :  { %v7703_v22 = vmul.f32 %v13393_v6, %v7415_v54  ;;  %v3904_v12 = vpop.f32.mrf.mxu1 }
 0xabe   :  { %v3905_v20 = vadd.f32 %v3904_v12, %v15710_v4  ;;  %v6555_v59 = vpop.f32.mrf.mxu0 }
 0xabf   :  { %v13442_v17 = vmax.f32 %v15711_v46, %v7703_v22  ;;  %v6900_v11 = vadd.f32 %v6555_v59, %v5930_v5  ;;  %v15716_v5 = vld [vmem:[#allocation269_spill] sm:$0xff] }
 0xac0   :  { %v4961_v40 = vadd.f32 %v4618_v42, %v3905_v20  ;;  %3943 = vmatmul.bf16.gmra.mxu1 %v15712_v3 }
 0xac1   :  { %v7160_v31 = vadd.f32 %v13207_v57, %v6900_v11 }
 0xac2   :  { %v4620_v48 = vpop.f32.mrf.mxu2  ;;  %v5931_v38 = vadd.f32 %v5588_v0, %v4961_v40  ;;  %v15717_v0 = vld [vmem:[#allocation242_spill] sm:$0xff] }
 0xac3   :  { %v7416_v41 = vmax.f32 %v7160_v31, 0.0 }
 0xac4   :  { %v5590_v7 = vpop.f32.mrf.mxu3 }
 0xac5   :  { %v7704_v53 = vmul.f32 %v13393_v6, %v7416_v41  ;;  %v3906_v56 = vpop.f32.mrf.mxu1 }
 0xac6   :  { %v3907_v54 = vadd.f32 %v3906_v56, %v15713_v62  ;;  %v6558_v12 = vpop.f32.mrf.mxu0 }
 0xac7   :  { %v13451_v22 = vmax.f32 %v15715_v26, %v7704_v53  ;;  %v6901_v42 = vadd.f32 %v6558_v12, %v5931_v38  ;;  %4662 = vmatmul.bf16.gmra.mxu2 %v15716_v5  ;;  %v15719_v38 = vmax.f32 %v12834_v9, %v13154_v15  ;;  %v15723_v9 = vld [vmem:[#allocation146_spill] sm:$0xff] }
 0xac8   :  { %v4962_v4 = vadd.f32 %v4620_v48, %v3907_v54  ;;  %v15720_v54 = vld [vmem:[#allocation279_spill] sm:$0xff] }
 0xac9   :  { %v7161_v20 = vadd.f32 %v13207_v57, %v6901_v42  ;;  %5632 = vmatmul.bf16.gmra.mxu3 %v15605_v44  ;;  %6597 = vmatmul.bf16.gmra.mxu0 %v15717_v0 }
 0xaca   :  { %v4623_v59 = vpop.f32.mrf.mxu2  ;;  %v5932_v46 = vadd.f32 %v5590_v7, %v4962_v4 }
 0xacb   :  { %v7417_v11 = vmax.f32 %v7161_v20, 0.0  ;;  %v15721_v20 = vld [vmem:[#allocation98_spill] sm:$0xff] }
 0xacc   :  { %v5593_v40 = vpop.f32.mrf.mxu3 }
 0xacd   :  { %v7705_v3 = vmul.f32 %v13393_v6, %v7417_v11  ;;  %v3909_v31 = vpop.f32.mrf.mxu1 }
 0xace   :  { %v3910_v41 = vadd.f32 %v3909_v31, %v15718_v34  ;;  %v6560_v53 = vpop.f32.mrf.mxu0  ;;  %v15722_v34 = vld [vmem:[#allocation92_spill] sm:$0xff] }
 0xacf   :  { %v13462_v48 = vmax.f32 %v15719_v38, %v7705_v3  ;;  %v6902_v56 = vadd.f32 %v6560_v53, %v5932_v46  ;;  %v15724_v15 = vmax.f32 %v15722_v34, %v15723_v9  ;;  %v15726_v46 = vld [vmem:[#allocation284_spill] sm:$0xff]  ;;  %v15731_v9 = vld [vmem:[#allocation287_spill] sm:$0xff] }
 0xad0   :  { %v4963_v62 = vadd.f32 %v4623_v59, %v3910_v41  ;;  %3948 = vmatmul.bf16.gmra.mxu1 %v15720_v54 }
 0xad1   :  { %v7162_v12 = vadd.f32 %v13207_v57, %v6902_v56 }
 0xad2   :  { %v4625_v7 = vpop.f32.mrf.mxu2  ;;  %v5933_v63 = vadd.f32 %v5593_v40, %v4963_v62  ;;  %v15727_v40 = vld [vmem:[#allocation258_spill] sm:$0xff] }
 0xad3   :  { %v7418_v26 = vmax.f32 %v7162_v12, 0.0 }
 0xad4   :  { %v5595_v42 = vpop.f32.mrf.mxu3 }
 0xad5   :  { %v7706_v5 = vmul.f32 %v13393_v6, %v7418_v26  ;;  %v3911_v4 = vpop.f32.mrf.mxu1 }
 0xad6   :  { %v3912_v11 = vadd.f32 %v3911_v4, %v15721_v20  ;;  %v6563_v31 = vpop.f32.mrf.mxu0  ;;  %v15728_v4 = vld [vmem:[#allocation115_spill] sm:$0xff] }
 0xad7   :  { %v13471_v3 = vmax.f32 %v15724_v15, %v7706_v5  ;;  %v6903_v59 = vadd.f32 %v6563_v31, %v5933_v63  ;;  %4667 = vmatmul.bf16.gmra.mxu2 %v15726_v46  ;;  %v15729_v63 = vld [vmem:[#allocation171_spill] sm:$0xff] }
 0xad8   :  { %v4964_v41 = vadd.f32 %v4625_v7, %v3912_v11  ;;  %v15730_v31 = vmax.f32 %v12859_v52, %v15729_v63  ;;  %v15734_v52 = vld [vmem:[#allocation177_spill] sm:$0xff] }
 0xad9   :  { %15725 = vst [vmem:[#allocation194_spill] sm:$0xff] %v13471_v3  ;;  %v7163_v53 = vadd.f32 %v13207_v57, %v6903_v59  ;;  %5637 = vmatmul.bf16.gmra.mxu3 %v15613_v19  ;;  %6602 = vmatmul.bf16.gmra.mxu0 %v15727_v40  ;;  %v15733_v19 = vld [vmem:[#allocation96_spill] sm:$0xff] }
 0xada   :  { %v4628_v38 = vpop.f32.mrf.mxu2  ;;  %v5934_v56 = vadd.f32 %v5595_v42, %v4964_v41 }
 0xadb   :  { %v7419_v62 = vmax.f32 %v7163_v53, 0.0 }
 0xadc   :  { %v5598_v54 = vpop.f32.mrf.mxu3 }
 0xadd   :  { %v7707_v12 = vmul.f32 %v13393_v6, %v7419_v62  ;;  %v3914_v26 = vpop.f32.mrf.mxu1 }
 0xade   :  { %v3915_v5 = vadd.f32 %v3914_v26, %v15728_v4  ;;  %v6565_v20 = vpop.f32.mrf.mxu0  ;;  %v15732_v26 = vld [vmem:[#allocation119_spill] sm:$0xff] }
 0xadf   :  { %v13482_v7 = vmax.f32 %v15730_v31, %v7707_v12  ;;  %v6904_v11 = vadd.f32 %v6565_v20, %v5934_v56  ;;  %v15735_v12 = vmax.f32 %v15733_v19, %v15734_v52  ;;  %v15737_v56 = vld [vmem:[#allocation300_spill] sm:$0xff]  ;;  %v15739_v19 = vld [vmem:[#allocation125_spill] sm:$0xff] }
 0xae0   :  { %v4965_v34 = vadd.f32 %v4628_v38, %v3915_v5  ;;  %3953 = vmatmul.bf16.gmra.mxu1 %v15731_v9  ;;  %v15742_v52 = vld [vmem:[#allocation316_spill] sm:$0xff] }
 0xae1   :  { %v7164_v15 = vadd.f32 %v13207_v57, %v6904_v11 }
 0xae2   :  { %v4630_v42 = vpop.f32.mrf.mxu2  ;;  %v5935_v59 = vadd.f32 %v5598_v54, %v4965_v34  ;;  %v15738_v54 = vld [vmem:[#allocation266_spill] sm:$0xff] }
 0xae3   :  { %v7420_v46 = vmax.f32 %v7164_v15, 0.0 }
 0xae4   :  { %v5600_v41 = vpop.f32.mrf.mxu3 }
 0xae5   :  { %v7708_v53 = vmul.f32 %v13393_v6, %v7420_v46  ;;  %v3916_v62 = vpop.f32.mrf.mxu1 }
 0xae6   :  { %v3917_v4 = vadd.f32 %v3916_v62, %v15732_v26  ;;  %v6568_v3 = vpop.f32.mrf.mxu0 }
 0xae7   :  { %v13491_v63 = vmax.f32 %v15735_v12, %v7708_v53  ;;  %v6905_v38 = vadd.f32 %v6568_v3, %v5935_v59  ;;  %4672 = vmatmul.bf16.gmra.mxu2 %v15737_v56  ;;  %v15740_v3 = vld [vmem:[#allocation152_spill] sm:$0xff] }
 0xae8   :  { %v4966_v5 = vadd.f32 %v4630_v42, %v3917_v4  ;;  %v15741_v59 = vmax.f32 %v12879_v35, %v15740_v3  ;;  %v15745_v35 = vld [vmem:[#allocation180_spill] sm:$0xff] }
 0xae9   :  { %15736 = vst [vmem:[#allocation239_spill] sm:$0xff] %v13491_v63  ;;  %v7165_v20 = vadd.f32 %v13207_v57, %v6905_v38  ;;  %5642 = vmatmul.bf16.gmra.mxu3 %v15621_v39  ;;  %6607 = vmatmul.bf16.gmra.mxu0 %v15738_v54  ;;  %v15744_v63 = vld [vmem:[#allocation120_spill] sm:$0xff] }
 0xaea   :  { %v4633_v31 = vpop.f32.mrf.mxu2  ;;  %v5936_v11 = vadd.f32 %v5600_v41, %v4966_v5 }
 0xaeb   :  { %v7421_v34 = vmax.f32 %v7165_v20, 0.0 }
 0xaec   :  { %v5603_v9 = vpop.f32.mrf.mxu3 }
 0xaed   :  { %v7709_v15 = vmul.f32 %v13393_v6, %v7421_v34  ;;  %v3919_v46 = vpop.f32.mrf.mxu1 }
 0xaee   :  { %v3920_v53 = vadd.f32 %v3919_v46, %v15739_v19  ;;  %v6570_v62 = vpop.f32.mrf.mxu0  ;;  %v15743_v46 = vld [vmem:[#allocation131_spill] sm:$0xff] }
 0xaef   :  { %v13502_v42 = vmax.f32 %v15741_v59, %v7709_v15  ;;  %v6906_v26 = vadd.f32 %v6570_v62, %v5936_v11  ;;  %v15746_v15 = vmax.f32 %v15744_v63, %v15745_v35  ;;  %v15748_v11 = vld [vmem:[#allocation308_spill] sm:$0xff]  ;;  %v15750_v63 = vld [vmem:[#allocation137_spill] sm:$0xff]  ;;  %v15753_v35 = vld [vmem:[#allocation3_spill] sm:$0xff] }
 0xaf0   :  { %v4967_v4 = vadd.f32 %v4633_v31, %v3920_v53  ;;  %3958 = vmatmul.bf16.gmra.mxu1 %v15742_v52 }
 0xaf1   :  { %v7166_v12 = vadd.f32 %v13207_v57, %v6906_v26 }
 0xaf2   :  { %v4635_v41 = vpop.f32.mrf.mxu2  ;;  %v5937_v38 = vadd.f32 %v5603_v9, %v4967_v4  ;;  %v15749_v9 = vld [vmem:[#allocation295_spill] sm:$0xff] }
 0xaf3   :  { %v7422_v56 = vmax.f32 %v7166_v12, 0.0 }
 0xaf4   :  { %v5605_v5 = vpop.f32.mrf.mxu3 }
 0xaf5   :  { %v7710_v20 = vmul.f32 %v13393_v6, %v7422_v56  ;;  %v3921_v34 = vpop.f32.mrf.mxu1 }
 0xaf6   :  { %v3922_v19 = vadd.f32 %v3921_v34, %v15743_v46  ;;  %v6573_v39 = vpop.f32.mrf.mxu0 }
 0xaf7   :  { %v13511_v3 = vmax.f32 %v15746_v15, %v7710_v20  ;;  %v6907_v31 = vadd.f32 %v6573_v39, %v5937_v38  ;;  %4677 = vmatmul.bf16.gmra.mxu2 %v15748_v11  ;;  %v15751_v39 = vld [vmem:[#allocation156_spill] sm:$0xff] }
 0xaf8   :  { %v4968_v53 = vadd.f32 %v4635_v41, %v3922_v19  ;;  %v15752_v38 = vmax.f32 %v12899_v14, %v15751_v39  ;;  %v15756_v14 = vld [vmem:[#allocation183_spill] sm:$0xff] }
 0xaf9   :  { %15747 = vst [vmem:[#allocation243_spill] sm:$0xff] %v13511_v3  ;;  %v7167_v62 = vadd.f32 %v13207_v57, %v6907_v31  ;;  %5647 = vmatmul.bf16.gmra.mxu3 %v15629_v51  ;;  %6612 = vmatmul.bf16.gmra.mxu0 %v15749_v9  ;;  %v15755_v3 = vld [vmem:[#allocation102_spill] sm:$0xff] }
 0xafa   :  { %v4638_v59 = vpop.f32.mrf.mxu2  ;;  %v5938_v26 = vadd.f32 %v5605_v5, %v4968_v53 }
 0xafb   :  { %v7423_v4 = vmax.f32 %v7167_v62, 0.0 }
 0xafc   :  { %v5608_v52 = vpop.f32.mrf.mxu3 }
 0xafd   :  { %v7711_v12 = vmul.f32 %v13393_v6, %v7423_v4  ;;  %v3924_v56 = vpop.f32.mrf.mxu1 }
 0xafe   :  { %v3925_v20 = vadd.f32 %v3924_v56, %v15750_v63  ;;  %v6575_v34 = vpop.f32.mrf.mxu0  ;;  %v15754_v56 = vld [vmem:[#allocation141_spill] sm:$0xff] }
 0xaff   :  { %v13522_v41 = vmax.f32 %v15752_v38, %v7711_v12  ;;  %v6908_v46 = vadd.f32 %v6575_v34, %v5938_v26  ;;  %v15757_v12 = vmax.f32 %v15755_v3, %v15756_v14  ;;  %v15759_v26 = vld [vmem:[#allocation4_spill] sm:$0xff]  ;;  %v15761_v3 = vld [vmem:[#allocation147_spill] sm:$0xff] }
 0xb00   :  { %v4969_v19 = vadd.f32 %v4638_v59, %v3925_v20  ;;  %3963 = vmatmul.bf16.gmra.mxu1 %v15753_v35 }
 0xb01   :  { %v7168_v15 = vadd.f32 %v13207_v57, %v6908_v46 }
 0xb02   :  { %v4640_v5 = vpop.f32.mrf.mxu2  ;;  %v5939_v31 = vadd.f32 %v5608_v52, %v4969_v19  ;;  %v15760_v52 = vld [vmem:[#allocation311_spill] sm:$0xff] }
 0xb03   :  { %v7424_v11 = vmax.f32 %v7168_v15, 0.0 }
 0xb04   :  { %v5610_v53 = vpop.f32.mrf.mxu3 }
 0xb05   :  { %v7712_v62 = vmul.f32 %v13393_v6, %v7424_v11  ;;  %v3926_v4 = vpop.f32.mrf.mxu1 }
 0xb06   :  { %v3927_v63 = vadd.f32 %v3926_v4, %v15754_v56  ;;  %v6578_v51 = vpop.f32.mrf.mxu0 }
 0xb07   :  { %v13531_v39 = vmax.f32 %v15757_v12, %v7712_v62  ;;  %v6909_v59 = vadd.f32 %v6578_v51, %v5939_v31  ;;  %4682 = vmatmul.bf16.gmra.mxu2 %v15759_v26  ;;  %v15762_v51 = vld [vmem:[#allocation188_spill] sm:$0xff] }
 0xb08   :  { %v4970_v20 = vadd.f32 %v4640_v5, %v3927_v63  ;;  %v15763_v31 = vmax.f32 %v12919_v18, %v15762_v51  ;;  %v15767_v18 = vld [vmem:[#allocation162_spill] sm:$0xff] }
 0xb09   :  { %15758 = vst [vmem:[#allocation198_spill] sm:$0xff] %v13531_v39  ;;  %v7169_v34 = vadd.f32 %v13207_v57, %v6909_v59  ;;  %5652 = vmatmul.bf16.gmra.mxu3 %v15637_v16  ;;  %6617 = vmatmul.bf16.gmra.mxu0 %v15760_v52  ;;  %v15764_v16 = vld [vmem:[#allocation5_spill] sm:$0xff] }
 0xb0a   :  { %v4643_v38 = vpop.f32.mrf.mxu2  ;;  %v5940_v46 = vadd.f32 %v5610_v53, %v4970_v20  ;;  %v15766_v39 = vld [vmem:[#allocation105_spill] sm:$0xff] }
 0xb0b   :  { %v7425_v19 = vmax.f32 %v7169_v34, 0.0 }
 0xb0c   :  { %v5613_v35 = vpop.f32.mrf.mxu3 }
 0xb0d   :  { %v7713_v15 = vmul.f32 %v13393_v6, %v7425_v19  ;;  %v3929_v11 = vpop.f32.mrf.mxu1  ;;  %v15765_v19 = vld [vmem:[#allocation150_spill] sm:$0xff] }
 0xb0e   :  { %v3930_v62 = vadd.f32 %v3929_v11, %v15761_v3  ;;  %v6580_v4 = vpop.f32.mrf.mxu0 }
 0xb0f   :  { %v13542_v5 = vmax.f32 %v15763_v31, %v7713_v15  ;;  %v6910_v56 = vadd.f32 %v6580_v4, %v5940_v46  ;;  %v15768_v15 = vmax.f32 %v15766_v39, %v15767_v18  ;;  %v15769_v46 = vld [vmem:[#allocation6_spill] sm:$0xff]  ;;  %v15771_v39 = vld [vmem:[#allocation153_spill] sm:$0xff] }
 0xb10   :  { %v4971_v63 = vadd.f32 %v4643_v38, %v3930_v62  ;;  %3968 = vmatmul.bf16.gmra.mxu1 %v15764_v16 }
 0xb11   :  { %v7170_v14 = vadd.f32 %v13207_v57, %v6910_v56 }
 0xb12   :  { %v4645_v53 = vpop.f32.mrf.mxu2  ;;  %v5941_v12 = vadd.f32 %v5613_v35, %v4971_v63  ;;  %v15770_v35 = vld [vmem:[#allocation326_spill] sm:$0xff] }
 0xb13   :  { %v7426_v59 = vmax.f32 %v7170_v14, 0.0 }
 0xb14   :  { %v5615_v26 = vpop.f32.mrf.mxu3 }
 0xb15   :  { %v7714_v20 = vmul.f32 %v13393_v6, %v7426_v59  ;;  %v3931_v34 = vpop.f32.mrf.mxu1 }
 0xb16   :  { %v3932_v11 = vadd.f32 %v3931_v34, %v15765_v19  ;;  %v6583_v3 = vpop.f32.mrf.mxu0 }
 0xb17   :  { %v13551_v51 = vmax.f32 %v15768_v15, %v7714_v20  ;;  %v6911_v38 = vadd.f32 %v6583_v3, %v5941_v12  ;;  %4687 = vmatmul.bf16.gmra.mxu2 %v15769_v46  ;;  %v15772_v12 = vld [vmem:[#allocation202_spill] sm:$0xff] }
 0xb18   :  { %v4972_v62 = vadd.f32 %v4645_v53, %v3932_v11  ;;  %v15773_v19 = vmax.f32 %v12939_v60, %v15772_v12 }
 0xb19   :  { %v7171_v4 = vadd.f32 %v13207_v57, %v6911_v38  ;;  %5657 = vmatmul.bf16.gmra.mxu3 %v15645_v30  ;;  %6622 = vmatmul.bf16.gmra.mxu0 %v15770_v35  ;;  %v15775_v30 = vld [vmem:[#allocation7_spill] sm:$0xff] }
 0xb1a   :  { %v4648_v31 = vpop.f32.mrf.mxu2  ;;  %v5942_v56 = vadd.f32 %v5615_v26, %v4972_v62  ;;  %v13568_v26 = vld [vmem:[%s14092_s2] ss:$0 sm:$0xff] }
 0xb1b   :  { %v7427_v63 = vmax.f32 %v7171_v4, 0.0  ;;  %v15776_v4 = vld [vmem:[#allocation158_spill] sm:$0xff] }
 0xb1c   :  { %v5618_v16 = vpop.f32.mrf.mxu3 }
 0xb1d   :  { %v7715_v14 = vmul.f32 %v13393_v6, %v7427_v63  ;;  %v3934_v59 = vpop.f32.mrf.mxu1  ;;  %v15778_v63 = vld [vmem:[#allocation165_spill] sm:$0xff] }
 0xb1e   :  { %v3935_v20 = vadd.f32 %v3934_v59, %v15771_v39  ;;  %v6585_v34 = vpop.f32.mrf.mxu0 }
 0xb1f   :  { %v13562_v53 = vmax.f32 %v15773_v19, %v7715_v14  ;;  %v6912_v57 = vadd.f32 %v6585_v34, %v5942_v56  ;;  %v15783_v19 = vld [vmem:[#allocation9_spill] sm:$0xff] }
 0xb20   :  { %v4973_v11 = vadd.f32 %v4648_v31, %v3935_v20  ;;  %3973 = vmatmul.bf16.gmra.mxu1 %v15775_v30  ;;  %v15777_v31 = vld [vmem:[#allocation123_spill] sm:$0xff]  ;;  %v15781_v20 = vld [vmem:[#allocation8_spill] sm:$0xff] }
 0xb21   :  { %15774 = vst [vmem:[#allocation250_spill] sm:$0xff] %v13562_v53  ;;  %v7172_v3 = vadd.f32 %v13568_v26, %v6912_v57  ;;  %v15779_v14 = vmax.f32 %v15777_v31, %v15778_v63  ;;  %v15791_v53 = vld [vmem:[#allocation108_spill] sm:$0xff] }
 0xb22   :  { %v4650_v18 = vpop.f32.mrf.mxu2  ;;  %v5943_v15 = vadd.f32 %v5618_v16, %v4973_v11  ;;  %v15782_v16 = vld [vmem:[#allocation121_spill] sm:$0xff] }
 0xb23   :  { %v7428_v38 = vmax.f32 %v7172_v3, 0.0 }
 0xb24   :  { %v5620_v46 = vpop.f32.mrf.mxu3 }
 0xb25   :  { %v7716_v62 = vmul.f32 %v13393_v6, %v7428_v38  ;;  %v3936_v60 = vpop.f32.mrf.mxu1 }
 0xb26   :  { %v3937_v35 = vadd.f32 %v3936_v60, %v15776_v4  ;;  %v6588_v56 = vpop.f32.mrf.mxu0  ;;  %v15784_v4 = vld [vmem:[#allocation175_spill] sm:$0xff] }
 0xb27   :  { %v13576_v59 = vmax.f32 %v15779_v14, %v7716_v62  ;;  %v6913_v39 = vadd.f32 %v6588_v56, %v5943_v15  ;;  %4692 = vmatmul.bf16.gmra.mxu2 %v15781_v20  ;;  %v15785_v15 = vld [vmem:[#allocation128_spill] sm:$0xff]  ;;  %v15786_v56 = vld [vmem:[#allocation209_spill] sm:$0xff] }
 0xb28   :  { %v4974_v34 = vadd.f32 %v4650_v18, %v3937_v35  ;;  %v15787_v63 = vmax.f32 %v15785_v15, %v15786_v56  ;;  %v15792_v15 = vld [vmem:[#allocation212_spill] sm:$0xff] }
 0xb29   :  { %15780 = vst [vmem:[#allocation203_spill] sm:$0xff] %v13576_v59  ;;  %v7173_v12 = vadd.f32 %v13568_v26, %v6913_v39  ;;  %5662 = vmatmul.bf16.gmra.mxu3 %v15782_v16  ;;  %6627 = vmatmul.bf16.gmra.mxu0 %v15783_v19  ;;  %v15789_v39 = vld [vmem:[#allocation10_spill] sm:$0xff] }
 0xb2a   :  { %v4653_v57 = vpop.f32.mrf.mxu2  ;;  %v5944_v11 = vadd.f32 %v5620_v46, %v4974_v34 }
 0xb2b   :  { %v7429_v30 = vmax.f32 %v7173_v12, 0.0 }
 0xb2c   :  { %v5623_v3 = vpop.f32.mrf.mxu3 }
 0xb2d   :  { %v7717_v38 = vmul.f32 %v13393_v6, %v7429_v30  ;;  %v3939_v60 = vpop.f32.mrf.mxu1 }
 0xb2e   :  { %v3940_v62 = vadd.f32 %v3939_v60, %v15784_v4  ;;  %v6590_v31 = vpop.f32.mrf.mxu0  ;;  %v15790_v60 = vld [vmem:[#allocation179_spill] sm:$0xff] }
 0xb2f   :  { %v13587_v18 = vmax.f32 %v15787_v63, %v7717_v38  ;;  %v6914_v35 = vadd.f32 %v6590_v31, %v5944_v11  ;;  %v15793_v38 = vmax.f32 %v15791_v53, %v15792_v15  ;;  %v15795_v11 = vld [vmem:[#allocation12_spill] sm:$0xff]  ;;  %v15797_v63 = vld [vmem:[#allocation11_spill] sm:$0xff]  ;;  %v15798_v53 = vld [vmem:[#allocation185_spill] sm:$0xff] }
 0xb30   :  { %v4975_v14 = vadd.f32 %v4653_v57, %v3940_v62  ;;  %3978 = vmatmul.bf16.gmra.mxu1 %v15789_v39 }
 0xb31   :  { %15788 = vst [vmem:[#allocation254_spill] sm:$0xff] %v13587_v18  ;;  %v7174_v20 = vadd.f32 %v13568_v26, %v6914_v35  ;;  %v15804_v18 = vld [vmem:[#allocation113_spill] sm:$0xff] }
 0xb32   :  { %v4655_v46 = vpop.f32.mrf.mxu2  ;;  %v5945_v34 = vadd.f32 %v5623_v3, %v4975_v14  ;;  %v15796_v3 = vld [vmem:[#allocation127_spill] sm:$0xff] }
 0xb33   :  { %v7430_v12 = vmax.f32 %v7174_v20, 0.0 }
 0xb34   :  { %v5625_v16 = vpop.f32.mrf.mxu3 }
 0xb35   :  { %v7718_v19 = vmul.f32 %v13393_v6, %v7430_v12  ;;  %v3941_v30 = vpop.f32.mrf.mxu1 }
 0xb36   :  { %v3942_v4 = vadd.f32 %v3941_v30, %v15790_v60  ;;  %v6593_v59 = vpop.f32.mrf.mxu0 }
 0xb37   :  { %v13596_v56 = vmax.f32 %v15793_v38, %v7718_v19  ;;  %v6915_v57 = vadd.f32 %v6593_v59, %v5945_v34  ;;  %4697 = vmatmul.bf16.gmra.mxu2 %v15795_v11  ;;  %v15799_v59 = vld [vmem:[#allocation145_spill] sm:$0xff]  ;;  %v15800_v34 = vld [vmem:[#allocation168_spill] sm:$0xff] }
 0xb38   :  { %v4976_v62 = vadd.f32 %v4655_v46, %v3942_v4  ;;  %v15801_v15 = vmax.f32 %v15799_v59, %v15800_v34  ;;  %v15805_v59 = vld [vmem:[#allocation218_spill] sm:$0xff] }
 0xb39   :  { %15794 = vst [vmem:[#allocation260_spill] sm:$0xff] %v13596_v56  ;;  %v7175_v31 = vadd.f32 %v13568_v26, %v6915_v57  ;;  %5667 = vmatmul.bf16.gmra.mxu3 %v15796_v3  ;;  %6632 = vmatmul.bf16.gmra.mxu0 %v15797_v63  ;;  %v15802_v57 = vld [vmem:[#allocation16_spill] sm:$0xff] }
 0xb3a   :  { %v4658_v35 = vpop.f32.mrf.mxu2  ;;  %v5946_v14 = vadd.f32 %v5625_v16, %v4976_v62 }
 0xb3b   :  { %v7431_v39 = vmax.f32 %v7175_v31, 0.0 }
 0xb3c   :  { %v5628_v20 = vpop.f32.mrf.mxu3 }
 0xb3d   :  { %v7719_v12 = vmul.f32 %v13393_v6, %v7431_v39  ;;  %v3944_v30 = vpop.f32.mrf.mxu1 }
 0xb3e   :  { %v3945_v19 = vadd.f32 %v3944_v30, %v15798_v53  ;;  %v6595_v60 = vpop.f32.mrf.mxu0  ;;  %v15803_v30 = vld [vmem:[#allocation191_spill] sm:$0xff] }
 0xb3f   :  { %v13607_v46 = vmax.f32 %v15801_v15, %v7719_v12  ;;  %v6916_v4 = vadd.f32 %v6595_v60, %v5946_v14  ;;  %v15806_v12 = vmax.f32 %v15804_v18, %v15805_v59  ;;  %v15807_v14 = vld [vmem:[#allocation15_spill] sm:$0xff] }
 0xb40   :  { %v4977_v38 = vadd.f32 %v4658_v35, %v3945_v19  ;;  %3983 = vmatmul.bf16.gmra.mxu1 %v15802_v57  ;;  %v15809_v18 = vld [vmem:[#allocation195_spill] sm:$0xff] }
 0xb41   :  { %v7176_v11 = vadd.f32 %v13568_v26, %v6916_v4 }
 0xb42   :  { %v4660_v16 = vpop.f32.mrf.mxu2  ;;  %v5947_v62 = vadd.f32 %v5628_v20, %v4977_v38  ;;  %v15808_v20 = vld [vmem:[#allocation13_spill] sm:$0xff] }
 0xb43   :  { %v7432_v31 = vmax.f32 %v7176_v11, 0.0 }
 0xb44   :  { %v5630_v3 = vpop.f32.mrf.mxu3 }
 0xb45   :  { %v7720_v63 = vmul.f32 %v13393_v6, %v7432_v31  ;;  %v3946_v39 = vpop.f32.mrf.mxu1 }
 0xb46   :  { %v3947_v53 = vadd.f32 %v3946_v39, %v15803_v30  ;;  %v6598_v56 = vpop.f32.mrf.mxu0 }
 0xb47   :  { %v13616_v34 = vmax.f32 %v15806_v12, %v7720_v63  ;;  %v6917_v35 = vadd.f32 %v6598_v56, %v5947_v62  ;;  %4702 = vmatmul.bf16.gmra.mxu2 %v15807_v14  ;;  %v15810_v56 = vmax.f32 %v15666_v37, %v13303_v1  ;;  %v15814_v1 = vld [vmem:[#allocation173_spill] sm:$0xff] }
 0xb48   :  { %v4978_v19 = vadd.f32 %v4660_v16, %v3947_v53 }
 0xb49   :  { %v7177_v60 = vadd.f32 %v13568_v26, %v6917_v35  ;;  %5672 = vmatmul.bf16.gmra.mxu3 %v15672_v24  ;;  %6637 = vmatmul.bf16.gmra.mxu0 %v15808_v20  ;;  %v15811_v24 = vld [vmem:[#allocation20_spill] sm:$0xff] }
 0xb4a   :  { %v4663_v15 = vpop.f32.mrf.mxu2  ;;  %v5948_v4 = vadd.f32 %v5630_v3, %v4978_v19 }
 0xb4b   :  { %v7433_v38 = vmax.f32 %v7177_v60, 0.0  ;;  %v15812_v60 = vld [vmem:[#allocation199_spill] sm:$0xff] }
 0xb4c   :  { %v5633_v57 = vpop.f32.mrf.mxu3 }
 0xb4d   :  { %v7721_v11 = vmul.f32 %v13393_v6, %v7433_v38  ;;  %v3949_v31 = vpop.f32.mrf.mxu1 }
 0xb4e   :  { %v3950_v63 = vadd.f32 %v3949_v31, %v15809_v18  ;;  %v6600_v39 = vpop.f32.mrf.mxu0  ;;  %v15813_v31 = vld [vmem:[#allocation130_spill] sm:$0xff] }
 0xb4f   :  { %v13627_v16 = vmax.f32 %v15810_v56, %v7721_v11  ;;  %v6918_v62 = vadd.f32 %v6600_v39, %v5948_v4  ;;  %v15815_v37 = vmax.f32 %v15813_v31, %v15814_v1  ;;  %v15816_v4 = vld [vmem:[#allocation23_spill] sm:$0xff] }
 0xb50   :  { %v4979_v30 = vadd.f32 %v4663_v15, %v3950_v63  ;;  %3988 = vmatmul.bf16.gmra.mxu1 %v15811_v24 }
 0xb51   :  { %v7178_v53 = vadd.f32 %v13568_v26, %v6918_v62 }
 0xb52   :  { %v4665_v3 = vpop.f32.mrf.mxu2  ;;  %v5949_v59 = vadd.f32 %v5633_v57, %v4979_v30  ;;  %v15817_v57 = vld [vmem:[#allocation17_spill] sm:$0xff] }
 0xb53   :  { %v7434_v12 = vmax.f32 %v7178_v53, 0.0 }
 0xb54   :  { %v5635_v35 = vpop.f32.mrf.mxu3 }
 0xb55   :  { %v7722_v14 = vmul.f32 %v13393_v6, %v7434_v12  ;;  %v3951_v19 = vpop.f32.mrf.mxu1  ;;  %v15818_v12 = vld [vmem:[#allocation205_spill] sm:$0xff] }
 0xb56   :  { %v3952_v20 = vadd.f32 %v3951_v19, %v15812_v60  ;;  %v6603_v38 = vpop.f32.mrf.mxu0 }
 0xb57   :  { %v13636_v11 = vmax.f32 %v15815_v37, %v7722_v14  ;;  %v6919_v15 = vadd.f32 %v6603_v38, %v5949_v59  ;;  %4707 = vmatmul.bf16.gmra.mxu2 %v15816_v4  ;;  %v15819_v59 = vmax.f32 %v13019_v13, %v13321_v47  ;;  %v15823_v13 = vld [vmem:[#allocation222_spill] sm:$0xff] }
 0xb58   :  { %v4980_v18 = vadd.f32 %v4665_v3, %v3952_v20 }
 0xb59   :  { %v7179_v63 = vadd.f32 %v13568_v26, %v6919_v15  ;;  %5677 = vmatmul.bf16.gmra.mxu3 %v15678_v21  ;;  %6642 = vmatmul.bf16.gmra.mxu0 %v15817_v57  ;;  %v15820_v21 = vld [vmem:[#allocation24_spill] sm:$0xff] }
 0xb5a   :  { %v4668_v39 = vpop.f32.mrf.mxu2  ;;  %v5950_v56 = vadd.f32 %v5635_v35, %v4980_v18  ;;  %v15821_v18 = vld [vmem:[#allocation210_spill] sm:$0xff] }
 0xb5b   :  { %v7435_v62 = vmax.f32 %v7179_v63, 0.0 }
 0xb5c   :  { %v5638_v30 = vpop.f32.mrf.mxu3 }
 0xb5d   :  { %v7723_v24 = vmul.f32 %v13393_v6, %v7435_v62  ;;  %v3954_v53 = vpop.f32.mrf.mxu1  ;;  %v15822_v62 = vld [vmem:[#allocation155_spill] sm:$0xff] }
 0xb5e   :  { %v3955_v14 = vadd.f32 %v3954_v53, %v15818_v12  ;;  %v6605_v19 = vpop.f32.mrf.mxu0  ;;  %v15824_v47 = vmax.f32 %v15822_v62, %v15823_v13 }
 0xb5f   :  { %v13647_v3 = vmax.f32 %v15819_v59, %v7723_v24  ;;  %v6920_v60 = vadd.f32 %v6605_v19, %v5950_v56  ;;  %v15825_v56 = vld [vmem:[#allocation27_spill] sm:$0xff] }
 0xb60   :  { %v4981_v20 = vadd.f32 %v4668_v39, %v3955_v14  ;;  %3993 = vmatmul.bf16.gmra.mxu1 %v15820_v21 }
 0xb61   :  { %v7180_v38 = vadd.f32 %v13568_v26, %v6920_v60 }
 0xb62   :  { %v4670_v35 = vpop.f32.mrf.mxu2  ;;  %v5951_v31 = vadd.f32 %v5638_v30, %v4981_v20  ;;  %v15826_v30 = vld [vmem:[#allocation21_spill] sm:$0xff] }
 0xb63   :  { %v7436_v1 = vmax.f32 %v7180_v38, 0.0  ;;  %v15827_v38 = vld [vmem:[#allocation215_spill] sm:$0xff] }
 0xb64   :  { %v5640_v37 = vpop.f32.mrf.mxu3 }
 0xb65   :  { %v7724_v15 = vmul.f32 %v13393_v6, %v7436_v1  ;;  %v3956_v4 = vpop.f32.mrf.mxu1 }
 0xb66   :  { %v3957_v63 = vadd.f32 %v3956_v4, %v15821_v18  ;;  %v6608_v57 = vpop.f32.mrf.mxu0 }
 0xb67   :  { %v13656_v24 = vmax.f32 %v15824_v47, %v7724_v15  ;;  %v6921_v39 = vadd.f32 %v6608_v57, %v5951_v31  ;;  %4712 = vmatmul.bf16.gmra.mxu2 %v15825_v56  ;;  %v15828_v31 = vmax.f32 %v13039_v27, %v13339_v25  ;;  %v15830_v56 = vld [vmem:[#allocation220_spill] sm:$0xff]  ;;  %v15831_v27 = vld [vmem:[#allocation229_spill] sm:$0xff] }
 0xb68   :  { %v4982_v53 = vadd.f32 %v4670_v35, %v3957_v63  ;;  %v15832_v25 = vmax.f32 %v13048_v29, %v15831_v27  ;;  %v15835_v29 = vld [vmem:[#allocation226_spill] sm:$0xff] }
 0xb69   :  { %v7181_v12 = vadd.f32 %v13568_v26, %v6921_v39  ;;  %5682 = vmatmul.bf16.gmra.mxu3 %v15683_v49  ;;  %6647 = vmatmul.bf16.gmra.mxu0 %v15826_v30  ;;  %v15829_v49 = vld [vmem:[#allocation26_spill] sm:$0xff] }
 0xb6a   :  { %v4673_v14 = vpop.f32.mrf.mxu2  ;;  %v5952_v19 = vadd.f32 %v5640_v37, %v4982_v53 }
 0xb6b   :  { %v7437_v59 = vmax.f32 %v7181_v12, 0.0 }
 0xb6c   :  { %v5643_v60 = vpop.f32.mrf.mxu3 }
 0xb6d   :  { %v7725_v20 = vmul.f32 %v13393_v6, %v7437_v59  ;;  %v3959_v21 = vpop.f32.mrf.mxu1 }
 0xb6e   :  { %v3960_v1 = vadd.f32 %v3959_v21, %v15827_v38  ;;  %v6610_v15 = vpop.f32.mrf.mxu0 }
 0xb6f   :  { %v13667_v35 = vmax.f32 %v15828_v31, %v7725_v20  ;;  %v6922_v4 = vadd.f32 %v6610_v15, %v5952_v19  ;;  %v15833_v19 = vld [vmem:[#allocation30_spill] sm:$0xff] }
 0xb70   :  { %v4983_v18 = vadd.f32 %v4673_v14, %v3960_v1  ;;  %3998 = vmatmul.bf16.gmra.mxu1 %v15829_v49 }
 0xb71   :  { %v7182_v63 = vadd.f32 %v13568_v26, %v6922_v4 }
 0xb72   :  { %v4675_v37 = vpop.f32.mrf.mxu2  ;;  %v5953_v57 = vadd.f32 %v5643_v60, %v4983_v18  ;;  %v15834_v60 = vld [vmem:[#allocation25_spill] sm:$0xff] }
 0xb73   :  { %v7438_v62 = vmax.f32 %v7182_v63, 0.0  ;;  %v15836_v63 = vmax.f32 %v13059_v10, %v13357_v33  ;;  %v15840_v10 = vld [vmem:[#allocation190_spill] sm:$0xff] }
 0xb74   :  { %v5645_v13 = vpop.f32.mrf.mxu3 }
 0xb75   :  { %v7726_v47 = vmul.f32 %v13393_v6, %v7438_v62  ;;  %v3961_v39 = vpop.f32.mrf.mxu1 }
 0xb76   :  { %v3962_v53 = vadd.f32 %v3961_v39, %v15830_v56  ;;  %v6613_v12 = vpop.f32.mrf.mxu0 }
 0xb77   :  { %v13676_v30 = vmax.f32 %v15832_v25, %v7726_v47  ;;  %v6923_v14 = vadd.f32 %v6613_v12, %v5953_v57  ;;  %4717 = vmatmul.bf16.gmra.mxu2 %v15833_v19  ;;  %v15838_v25 = vld [vmem:[#allocation231_spill] sm:$0xff] }
 0xb78   :  { %v4984_v59 = vadd.f32 %v4675_v37, %v3962_v53 }
 0xb79   :  { %v7183_v20 = vadd.f32 %v13568_v26, %v6923_v14  ;;  %5687 = vmatmul.bf16.gmra.mxu3 %v15689_v50  ;;  %6652 = vmatmul.bf16.gmra.mxu0 %v15834_v60  ;;  %v15837_v50 = vld [vmem:[#allocation33_spill] sm:$0xff] }
 0xb7a   :  { %v4678_v21 = vpop.f32.mrf.mxu2  ;;  %v5954_v38 = vadd.f32 %v5645_v13, %v4984_v59  ;;  %v15839_v59 = vld [vmem:[#allocation134_spill] sm:$0xff] }
 0xb7b   :  { %v7439_v1 = vmax.f32 %v7183_v20, 0.0  ;;  %v15841_v33 = vmax.f32 %v15839_v59, %v15840_v10  ;;  %v15847_v10 = vld [vmem:[#allocation241_spill] sm:$0xff] }
 0xb7c   :  { %v5648_v15 = vpop.f32.mrf.mxu3 }
 0xb7d   :  { %v7727_v31 = vmul.f32 %v13393_v6, %v7439_v1  ;;  %v3964_v4 = vpop.f32.mrf.mxu1 }
 0xb7e   :  { %v3965_v18 = vadd.f32 %v3964_v4, %v15835_v29  ;;  %v6615_v49 = vpop.f32.mrf.mxu0 }
 0xb7f   :  { %v13687_v37 = vmax.f32 %v15836_v63, %v7727_v31  ;;  %v6924_v57 = vadd.f32 %v6615_v49, %v5954_v38 }
 0xb80   :  { %v4985_v62 = vadd.f32 %v4678_v21, %v3965_v18  ;;  %4003 = vmatmul.bf16.gmra.mxu1 %v15837_v50  ;;  %v15842_v21 = vld [vmem:[#allocation34_spill] sm:$0xff] }
 0xb81   :  { %v7184_v47 = vadd.f32 %v13568_v26, %v6924_v57  ;;  %v15844_v57 = vld [vmem:[#allocation236_spill] sm:$0xff] }
 0xb82   :  { %v4680_v13 = vpop.f32.mrf.mxu2  ;;  %v5955_v39 = vadd.f32 %v5648_v15, %v4985_v62  ;;  %v15843_v15 = vld [vmem:[#allocation29_spill] sm:$0xff] }
 0xb83   :  { %v7440_v56 = vmax.f32 %v7184_v47, 0.0  ;;  %v15845_v47 = vmax.f32 %v13079_v32, %v13375_v28  ;;  %v15849_v32 = vld [vmem:[#allocation233_spill] sm:$0xff] }
 0xb84   :  { %v5650_v53 = vpop.f32.mrf.mxu3 }
 0xb85   :  { %v7728_v12 = vmul.f32 %v13393_v6, %v7440_v56  ;;  %v3966_v27 = vpop.f32.mrf.mxu1 }
 0xb86   :  { %v3967_v14 = vadd.f32 %v3966_v27, %v15838_v25  ;;  %v6618_v19 = vpop.f32.mrf.mxu0 }
 0xb87   :  { %v13696_v20 = vmax.f32 %v15841_v33, %v7728_v12  ;;  %v6925_v60 = vadd.f32 %v6618_v19, %v5955_v39  ;;  %4722 = vmatmul.bf16.gmra.mxu2 %v15842_v21  ;;  %v15848_v21 = vld [vmem:[#allocation161_spill] sm:$0xff] }
 0xb88   :  { %v4986_v38 = vadd.f32 %v4680_v13, %v3967_v14  ;;  %v15850_v28 = vmax.f32 %v15848_v21, %v15849_v32 }
 0xb89   :  { %v7185_v1 = vadd.f32 %v13568_v26, %v6925_v60  ;;  %5692 = vmatmul.bf16.gmra.mxu3 %v15694_v36  ;;  %6657 = vmatmul.bf16.gmra.mxu0 %v15843_v15  ;;  %v15846_v36 = vld [vmem:[#allocation37_spill] sm:$0xff]  ;;  %v15851_v15 = vld [vmem:[#allocation36_spill] sm:$0xff] }
 0xb8a   :  { %v4683_v31 = vpop.f32.mrf.mxu2  ;;  %v5956_v4 = vadd.f32 %v5650_v53, %v4986_v38 }
 0xb8b   :  { %v7441_v29 = vmax.f32 %v7185_v1, 0.0 }
 0xb8c   :  { %v5653_v18 = vpop.f32.mrf.mxu3 }
 0xb8d   :  { %v7729_v49 = vmul.f32 %v13393_v6, %v7441_v29  ;;  %v3969_v63 = vpop.f32.mrf.mxu1  ;;  %v13723_v29 = vld [vmem:[%s14093_s3 + $0x7] ss:$0 sm:$0xff] }
 0xb8e   :  { %v3970_v62 = vadd.f32 %v3969_v63, %v15844_v57  ;;  %v6620_v50 = vpop.f32.mrf.mxu0 }
 0xb8f   :  { %v13707_v13 = vmax.f32 %v15845_v47, %v7729_v49  ;;  %v6926_v39 = vadd.f32 %v6620_v50, %v5956_v4  ;;  %v15853_v47 = vld [vmem:[#allocation247_spill] sm:$0xff] }
 0xb90   :  { %v4987_v56 = vadd.f32 %v4683_v31, %v3970_v62  ;;  %4008 = vmatmul.bf16.gmra.mxu1 %v15846_v36 }
 0xb91   :  { %v7186_v12 = vadd.f32 %v13568_v26, %v6926_v39 }
 0xb92   :  { %v4685_v53 = vpop.f32.mrf.mxu2  ;;  %v5957_v27 = vadd.f32 %v5653_v18, %v4987_v56 }
 0xb93   :  { %v7442_v25 = vmax.f32 %v7186_v12, 0.0 }
 0xb94   :  { %v5655_v14 = vpop.f32.mrf.mxu3 }
 0xb95   :  { %v7730_v19 = vmul.f32 %v13393_v6, %v7442_v25  ;;  %v3971_v59 = vpop.f32.mrf.mxu1  ;;  %v15852_v6 = vld [vmem:[#allocation31_spill] sm:$0xff] }
 0xb96   :  { %v3972_v33 = vadd.f32 %v3971_v59, %v15847_v10  ;;  %v6623_v60 = vpop.f32.mrf.mxu0 }
 0xb97   :  { %v13716_v38 = vmax.f32 %v15850_v28, %v7730_v19  ;;  %v6927_v1 = vadd.f32 %v6623_v60, %v5957_v27  ;;  %4727 = vmatmul.bf16.gmra.mxu2 %v15851_v15  ;;  %v15854_v27 = vld [vmem:[#allocation40_spill] sm:$0xff] }
 0xb98   :  { %v4988_v31 = vadd.f32 %v4685_v53, %v3972_v33  ;;  %v15855_v60 = vld [vmem:[#allocation252_spill] sm:$0xff] }
 0xb99   :  { %v7187_v4 = vadd.f32 %v13568_v26, %v6927_v1  ;;  %5697 = vmatmul.bf16.gmra.mxu3 %v15701_v2  ;;  %6662 = vmatmul.bf16.gmra.mxu0 %v15852_v6  ;;  %v7988_v28 = vld [vmem:[%s14094_s4 + $0x8] sm:$0xff]  ;;  %v15856_v6 = vld [vmem:[#allocation38_spill] sm:$0xff] }
 0xb9a   :  { %v4688_v18 = vpop.f32.mrf.mxu2  ;;  %v5958_v49 = vadd.f32 %v5655_v14, %v4988_v31 }
 0xb9b   :  { %v7443_v63 = vmax.f32 %v7187_v4, 0.0 }
 0xb9c   :  { %v5658_v57 = vpop.f32.mrf.mxu3 }
 0xb9d   :  { %v7731_v62 = vmul.f32 %v13723_v29, %v7443_v63  ;;  %v3974_v50 = vpop.f32.mrf.mxu1 }
 0xb9e   :  { %v3975_v39 = vadd.f32 %v3974_v50, %v15853_v47  ;;  %v6625_v56 = vpop.f32.mrf.mxu0 }
 0xb9f   :  { %v7769_v36 = vmax.f32 %v13402_v45, %v7731_v62  ;;  %v6928_v12 = vadd.f32 %v6625_v56, %v5958_v49  ;;  %v7987_v45 = vld [vmem:[%s14094_s4] sm:$0xff] }
 0xba0   :  { %v4989_v53 = vadd.f32 %v4688_v18, %v3975_v39  ;;  %4013 = vmatmul.bf16.gmra.mxu1 %v15854_v27  ;;  %v15857_v39 = vld [vmem:[#allocation257_spill] sm:$0xff]  ;;  %v15858_v27 = vld [vmem:[#allocation44_spill] sm:$0xff] }
 0xba1   :  { %v7188_v2 = vadd.f32 %v13568_v26, %v6928_v12  ;;  %v13745_v18 = vadd.f32 %v7987_v45, %v7769_v36  ;;  %v7990_v45 = vld [vmem:[%s14094_s4 + $0x18] sm:$0xff] }
 0xba2   :  { %v4690_v25 = vpop.f32.mrf.mxu2  ;;  %v5959_v19 = vadd.f32 %v5658_v57, %v4989_v53 }
 0xba3   :  { %v7444_v59 = vmax.f32 %v7188_v2, 0.0 }
 0xba4   :  { %v5660_v14 = vpop.f32.mrf.mxu3 }
 0xba5   :  { %v7732_v10 = vmul.f32 %v13723_v29, %v7444_v59  ;;  %v3976_v33 = vpop.f32.mrf.mxu1 }
 0xba6   :  { %v3977_v21 = vadd.f32 %v3976_v33, %v15855_v60  ;;  %v6628_v32 = vpop.f32.mrf.mxu0  ;;  %v15859_v60 = vld [vmem:[#allocation262_spill] sm:$0xff] }
 0xba7   :  { %v6929_v1 = vadd.f32 %v6628_v32, %v5959_v19  ;;  %4732 = vmatmul.bf16.gmra.mxu2 %v15595_v61  ;;  %v7776_v15 = vmax.f32 %v13411_v8, %v7732_v10 }
 0xba8   :  { %v4990_v31 = vadd.f32 %v4690_v25, %v3977_v21 }
 0xba9   :  { %v7189_v4 = vadd.f32 %v13568_v26, %v6929_v1  ;;  %5702 = vmatmul.bf16.gmra.mxu3 %v15709_v55  ;;  %6667 = vmatmul.bf16.gmra.mxu0 %v15856_v6  ;;  %v13747_v49 = vadd.f32 %v7988_v28, %v7776_v15 }
 0xbaa   :  { %v4693_v63 = vpop.f32.mrf.mxu2  ;;  %v5960_v57 = vadd.f32 %v5660_v14, %v4990_v31 }
 0xbab   :  { %v7445_v62 = vmax.f32 %v7189_v4, 0.0  ;;  %v8052_v50 = vpack.c.bf16 %v13747_v49, %v13745_v18  ;;  %v15860_v4 = vld [vmem:[#allocation42_spill] sm:$0xff] }
 0xbac   :  { %v5663_v61 = vpop.f32.mrf.mxu3  ;;  %v14001_v18 = vld [vmem:[%s14095_s5] sm:$0x1] }
 0xbad   :  { %v7733_v8 = vmul.f32 %v13723_v29, %v7445_v62  ;;  %v3979_v47 = vpop.f32.mrf.mxu1 }
 0xbae   :  { %v3980_v56 = vadd.f32 %v3979_v47, %v15857_v39  ;;  %v6630_v12 = vpop.f32.mrf.mxu0  ;;  %v15861_v39 = vld [vmem:[#allocation268_spill] sm:$0xff] }
 0xbaf   :  { %v7783_v55 = vmax.f32 %v13422_v43, %v7733_v8  ;;  %v6930_v53 = vadd.f32 %v6630_v12, %v5960_v57  ;;  %v7989_v43 = vld [vmem:[%s14094_s4 + $0x10] sm:$0xff] }
 0xbb0   :  { %v4991_v36 = vadd.f32 %v4693_v63, %v3980_v56  ;;  %4018 = vmatmul.bf16.gmra.mxu1 %v15858_v27 }
 0xbb1   :  { %v7190_v2 = vadd.f32 %v13568_v26, %v6930_v53  ;;  %v13769_v6 = vadd.f32 %v7989_v43, %v7783_v55 }
 0xbb2   :  { %v4695_v25 = vpop.f32.mrf.mxu2  ;;  %v5961_v19 = vadd.f32 %v5663_v61, %v4991_v36  ;;  %v15862_v36 = vld [vmem:[#allocation47_spill] sm:$0xff] }
 0xbb3   :  { %v7446_v59 = vmax.f32 %v7190_v2, 0.0 }
 0xbb4   :  { %v5665_v14 = vpop.f32.mrf.mxu3 }
 0xbb5   :  { %v7734_v10 = vmul.f32 %v13723_v29, %v7446_v59  ;;  %v3981_v33 = vpop.f32.mrf.mxu1 }
 0xbb6   :  { %v3982_v21 = vadd.f32 %v3981_v33, %v15859_v60  ;;  %v6633_v32 = vpop.f32.mrf.mxu0  ;;  %v15863_v33 = vld [vmem:[#allocation273_spill] sm:$0xff] }
 0xbb7   :  { %v6931_v28 = vadd.f32 %v6633_v32, %v5961_v19  ;;  %4737 = vmatmul.bf16.gmra.mxu2 %v15600_v58  ;;  %v7790_v1 = vmax.f32 %v13431_v23, %v7734_v10  ;;  %v7992_v32 = vld [vmem:[%s14094_s4 + $0x28] sm:$0xff] }
 0xbb8   :  { %v4992_v15 = vadd.f32 %v4695_v25, %v3982_v21 }
 0xbb9   :  { %v7191_v31 = vadd.f32 %v13568_v26, %v6931_v28  ;;  %5707 = vmatmul.bf16.gmra.mxu3 %v15717_v0  ;;  %6672 = vmatmul.bf16.gmra.mxu0 %v15860_v4  ;;  %v13771_v63 = vadd.f32 %v7990_v45, %v7790_v1 }
 0xbba   :  { %v4698_v57 = vpop.f32.mrf.mxu2  ;;  %v5962_v62 = vadd.f32 %v5665_v14, %v4992_v15  ;;  %v15864_v15 = vld [vmem:[#allocation46_spill] sm:$0xff] }
 0xbbb   :  { %v7447_v61 = vmax.f32 %v7191_v31, 0.0  ;;  %v8053_v8 = vpack.c.bf16 %v13771_v63, %v13769_v6  ;;  %v15901_v6 = vld [vmem:[#allocation358_spill] sm:$0xff] }
 0xbbc   :  { %v5668_v58 = vpop.f32.mrf.mxu3 }
 0xbbd   :  { %v7735_v23 = vmul.f32 %v13723_v29, %v7447_v61  ;;  %v3984_v47 = vpop.f32.mrf.mxu1 }
 0xbbe   :  { %v3985_v56 = vadd.f32 %v3984_v47, %v15861_v39  ;;  %v6635_v12 = vpop.f32.mrf.mxu0  ;;  %v15865_v47 = vld [vmem:[#allocation278_spill] sm:$0xff] }
 0xbbf   :  { %v7797_v0 = vmax.f32 %v13442_v17, %v7735_v23  ;;  %v6932_v53 = vadd.f32 %v6635_v12, %v5962_v62  ;;  %v7991_v17 = vld [vmem:[%s14094_s4 + $0x20] sm:$0xff] }
 0xbc0   :  { %v4993_v55 = vadd.f32 %v4698_v57, %v3985_v56  ;;  %4023 = vmatmul.bf16.gmra.mxu1 %v15862_v36 }
 0xbc1   :  { %v7192_v27 = vadd.f32 %v13568_v26, %v6932_v53  ;;  %v13793_v31 = vadd.f32 %v7991_v17, %v7797_v0  ;;  %v15866_v53 = vld [vmem:[#allocation60_spill] sm:$0xff]  ;;  %v15868_v17 = vld [vmem:[#allocation63_spill] sm:$0xff] }
 0xbc2   :  { %v4700_v2 = vpop.f32.mrf.mxu2  ;;  %v5963_v25 = vadd.f32 %v5668_v58, %v4993_v55 }
 0xbc3   :  { %v7448_v19 = vmax.f32 %v7192_v27, 0.0 }
 0xbc4   :  { %v5670_v59 = vpop.f32.mrf.mxu3 }
 0xbc5   :  { %v7736_v14 = vmul.f32 %v13723_v29, %v7448_v19  ;;  %v3986_v10 = vpop.f32.mrf.mxu1 }
 0xbc6   :  { %v3987_v60 = vadd.f32 %v3986_v10, %v15863_v33  ;;  %v6638_v21 = vpop.f32.mrf.mxu0  ;;  %v15867_v10 = vld [vmem:[#allocation283_spill] sm:$0xff] }
 0xbc7   :  { %v6933_v43 = vadd.f32 %v6638_v21, %v5963_v25  ;;  %4742 = vmatmul.bf16.gmra.mxu2 %v15605_v44  ;;  %v7804_v45 = vmax.f32 %v13451_v22, %v7736_v14  ;;  %v7993_v14 = vld [vmem:[%s14094_s4 + $0x30] sm:$0xff] }
 0xbc8   :  { %v4994_v28 = vadd.f32 %v4700_v2, %v3987_v60  ;;  %v7994_v60 = vld [vmem:[%s14094_s4 + $0x38] sm:$0xff] }
 0xbc9   :  { %v7193_v1 = vadd.f32 %v13568_v26, %v6933_v43  ;;  %5712 = vmatmul.bf16.gmra.mxu3 %v15727_v40  ;;  %6677 = vmatmul.bf16.gmra.mxu0 %v15864_v15  ;;  %v13795_v4 = vadd.f32 %v7992_v32, %v7804_v45  ;;  %v15869_v32 = vld [vmem:[#allocation194_spill] sm:$0xff]  ;;  %v15870_v15 = vld [vmem:[#allocation51_spill] sm:$0xff] }
 0xbca   :  { %v4703_v57 = vpop.f32.mrf.mxu2  ;;  %v5964_v62 = vadd.f32 %v5670_v59, %v4994_v28 }
 0xbcb   :  { %v7449_v61 = vmax.f32 %v7193_v1, 0.0  ;;  %v8054_v58 = vpack.c.bf16 %v13795_v4, %v13793_v31 }
 0xbcc   :  { %v5673_v44 = vpop.f32.mrf.mxu3 }
 0xbcd   :  { %v7737_v22 = vmul.f32 %v13723_v29, %v7449_v61  ;;  %v3989_v23 = vpop.f32.mrf.mxu1 }
 0xbce   :  { %v3990_v39 = vadd.f32 %v3989_v23, %v15865_v47  ;;  %v6640_v56 = vpop.f32.mrf.mxu0 }
 0xbcf   :  { %v7811_v40 = vmax.f32 %v13462_v48, %v7737_v22  ;;  %v6934_v12 = vadd.f32 %v6640_v56, %v5964_v62  ;;  %v15871_v56 = vld [vmem:[#allocation289_spill] sm:$0xff] }
 0xbd0   :  { %v4995_v0 = vadd.f32 %v4703_v57, %v3990_v39  ;;  %4028 = vmatmul.bf16.gmra.mxu1 %v15866_v53  ;;  %v15872_v53 = vld [vmem:[#allocation69_spill] sm:$0xff] }
 0xbd1   :  { %v7194_v55 = vadd.f32 %v13568_v26, %v6934_v12  ;;  %v13814_v45 = vadd.f32 %v7993_v14, %v7811_v40 }
 0xbd2   :  { %v4705_v36 = vpop.f32.mrf.mxu2  ;;  %v5965_v27 = vadd.f32 %v5673_v44, %v4995_v0 }
 0xbd3   :  { %v7450_v2 = vmax.f32 %v7194_v55, 0.0 }
 0xbd4   :  { %v5675_v25 = vpop.f32.mrf.mxu3 }
 0xbd5   :  { %v7738_v19 = vmul.f32 %v13723_v29, %v7450_v2  ;;  %v3991_v59 = vpop.f32.mrf.mxu1 }
 0xbd6   :  { %v3992_v33 = vadd.f32 %v3991_v59, %v15867_v10  ;;  %v6643_v48 = vpop.f32.mrf.mxu0 }
 0xbd7   :  { %v6935_v21 = vadd.f32 %v6643_v48, %v5965_v27  ;;  %4747 = vmatmul.bf16.gmra.mxu2 %v15868_v17  ;;  %v7818_v43 = vmax.f32 %v15869_v32, %v7738_v19 }
 0xbd8   :  { %v4996_v28 = vadd.f32 %v4705_v36, %v3992_v33  ;;  %v15873_v33 = vld [vmem:[#allocation294_spill] sm:$0xff] }
 0xbd9   :  { %v7195_v1 = vadd.f32 %v13568_v26, %v6935_v21  ;;  %5717 = vmatmul.bf16.gmra.mxu3 %v15738_v54  ;;  %6682 = vmatmul.bf16.gmra.mxu0 %v15870_v15  ;;  %v13819_v57 = vadd.f32 %v7994_v60, %v7818_v43  ;;  %v7996_v60 = vld [vmem:[%s14094_s4 + $0x48] sm:$0xff] }
 0xbda   :  { %v4708_v62 = vpop.f32.mrf.mxu2  ;;  %v5966_v39 = vadd.f32 %v5675_v25, %v4996_v28  ;;  %v7995_v25 = vld [vmem:[%s14094_s4 + $0x40] sm:$0xff] }
 0xbdb   :  { %v7451_v61 = vmax.f32 %v7195_v1, 0.0  ;;  %v8055_v44 = vpack.c.bf16 %v13819_v57, %v13814_v45  ;;  %v15874_v21 = vld [vmem:[#allocation239_spill] sm:$0xff]  ;;  %v15899_v45 = vld [vmem:[#allocation350_spill] sm:$0xff] }
 0xbdc   :  { %v5678_v22 = vpop.f32.mrf.mxu3  ;;  %v15875_v43 = vld [vmem:[#allocation67_spill] sm:$0xff] }
 0xbdd   :  { %v7739_v23 = vmul.f32 %v13723_v29, %v7451_v61  ;;  %v3994_v47 = vpop.f32.mrf.mxu1 }
 0xbde   :  { %v3995_v40 = vadd.f32 %v3994_v47, %v15871_v56  ;;  %v6645_v12 = vpop.f32.mrf.mxu0 }
 0xbdf   :  { %v7825_v0 = vmax.f32 %v13482_v7, %v7739_v23  ;;  %v6936_v54 = vadd.f32 %v6645_v12, %v5966_v39  ;;  %v15877_v12 = vld [vmem:[#allocation299_spill] sm:$0xff] }
 0xbe0   :  { %4033 = vmatmul.bf16.gmra.mxu1 %v15872_v53  ;;  %v4997_v55 = vadd.f32 %v4708_v62, %v3995_v40  ;;  %v15876_v62 = vld [vmem:[#allocation55_spill] sm:$0xff] }
 0xbe1   :  { %v7196_v36 = vadd.f32 %v13568_v26, %v6936_v54  ;;  %v13838_v28 = vadd.f32 %v7995_v25, %v7825_v0 }
 0xbe2   :  { %v4710_v27 = vpop.f32.mrf.mxu2  ;;  %v5967_v10 = vadd.f32 %v5678_v22, %v4997_v55 }
 0xbe3   :  { %v7452_v2 = vmax.f32 %v7196_v36, 0.0  ;;  %v15878_v36 = vld [vmem:[#allocation79_spill] sm:$0xff] }
 0xbe4   :  { %v5680_v19 = vpop.f32.mrf.mxu3 }
 0xbe5   :  { %v7740_v59 = vmul.f32 %v13723_v29, %v7452_v2  ;;  %v3996_v14 = vpop.f32.mrf.mxu1 }
 0xbe6   :  { %v3997_v48 = vadd.f32 %v3996_v14, %v15873_v33  ;;  %v6648_v7 = vpop.f32.mrf.mxu0 }
 0xbe7   :  { %v7832_v17 = vmax.f32 %v15874_v21, %v7740_v59  ;;  %v6937_v32 = vadd.f32 %v6648_v7, %v5967_v10  ;;  %4752 = vmatmul.bf16.gmra.mxu2 %v15875_v43  ;;  %v15879_v7 = vld [vmem:[#allocation304_spill] sm:$0xff] }
 0xbe8   :  { %v4998_v1 = vadd.f32 %v4710_v27, %v3997_v48  ;;  %v7997_v48 = vld [vmem:[%s14094_s4 + $0x50] sm:$0xff] }
 0xbe9   :  { %v7197_v15 = vadd.f32 %v13568_v26, %v6937_v32  ;;  %5722 = vmatmul.bf16.gmra.mxu3 %v15749_v9  ;;  %6687 = vmatmul.bf16.gmra.mxu0 %v15876_v62  ;;  %v13843_v61 = vadd.f32 %v7996_v60, %v7832_v17  ;;  %v7998_v17 = vld [vmem:[%s14094_s4 + $0x58] sm:$0xff]  ;;  %v15880_v32 = vld [vmem:[#allocation243_spill] sm:$0xff] }
 0xbea   :  { %v4713_v22 = vpop.f32.mrf.mxu2  ;;  %v5968_v40 = vadd.f32 %v5680_v19, %v4998_v1 }
 0xbeb   :  { %v8056_v23 = vpack.c.bf16 %v13843_v61, %v13838_v28  ;;  %v7453_v47 = vmax.f32 %v7197_v15, 0.0 }
 0xbec   :  { %v5683_v39 = vpop.f32.mrf.mxu3 }
 0xbed   :  { %v3999_v56 = vpop.f32.mrf.mxu1  ;;  %v7741_v55 = vmul.f32 %v13723_v29, %v7453_v47  ;;  %v15882_v47 = vld [vmem:[#allocation73_spill] sm:$0xff] }
 0xbee   :  { %v4000_v0 = vadd.f32 %v3999_v56, %v15877_v12  ;;  %v6650_v54 = vpop.f32.mrf.mxu0 }
 0xbef   :  { %v6938_v53 = vadd.f32 %v6650_v54, %v5968_v40  ;;  %v7839_v14 = vmax.f32 %v13502_v42, %v7741_v55  ;;  %v15881_v42 = vld [vmem:[#allocation88_spill] sm:$0xff]  ;;  %v15883_v55 = vld [vmem:[#allocation310_spill] sm:$0xff] }
 0xbf0   :  { %4038 = vmatmul.bf16.gmra.mxu1 %v15878_v36  ;;  %v4999_v9 = vadd.f32 %v4713_v22, %v4000_v0 }
 0xbf1   :  { %v7198_v27 = vadd.f32 %v13568_v26, %v6938_v53  ;;  %v13862_v15 = vadd.f32 %v7997_v48, %v7839_v14 }
 0xbf2   :  { %v4715_v2 = vpop.f32.mrf.mxu2  ;;  %v5969_v19 = vadd.f32 %v5683_v39, %v4999_v9 }
 0xbf3   :  { %v7454_v59 = vmax.f32 %v7198_v27, 0.0 }
 0xbf4   :  { %v5685_v10 = vpop.f32.mrf.mxu3 }
 0xbf5   :  { %v7742_v25 = vmul.f32 %v13723_v29, %v7454_v59  ;;  %v4001_v33 = vpop.f32.mrf.mxu1 }
 0xbf6   :  { %v4002_v60 = vadd.f32 %v4001_v33, %v15879_v7  ;;  %v6653_v21 = vpop.f32.mrf.mxu0 }
 0xbf7   :  { %v7846_v43 = vmax.f32 %v15880_v32, %v7742_v25  ;;  %v6939_v1 = vadd.f32 %v6653_v21, %v5969_v19  ;;  %4757 = vmatmul.bf16.gmra.mxu2 %v15881_v42  ;;  %v15885_v21 = vld [vmem:[#allocation315_spill] sm:$0xff]  ;;  %v15886_v42 = vld [vmem:[#allocation198_spill] sm:$0xff] }
 0xbf8   :  { %v5000_v62 = vadd.f32 %v4715_v2, %v4002_v60  ;;  %v15884_v2 = vld [vmem:[#allocation91_spill] sm:$0xff] }
 0xbf9   :  { %v7199_v22 = vadd.f32 %v13568_v26, %v6939_v1  ;;  %5727 = vmatmul.bf16.gmra.mxu3 %v15760_v52  ;;  %6692 = vmatmul.bf16.gmra.mxu0 %v15882_v47  ;;  %v13867_v39 = vadd.f32 %v7998_v17, %v7846_v43  ;;  %v7999_v43 = vld [vmem:[%s14094_s4 + $0x60] sm:$0xff]  ;;  %v8000_v1 = vld [vmem:[%s14094_s4 + $0x68] sm:$0xff] }
 0xbfa   :  { %v4718_v56 = vpop.f32.mrf.mxu2  ;;  %v5970_v53 = vadd.f32 %v5685_v10, %v5000_v62 }
 0xbfb   :  { %v8057_v40 = vpack.c.bf16 %v13867_v39, %v13862_v15  ;;  %v7455_v0 = vmax.f32 %v7199_v22, 0.0 }
 0xbfc   :  { %v5688_v12 = vpop.f32.mrf.mxu3 }
 0xbfd   :  { %v4004_v54 = vpop.f32.mrf.mxu1  ;;  %v7743_v52 = vmul.f32 %v13723_v29, %v7455_v0 }
 0xbfe   :  { %v4005_v36 = vadd.f32 %v4004_v54, %v15883_v55  ;;  %v6655_v9 = vpop.f32.mrf.mxu0 }
 0xbff   :  { %v6940_v27 = vadd.f32 %v6655_v9, %v5970_v53  ;;  %v7853_v48 = vmax.f32 %v13522_v41, %v7743_v52 }
 0xc00   :  { %4043 = vmatmul.bf16.gmra.mxu1 %v15884_v2  ;;  %v5001_v59 = vadd.f32 %v4718_v56, %v4005_v36  ;;  %v15887_v56 = vld [vmem:[#allocation85_spill] sm:$0xff]  ;;  %v15888_v2 = vld [vmem:[#allocation320_spill] sm:$0xff] }
 0xc01   :  { %v7200_v14 = vadd.f32 %v13568_v26, %v6940_v27 }
 0xc02   :  { %v4720_v25 = vpop.f32.mrf.mxu2  ;;  %v5971_v10 = vadd.f32 %v5688_v12, %v5001_v59  ;;  %v8031_v12 = vadd.f32 %v7999_v43, %v7853_v48 }
 0xc03   :  { %v7456_v33 = vmax.f32 %v7200_v14, 0.0 }
 0xc04   :  { %v5690_v19 = vpop.f32.mrf.mxu3 }
 0xc05   :  { %v7744_v7 = vmul.f32 %v13723_v29, %v7456_v33  ;;  %v4006_v60 = vpop.f32.mrf.mxu1 }
 0xc06   :  { %v4007_v17 = vadd.f32 %v4006_v60, %v15885_v21  ;;  %v6658_v32 = vpop.f32.mrf.mxu0 }
 0xc07   :  { %v7860_v62 = vmax.f32 %v15886_v42, %v7744_v7  ;;  %v6941_v22 = vadd.f32 %v6658_v32, %v5971_v10  ;;  %v15889_v42 = vld [vmem:[#allocation325_spill] sm:$0xff] }
 0xc08   :  { %v5002_v47 = vadd.f32 %v4720_v25, %v4007_v17 }
 0xc09   :  { %v7201_v41 = vadd.f32 %v13568_v26, %v6941_v22  ;;  %6697 = vmatmul.bf16.gmra.mxu0 %v15887_v56  ;;  %v8032_v0 = vadd.f32 %v8000_v1, %v7860_v62  ;;  %v8002_v1 = vld [vmem:[%s14094_s4 + $0x78] sm:$0xff] }
 0xc0a   :  { %v4723_v54 = vpop.f32.mrf.mxu2  ;;  %v5972_v27 = vadd.f32 %v5690_v19, %v5002_v47  ;;  %v8001_v19 = vld [vmem:[%s14094_s4 + $0x70] sm:$0xff] }
 0xc0b   :  { %v8058_v53 = vpack.c.bf16 %v8032_v0, %v8031_v12  ;;  %v7457_v36 = vmax.f32 %v7201_v41, 0.0 }
 0xc0c   :  { %v5693_v55 = vpop.f32.mrf.mxu3 }
 0xc0d   :  { %v4009_v9 = vpop.f32.mrf.mxu1  ;;  %v7745_v7 = vmul.f32 %v13723_v29, %v7457_v36 }
 0xc0e   :  { %v4010_v52 = vadd.f32 %v4009_v9, %v15888_v2  ;;  %v6660_v59 = vpop.f32.mrf.mxu0 }
 0xc0f   :  { %v6942_v14 = vadd.f32 %v6660_v59, %v5972_v27  ;;  %v7867_v17 = vmax.f32 %v13542_v5, %v7745_v7  ;;  %v15890_v59 = vld [vmem:[#allocation330_spill] sm:$0xff] }
 0xc10   :  { %v5003_v33 = vadd.f32 %v4723_v54, %v4010_v52  ;;  %v15891_v7 = vld [vmem:[#allocation250_spill] sm:$0xff] }
 0xc11   :  { %v7202_v25 = vadd.f32 %v13568_v26, %v6942_v14  ;;  %v8033_v12 = vadd.f32 %v8001_v19, %v7867_v17 }
 0xc12   :  { %v4725_v60 = vpop.f32.mrf.mxu2  ;;  %v5973_v10 = vadd.f32 %v5693_v55, %v5003_v33 }
 0xc13   :  { %v7458_v21 = vmax.f32 %v7202_v25, 0.0 }
 0xc14   :  { %v5695_v48 = vpop.f32.mrf.mxu3 }
 0xc15   :  { %v7746_v32 = vmul.f32 %v13723_v29, %v7458_v21  ;;  %v4011_v43 = vpop.f32.mrf.mxu1 }
 0xc16   :  { %v4012_v62 = vadd.f32 %v4011_v43, %v15889_v42  ;;  %v6663_v22 = vpop.f32.mrf.mxu0 }
 0xc17   :  { %v7874_v47 = vmax.f32 %v13551_v51, %v7746_v32  ;;  %v6943_v41 = vadd.f32 %v6663_v22, %v5973_v10  ;;  %v8003_v22 = vld [vmem:[%s14094_s4 + $0x80] sm:$0xff] }
 0xc18   :  { %v5004_v56 = vadd.f32 %v4725_v60, %v4012_v62 }
 0xc19   :  { %v8034_v5 = vadd.f32 %v8002_v1, %v7874_v47  ;;  %v7203_v0 = vadd.f32 %v13568_v26, %v6943_v41  ;;  %v15892_v1 = vld [vmem:[#allocation334_spill] sm:$0xff]  ;;  %v8004_v47 = vld [vmem:[%s14094_s4 + $0x88] sm:$0xff] }
 0xc1a   :  { %v4728_v54 = vpop.f32.mrf.mxu2  ;;  %v5974_v55 = vadd.f32 %v5695_v48, %v5004_v56  ;;  %v15893_v41 = vld [vmem:[#allocation203_spill] sm:$0xff] }
 0xc1b   :  { %v7459_v36 = vmax.f32 %v7203_v0, 0.0  ;;  %v8059_v9 = vpack.c.bf16 %v8034_v5, %v8033_v12 }
 0xc1c   :  { %v5698_v27 = vpop.f32.mrf.mxu3 }
 0xc1d   :  { %v7747_v2 = vmul.f32 %v13723_v29, %v7459_v36  ;;  %v4014_v52 = vpop.f32.mrf.mxu1  ;;  %8075 = vmatpush.bf16.xpose.msra.mxu1 %v8059_v9 }
 0xc1e   :  { %v4015_v14 = vadd.f32 %v4014_v52, %v15890_v59  ;;  %v6665_v33 = vpop.f32.mrf.mxu0 }
 0xc1f   :  { %v7881_v51 = vmax.f32 %v15891_v7, %v7747_v2  ;;  %v6944_v25 = vadd.f32 %v6665_v33, %v5974_v55  ;;  %v15895_v7 = vld [vmem:[#allocation254_spill] sm:$0xff] }
 0xc20   :  { %v5005_v60 = vadd.f32 %v4728_v54, %v4015_v14  ;;  %v15894_v14 = vld [vmem:[#allocation337_spill] sm:$0xff] }
 0xc21   :  { %v7204_v10 = vadd.f32 %v13568_v26, %v6944_v25  ;;  %v13915_v54 = vadd.f32 %v8003_v22, %v7881_v51  ;;  %v15897_v22 = vld [vmem:[#allocation260_spill] sm:$0xff] }
 0xc22   :  { %v4730_v21 = vpop.f32.mrf.mxu2  ;;  %v5975_v17 = vadd.f32 %v5698_v27, %v5005_v60 }
 0xc23   :  { %v7460_v32 = vmax.f32 %v7204_v10, 0.0  ;;  %v13930_v10 = vld [vmem:[%s14092_s2] ss:$0 sm:$0xff] }
 0xc24   :  { %v5700_v48 = vpop.f32.mrf.mxu3 }
 0xc25   :  { %v7748_v43 = vmul.f32 %v13723_v29, %v7460_v32  ;;  %v4016_v19 = vpop.f32.mrf.mxu1  ;;  %8076 = vmatpush.bf16.xpose.msra.mxu1 %v8058_v53 }
 0xc26   :  { %v4017_v42 = vadd.f32 %v4016_v19, %v15892_v1  ;;  %v6668_v62 = vpop.f32.mrf.mxu0 }
 0xc27   :  { %v7888_v56 = vmax.f32 %v15893_v41, %v7748_v43  ;;  %v6945_v12 = vadd.f32 %v6668_v62, %v5975_v17  ;;  %v8006_v62 = vld [vmem:[%s14094_s4 + $0x98] sm:$0xff] }
 0xc28   :  { %v5006_v5 = vadd.f32 %v4730_v21, %v4017_v42  ;;  %v8005_v42 = vld [vmem:[%s14094_s4 + $0x90] sm:$0xff] }
 0xc29   :  { %v7205_v0 = vadd.f32 %v13568_v26, %v6945_v12  ;;  %v13917_v53 = vadd.f32 %v8004_v47, %v7888_v56 }
 0xc2a   :  { %v4733_v55 = vpop.f32.mrf.mxu2  ;;  %v5976_v36 = vadd.f32 %v5700_v48, %v5006_v5 }
 0xc2b   :  { %v7461_v9 = vmax.f32 %v7205_v0, 0.0  ;;  %v8060_v27 = vpack.c.bf16 %v13917_v53, %v13915_v54 }
 0xc2c   :  { %v5703_v2 = vpop.f32.mrf.mxu3 }
 0xc2d   :  { %v7749_v52 = vmul.f32 %v13723_v29, %v7461_v9  ;;  %v4019_v59 = vpop.f32.mrf.mxu1  ;;  %8077 = vmatpush.bf16.xpose.msra.mxu1 %v8057_v40  ;;  %v15896_v40 = vld [vmem:[#allocation341_spill] sm:$0xff] }
 0xc2e   :  { %v4020_v26 = vadd.f32 %v4019_v59, %v15894_v14  ;;  %v6670_v33 = vpop.f32.mrf.mxu0 }
 0xc2f   :  { %v7895_v51 = vmax.f32 %v15895_v7, %v7749_v52  ;;  %v6946_v25 = vadd.f32 %v6670_v33, %v5976_v36  ;;  %v15898_v52 = vld [vmem:[#allocation346_spill] sm:$0xff] }
 0xc30   :  { %v5007_v60 = vadd.f32 %v4733_v55, %v4020_v26 }
 0xc31   :  { %v7206_v21 = vadd.f32 %v13930_v10, %v6946_v25  ;;  %v13946_v5 = vadd.f32 %v8005_v42, %v7895_v51 }
 0xc32   :  { %v4735_v17 = vpop.f32.mrf.mxu2  ;;  %v5977_v32 = vadd.f32 %v5703_v2, %v5007_v60 }
 0xc33   :  { %v7462_v48 = vmax.f32 %v7206_v21, 0.0 }
 0xc34   :  { %v5705_v43 = vpop.f32.mrf.mxu3 }
 0xc35   :  { %v7750_v15 = vmul.f32 %v13723_v29, %v7462_v48  ;;  %v4021_v39 = vpop.f32.mrf.mxu1  ;;  %8078 = vmatpush.bf16.xpose.msra.mxu1 %v8056_v23 }
 0xc36   :  { %v4022_v19 = vadd.f32 %v4021_v39, %v15896_v40  ;;  %v6673_v1 = vpop.f32.mrf.mxu0 }
 0xc37   :  { %v7902_v47 = vmax.f32 %v15897_v22, %v7750_v15  ;;  %v6947_v41 = vadd.f32 %v6673_v1, %v5977_v32 }
 0xc38   :  { %v5008_v56 = vadd.f32 %v4735_v17, %v4022_v19 }
 0xc39   :  { %v7207_v12 = vadd.f32 %v13930_v10, %v6947_v41  ;;  %v13948_v28 = vadd.f32 %v8006_v62, %v7902_v47 }
 0xc3a   :  { %v4738_v61 = vpop.f32.mrf.mxu2  ;;  %v5978_v23 = vadd.f32 %v5705_v43, %v5008_v56  ;;  %v8008_v43 = vld [vmem:[%s14094_s4 + $0xa8] sm:$0xff] }
 0xc3b   :  { %v7463_v0 = vmax.f32 %v7207_v12, 0.0  ;;  %v8061_v55 = vpack.c.bf16 %v13948_v28, %v13946_v5 }
 0xc3c   :  { %v5708_v36 = vpop.f32.mrf.mxu3 }
 0xc3d   :  { %v7751_v9 = vmul.f32 %v13723_v29, %v7463_v0  ;;  %v4024_v2 = vpop.f32.mrf.mxu1  ;;  %8079 = vmatpush.bf16.xpose.msra.mxu1 %v8055_v44 }
 0xc3e   :  { %v4025_v59 = vadd.f32 %v4024_v2, %v15898_v52  ;;  %v6675_v14 = vpop.f32.mrf.mxu0 }
 0xc3f   :  { %v7909_v26 = vmax.f32 %v13607_v46, %v7751_v9  ;;  %v6948_v33 = vadd.f32 %v6675_v14, %v5978_v23  ;;  %v8007_v46 = vld [vmem:[%s14094_s4 + $0xa0] sm:$0xff] }
 0xc40   :  { %v5009_v7 = vadd.f32 %v4738_v61, %v4025_v59 }
 0xc41   :  { %v7208_v51 = vadd.f32 %v13930_v10, %v6948_v33  ;;  %v13972_v1 = vadd.f32 %v8007_v46, %v7909_v26  ;;  %v8010_v33 = vld [vmem:[%s14094_s4 + $0xb8] sm:$0xff] }
 0xc42   :  { %v4740_v25 = vpop.f32.mrf.mxu2  ;;  %v5979_v60 = vadd.f32 %v5708_v36, %v5009_v7 }
 0xc43   :  { %v7464_v21 = vmax.f32 %v7208_v51, 0.0 }
 0xc44   :  { %v5710_v17 = vpop.f32.mrf.mxu3 }
 0xc45   :  { %v7752_v32 = vmul.f32 %v13723_v29, %v7464_v21  ;;  %v4026_v48 = vpop.f32.mrf.mxu1  ;;  %8080 = vmatpush.bf16.xpose.msra.mxu1 %v8054_v58 }
 0xc46   :  { %v4027_v57 = vadd.f32 %v4026_v48, %v15899_v45  ;;  %v6678_v44 = vpop.f32.mrf.mxu0 }
 0xc47   :  { %v7916_v15 = vmax.f32 %v13616_v34, %v7752_v32  ;;  %v6949_v39 = vadd.f32 %v6678_v44, %v5979_v60  ;;  %v15900_v34 = vld [vmem:[#allocation354_spill] sm:$0xff] }
 0xc48   :  { %v5010_v40 = vadd.f32 %v4740_v25, %v4027_v57  ;;  %v15902_v44 = vld [vmem:[#allocation362_spill] sm:$0xff] }
 0xc49   :  { %v7209_v19 = vadd.f32 %v13930_v10, %v6949_v39  ;;  %v13974_v31 = vadd.f32 %v8008_v43, %v7916_v15 }
 0xc4a   :  { %v4743_v4 = vpop.f32.mrf.mxu2  ;;  %v5980_v58 = vadd.f32 %v5710_v17, %v5010_v40 }
 0xc4b   :  { %v7465_v42 = vmax.f32 %v7209_v19, 0.0  ;;  %v8062_v62 = vpack.c.bf16 %v13974_v31, %v13972_v1  ;;  %v15908_v31 = vlaneseq }
 0xc4c   :  { %v5713_v22 = vpop.f32.mrf.mxu3 }
 0xc4d   :  { %v7753_v47 = vmul.f32 %v13723_v29, %v7465_v42  ;;  %v4029_v41 = vpop.f32.mrf.mxu1  ;;  %8081 = vmatpush.bf16.xpose.msra.mxu1 %v8053_v8  ;;  %vm8109_vm1 = vcmp.lt.s32.totalorder %v15908_v31, 256 }
 0xc4e   :  { %v4030_v56 = vadd.f32 %v4029_v41, %v15900_v34  ;;  %v6680_v12 = vpop.f32.mrf.mxu0  ;;  %v15903_v34 = vld [vmem:[#allocation366_spill] sm:$0xff] }
 0xc4f   :  { %v7923_v61 = vmax.f32 %v13627_v16, %v7753_v47  ;;  %v6950_v23 = vadd.f32 %v6680_v12, %v5980_v58  ;;  %v8009_v16 = vld [vmem:[%s14094_s4 + $0xb0] sm:$0xff] }
 0xc50   :  { %v5011_v0 = vadd.f32 %v4743_v4, %v4030_v56 }
 0xc51   :  { %v7210_v36 = vadd.f32 %v13930_v10, %v6950_v23  ;;  %v14003_v49 = vadd.f32 %v8009_v16, %v7923_v61  ;;  %v8011_v61 = vld [vmem:[%s14094_s4 + $0xc0] sm:$0xff] }
 0xc52   :  { %v4745_v9 = vpop.f32.mrf.mxu2  ;;  %v5981_v2 = vadd.f32 %v5713_v22, %v5011_v0  ;;  %v15904_v16 = vld [vmem:[#allocation370_spill] sm:$0xff] }
 0xc53   :  { %v7466_v52 = vmax.f32 %v7210_v36, 0.0 }
 0xc54   :  { %v5715_v59 = vpop.f32.mrf.mxu3 }
 0xc55   :  { %v7754_v14 = vmul.f32 %v13723_v29, %v7466_v52  ;;  %v4031_v26 = vpop.f32.mrf.mxu1  ;;  %8082 = vmatpush.bf16.xpose.msra.mxu1 %v8052_v50 }
 0xc56   :  { %v4032_v63 = vadd.f32 %v4031_v26, %v15901_v6  ;;  %v6683_v8 = vpop.f32.mrf.mxu0 }
 0xc57   :  { %v7930_v7 = vmax.f32 %v13636_v11, %v7754_v14  ;;  %v6951_v51 = vadd.f32 %v6683_v8, %v5981_v2 }
 0xc58   :  { %v5012_v25 = vadd.f32 %v4745_v9, %v4032_v63 }
 0xc59   :  { %v7211_v60 = vadd.f32 %v13930_v10, %v6951_v51  ;;  %v14005_v50 = vadd.f32 %v8010_v33, %v7930_v7 }
 0xc5a   :  { %v4748_v21 = vpop.f32.mrf.mxu2  ;;  %v5982_v17 = vadd.f32 %v5715_v59, %v5012_v25 }
 0xc5b   :  { %v7467_v32 = vmax.f32 %v7211_v60, 0.0  ;;  %v8063_v48 = vpack.c.bf16 %v14005_v50, %v14003_v49 }
 0xc5c   :  { %v5718_v11 = vpop.f32.mrf.mxu3  ;;  %8083 = vmatmul.bf16.vlgmr.msra.gmra.mxu1 %v14001_v18 }
 0xc5d   :  { %v7755_v45 = vmul.f32 %v13723_v29, %v7467_v32  ;;  %v4034_v57 = vpop.f32.mrf.mxu1 }
 0xc5e   :  { %v4035_v46 = vadd.f32 %v4034_v57, %v15902_v44  ;;  %v6685_v43 = vpop.f32.mrf.mxu0  ;;  %v15905_v44 = vld [vmem:[#allocation374_spill] sm:$0xff] }
 0xc5f   :  { %v7937_v15 = vmax.f32 %v13647_v3, %v7755_v45  ;;  %v6952_v39 = vadd.f32 %v6685_v43, %v5982_v17  ;;  %v8012_v3 = vld [vmem:[%s14094_s4 + $0xc8] sm:$0xff] }
 0xc60   :  { %v5013_v40 = vadd.f32 %v4748_v21, %v4035_v46 }
 0xc61   :  { %v7212_v19 = vadd.f32 %v13930_v10, %v6952_v39  ;;  %v14024_v2 = vadd.f32 %v8011_v61, %v7937_v15  ;;  %v8013_v15 = vld [vmem:[%s14094_s4 + $0xd0] sm:$0xff]  ;;  %v8014_v39 = vld [vmem:[%s14094_s4 + $0xd8] sm:$0xff] }
 0xc62   :  { %v4750_v4 = vpop.f32.mrf.mxu2  ;;  %v5983_v41 = vadd.f32 %v5718_v11, %v5013_v40  ;;  %v15906_v61 = vld [vmem:[#allocation377_spill] sm:$0xff] }
 0xc63   :  { %v7468_v58 = vmax.f32 %v7212_v19, 0.0 }
 0xc64   :  { %v5720_v42 = vpop.f32.mrf.mxu3 }
 0xc65   :  { %v7756_v22 = vmul.f32 %v13723_v29, %v7468_v58  ;;  %v4036_v47 = vpop.f32.mrf.mxu1 }
 0xc66   :  { %v4037_v56 = vadd.f32 %v4036_v47, %v15903_v34  ;;  %v6688_v12 = vpop.f32.mrf.mxu0 }
 0xc67   :  { %v7944_v23 = vmax.f32 %v13656_v24, %v7756_v22  ;;  %v6953_v0 = vadd.f32 %v6688_v12, %v5983_v41 }
 0xc68   :  { %v5014_v36 = vadd.f32 %v4750_v4, %v4037_v56 }
 0xc69   :  { %v7213_v9 = vadd.f32 %v13930_v10, %v6953_v0  ;;  %v14026_v52 = vadd.f32 %v8012_v3, %v7944_v23 }
 0xc6a   :  { %v4753_v59 = vpop.f32.mrf.mxu2  ;;  %v5984_v63 = vadd.f32 %v5720_v42, %v5014_v36 }
 0xc6b   :  { %v8064_v14 = vpack.c.bf16 %v14026_v52, %v14024_v2  ;;  %v7469_v26 = vmax.f32 %v7213_v9, 0.0 }
 0xc6c   :  { %v5723_v8 = vpop.f32.mrf.mxu3 }
 0xc6d   :  { %v4039_v6 = vpop.f32.mrf.mxu1  ;;  %v7757_v51 = vmul.f32 %v13723_v29, %v7469_v26 }
 0xc6e   :  { %v4040_v33 = vadd.f32 %v4039_v6, %v15904_v16  ;;  %v6690_v7 = vpop.f32.mrf.mxu0 }
 0xc6f   :  { %v6954_v24 = vadd.f32 %v6690_v7, %v5984_v63  ;;  %v7951_v32 = vmax.f32 %v13667_v35, %v7757_v51  ;;  %v8015_v51 = vld [vmem:[%s14094_s4 + $0xe0] sm:$0xff] }
 0xc70   :  { %v5015_v25 = vadd.f32 %v4753_v59, %v4040_v33  ;;  %v15907_v33 = vld [vmem:[#allocation382_spill] sm:$0xff] }
 0xc71   :  { %v7214_v60 = vadd.f32 %v13930_v10, %v6954_v24  ;;  %v8045_v42 = vadd.f32 %v8013_v15, %v7951_v32 }
 0xc72   :  { %v4755_v17 = vpop.f32.mrf.mxu2  ;;  %v5985_v57 = vadd.f32 %v5723_v8, %v5015_v25  ;;  %v8016_v25 = vld [vmem:[%s14094_s4 + $0xe8] sm:$0xff] }
 0xc73   :  { %v7470_v21 = vmax.f32 %v7214_v60, 0.0 }
 0xc74   :  { %v5725_v4 = vpop.f32.mrf.mxu3 }
 0xc75   :  { %v7758_v11 = vmul.f32 %v13723_v29, %v7470_v21  ;;  %v4041_v45 = vpop.f32.mrf.mxu1 }
 0xc76   :  { %v4042_v46 = vadd.f32 %v4041_v45, %v15905_v44  ;;  %v6693_v43 = vpop.f32.mrf.mxu0 }
 0xc77   :  { %v7958_v40 = vmax.f32 %v13676_v30, %v7758_v11  ;;  %v6955_v19 = vadd.f32 %v6693_v43, %v5985_v57 }
 0xc78   :  { %v5016_v35 = vadd.f32 %v4755_v17, %v4042_v46 }
 0xc79   :  { %v7215_v58 = vadd.f32 %v13930_v10, %v6955_v19  ;;  %v8046_v22 = vadd.f32 %v8014_v39, %v7958_v40 }
 0xc7a   :  { %v5986_v56 = vadd.f32 %v5725_v4, %v5016_v35  ;;  %v4758_v12 = vpop.f32.mrf.mxu2 }
 0xc7b   :  { %v8065_v47 = vpack.c.bf16 %v8046_v22, %v8045_v42  ;;  %v7471_v41 = vmax.f32 %v7215_v58, 0.0  ;;  %v8017_v58 = vld [vmem:[%s14094_s4 + $0xf0] sm:$0xff]  ;;  %v8018_v42 = vld [vmem:[%s14094_s4 + $0xf8] sm:$0xff] }
 0xc7c   :  { %v5728_v59 = vpop.f32.mrf.mxu3 }
 0xc7d   :  { %v4044_v34 = vpop.f32.mrf.mxu1  ;;  %v7759_v36 = vmul.f32 %v13723_v29, %v7471_v41 }
 0xc7e   :  { %v4045_v3 = vadd.f32 %v4044_v34, %v15906_v61  ;;  %v6695_v23 = vpop.f32.mrf.mxu0 }
 0xc7f   :  { %v6956_v0 = vadd.f32 %v6695_v23, %v5986_v56  ;;  %v7965_v6 = vmax.f32 %v13687_v37, %v7759_v36 }
 0xc80   :  { %v5017_v9 = vadd.f32 %v4758_v12, %v4045_v3 }
 0xc81   :  { %v7216_v30 = vadd.f32 %v13930_v10, %v6956_v0  ;;  %v8047_v11 = vadd.f32 %v8015_v51, %v7965_v6 }
 0xc82   :  { %v5987_v16 = vadd.f32 %v5728_v59, %v5017_v9  ;;  %v4760_v17 = vpop.f32.mrf.mxu2 }
 0xc83   :  { %v7472_v26 = vmax.f32 %v7216_v30, 0.0 }
 0xc84   :  { %v5730_v44 = vpop.f32.mrf.mxu3 }
 0xc85   :  { %v7760_v63 = vmul.f32 %v13723_v29, %v7472_v26  ;;  %v4046_v8 = vpop.f32.mrf.mxu1 }
 0xc86   :  { %v4047_v7 = vadd.f32 %v4046_v8, %v15907_v33  ;;  %v6698_v24 = vpop.f32.mrf.mxu0 }
 0xc87   :  { %v7972_v60 = vmax.f32 %v13696_v20, %v7760_v63  ;;  %v6957_v21 = vadd.f32 %v6698_v24, %v5987_v16 }
 0xc88   :  { %v5018_v37 = vadd.f32 %v4760_v17, %v4047_v7 }
 0xc89   :  { %v7217_v32 = vadd.f32 %v13930_v10, %v6957_v21  ;;  %v8048_v45 = vadd.f32 %v8016_v25, %v7972_v60 }
 0xc8a   :  { %v5988_v43 = vadd.f32 %v5730_v44, %v5018_v37 }
 0xc8b   :  { %v8066_v57 = vpack.c.bf16 %v8048_v45, %v8047_v11  ;;  %v7473_v46 = vmax.f32 %v7217_v32, 0.0 }
 0xc8d   :  { %v7761_v40 = vmul.f32 %v13723_v29, %v7473_v46 }
 0xc8e   :  { %v6700_v15 = vpop.f32.mrf.mxu0 }
 0xc8f   :  { %v6958_v39 = vadd.f32 %v6700_v15, %v5988_v43  ;;  %v7979_v20 = vmax.f32 %v13707_v13, %v7761_v40 }
 0xc91   :  { %v7218_v19 = vadd.f32 %v13930_v10, %v6958_v39  ;;  %v8049_v41 = vadd.f32 %v8017_v58, %v7979_v20 }
 0xc93   :  { %v7474_v4 = vmax.f32 %v7218_v19, 0.0 }
 0xc95   :  { %v7762_v35 = vmul.f32 %v13723_v29, %v7474_v4  ;;  %v8072_v29 = vpop.permute.xlu0 %8071 }
 0xc96   :  { %v8074_v10 = vperm.slane %v8072_v29, 0 }
 0xc97   :  { %v7986_v22 = vmax.f32 %v13716_v38, %v7762_v35 }
 0xc99   :  { %v8050_v34 = vadd.f32 %v8018_v42, %v7986_v22 }
 0xc9b   :  { %v8067_v56 = vpack.c.bf16 %v8050_v34, %v8049_v41 }
 0xc9d   :  { %8088 = vmatpush.bf16.xpose.msra.mxu2 %v8067_v56 }
 0xca5   :  { %8089 = vmatpush.bf16.xpose.msra.mxu2 %v8066_v57 }
 0xcad   :  { %8090 = vmatpush.bf16.xpose.msra.mxu2 %v8065_v47 }
 0xcb5   :  { %8091 = vmatpush.bf16.xpose.msra.mxu2 %v8064_v14 }
 0xcbd   :  { %8092 = vmatpush.bf16.xpose.msra.mxu2 %v8063_v48 }
 0xcc5   :  { %8093 = vmatpush.bf16.xpose.msra.mxu2 %v8062_v62 }
 0xccd   :  { %8094 = vmatpush.bf16.xpose.msra.mxu2 %v8061_v55 }
 0xcd5   :  { %8095 = vmatpush.bf16.xpose.msra.mxu2 %v8060_v27 }
 0xcd9   :  { %v8084_v13 = vpop.f32.mrf.mxu1 }
 0xcda   :  { %v8085_v48 = vadd.f32 %v8084_v13, %v8074_v10 }
 0xcdc   :  { %8096 = vmatmul.bf16.vlgmr.msra.gmra.mxu2 %v14001_v18 }
 0xce1   :  { %v8086_v38 = vpop.f32.mrf.mxu1 }
 0xd5f   :  { %v8097_v49 = vpop.f32.mrf.mxu2 }
 0xd60   :  { %v8098_v50 = vadd.f32 %v8097_v49, %v8074_v10 }
 0xd62   :  { %v8103_v1 = vrot.slane %v8098_v50, 7 }
 0xd64   :  { %v8105_v62 = vsel %vm8104_vm0, %v8085_v48, %v8103_v1 }
 0xd65   :  { %8111 = vst.msk [vmem:[%s14096_s7] sm:$0x3] %vm8109_vm1, %v8105_v62 }
 0xd67   :  { %v8099_v54 = vpop.f32.mrf.mxu2 }

</bundles_post_ra>
